<compile_context>
chip_gen: v6e
topology: v6e:2x2x1
jax: 0.10.0
libtpu: 0.0.40
codegen_flags: <defaults>
</compile_context>

<pallas_src>
import functools

import jax
import jax.numpy as jnp
from jax.experimental import pallas as pl
from jax.experimental.pallas import tpu as pltpu

# ----------------------------- config ---------------------------------------
VOCAB = 64
D_MODEL = 32
N_HEADS = 4
N_LAYERS = 2
HIDDEN = 64
MAX_SEQ = 16
EPS = 1e-5
HEAD_DIM = D_MODEL // N_HEADS
LANES = 128       # slab lane width (lane-dense)
ROW_ALIGN = 8     # sublane alignment for every packed parameter

_VMEM = pl.BlockSpec(memory_space=pltpu.MemorySpace.VMEM)


def _round_up(n, m):
    return -(-n // m) * m


# ----------------------------- slab packing ----------------------------------
def _pack_slab(parts, dtype):
    """Stack 2-D params along sublanes; zero-pad each to (8k, 128)."""
    padded = []
    for a in parts:
        a = jnp.asarray(a, dtype)
        r, c = a.shape
        padded.append(jnp.pad(a, ((0, _round_up(r, ROW_ALIGN) - r),
                                  (0, LANES - c))))
    return jnp.concatenate(padded, axis=0)


class _SlabReader:
    """Reads packed params back out of a slab ref with static slices.

    MUST consume params in exactly the order pack_params() packed them.
    """

    def __init__(self, ref):
        self._ref = ref
        self._row = 0

    def take(self, rows, cols=None):
        r0 = self._row
        self._row += _round_up(rows, ROW_ALIGN)
        if cols is None:
            return self._ref[r0:r0 + rows, :]          # full 128 lanes
        return self._ref[r0:r0 + rows, :cols]


# ------------------------- in-kernel building blocks -------------------------
def _layernorm(x, g, b):
    mean = jnp.mean(x, axis=-1, keepdims=True)
    c = x - mean
    var = jnp.mean(c * c, axis=-1, keepdims=True)
    return c * jax.lax.rsqrt(var + EPS) * g + b


def _mha(q3, k3, v3, wo, bo, batch, s_q):
    """q3: (B, s_q, D) f32; k3/v3: (B, s_kv, D) f32; wo: (D, D) bf16.

    Batch is folded into dot_general batch dims; heads are 4 static lane
    slices; output projection accumulated per head (no lane concatenate).
    """
    scale = 1.0 / float(HEAD_DIM) ** 0.5
    q16 = (q3 * scale).astype(jnp.bfloat16)
    k16 = k3.astype(jnp.bfloat16)
    v16 = v3.astype(jnp.bfloat16)
    acc = None
    for h in range(N_HEADS):
        lo, hi = h * HEAD_DIM, (h + 1) * HEAD_DIM
        s = jax.lax.dot_general(
            q16[:, :, lo:hi], k16[:, :, lo:hi],
            (((2,), (2,)), ((0,), (0,))),
            preferred_element_type=jnp.float32)              # (B, s_q, s_kv)
        s = s - jnp.max(s, axis=-1, keepdims=True)
        p = jnp.exp(s)
        p = p * pl.reciprocal(jnp.sum(p, axis=-1, keepdims=True), approx=True)
        oh = jax.lax.dot_general(
            p.astype(jnp.bfloat16), v16[:, :, lo:hi],
            (((2,), (1,)), ((0,), (0,))),
            preferred_element_type=jnp.float32)              # (B, s_q, dh)
        contrib = jnp.dot(
            oh.reshape(batch * s_q, HEAD_DIM).astype(jnp.bfloat16),
            wo[lo:hi, :], preferred_element_type=jnp.float32)  # (B*s_q, D)
        acc = contrib if acc is None else acc + contrib
    return acc + bo


def _self_attn(x, wqkv, bqkv, wo, bo, batch, s):
    qkv = jnp.dot(x.astype(jnp.bfloat16), wqkv,
                  preferred_element_type=jnp.float32) + bqkv   # (B*s, 3D)
    q3 = qkv[:, 0:D_MODEL].reshape(batch, s, D_MODEL)
    k3 = qkv[:, D_MODEL:2 * D_MODEL].reshape(batch, s, D_MODEL)
    v3 = qkv[:, 2 * D_MODEL:3 * D_MODEL].reshape(batch, s, D_MODEL)
    return _mha(q3, k3, v3, wo, bo, batch, s)


def _cross_attn(y, mem, wq, bq, wkv, bkv, wo, bo, batch, s_q, s_kv):
    q = jnp.dot(y.astype(jnp.bfloat16), wq,
                preferred_element_type=jnp.float32) + bq       # (B*s_q, D)
    kv = jnp.dot(mem.astype(jnp.bfloat16), wkv,
                 preferred_element_type=jnp.float32) + bkv     # (B*s_kv, 2D)
    q3 = q.reshape(batch, s_q, D_MODEL)
    k3 = kv[:, 0:D_MODEL].reshape(batch, s_kv, D_MODEL)
    v3 = kv[:, D_MODEL:2 * D_MODEL].reshape(batch, s_kv, D_MODEL)
    return _mha(q3, k3, v3, wo, bo, batch, s_q)


def _ffn(x, w1, b1, w2, b2):
    h = jnp.dot(x.astype(jnp.bfloat16), w1,
                preferred_element_type=jnp.float32) + b1
    h = jnp.maximum(h, 0.0)
    return jnp.dot(h.astype(jnp.bfloat16), w2,
                   preferred_element_type=jnp.float32) + b2


def _embed(tok_ref, emb, pos, batch, s):
    """One-hot embedding gather on the MXU + positional-encoding add."""
    n = batch * s
    ids = tok_ref[...]                                         # (n, 1) int32
    onehot = jnp.where(
        jax.lax.broadcasted_iota(jnp.int32, (n, VOCAB), 1) == ids,
        1.0, 0.0).astype(jnp.bfloat16)
    x = jnp.dot(onehot, emb, preferred_element_type=jnp.float32)   # (n, D)
    return x + jnp.concatenate([pos] * batch, axis=0)


# ----------------------------- fused kernel ----------------------------------
def _fused_kernel(src_ref, tgt_ref, w_ref, b_ref, out_ref, *,
                  batch, s_src, s_tgt):
    wr = _SlabReader(w_ref)     # bf16 matmul weights
    br = _SlabReader(b_ref)     # f32 biases / LN params / pos-enc

    emb = wr.take(VOCAB, D_MODEL)            # (64, 32) bf16
    pos = br.take(MAX_SEQ, D_MODEL)          # (16, 32) f32

    x = _embed(src_ref, emb, pos[:s_src, :], batch, s_src)     # (B*S_src, D)
    y = _embed(tgt_ref, emb, pos[:s_tgt, :], batch, s_tgt)     # (B*S_tgt, D)

    # -------- encoder stack (post-norm) --------
    for _ in range(N_LAYERS):
        wqkv = wr.take(D_MODEL, 3 * D_MODEL)
        wo = wr.take(D_MODEL, D_MODEL)
        w1 = wr.take(D_MODEL, HIDDEN)
        w2 = wr.take(HIDDEN, D_MODEL)
        bqkv = br.take(1, 3 * D_MODEL)
        bo = br.take(1, D_MODEL)
        ln1_g = br.take(1, D_MODEL)
        ln1_b = br.take(1, D_MODEL)
        b1 = br.take(1, HIDDEN)
        b2 = br.take(1, D_MODEL)
        ln2_g = br.take(1, D_MODEL)
        ln2_b = br.take(1, D_MODEL)
        a = _self_attn(x, wqkv, bqkv, wo, bo, batch, s_src)
        x = _layernorm(x + a, ln1_g, ln1_b)
        f = _ffn(x, w1, b1, w2, b2)
        x = _layernorm(x + f, ln2_g, ln2_b)
    enc_g = br.take(1, D_MODEL)
    enc_b = br.take(1, D_MODEL)
    mem = _layernorm(x, enc_g, enc_b)        # encoder final norm

    # -------- decoder stack (post-norm) --------
    for _ in range(N_LAYERS):
        sa_wqkv = wr.take(D_MODEL, 3 * D_MODEL)
        sa_wo = wr.take(D_MODEL, D_MODEL)
        ca_wq = wr.take(D_MODEL, D_MODEL)
        ca_wkv = wr.take(D_MODEL, 2 * D_MODEL)
        ca_wo = wr.take(D_MODEL, D_MODEL)
        w1 = wr.take(D_MODEL, HIDDEN)
        w2 = wr.take(HIDDEN, D_MODEL)
        sa_bqkv = br.take(1, 3 * D_MODEL)
        sa_bo = br.take(1, D_MODEL)
        ln1_g = br.take(1, D_MODEL)
        ln1_b = br.take(1, D_MODEL)
        ca_bq = br.take(1, D_MODEL)
        ca_bkv = br.take(1, 2 * D_MODEL)
        ca_bo = br.take(1, D_MODEL)
        ln2_g = br.take(1, D_MODEL)
        ln2_b = br.take(1, D_MODEL)
        b1 = br.take(1, HIDDEN)
        b2 = br.take(1, D_MODEL)
        ln3_g = br.take(1, D_MODEL)
        ln3_b = br.take(1, D_MODEL)
        a = _self_attn(y, sa_wqkv, sa_bqkv, sa_wo, sa_bo, batch, s_tgt)
        y = _layernorm(y + a, ln1_g, ln1_b)
        c = _cross_attn(y, mem, ca_wq, ca_bq, ca_wkv, ca_bkv, ca_wo, ca_bo,
                        batch, s_tgt, s_src)
        y = _layernorm(y + c, ln2_g, ln2_b)
        f = _ffn(y, w1, b1, w2, b2)
        y = _layernorm(y + f, ln3_g, ln3_b)
    dec_g = br.take(1, D_MODEL)
    dec_b = br.take(1, D_MODEL)
    y = _layernorm(y, dec_g, dec_b)          # decoder final norm

    # -------- lane-dense final fc (VOCAB zero-padded to 128 lanes) --------
    fc_w = wr.take(D_MODEL)                  # (32, 128) bf16, cols>=64 are 0
    fc_b = br.take(1)                        # (1, 128) f32, cols>=64 are 0
    logits = jnp.dot(y.astype(jnp.bfloat16), fc_w,
                     preferred_element_type=jnp.float32) + fc_b
    out_ref[...] = logits.astype(out_ref.dtype)


# ----------------------------- param packing ---------------------------------
def pack_params(params):
    """One-time (outside jit) packing of all params into two slabs.

    Order here MUST match the _SlabReader.take() order in _fused_kernel.
    """
    w_parts = [params["embedding"]]
    b_parts = [params["pos_enc"]]
    for lp in params["enc_layers"]:
        a, f = lp["attn"], lp["ffn"]
        w_parts += [a["wqkv"], a["wo"], f["w1"], f["w2"]]
        b_parts += [a["bqkv"], a["bo"], lp["ln1_g"], lp["ln1_b"],
                    f["b1"], f["b2"], lp["ln2_g"], lp["ln2_b"]]
    b_parts += [params["enc_norm_g"], params["enc_norm_b"]]
    for lp in params["dec_layers"]:
        sa, ca, f = lp["self_attn"], lp["cross_attn"], lp["ffn"]
        w_parts += [sa["wqkv"], sa["wo"], ca["wq"], ca["wkv"], ca["wo"],
                    f["w1"], f["w2"]]
        b_parts += [sa["bqkv"], sa["bo"], lp["ln1_g"], lp["ln1_b"],
                    ca["bq"], ca["bkv"], ca["bo"], lp["ln2_g"], lp["ln2_b"],
                    f["b1"], f["b2"], lp["ln3_g"], lp["ln3_b"]]
    b_parts += [params["dec_norm_g"], params["dec_norm_b"], params["fc_b"]]
    w_parts += [params["fc_w"]]
    return {"w_slab": _pack_slab(w_parts, jnp.bfloat16),
            "b_slab": _pack_slab(b_parts, jnp.float32)}


# ----------------------------- forward wrapper --------------------------------
def transformer_forward(packed, src, tgt):
    b, s_src = src.shape
    _, s_tgt = tgt.shape
    src_ids = src.reshape(b * s_src, 1).astype(jnp.int32)
    tgt_ids = tgt.reshape(b * s_tgt, 1).astype(jnp.int32)

    kernel = functools.partial(_fused_kernel, batch=b, s_src=s_src,
                               s_tgt=s_tgt)
    out = pl.pallas_call(
        kernel,
        out_shape=jax.ShapeDtypeStruct((b * s_tgt, LANES), jnp.float32),
        in_specs=[_VMEM, _VMEM, _VMEM, _VMEM],
        out_specs=_VMEM,
    )(src_ids, tgt_ids, packed["w_slab"], packed["b_slab"])
    return out[:, :VOCAB].reshape(b, s_tgt, VOCAB)


# ----------------------------- parameter init ---------------------------------
def _self_attn_params(key, d):
    k1, k2 = jax.random.split(key)
    return {
        "wqkv": 0.02 * jax.random.normal(k1, (d, 3 * d), jnp.float32),
        "bqkv": jnp.zeros((1, 3 * d), jnp.float32),
        "wo": 0.02 * jax.random.normal(k2, (d, d), jnp.float32),
        "bo": jnp.zeros((1, d), jnp.float32),
    }


def _cross_attn_params(key, d):
    k1, k2, k3 = jax.random.split(key, 3)
    return {
        "wq": 0.02 * jax.random.normal(k1, (d, d), jnp.float32),
        "bq": jnp.zeros((1, d), jnp.float32),
        "wkv": 0.02 * jax.random.normal(k2, (d, 2 * d), jnp.float32),
        "bkv": jnp.zeros((1, 2 * d), jnp.float32),
        "wo": 0.02 * jax.random.normal(k3, (d, d), jnp.float32),
        "bo": jnp.zeros((1, d), jnp.float32),
    }


def _ffn_params(key, d, h):
    k1, k2 = jax.random.split(key)
    return {
        "w1": 0.02 * jax.random.normal(k1, (d, h), jnp.float32),
        "b1": jnp.zeros((1, h), jnp.float32),
        "w2": 0.02 * jax.random.normal(k2, (h, d), jnp.float32),
        "b2": jnp.zeros((1, d), jnp.float32),
    }


def _ln(d):
    return jnp.ones((1, d), jnp.float32), jnp.zeros((1, d), jnp.float32)


def _enc_layer_params(key, d, h):
    k1, k2 = jax.random.split(key)
    ln1_g, ln1_b = _ln(d)
    ln2_g, ln2_b = _ln(d)
    return {"attn": _self_attn_params(k1, d), "ffn": _ffn_params(k2, d, h),
            "ln1_g": ln1_g, "ln1_b": ln1_b, "ln2_g": ln2_g, "ln2_b": ln2_b}


def _dec_layer_params(key, d, h):
    k1, k2, k3 = jax.random.split(key, 3)
    ln1_g, ln1_b = _ln(d)
    ln2_g, ln2_b = _ln(d)
    ln3_g, ln3_b = _ln(d)
    return {"self_attn": _self_attn_params(k1, d),
            "cross_attn": _cross_attn_params(k2, d),
            "ffn": _ffn_params(k3, d, h),
            "ln1_g": ln1_g, "ln1_b": ln1_b,
            "ln2_g": ln2_g, "ln2_b": ln2_b,
            "ln3_g": ln3_g, "ln3_b": ln3_b}


def init_params(key):
    keys = jax.random.split(key, 4 + 2 * N_LAYERS)
    enc_norm_g, enc_norm_b = _ln(D_MODEL)
    dec_norm_g, dec_norm_b = _ln(D_MODEL)
    return {
        "embedding": 0.02 * jax.random.normal(keys[0], (VOCAB, D_MODEL),
                                              jnp.float32),
        # PyTorch initializes positional_encoding to zeros
        "pos_enc": jnp.zeros((MAX_SEQ, D_MODEL), jnp.float32),
        "fc_w": 0.02 * jax.random.normal(keys[1], (D_MODEL, VOCAB),
                                         jnp.float32),
        "fc_b": jnp.zeros((1, VOCAB), jnp.float32),
        "enc_norm_g": enc_norm_g, "enc_norm_b": enc_norm_b,
        "dec_norm_g": dec_norm_g, "dec_norm_b": dec_norm_b,
        "enc_layers": [_enc_layer_params(keys[4 + i], D_MODEL, HIDDEN)
                       for i in range(N_LAYERS)],
        "dec_layers": [_dec_layer_params(keys[4 + N_LAYERS + i], D_MODEL,
                                         HIDDEN) for i in range(N_LAYERS)],
    }


# ----------------------------- main -------------------------------------------
if __name__ == "__main__":
    key = jax.random.PRNGKey(0)
    k_param, k_src, k_tgt = jax.random.split(key, 3)

    params = init_params(k_param)
    packed = pack_params(params)          # one-time slab packing (outside jit)

    B, S_SRC, S_TGT = 2, 8, 8
    src = jax.random.randint(k_src, (B, S_SRC), 0, VOCAB, dtype=jnp.int32)
    tgt = jax.random.randint(k_tgt, (B, S_TGT), 0, VOCAB, dtype=jnp.int32)

    fwd = jax.jit(transformer_forward)
    logits = fwd(packed, src, tgt)
    logits = jax.block_until_ready(logits)

    assert logits.shape == (B, S_TGT, VOCAB), logits.shape
    assert logits.dtype == jnp.float32
    assert bool(jnp.all(jnp.isfinite(logits)))
    print("KERNEL_OK")
</pallas_src>

<mosaic_0001>
module attributes {stable_mosaic.version = 11 : i64} {
  func.func @_fused_kernel(%arg0: memref<16x1xi32, #tpu.memory_space<vmem>>, %arg1: memref<16x1xi32, #tpu.memory_space<vmem>>, %arg2: memref<928x128xbf16, #tpu.memory_space<vmem>>, %arg3: memref<392x128xf32, #tpu.memory_space<vmem>>, %arg4: memref<16x128xf32, #tpu.memory_space<vmem>>) attributes {dimension_semantics = [], scalar_prefetch = 0 : i64, scratch_operands = 0 : i64, tpu.core_type = #tpu.core_type<tc>} {
    %c0 = arith.constant 0 : index
    %c0_0 = arith.constant 0 : index
    %0 = vector.load %arg2[%c0, %c0_0] : memref<928x128xbf16, #tpu.memory_space<vmem>>, vector<64x32xbf16>
    %c0_1 = arith.constant 0 : index
    %c0_2 = arith.constant 0 : index
    %1 = vector.load %arg3[%c0_1, %c0_2] : memref<392x128xf32, #tpu.memory_space<vmem>>, vector<16x32xf32>
    %2 = vector.extract_strided_slice %1 {offsets = [0, 0], sizes = [8, 32], strides = [1, 1]} : vector<16x32xf32> to vector<8x32xf32>
    %c0_3 = arith.constant 0 : index
    %c0_4 = arith.constant 0 : index
    %3 = vector.load %arg0[%c0_3, %c0_4] : memref<16x1xi32, #tpu.memory_space<vmem>>, vector<16x1xi32>
    %4 = tpu.iota {dimensions = array<i32: 1>} : vector<16x64xi32>
    %5 = vector.broadcast %3 : vector<16x1xi32> to vector<16x64xi32>
    %6 = arith.cmpi eq, %4, %5 : vector<16x64xi32>
    %cst = arith.constant 1.000000e+00 : f32
    %cst_5 = arith.constant 0.000000e+00 : f32
    %7 = vector.broadcast %cst : f32 to vector<16x64xf32>
    %8 = vector.broadcast %cst_5 : f32 to vector<16x64xf32>
    %9 = arith.select %6, %7, %8 : vector<16x64xi1>, vector<16x64xf32>
    %10 = arith.truncf %9 : vector<16x64xf32> to vector<16x64xbf16>
    %cst_6 = arith.constant dense<0.000000e+00> : vector<16x32xf32>
    %11 = tpu.matmul %10, %0, %cst_6 {dimension_numbers = #tpu.dot_dimension_numbers<[1], [0], [0], [1], [0, 0, 1, 1], [], []>} : vector<16x64xbf16>, vector<64x32xbf16>, vector<16x32xf32> -> vector<16x32xf32>
    %12 = tpu.concatenate %2, %2 in 0 : vector<8x32xf32>, vector<8x32xf32> -> vector<16x32xf32>
    %13 = arith.addf %11, %12 : vector<16x32xf32>
    %14 = vector.extract_strided_slice %1 {offsets = [0, 0], sizes = [8, 32], strides = [1, 1]} : vector<16x32xf32> to vector<8x32xf32>
    %c0_7 = arith.constant 0 : index
    %c0_8 = arith.constant 0 : index
    %15 = vector.load %arg1[%c0_7, %c0_8] : memref<16x1xi32, #tpu.memory_space<vmem>>, vector<16x1xi32>
    %16 = tpu.iota {dimensions = array<i32: 1>} : vector<16x64xi32>
    %17 = vector.broadcast %15 : vector<16x1xi32> to vector<16x64xi32>
    %18 = arith.cmpi eq, %16, %17 : vector<16x64xi32>
    %cst_9 = arith.constant 1.000000e+00 : f32
    %cst_10 = arith.constant 0.000000e+00 : f32
    %19 = vector.broadcast %cst_9 : f32 to vector<16x64xf32>
    %20 = vector.broadcast %cst_10 : f32 to vector<16x64xf32>
    %21 = arith.select %18, %19, %20 : vector<16x64xi1>, vector<16x64xf32>
    %22 = arith.truncf %21 : vector<16x64xf32> to vector<16x64xbf16>
    %cst_11 = arith.constant dense<0.000000e+00> : vector<16x32xf32>
    %23 = tpu.matmul %22, %0, %cst_11 {dimension_numbers = #tpu.dot_dimension_numbers<[1], [0], [0], [1], [0, 0, 1, 1], [], []>} : vector<16x64xbf16>, vector<64x32xbf16>, vector<16x32xf32> -> vector<16x32xf32>
    %24 = tpu.concatenate %14, %14 in 0 : vector<8x32xf32>, vector<8x32xf32> -> vector<16x32xf32>
    %25 = arith.addf %23, %24 : vector<16x32xf32>
    %c64 = arith.constant 64 : index
    %c0_12 = arith.constant 0 : index
    %26 = vector.load %arg2[%c64, %c0_12] : memref<928x128xbf16, #tpu.memory_space<vmem>>, vector<32x96xbf16>
    %c96 = arith.constant 96 : index
    %c0_13 = arith.constant 0 : index
    %27 = vector.load %arg2[%c96, %c0_13] : memref<928x128xbf16, #tpu.memory_space<vmem>>, vector<32x32xbf16>
    %c128 = arith.constant 128 : index
    %c0_14 = arith.constant 0 : index
    %28 = vector.load %arg2[%c128, %c0_14] : memref<928x128xbf16, #tpu.memory_space<vmem>>, vector<32x64xbf16>
    %c160 = arith.constant 160 : index
    %c0_15 = arith.constant 0 : index
    %29 = vector.load %arg2[%c160, %c0_15] : memref<928x128xbf16, #tpu.memory_space<vmem>>, vector<64x32xbf16>
    %c16 = arith.constant 16 : index
    %c0_16 = arith.constant 0 : index
    %30 = vector.load %arg3[%c16, %c0_16] : memref<392x128xf32, #tpu.memory_space<vmem>>, vector<1x96xf32>
    %c24 = arith.constant 24 : index
    %c0_17 = arith.constant 0 : index
    %31 = vector.load %arg3[%c24, %c0_17] : memref<392x128xf32, #tpu.memory_space<vmem>>, vector<1x32xf32>
    %c32 = arith.constant 32 : index
    %c0_18 = arith.constant 0 : index
    %32 = vector.load %arg3[%c32, %c0_18] : memref<392x128xf32, #tpu.memory_space<vmem>>, vector<1x32xf32>
    %c40 = arith.constant 40 : index
    %c0_19 = arith.constant 0 : index
    %33 = vector.load %arg3[%c40, %c0_19] : memref<392x128xf32, #tpu.memory_space<vmem>>, vector<1x32xf32>
    %c48 = arith.constant 48 : index
    %c0_20 = arith.constant 0 : index
    %34 = vector.load %arg3[%c48, %c0_20] : memref<392x128xf32, #tpu.memory_space<vmem>>, vector<1x64xf32>
    %c56 = arith.constant 56 : index
    %c0_21 = arith.constant 0 : index
    %35 = vector.load %arg3[%c56, %c0_21] : memref<392x128xf32, #tpu.memory_space<vmem>>, vector<1x32xf32>
    %c64_22 = arith.constant 64 : index
    %c0_23 = arith.constant 0 : index
    %36 = vector.load %arg3[%c64_22, %c0_23] : memref<392x128xf32, #tpu.memory_space<vmem>>, vector<1x32xf32>
    %c72 = arith.constant 72 : index
    %c0_24 = arith.constant 0 : index
    %37 = vector.load %arg3[%c72, %c0_24] : memref<392x128xf32, #tpu.memory_space<vmem>>, vector<1x32xf32>
    %38 = arith.truncf %13 : vector<16x32xf32> to vector<16x32xbf16>
    %cst_25 = arith.constant dense<0.000000e+00> : vector<16x96xf32>
    %39 = tpu.matmul %38, %26, %cst_25 {dimension_numbers = #tpu.dot_dimension_numbers<[1], [0], [0], [1], [0, 0, 1, 1], [], []>} : vector<16x32xbf16>, vector<32x96xbf16>, vector<16x96xf32> -> vector<16x96xf32>
    %40 = vector.broadcast %30 : vector<1x96xf32> to vector<16x96xf32>
    %41 = arith.addf %39, %40 : vector<16x96xf32>
    %42 = vector.extract_strided_slice %41 {offsets = [0, 0], sizes = [16, 32], strides = [1, 1]} : vector<16x96xf32> to vector<16x32xf32>
    %43 = vector.shape_cast %42 : vector<16x32xf32> to vector<2x8x32xf32>
    %44 = vector.extract_strided_slice %41 {offsets = [0, 32], sizes = [16, 32], strides = [1, 1]} : vector<16x96xf32> to vector<16x32xf32>
    %45 = vector.shape_cast %44 : vector<16x32xf32> to vector<2x8x32xf32>
    %46 = vector.extract_strided_slice %41 {offsets = [0, 64], sizes = [16, 32], strides = [1, 1]} : vector<16x96xf32> to vector<16x32xf32>
    %47 = vector.shape_cast %46 : vector<16x32xf32> to vector<2x8x32xf32>
    %cst_26 = arith.constant 0.353553385 : f32
    %48 = vector.broadcast %cst_26 : f32 to vector<2x8x32xf32>
    %49 = arith.mulf %43, %48 : vector<2x8x32xf32>
    %50 = arith.truncf %49 : vector<2x8x32xf32> to vector<2x8x32xbf16>
    %51 = arith.truncf %45 : vector<2x8x32xf32> to vector<2x8x32xbf16>
    %52 = arith.truncf %47 : vector<2x8x32xf32> to vector<2x8x32xbf16>
    %53 = vector.extract_strided_slice %50 {offsets = [0, 0, 0], sizes = [2, 8, 8], strides = [1, 1, 1]} : vector<2x8x32xbf16> to vector<2x8x8xbf16>
    %54 = vector.extract_strided_slice %51 {offsets = [0, 0, 0], sizes = [2, 8, 8], strides = [1, 1, 1]} : vector<2x8x32xbf16> to vector<2x8x8xbf16>
    %cst_27 = arith.constant dense<0.000000e+00> : vector<2x8x8xf32>
    %55 = tpu.matmul %53, %54, %cst_27 {dimension_numbers = #tpu.dot_dimension_numbers<[2], [2], [1], [1], [0, 0, 0, 1, 1, 1], [0], [0]>} : vector<2x8x8xbf16>, vector<2x8x8xbf16>, vector<2x8x8xf32> -> vector<2x8x8xf32>
    %cst_28 = arith.constant dense<0xFF800000> : vector<2x8xf32>
    %56 = vector.multi_reduction <maximumf>, %55, %cst_28 [2] : vector<2x8x8xf32> to vector<2x8xf32>
    %57 = vector.shape_cast %56 : vector<2x8xf32> to vector<2x8x1xf32>
    %58 = vector.broadcast %57 : vector<2x8x1xf32> to vector<2x8x8xf32>
    %59 = arith.subf %55, %58 : vector<2x8x8xf32>
    %60 = math.exp %59 : vector<2x8x8xf32>
    %cst_29 = arith.constant dense<0.000000e+00> : vector<2x8xf32>
    %61 = vector.multi_reduction <add>, %60, %cst_29 [2] : vector<2x8x8xf32> to vector<2x8xf32>
    %62 = vector.shape_cast %61 : vector<2x8xf32> to vector<2x8x1xf32>
    %63 = tpu.reciprocal %62 {approx = true} : vector<2x8x1xf32> -> vector<2x8x1xf32>
    %64 = vector.broadcast %63 : vector<2x8x1xf32> to vector<2x8x8xf32>
    %65 = arith.mulf %60, %64 : vector<2x8x8xf32>
    %66 = arith.truncf %65 : vector<2x8x8xf32> to vector<2x8x8xbf16>
    %67 = vector.extract_strided_slice %52 {offsets = [0, 0, 0], sizes = [2, 8, 8], strides = [1, 1, 1]} : vector<2x8x32xbf16> to vector<2x8x8xbf16>
    %cst_30 = arith.constant dense<0.000000e+00> : vector<2x8x8xf32>
    %68 = tpu.matmul %66, %67, %cst_30 {dimension_numbers = #tpu.dot_dimension_numbers<[2], [1], [1], [2], [0, 0, 0, 1, 1, 2], [0], [0]>} : vector<2x8x8xbf16>, vector<2x8x8xbf16>, vector<2x8x8xf32> -> vector<2x8x8xf32>
    %69 = vector.shape_cast %68 : vector<2x8x8xf32> to vector<16x8xf32>
    %70 = arith.truncf %69 : vector<16x8xf32> to vector<16x8xbf16>
    %71 = vector.extract_strided_slice %27 {offsets = [0, 0], sizes = [8, 32], strides = [1, 1]} : vector<32x32xbf16> to vector<8x32xbf16>
    %cst_31 = arith.constant dense<0.000000e+00> : vector<16x32xf32>
    %72 = tpu.matmul %70, %71, %cst_31 {dimension_numbers = #tpu.dot_dimension_numbers<[1], [0], [0], [1], [0, 0, 1, 1], [], []>} : vector<16x8xbf16>, vector<8x32xbf16>, vector<16x32xf32> -> vector<16x32xf32>
    %73 = vector.extract_strided_slice %50 {offsets = [0, 0, 8], sizes = [2, 8, 8], strides = [1, 1, 1]} : vector<2x8x32xbf16> to vector<2x8x8xbf16>
    %74 = vector.extract_strided_slice %51 {offsets = [0, 0, 8], sizes = [2, 8, 8], strides = [1, 1, 1]} : vector<2x8x32xbf16> to vector<2x8x8xbf16>
    %cst_32 = arith.constant dense<0.000000e+00> : vector<2x8x8xf32>
    %75 = tpu.matmul %73, %74, %cst_32 {dimension_numbers = #tpu.dot_dimension_numbers<[2], [2], [1], [1], [0, 0, 0, 1, 1, 1], [0], [0]>} : vector<2x8x8xbf16>, vector<2x8x8xbf16>, vector<2x8x8xf32> -> vector<2x8x8xf32>
    %cst_33 = arith.constant dense<0xFF800000> : vector<2x8xf32>
    %76 = vector.multi_reduction <maximumf>, %75, %cst_33 [2] : vector<2x8x8xf32> to vector<2x8xf32>
    %77 = vector.shape_cast %76 : vector<2x8xf32> to vector<2x8x1xf32>
    %78 = vector.broadcast %77 : vector<2x8x1xf32> to vector<2x8x8xf32>
    %79 = arith.subf %75, %78 : vector<2x8x8xf32>
    %80 = math.exp %79 : vector<2x8x8xf32>
    %cst_34 = arith.constant dense<0.000000e+00> : vector<2x8xf32>
    %81 = vector.multi_reduction <add>, %80, %cst_34 [2] : vector<2x8x8xf32> to vector<2x8xf32>
    %82 = vector.shape_cast %81 : vector<2x8xf32> to vector<2x8x1xf32>
    %83 = tpu.reciprocal %82 {approx = true} : vector<2x8x1xf32> -> vector<2x8x1xf32>
    %84 = vector.broadcast %83 : vector<2x8x1xf32> to vector<2x8x8xf32>
    %85 = arith.mulf %80, %84 : vector<2x8x8xf32>
    %86 = arith.truncf %85 : vector<2x8x8xf32> to vector<2x8x8xbf16>
    %87 = vector.extract_strided_slice %52 {offsets = [0, 0, 8], sizes = [2, 8, 8], strides = [1, 1, 1]} : vector<2x8x32xbf16> to vector<2x8x8xbf16>
    %cst_35 = arith.constant dense<0.000000e+00> : vector<2x8x8xf32>
    %88 = tpu.matmul %86, %87, %cst_35 {dimension_numbers = #tpu.dot_dimension_numbers<[2], [1], [1], [2], [0, 0, 0, 1, 1, 2], [0], [0]>} : vector<2x8x8xbf16>, vector<2x8x8xbf16>, vector<2x8x8xf32> -> vector<2x8x8xf32>
    %89 = vector.shape_cast %88 : vector<2x8x8xf32> to vector<16x8xf32>
    %90 = arith.truncf %89 : vector<16x8xf32> to vector<16x8xbf16>
    %91 = vector.extract_strided_slice %27 {offsets = [8, 0], sizes = [8, 32], strides = [1, 1]} : vector<32x32xbf16> to vector<8x32xbf16>
    %cst_36 = arith.constant dense<0.000000e+00> : vector<16x32xf32>
    %92 = tpu.matmul %90, %91, %cst_36 {dimension_numbers = #tpu.dot_dimension_numbers<[1], [0], [0], [1], [0, 0, 1, 1], [], []>} : vector<16x8xbf16>, vector<8x32xbf16>, vector<16x32xf32> -> vector<16x32xf32>
    %93 = arith.addf %72, %92 : vector<16x32xf32>
    %94 = vector.extract_strided_slice %50 {offsets = [0, 0, 16], sizes = [2, 8, 8], strides = [1, 1, 1]} : vector<2x8x32xbf16> to vector<2x8x8xbf16>
    %95 = vector.extract_strided_slice %51 {offsets = [0, 0, 16], sizes = [2, 8, 8], strides = [1, 1, 1]} : vector<2x8x32xbf16> to vector<2x8x8xbf16>
    %cst_37 = arith.constant dense<0.000000e+00> : vector<2x8x8xf32>
    %96 = tpu.matmul %94, %95, %cst_37 {dimension_numbers = #tpu.dot_dimension_numbers<[2], [2], [1], [1], [0, 0, 0, 1, 1, 1], [0], [0]>} : vector<2x8x8xbf16>, vector<2x8x8xbf16>, vector<2x8x8xf32> -> vector<2x8x8xf32>
    %cst_38 = arith.constant dense<0xFF800000> : vector<2x8xf32>
    %97 = vector.multi_reduction <maximumf>, %96, %cst_38 [2] : vector<2x8x8xf32> to vector<2x8xf32>
    %98 = vector.shape_cast %97 : vector<2x8xf32> to vector<2x8x1xf32>
    %99 = vector.broadcast %98 : vector<2x8x1xf32> to vector<2x8x8xf32>
    %100 = arith.subf %96, %99 : vector<2x8x8xf32>
    %101 = math.exp %100 : vector<2x8x8xf32>
    %cst_39 = arith.constant dense<0.000000e+00> : vector<2x8xf32>
    %102 = vector.multi_reduction <add>, %101, %cst_39 [2] : vector<2x8x8xf32> to vector<2x8xf32>
    %103 = vector.shape_cast %102 : vector<2x8xf32> to vector<2x8x1xf32>
    %104 = tpu.reciprocal %103 {approx = true} : vector<2x8x1xf32> -> vector<2x8x1xf32>
    %105 = vector.broadcast %104 : vector<2x8x1xf32> to vector<2x8x8xf32>
    %106 = arith.mulf %101, %105 : vector<2x8x8xf32>
    %107 = arith.truncf %106 : vector<2x8x8xf32> to vector<2x8x8xbf16>
    %108 = vector.extract_strided_slice %52 {offsets = [0, 0, 16], sizes = [2, 8, 8], strides = [1, 1, 1]} : vector<2x8x32xbf16> to vector<2x8x8xbf16>
    %cst_40 = arith.constant dense<0.000000e+00> : vector<2x8x8xf32>
    %109 = tpu.matmul %107, %108, %cst_40 {dimension_numbers = #tpu.dot_dimension_numbers<[2], [1], [1], [2], [0, 0, 0, 1, 1, 2], [0], [0]>} : vector<2x8x8xbf16>, vector<2x8x8xbf16>, vector<2x8x8xf32> -> vector<2x8x8xf32>
    %110 = vector.shape_cast %109 : vector<2x8x8xf32> to vector<16x8xf32>
    %111 = arith.truncf %110 : vector<16x8xf32> to vector<16x8xbf16>
    %112 = vector.extract_strided_slice %27 {offsets = [16, 0], sizes = [8, 32], strides = [1, 1]} : vector<32x32xbf16> to vector<8x32xbf16>
    %cst_41 = arith.constant dense<0.000000e+00> : vector<16x32xf32>
    %113 = tpu.matmul %111, %112, %cst_41 {dimension_numbers = #tpu.dot_dimension_numbers<[1], [0], [0], [1], [0, 0, 1, 1], [], []>} : vector<16x8xbf16>, vector<8x32xbf16>, vector<16x32xf32> -> vector<16x32xf32>
    %114 = arith.addf %93, %113 : vector<16x32xf32>
    %115 = vector.extract_strided_slice %50 {offsets = [0, 0, 24], sizes = [2, 8, 8], strides = [1, 1, 1]} : vector<2x8x32xbf16> to vector<2x8x8xbf16>
    %116 = vector.extract_strided_slice %51 {offsets = [0, 0, 24], sizes = [2, 8, 8], strides = [1, 1, 1]} : vector<2x8x32xbf16> to vector<2x8x8xbf16>
    %cst_42 = arith.constant dense<0.000000e+00> : vector<2x8x8xf32>
    %117 = tpu.matmul %115, %116, %cst_42 {dimension_numbers = #tpu.dot_dimension_numbers<[2], [2], [1], [1], [0, 0, 0, 1, 1, 1], [0], [0]>} : vector<2x8x8xbf16>, vector<2x8x8xbf16>, vector<2x8x8xf32> -> vector<2x8x8xf32>
    %cst_43 = arith.constant dense<0xFF800000> : vector<2x8xf32>
    %118 = vector.multi_reduction <maximumf>, %117, %cst_43 [2] : vector<2x8x8xf32> to vector<2x8xf32>
    %119 = vector.shape_cast %118 : vector<2x8xf32> to vector<2x8x1xf32>
    %120 = vector.broadcast %119 : vector<2x8x1xf32> to vector<2x8x8xf32>
    %121 = arith.subf %117, %120 : vector<2x8x8xf32>
    %122 = math.exp %121 : vector<2x8x8xf32>
    %cst_44 = arith.constant dense<0.000000e+00> : vector<2x8xf32>
    %123 = vector.multi_reduction <add>, %122, %cst_44 [2] : vector<2x8x8xf32> to vector<2x8xf32>
    %124 = vector.shape_cast %123 : vector<2x8xf32> to vector<2x8x1xf32>
    %125 = tpu.reciprocal %124 {approx = true} : vector<2x8x1xf32> -> vector<2x8x1xf32>
    %126 = vector.broadcast %125 : vector<2x8x1xf32> to vector<2x8x8xf32>
    %127 = arith.mulf %122, %126 : vector<2x8x8xf32>
    %128 = arith.truncf %127 : vector<2x8x8xf32> to vector<2x8x8xbf16>
    %129 = vector.extract_strided_slice %52 {offsets = [0, 0, 24], sizes = [2, 8, 8], strides = [1, 1, 1]} : vector<2x8x32xbf16> to vector<2x8x8xbf16>
    %cst_45 = arith.constant dense<0.000000e+00> : vector<2x8x8xf32>
    %130 = tpu.matmul %128, %129, %cst_45 {dimension_numbers = #tpu.dot_dimension_numbers<[2], [1], [1], [2], [0, 0, 0, 1, 1, 2], [0], [0]>} : vector<2x8x8xbf16>, vector<2x8x8xbf16>, vector<2x8x8xf32> -> vector<2x8x8xf32>
    %131 = vector.shape_cast %130 : vector<2x8x8xf32> to vector<16x8xf32>
    %132 = arith.truncf %131 : vector<16x8xf32> to vector<16x8xbf16>
    %133 = vector.extract_strided_slice %27 {offsets = [24, 0], sizes = [8, 32], strides = [1, 1]} : vector<32x32xbf16> to vector<8x32xbf16>
    %cst_46 = arith.constant dense<0.000000e+00> : vector<16x32xf32>
    %134 = tpu.matmul %132, %133, %cst_46 {dimension_numbers = #tpu.dot_dimension_numbers<[1], [0], [0], [1], [0, 0, 1, 1], [], []>} : vector<16x8xbf16>, vector<8x32xbf16>, vector<16x32xf32> -> vector<16x32xf32>
    %135 = arith.addf %114, %134 : vector<16x32xf32>
    %136 = vector.broadcast %31 : vector<1x32xf32> to vector<16x32xf32>
    %137 = arith.addf %135, %136 : vector<16x32xf32>
    %138 = arith.addf %13, %137 : vector<16x32xf32>
    %cst_47 = arith.constant dense<0.000000e+00> : vector<16xf32>
    %139 = vector.multi_reduction <add>, %138, %cst_47 [1] : vector<16x32xf32> to vector<16xf32>
    %140 = vector.shape_cast %139 : vector<16xf32> to vector<16x1xf32>
    %cst_48 = arith.constant 3.200000e+01 : f32
    %141 = vector.broadcast %cst_48 : f32 to vector<16x1xf32>
    %142 = arith.divf %140, %141 : vector<16x1xf32>
    %143 = vector.broadcast %142 : vector<16x1xf32> to vector<16x32xf32>
    %144 = arith.subf %138, %143 : vector<16x32xf32>
    %145 = arith.mulf %144, %144 : vector<16x32xf32>
    %cst_49 = arith.constant dense<0.000000e+00> : vector<16xf32>
    %146 = vector.multi_reduction <add>, %145, %cst_49 [1] : vector<16x32xf32> to vector<16xf32>
    %147 = vector.shape_cast %146 : vector<16xf32> to vector<16x1xf32>
    %cst_50 = arith.constant 3.200000e+01 : f32
    %148 = vector.broadcast %cst_50 : f32 to vector<16x1xf32>
    %149 = arith.divf %147, %148 : vector<16x1xf32>
    %cst_51 = arith.constant 9.99999974E-6 : f32
    %150 = vector.broadcast %cst_51 : f32 to vector<16x1xf32>
    %151 = arith.addf %149, %150 : vector<16x1xf32>
    %152 = math.rsqrt %151 : vector<16x1xf32>
    %153 = vector.broadcast %152 : vector<16x1xf32> to vector<16x32xf32>
    %154 = arith.mulf %144, %153 : vector<16x32xf32>
    %155 = vector.broadcast %32 : vector<1x32xf32> to vector<16x32xf32>
    %156 = arith.mulf %154, %155 : vector<16x32xf32>
    %157 = vector.broadcast %33 : vector<1x32xf32> to vector<16x32xf32>
    %158 = arith.addf %156, %157 : vector<16x32xf32>
    %159 = arith.truncf %158 : vector<16x32xf32> to vector<16x32xbf16>
    %cst_52 = arith.constant dense<0.000000e+00> : vector<16x64xf32>
    %160 = tpu.matmul %159, %28, %cst_52 {dimension_numbers = #tpu.dot_dimension_numbers<[1], [0], [0], [1], [0, 0, 1, 1], [], []>} : vector<16x32xbf16>, vector<32x64xbf16>, vector<16x64xf32> -> vector<16x64xf32>
    %161 = vector.broadcast %34 : vector<1x64xf32> to vector<16x64xf32>
    %162 = arith.addf %160, %161 : vector<16x64xf32>
    %cst_53 = arith.constant 0.000000e+00 : f32
    %163 = vector.broadcast %cst_53 : f32 to vector<16x64xf32>
    %164 = arith.maximumf %162, %163 : vector<16x64xf32>
    %165 = arith.truncf %164 : vector<16x64xf32> to vector<16x64xbf16>
    %cst_54 = arith.constant dense<0.000000e+00> : vector<16x32xf32>
    %166 = tpu.matmul %165, %29, %cst_54 {dimension_numbers = #tpu.dot_dimension_numbers<[1], [0], [0], [1], [0, 0, 1, 1], [], []>} : vector<16x64xbf16>, vector<64x32xbf16>, vector<16x32xf32> -> vector<16x32xf32>
    %167 = vector.broadcast %35 : vector<1x32xf32> to vector<16x32xf32>
    %168 = arith.addf %166, %167 : vector<16x32xf32>
    %169 = arith.addf %158, %168 : vector<16x32xf32>
    %cst_55 = arith.constant dense<0.000000e+00> : vector<16xf32>
    %170 = vector.multi_reduction <add>, %169, %cst_55 [1] : vector<16x32xf32> to vector<16xf32>
    %171 = vector.shape_cast %170 : vector<16xf32> to vector<16x1xf32>
    %cst_56 = arith.constant 3.200000e+01 : f32
    %172 = vector.broadcast %cst_56 : f32 to vector<16x1xf32>
    %173 = arith.divf %171, %172 : vector<16x1xf32>
    %174 = vector.broadcast %173 : vector<16x1xf32> to vector<16x32xf32>
    %175 = arith.subf %169, %174 : vector<16x32xf32>
    %176 = arith.mulf %175, %175 : vector<16x32xf32>
    %cst_57 = arith.constant dense<0.000000e+00> : vector<16xf32>
    %177 = vector.multi_reduction <add>, %176, %cst_57 [1] : vector<16x32xf32> to vector<16xf32>
    %178 = vector.shape_cast %177 : vector<16xf32> to vector<16x1xf32>
    %cst_58 = arith.constant 3.200000e+01 : f32
    %179 = vector.broadcast %cst_58 : f32 to vector<16x1xf32>
    %180 = arith.divf %178, %179 : vector<16x1xf32>
    %cst_59 = arith.constant 9.99999974E-6 : f32
    %181 = vector.broadcast %cst_59 : f32 to vector<16x1xf32>
    %182 = arith.addf %180, %181 : vector<16x1xf32>
    %183 = math.rsqrt %182 : vector<16x1xf32>
    %184 = vector.broadcast %183 : vector<16x1xf32> to vector<16x32xf32>
    %185 = arith.mulf %175, %184 : vector<16x32xf32>
    %186 = vector.broadcast %36 : vector<1x32xf32> to vector<16x32xf32>
    %187 = arith.mulf %185, %186 : vector<16x32xf32>
    %188 = vector.broadcast %37 : vector<1x32xf32> to vector<16x32xf32>
    %189 = arith.addf %187, %188 : vector<16x32xf32>
    %c224 = arith.constant 224 : index
    %c0_60 = arith.constant 0 : index
    %190 = vector.load %arg2[%c224, %c0_60] : memref<928x128xbf16, #tpu.memory_space<vmem>>, vector<32x96xbf16>
    %c256 = arith.constant 256 : index
    %c0_61 = arith.constant 0 : index
    %191 = vector.load %arg2[%c256, %c0_61] : memref<928x128xbf16, #tpu.memory_space<vmem>>, vector<32x32xbf16>
    %c288 = arith.constant 288 : index
    %c0_62 = arith.constant 0 : index
    %192 = vector.load %arg2[%c288, %c0_62] : memref<928x128xbf16, #tpu.memory_space<vmem>>, vector<32x64xbf16>
    %c320 = arith.constant 320 : index
    %c0_63 = arith.constant 0 : index
    %193 = vector.load %arg2[%c320, %c0_63] : memref<928x128xbf16, #tpu.memory_space<vmem>>, vector<64x32xbf16>
    %c80 = arith.constant 80 : index
    %c0_64 = arith.constant 0 : index
    %194 = vector.load %arg3[%c80, %c0_64] : memref<392x128xf32, #tpu.memory_space<vmem>>, vector<1x96xf32>
    %c88 = arith.constant 88 : index
    %c0_65 = arith.constant 0 : index
    %195 = vector.load %arg3[%c88, %c0_65] : memref<392x128xf32, #tpu.memory_space<vmem>>, vector<1x32xf32>
    %c96_66 = arith.constant 96 : index
    %c0_67 = arith.constant 0 : index
    %196 = vector.load %arg3[%c96_66, %c0_67] : memref<392x128xf32, #tpu.memory_space<vmem>>, vector<1x32xf32>
    %c104 = arith.constant 104 : index
    %c0_68 = arith.constant 0 : index
    %197 = vector.load %arg3[%c104, %c0_68] : memref<392x128xf32, #tpu.memory_space<vmem>>, vector<1x32xf32>
    %c112 = arith.constant 112 : index
    %c0_69 = arith.constant 0 : index
    %198 = vector.load %arg3[%c112, %c0_69] : memref<392x128xf32, #tpu.memory_space<vmem>>, vector<1x64xf32>
    %c120 = arith.constant 120 : index
    %c0_70 = arith.constant 0 : index
    %199 = vector.load %arg3[%c120, %c0_70] : memref<392x128xf32, #tpu.memory_space<vmem>>, vector<1x32xf32>
    %c128_71 = arith.constant 128 : index
    %c0_72 = arith.constant 0 : index
    %200 = vector.load %arg3[%c128_71, %c0_72] : memref<392x128xf32, #tpu.memory_space<vmem>>, vector<1x32xf32>
    %c136 = arith.constant 136 : index
    %c0_73 = arith.constant 0 : index
    %201 = vector.load %arg3[%c136, %c0_73] : memref<392x128xf32, #tpu.memory_space<vmem>>, vector<1x32xf32>
    %202 = arith.truncf %189 : vector<16x32xf32> to vector<16x32xbf16>
    %cst_74 = arith.constant dense<0.000000e+00> : vector<16x96xf32>
    %203 = tpu.matmul %202, %190, %cst_74 {dimension_numbers = #tpu.dot_dimension_numbers<[1], [0], [0], [1], [0, 0, 1, 1], [], []>} : vector<16x32xbf16>, vector<32x96xbf16>, vector<16x96xf32> -> vector<16x96xf32>
    %204 = vector.broadcast %194 : vector<1x96xf32> to vector<16x96xf32>
    %205 = arith.addf %203, %204 : vector<16x96xf32>
    %206 = vector.extract_strided_slice %205 {offsets = [0, 0], sizes = [16, 32], strides = [1, 1]} : vector<16x96xf32> to vector<16x32xf32>
    %207 = vector.shape_cast %206 : vector<16x32xf32> to vector<2x8x32xf32>
    %208 = vector.extract_strided_slice %205 {offsets = [0, 32], sizes = [16, 32], strides = [1, 1]} : vector<16x96xf32> to vector<16x32xf32>
    %209 = vector.shape_cast %208 : vector<16x32xf32> to vector<2x8x32xf32>
    %210 = vector.extract_strided_slice %205 {offsets = [0, 64], sizes = [16, 32], strides = [1, 1]} : vector<16x96xf32> to vector<16x32xf32>
    %211 = vector.shape_cast %210 : vector<16x32xf32> to vector<2x8x32xf32>
    %cst_75 = arith.constant 0.353553385 : f32
    %212 = vector.broadcast %cst_75 : f32 to vector<2x8x32xf32>
    %213 = arith.mulf %207, %212 : vector<2x8x32xf32>
    %214 = arith.truncf %213 : vector<2x8x32xf32> to vector<2x8x32xbf16>
    %215 = arith.truncf %209 : vector<2x8x32xf32> to vector<2x8x32xbf16>
    %216 = arith.truncf %211 : vector<2x8x32xf32> to vector<2x8x32xbf16>
    %217 = vector.extract_strided_slice %214 {offsets = [0, 0, 0], sizes = [2, 8, 8], strides = [1, 1, 1]} : vector<2x8x32xbf16> to vector<2x8x8xbf16>
    %218 = vector.extract_strided_slice %215 {offsets = [0, 0, 0], sizes = [2, 8, 8], strides = [1, 1, 1]} : vector<2x8x32xbf16> to vector<2x8x8xbf16>
    %cst_76 = arith.constant dense<0.000000e+00> : vector<2x8x8xf32>
    %219 = tpu.matmul %217, %218, %cst_76 {dimension_numbers = #tpu.dot_dimension_numbers<[2], [2], [1], [1], [0, 0, 0, 1, 1, 1], [0], [0]>} : vector<2x8x8xbf16>, vector<2x8x8xbf16>, vector<2x8x8xf32> -> vector<2x8x8xf32>
    %cst_77 = arith.constant dense<0xFF800000> : vector<2x8xf32>
    %220 = vector.multi_reduction <maximumf>, %219, %cst_77 [2] : vector<2x8x8xf32> to vector<2x8xf32>
    %221 = vector.shape_cast %220 : vector<2x8xf32> to vector<2x8x1xf32>
    %222 = vector.broadcast %221 : vector<2x8x1xf32> to vector<2x8x8xf32>
    %223 = arith.subf %219, %222 : vector<2x8x8xf32>
    %224 = math.exp %223 : vector<2x8x8xf32>
    %cst_78 = arith.constant dense<0.000000e+00> : vector<2x8xf32>
    %225 = vector.multi_reduction <add>, %224, %cst_78 [2] : vector<2x8x8xf32> to vector<2x8xf32>
    %226 = vector.shape_cast %225 : vector<2x8xf32> to vector<2x8x1xf32>
    %227 = tpu.reciprocal %226 {approx = true} : vector<2x8x1xf32> -> vector<2x8x1xf32>
    %228 = vector.broadcast %227 : vector<2x8x1xf32> to vector<2x8x8xf32>
    %229 = arith.mulf %224, %228 : vector<2x8x8xf32>
    %230 = arith.truncf %229 : vector<2x8x8xf32> to vector<2x8x8xbf16>
    %231 = vector.extract_strided_slice %216 {offsets = [0, 0, 0], sizes = [2, 8, 8], strides = [1, 1, 1]} : vector<2x8x32xbf16> to vector<2x8x8xbf16>
    %cst_79 = arith.constant dense<0.000000e+00> : vector<2x8x8xf32>
    %232 = tpu.matmul %230, %231, %cst_79 {dimension_numbers = #tpu.dot_dimension_numbers<[2], [1], [1], [2], [0, 0, 0, 1, 1, 2], [0], [0]>} : vector<2x8x8xbf16>, vector<2x8x8xbf16>, vector<2x8x8xf32> -> vector<2x8x8xf32>
    %233 = vector.shape_cast %232 : vector<2x8x8xf32> to vector<16x8xf32>
    %234 = arith.truncf %233 : vector<16x8xf32> to vector<16x8xbf16>
    %235 = vector.extract_strided_slice %191 {offsets = [0, 0], sizes = [8, 32], strides = [1, 1]} : vector<32x32xbf16> to vector<8x32xbf16>
    %cst_80 = arith.constant dense<0.000000e+00> : vector<16x32xf32>
    %236 = tpu.matmul %234, %235, %cst_80 {dimension_numbers = #tpu.dot_dimension_numbers<[1], [0], [0], [1], [0, 0, 1, 1], [], []>} : vector<16x8xbf16>, vector<8x32xbf16>, vector<16x32xf32> -> vector<16x32xf32>
    %237 = vector.extract_strided_slice %214 {offsets = [0, 0, 8], sizes = [2, 8, 8], strides = [1, 1, 1]} : vector<2x8x32xbf16> to vector<2x8x8xbf16>
    %238 = vector.extract_strided_slice %215 {offsets = [0, 0, 8], sizes = [2, 8, 8], strides = [1, 1, 1]} : vector<2x8x32xbf16> to vector<2x8x8xbf16>
    %cst_81 = arith.constant dense<0.000000e+00> : vector<2x8x8xf32>
    %239 = tpu.matmul %237, %238, %cst_81 {dimension_numbers = #tpu.dot_dimension_numbers<[2], [2], [1], [1], [0, 0, 0, 1, 1, 1], [0], [0]>} : vector<2x8x8xbf16>, vector<2x8x8xbf16>, vector<2x8x8xf32> -> vector<2x8x8xf32>
    %cst_82 = arith.constant dense<0xFF800000> : vector<2x8xf32>
    %240 = vector.multi_reduction <maximumf>, %239, %cst_82 [2] : vector<2x8x8xf32> to vector<2x8xf32>
    %241 = vector.shape_cast %240 : vector<2x8xf32> to vector<2x8x1xf32>
    %242 = vector.broadcast %241 : vector<2x8x1xf32> to vector<2x8x8xf32>
    %243 = arith.subf %239, %242 : vector<2x8x8xf32>
    %244 = math.exp %243 : vector<2x8x8xf32>
    %cst_83 = arith.constant dense<0.000000e+00> : vector<2x8xf32>
    %245 = vector.multi_reduction <add>, %244, %cst_83 [2] : vector<2x8x8xf32> to vector<2x8xf32>
    %246 = vector.shape_cast %245 : vector<2x8xf32> to vector<2x8x1xf32>
    %247 = tpu.reciprocal %246 {approx = true} : vector<2x8x1xf32> -> vector<2x8x1xf32>
    %248 = vector.broadcast %247 : vector<2x8x1xf32> to vector<2x8x8xf32>
    %249 = arith.mulf %244, %248 : vector<2x8x8xf32>
    %250 = arith.truncf %249 : vector<2x8x8xf32> to vector<2x8x8xbf16>
    %251 = vector.extract_strided_slice %216 {offsets = [0, 0, 8], sizes = [2, 8, 8], strides = [1, 1, 1]} : vector<2x8x32xbf16> to vector<2x8x8xbf16>
    %cst_84 = arith.constant dense<0.000000e+00> : vector<2x8x8xf32>
    %252 = tpu.matmul %250, %251, %cst_84 {dimension_numbers = #tpu.dot_dimension_numbers<[2], [1], [1], [2], [0, 0, 0, 1, 1, 2], [0], [0]>} : vector<2x8x8xbf16>, vector<2x8x8xbf16>, vector<2x8x8xf32> -> vector<2x8x8xf32>
    %253 = vector.shape_cast %252 : vector<2x8x8xf32> to vector<16x8xf32>
    %254 = arith.truncf %253 : vector<16x8xf32> to vector<16x8xbf16>
    %255 = vector.extract_strided_slice %191 {offsets = [8, 0], sizes = [8, 32], strides = [1, 1]} : vector<32x32xbf16> to vector<8x32xbf16>
    %cst_85 = arith.constant dense<0.000000e+00> : vector<16x32xf32>
    %256 = tpu.matmul %254, %255, %cst_85 {dimension_numbers = #tpu.dot_dimension_numbers<[1], [0], [0], [1], [0, 0, 1, 1], [], []>} : vector<16x8xbf16>, vector<8x32xbf16>, vector<16x32xf32> -> vector<16x32xf32>
    %257 = arith.addf %236, %256 : vector<16x32xf32>
    %258 = vector.extract_strided_slice %214 {offsets = [0, 0, 16], sizes = [2, 8, 8], strides = [1, 1, 1]} : vector<2x8x32xbf16> to vector<2x8x8xbf16>
    %259 = vector.extract_strided_slice %215 {offsets = [0, 0, 16], sizes = [2, 8, 8], strides = [1, 1, 1]} : vector<2x8x32xbf16> to vector<2x8x8xbf16>
    %cst_86 = arith.constant dense<0.000000e+00> : vector<2x8x8xf32>
    %260 = tpu.matmul %258, %259, %cst_86 {dimension_numbers = #tpu.dot_dimension_numbers<[2], [2], [1], [1], [0, 0, 0, 1, 1, 1], [0], [0]>} : vector<2x8x8xbf16>, vector<2x8x8xbf16>, vector<2x8x8xf32> -> vector<2x8x8xf32>
    %cst_87 = arith.constant dense<0xFF800000> : vector<2x8xf32>
    %261 = vector.multi_reduction <maximumf>, %260, %cst_87 [2] : vector<2x8x8xf32> to vector<2x8xf32>
    %262 = vector.shape_cast %261 : vector<2x8xf32> to vector<2x8x1xf32>
    %263 = vector.broadcast %262 : vector<2x8x1xf32> to vector<2x8x8xf32>
    %264 = arith.subf %260, %263 : vector<2x8x8xf32>
    %265 = math.exp %264 : vector<2x8x8xf32>
    %cst_88 = arith.constant dense<0.000000e+00> : vector<2x8xf32>
    %266 = vector.multi_reduction <add>, %265, %cst_88 [2] : vector<2x8x8xf32> to vector<2x8xf32>
    %267 = vector.shape_cast %266 : vector<2x8xf32> to vector<2x8x1xf32>
    %268 = tpu.reciprocal %267 {approx = true} : vector<2x8x1xf32> -> vector<2x8x1xf32>
    %269 = vector.broadcast %268 : vector<2x8x1xf32> to vector<2x8x8xf32>
    %270 = arith.mulf %265, %269 : vector<2x8x8xf32>
    %271 = arith.truncf %270 : vector<2x8x8xf32> to vector<2x8x8xbf16>
    %272 = vector.extract_strided_slice %216 {offsets = [0, 0, 16], sizes = [2, 8, 8], strides = [1, 1, 1]} : vector<2x8x32xbf16> to vector<2x8x8xbf16>
    %cst_89 = arith.constant dense<0.000000e+00> : vector<2x8x8xf32>
    %273 = tpu.matmul %271, %272, %cst_89 {dimension_numbers = #tpu.dot_dimension_numbers<[2], [1], [1], [2], [0, 0, 0, 1, 1, 2], [0], [0]>} : vector<2x8x8xbf16>, vector<2x8x8xbf16>, vector<2x8x8xf32> -> vector<2x8x8xf32>
    %274 = vector.shape_cast %273 : vector<2x8x8xf32> to vector<16x8xf32>
    %275 = arith.truncf %274 : vector<16x8xf32> to vector<16x8xbf16>
    %276 = vector.extract_strided_slice %191 {offsets = [16, 0], sizes = [8, 32], strides = [1, 1]} : vector<32x32xbf16> to vector<8x32xbf16>
    %cst_90 = arith.constant dense<0.000000e+00> : vector<16x32xf32>
    %277 = tpu.matmul %275, %276, %cst_90 {dimension_numbers = #tpu.dot_dimension_numbers<[1], [0], [0], [1], [0, 0, 1, 1], [], []>} : vector<16x8xbf16>, vector<8x32xbf16>, vector<16x32xf32> -> vector<16x32xf32>
    %278 = arith.addf %257, %277 : vector<16x32xf32>
    %279 = vector.extract_strided_slice %214 {offsets = [0, 0, 24], sizes = [2, 8, 8], strides = [1, 1, 1]} : vector<2x8x32xbf16> to vector<2x8x8xbf16>
    %280 = vector.extract_strided_slice %215 {offsets = [0, 0, 24], sizes = [2, 8, 8], strides = [1, 1, 1]} : vector<2x8x32xbf16> to vector<2x8x8xbf16>
    %cst_91 = arith.constant dense<0.000000e+00> : vector<2x8x8xf32>
    %281 = tpu.matmul %279, %280, %cst_91 {dimension_numbers = #tpu.dot_dimension_numbers<[2], [2], [1], [1], [0, 0, 0, 1, 1, 1], [0], [0]>} : vector<2x8x8xbf16>, vector<2x8x8xbf16>, vector<2x8x8xf32> -> vector<2x8x8xf32>
    %cst_92 = arith.constant dense<0xFF800000> : vector<2x8xf32>
    %282 = vector.multi_reduction <maximumf>, %281, %cst_92 [2] : vector<2x8x8xf32> to vector<2x8xf32>
    %283 = vector.shape_cast %282 : vector<2x8xf32> to vector<2x8x1xf32>
    %284 = vector.broadcast %283 : vector<2x8x1xf32> to vector<2x8x8xf32>
    %285 = arith.subf %281, %284 : vector<2x8x8xf32>
    %286 = math.exp %285 : vector<2x8x8xf32>
    %cst_93 = arith.constant dense<0.000000e+00> : vector<2x8xf32>
    %287 = vector.multi_reduction <add>, %286, %cst_93 [2] : vector<2x8x8xf32> to vector<2x8xf32>
    %288 = vector.shape_cast %287 : vector<2x8xf32> to vector<2x8x1xf32>
    %289 = tpu.reciprocal %288 {approx = true} : vector<2x8x1xf32> -> vector<2x8x1xf32>
    %290 = vector.broadcast %289 : vector<2x8x1xf32> to vector<2x8x8xf32>
    %291 = arith.mulf %286, %290 : vector<2x8x8xf32>
    %292 = arith.truncf %291 : vector<2x8x8xf32> to vector<2x8x8xbf16>
    %293 = vector.extract_strided_slice %216 {offsets = [0, 0, 24], sizes = [2, 8, 8], strides = [1, 1, 1]} : vector<2x8x32xbf16> to vector<2x8x8xbf16>
    %cst_94 = arith.constant dense<0.000000e+00> : vector<2x8x8xf32>
    %294 = tpu.matmul %292, %293, %cst_94 {dimension_numbers = #tpu.dot_dimension_numbers<[2], [1], [1], [2], [0, 0, 0, 1, 1, 2], [0], [0]>} : vector<2x8x8xbf16>, vector<2x8x8xbf16>, vector<2x8x8xf32> -> vector<2x8x8xf32>
    %295 = vector.shape_cast %294 : vector<2x8x8xf32> to vector<16x8xf32>
    %296 = arith.truncf %295 : vector<16x8xf32> to vector<16x8xbf16>
    %297 = vector.extract_strided_slice %191 {offsets = [24, 0], sizes = [8, 32], strides = [1, 1]} : vector<32x32xbf16> to vector<8x32xbf16>
    %cst_95 = arith.constant dense<0.000000e+00> : vector<16x32xf32>
    %298 = tpu.matmul %296, %297, %cst_95 {dimension_numbers = #tpu.dot_dimension_numbers<[1], [0], [0], [1], [0, 0, 1, 1], [], []>} : vector<16x8xbf16>, vector<8x32xbf16>, vector<16x32xf32> -> vector<16x32xf32>
    %299 = arith.addf %278, %298 : vector<16x32xf32>
    %300 = vector.broadcast %195 : vector<1x32xf32> to vector<16x32xf32>
    %301 = arith.addf %299, %300 : vector<16x32xf32>
    %302 = arith.addf %189, %301 : vector<16x32xf32>
    %cst_96 = arith.constant dense<0.000000e+00> : vector<16xf32>
    %303 = vector.multi_reduction <add>, %302, %cst_96 [1] : vector<16x32xf32> to vector<16xf32>
    %304 = vector.shape_cast %303 : vector<16xf32> to vector<16x1xf32>
    %cst_97 = arith.constant 3.200000e+01 : f32
    %305 = vector.broadcast %cst_97 : f32 to vector<16x1xf32>
    %306 = arith.divf %304, %305 : vector<16x1xf32>
    %307 = vector.broadcast %306 : vector<16x1xf32> to vector<16x32xf32>
    %308 = arith.subf %302, %307 : vector<16x32xf32>
    %309 = arith.mulf %308, %308 : vector<16x32xf32>
    %cst_98 = arith.constant dense<0.000000e+00> : vector<16xf32>
    %310 = vector.multi_reduction <add>, %309, %cst_98 [1] : vector<16x32xf32> to vector<16xf32>
    %311 = vector.shape_cast %310 : vector<16xf32> to vector<16x1xf32>
    %cst_99 = arith.constant 3.200000e+01 : f32
    %312 = vector.broadcast %cst_99 : f32 to vector<16x1xf32>
    %313 = arith.divf %311, %312 : vector<16x1xf32>
    %cst_100 = arith.constant 9.99999974E-6 : f32
    %314 = vector.broadcast %cst_100 : f32 to vector<16x1xf32>
    %315 = arith.addf %313, %314 : vector<16x1xf32>
    %316 = math.rsqrt %315 : vector<16x1xf32>
    %317 = vector.broadcast %316 : vector<16x1xf32> to vector<16x32xf32>
    %318 = arith.mulf %308, %317 : vector<16x32xf32>
    %319 = vector.broadcast %196 : vector<1x32xf32> to vector<16x32xf32>
    %320 = arith.mulf %318, %319 : vector<16x32xf32>
    %321 = vector.broadcast %197 : vector<1x32xf32> to vector<16x32xf32>
    %322 = arith.addf %320, %321 : vector<16x32xf32>
    %323 = arith.truncf %322 : vector<16x32xf32> to vector<16x32xbf16>
    %cst_101 = arith.constant dense<0.000000e+00> : vector<16x64xf32>
    %324 = tpu.matmul %323, %192, %cst_101 {dimension_numbers = #tpu.dot_dimension_numbers<[1], [0], [0], [1], [0, 0, 1, 1], [], []>} : vector<16x32xbf16>, vector<32x64xbf16>, vector<16x64xf32> -> vector<16x64xf32>
    %325 = vector.broadcast %198 : vector<1x64xf32> to vector<16x64xf32>
    %326 = arith.addf %324, %325 : vector<16x64xf32>
    %cst_102 = arith.constant 0.000000e+00 : f32
    %327 = vector.broadcast %cst_102 : f32 to vector<16x64xf32>
    %328 = arith.maximumf %326, %327 : vector<16x64xf32>
    %329 = arith.truncf %328 : vector<16x64xf32> to vector<16x64xbf16>
    %cst_103 = arith.constant dense<0.000000e+00> : vector<16x32xf32>
    %330 = tpu.matmul %329, %193, %cst_103 {dimension_numbers = #tpu.dot_dimension_numbers<[1], [0], [0], [1], [0, 0, 1, 1], [], []>} : vector<16x64xbf16>, vector<64x32xbf16>, vector<16x32xf32> -> vector<16x32xf32>
    %331 = vector.broadcast %199 : vector<1x32xf32> to vector<16x32xf32>
    %332 = arith.addf %330, %331 : vector<16x32xf32>
    %333 = arith.addf %322, %332 : vector<16x32xf32>
    %cst_104 = arith.constant dense<0.000000e+00> : vector<16xf32>
    %334 = vector.multi_reduction <add>, %333, %cst_104 [1] : vector<16x32xf32> to vector<16xf32>
    %335 = vector.shape_cast %334 : vector<16xf32> to vector<16x1xf32>
    %cst_105 = arith.constant 3.200000e+01 : f32
    %336 = vector.broadcast %cst_105 : f32 to vector<16x1xf32>
    %337 = arith.divf %335, %336 : vector<16x1xf32>
    %338 = vector.broadcast %337 : vector<16x1xf32> to vector<16x32xf32>
    %339 = arith.subf %333, %338 : vector<16x32xf32>
    %340 = arith.mulf %339, %339 : vector<16x32xf32>
    %cst_106 = arith.constant dense<0.000000e+00> : vector<16xf32>
    %341 = vector.multi_reduction <add>, %340, %cst_106 [1] : vector<16x32xf32> to vector<16xf32>
    %342 = vector.shape_cast %341 : vector<16xf32> to vector<16x1xf32>
    %cst_107 = arith.constant 3.200000e+01 : f32
    %343 = vector.broadcast %cst_107 : f32 to vector<16x1xf32>
    %344 = arith.divf %342, %343 : vector<16x1xf32>
    %cst_108 = arith.constant 9.99999974E-6 : f32
    %345 = vector.broadcast %cst_108 : f32 to vector<16x1xf32>
    %346 = arith.addf %344, %345 : vector<16x1xf32>
    %347 = math.rsqrt %346 : vector<16x1xf32>
    %348 = vector.broadcast %347 : vector<16x1xf32> to vector<16x32xf32>
    %349 = arith.mulf %339, %348 : vector<16x32xf32>
    %350 = vector.broadcast %200 : vector<1x32xf32> to vector<16x32xf32>
    %351 = arith.mulf %349, %350 : vector<16x32xf32>
    %352 = vector.broadcast %201 : vector<1x32xf32> to vector<16x32xf32>
    %353 = arith.addf %351, %352 : vector<16x32xf32>
    %c144 = arith.constant 144 : index
    %c0_109 = arith.constant 0 : index
    %354 = vector.load %arg3[%c144, %c0_109] : memref<392x128xf32, #tpu.memory_space<vmem>>, vector<1x32xf32>
    %c152 = arith.constant 152 : index
    %c0_110 = arith.constant 0 : index
    %355 = vector.load %arg3[%c152, %c0_110] : memref<392x128xf32, #tpu.memory_space<vmem>>, vector<1x32xf32>
    %cst_111 = arith.constant dense<0.000000e+00> : vector<16xf32>
    %356 = vector.multi_reduction <add>, %353, %cst_111 [1] : vector<16x32xf32> to vector<16xf32>
    %357 = vector.shape_cast %356 : vector<16xf32> to vector<16x1xf32>
    %cst_112 = arith.constant 3.200000e+01 : f32
    %358 = vector.broadcast %cst_112 : f32 to vector<16x1xf32>
    %359 = arith.divf %357, %358 : vector<16x1xf32>
    %360 = vector.broadcast %359 : vector<16x1xf32> to vector<16x32xf32>
    %361 = arith.subf %353, %360 : vector<16x32xf32>
    %362 = arith.mulf %361, %361 : vector<16x32xf32>
    %cst_113 = arith.constant dense<0.000000e+00> : vector<16xf32>
    %363 = vector.multi_reduction <add>, %362, %cst_113 [1] : vector<16x32xf32> to vector<16xf32>
    %364 = vector.shape_cast %363 : vector<16xf32> to vector<16x1xf32>
    %cst_114 = arith.constant 3.200000e+01 : f32
    %365 = vector.broadcast %cst_114 : f32 to vector<16x1xf32>
    %366 = arith.divf %364, %365 : vector<16x1xf32>
    %cst_115 = arith.constant 9.99999974E-6 : f32
    %367 = vector.broadcast %cst_115 : f32 to vector<16x1xf32>
    %368 = arith.addf %366, %367 : vector<16x1xf32>
    %369 = math.rsqrt %368 : vector<16x1xf32>
    %370 = vector.broadcast %369 : vector<16x1xf32> to vector<16x32xf32>
    %371 = arith.mulf %361, %370 : vector<16x32xf32>
    %372 = vector.broadcast %354 : vector<1x32xf32> to vector<16x32xf32>
    %373 = arith.mulf %371, %372 : vector<16x32xf32>
    %374 = vector.broadcast %355 : vector<1x32xf32> to vector<16x32xf32>
    %375 = arith.addf %373, %374 : vector<16x32xf32>
    %c384 = arith.constant 384 : index
    %c0_116 = arith.constant 0 : index
    %376 = vector.load %arg2[%c384, %c0_116] : memref<928x128xbf16, #tpu.memory_space<vmem>>, vector<32x96xbf16>
    %c416 = arith.constant 416 : index
    %c0_117 = arith.constant 0 : index
    %377 = vector.load %arg2[%c416, %c0_117] : memref<928x128xbf16, #tpu.memory_space<vmem>>, vector<32x32xbf16>
    %c448 = arith.constant 448 : index
    %c0_118 = arith.constant 0 : index
    %378 = vector.load %arg2[%c448, %c0_118] : memref<928x128xbf16, #tpu.memory_space<vmem>>, vector<32x32xbf16>
    %c480 = arith.constant 480 : index
    %c0_119 = arith.constant 0 : index
    %379 = vector.load %arg2[%c480, %c0_119] : memref<928x128xbf16, #tpu.memory_space<vmem>>, vector<32x64xbf16>
    %c512 = arith.constant 512 : index
    %c0_120 = arith.constant 0 : index
    %380 = vector.load %arg2[%c512, %c0_120] : memref<928x128xbf16, #tpu.memory_space<vmem>>, vector<32x32xbf16>
    %c544 = arith.constant 544 : index
    %c0_121 = arith.constant 0 : index
    %381 = vector.load %arg2[%c544, %c0_121] : memref<928x128xbf16, #tpu.memory_space<vmem>>, vector<32x64xbf16>
    %c576 = arith.constant 576 : index
    %c0_122 = arith.constant 0 : index
    %382 = vector.load %arg2[%c576, %c0_122] : memref<928x128xbf16, #tpu.memory_space<vmem>>, vector<64x32xbf16>
    %c160_123 = arith.constant 160 : index
    %c0_124 = arith.constant 0 : index
    %383 = vector.load %arg3[%c160_123, %c0_124] : memref<392x128xf32, #tpu.memory_space<vmem>>, vector<1x96xf32>
    %c168 = arith.constant 168 : index
    %c0_125 = arith.constant 0 : index
    %384 = vector.load %arg3[%c168, %c0_125] : memref<392x128xf32, #tpu.memory_space<vmem>>, vector<1x32xf32>
    %c176 = arith.constant 176 : index
    %c0_126 = arith.constant 0 : index
    %385 = vector.load %arg3[%c176, %c0_126] : memref<392x128xf32, #tpu.memory_space<vmem>>, vector<1x32xf32>
    %c184 = arith.constant 184 : index
    %c0_127 = arith.constant 0 : index
    %386 = vector.load %arg3[%c184, %c0_127] : memref<392x128xf32, #tpu.memory_space<vmem>>, vector<1x32xf32>
    %c192 = arith.constant 192 : index
    %c0_128 = arith.constant 0 : index
    %387 = vector.load %arg3[%c192, %c0_128] : memref<392x128xf32, #tpu.memory_space<vmem>>, vector<1x32xf32>
    %c200 = arith.constant 200 : index
    %c0_129 = arith.constant 0 : index
    %388 = vector.load %arg3[%c200, %c0_129] : memref<392x128xf32, #tpu.memory_space<vmem>>, vector<1x64xf32>
    %c208 = arith.constant 208 : index
    %c0_130 = arith.constant 0 : index
    %389 = vector.load %arg3[%c208, %c0_130] : memref<392x128xf32, #tpu.memory_space<vmem>>, vector<1x32xf32>
    %c216 = arith.constant 216 : index
    %c0_131 = arith.constant 0 : index
    %390 = vector.load %arg3[%c216, %c0_131] : memref<392x128xf32, #tpu.memory_space<vmem>>, vector<1x32xf32>
    %c224_132 = arith.constant 224 : index
    %c0_133 = arith.constant 0 : index
    %391 = vector.load %arg3[%c224_132, %c0_133] : memref<392x128xf32, #tpu.memory_space<vmem>>, vector<1x32xf32>
    %c232 = arith.constant 232 : index
    %c0_134 = arith.constant 0 : index
    %392 = vector.load %arg3[%c232, %c0_134] : memref<392x128xf32, #tpu.memory_space<vmem>>, vector<1x64xf32>
    %c240 = arith.constant 240 : index
    %c0_135 = arith.constant 0 : index
    %393 = vector.load %arg3[%c240, %c0_135] : memref<392x128xf32, #tpu.memory_space<vmem>>, vector<1x32xf32>
    %c248 = arith.constant 248 : index
    %c0_136 = arith.constant 0 : index
    %394 = vector.load %arg3[%c248, %c0_136] : memref<392x128xf32, #tpu.memory_space<vmem>>, vector<1x32xf32>
    %c256_137 = arith.constant 256 : index
    %c0_138 = arith.constant 0 : index
    %395 = vector.load %arg3[%c256_137, %c0_138] : memref<392x128xf32, #tpu.memory_space<vmem>>, vector<1x32xf32>
    %396 = arith.truncf %25 : vector<16x32xf32> to vector<16x32xbf16>
    %cst_139 = arith.constant dense<0.000000e+00> : vector<16x96xf32>
    %397 = tpu.matmul %396, %376, %cst_139 {dimension_numbers = #tpu.dot_dimension_numbers<[1], [0], [0], [1], [0, 0, 1, 1], [], []>} : vector<16x32xbf16>, vector<32x96xbf16>, vector<16x96xf32> -> vector<16x96xf32>
    %398 = vector.broadcast %383 : vector<1x96xf32> to vector<16x96xf32>
    %399 = arith.addf %397, %398 : vector<16x96xf32>
    %400 = vector.extract_strided_slice %399 {offsets = [0, 0], sizes = [16, 32], strides = [1, 1]} : vector<16x96xf32> to vector<16x32xf32>
    %401 = vector.shape_cast %400 : vector<16x32xf32> to vector<2x8x32xf32>
    %402 = vector.extract_strided_slice %399 {offsets = [0, 32], sizes = [16, 32], strides = [1, 1]} : vector<16x96xf32> to vector<16x32xf32>
    %403 = vector.shape_cast %402 : vector<16x32xf32> to vector<2x8x32xf32>
    %404 = vector.extract_strided_slice %399 {offsets = [0, 64], sizes = [16, 32], strides = [1, 1]} : vector<16x96xf32> to vector<16x32xf32>
    %405 = vector.shape_cast %404 : vector<16x32xf32> to vector<2x8x32xf32>
    %cst_140 = arith.constant 0.353553385 : f32
    %406 = vector.broadcast %cst_140 : f32 to vector<2x8x32xf32>
    %407 = arith.mulf %401, %406 : vector<2x8x32xf32>
    %408 = arith.truncf %407 : vector<2x8x32xf32> to vector<2x8x32xbf16>
    %409 = arith.truncf %403 : vector<2x8x32xf32> to vector<2x8x32xbf16>
    %410 = arith.truncf %405 : vector<2x8x32xf32> to vector<2x8x32xbf16>
    %411 = vector.extract_strided_slice %408 {offsets = [0, 0, 0], sizes = [2, 8, 8], strides = [1, 1, 1]} : vector<2x8x32xbf16> to vector<2x8x8xbf16>
    %412 = vector.extract_strided_slice %409 {offsets = [0, 0, 0], sizes = [2, 8, 8], strides = [1, 1, 1]} : vector<2x8x32xbf16> to vector<2x8x8xbf16>
    %cst_141 = arith.constant dense<0.000000e+00> : vector<2x8x8xf32>
    %413 = tpu.matmul %411, %412, %cst_141 {dimension_numbers = #tpu.dot_dimension_numbers<[2], [2], [1], [1], [0, 0, 0, 1, 1, 1], [0], [0]>} : vector<2x8x8xbf16>, vector<2x8x8xbf16>, vector<2x8x8xf32> -> vector<2x8x8xf32>
    %cst_142 = arith.constant dense<0xFF800000> : vector<2x8xf32>
    %414 = vector.multi_reduction <maximumf>, %413, %cst_142 [2] : vector<2x8x8xf32> to vector<2x8xf32>
    %415 = vector.shape_cast %414 : vector<2x8xf32> to vector<2x8x1xf32>
    %416 = vector.broadcast %415 : vector<2x8x1xf32> to vector<2x8x8xf32>
    %417 = arith.subf %413, %416 : vector<2x8x8xf32>
    %418 = math.exp %417 : vector<2x8x8xf32>
    %cst_143 = arith.constant dense<0.000000e+00> : vector<2x8xf32>
    %419 = vector.multi_reduction <add>, %418, %cst_143 [2] : vector<2x8x8xf32> to vector<2x8xf32>
    %420 = vector.shape_cast %419 : vector<2x8xf32> to vector<2x8x1xf32>
    %421 = tpu.reciprocal %420 {approx = true} : vector<2x8x1xf32> -> vector<2x8x1xf32>
    %422 = vector.broadcast %421 : vector<2x8x1xf32> to vector<2x8x8xf32>
    %423 = arith.mulf %418, %422 : vector<2x8x8xf32>
    %424 = arith.truncf %423 : vector<2x8x8xf32> to vector<2x8x8xbf16>
    %425 = vector.extract_strided_slice %410 {offsets = [0, 0, 0], sizes = [2, 8, 8], strides = [1, 1, 1]} : vector<2x8x32xbf16> to vector<2x8x8xbf16>
    %cst_144 = arith.constant dense<0.000000e+00> : vector<2x8x8xf32>
    %426 = tpu.matmul %424, %425, %cst_144 {dimension_numbers = #tpu.dot_dimension_numbers<[2], [1], [1], [2], [0, 0, 0, 1, 1, 2], [0], [0]>} : vector<2x8x8xbf16>, vector<2x8x8xbf16>, vector<2x8x8xf32> -> vector<2x8x8xf32>
    %427 = vector.shape_cast %426 : vector<2x8x8xf32> to vector<16x8xf32>
    %428 = arith.truncf %427 : vector<16x8xf32> to vector<16x8xbf16>
    %429 = vector.extract_strided_slice %377 {offsets = [0, 0], sizes = [8, 32], strides = [1, 1]} : vector<32x32xbf16> to vector<8x32xbf16>
    %cst_145 = arith.constant dense<0.000000e+00> : vector<16x32xf32>
    %430 = tpu.matmul %428, %429, %cst_145 {dimension_numbers = #tpu.dot_dimension_numbers<[1], [0], [0], [1], [0, 0, 1, 1], [], []>} : vector<16x8xbf16>, vector<8x32xbf16>, vector<16x32xf32> -> vector<16x32xf32>
    %431 = vector.extract_strided_slice %408 {offsets = [0, 0, 8], sizes = [2, 8, 8], strides = [1, 1, 1]} : vector<2x8x32xbf16> to vector<2x8x8xbf16>
    %432 = vector.extract_strided_slice %409 {offsets = [0, 0, 8], sizes = [2, 8, 8], strides = [1, 1, 1]} : vector<2x8x32xbf16> to vector<2x8x8xbf16>
    %cst_146 = arith.constant dense<0.000000e+00> : vector<2x8x8xf32>
    %433 = tpu.matmul %431, %432, %cst_146 {dimension_numbers = #tpu.dot_dimension_numbers<[2], [2], [1], [1], [0, 0, 0, 1, 1, 1], [0], [0]>} : vector<2x8x8xbf16>, vector<2x8x8xbf16>, vector<2x8x8xf32> -> vector<2x8x8xf32>
    %cst_147 = arith.constant dense<0xFF800000> : vector<2x8xf32>
    %434 = vector.multi_reduction <maximumf>, %433, %cst_147 [2] : vector<2x8x8xf32> to vector<2x8xf32>
    %435 = vector.shape_cast %434 : vector<2x8xf32> to vector<2x8x1xf32>
    %436 = vector.broadcast %435 : vector<2x8x1xf32> to vector<2x8x8xf32>
    %437 = arith.subf %433, %436 : vector<2x8x8xf32>
    %438 = math.exp %437 : vector<2x8x8xf32>
    %cst_148 = arith.constant dense<0.000000e+00> : vector<2x8xf32>
    %439 = vector.multi_reduction <add>, %438, %cst_148 [2] : vector<2x8x8xf32> to vector<2x8xf32>
    %440 = vector.shape_cast %439 : vector<2x8xf32> to vector<2x8x1xf32>
    %441 = tpu.reciprocal %440 {approx = true} : vector<2x8x1xf32> -> vector<2x8x1xf32>
    %442 = vector.broadcast %441 : vector<2x8x1xf32> to vector<2x8x8xf32>
    %443 = arith.mulf %438, %442 : vector<2x8x8xf32>
    %444 = arith.truncf %443 : vector<2x8x8xf32> to vector<2x8x8xbf16>
    %445 = vector.extract_strided_slice %410 {offsets = [0, 0, 8], sizes = [2, 8, 8], strides = [1, 1, 1]} : vector<2x8x32xbf16> to vector<2x8x8xbf16>
    %cst_149 = arith.constant dense<0.000000e+00> : vector<2x8x8xf32>
    %446 = tpu.matmul %444, %445, %cst_149 {dimension_numbers = #tpu.dot_dimension_numbers<[2], [1], [1], [2], [0, 0, 0, 1, 1, 2], [0], [0]>} : vector<2x8x8xbf16>, vector<2x8x8xbf16>, vector<2x8x8xf32> -> vector<2x8x8xf32>
    %447 = vector.shape_cast %446 : vector<2x8x8xf32> to vector<16x8xf32>
    %448 = arith.truncf %447 : vector<16x8xf32> to vector<16x8xbf16>
    %449 = vector.extract_strided_slice %377 {offsets = [8, 0], sizes = [8, 32], strides = [1, 1]} : vector<32x32xbf16> to vector<8x32xbf16>
    %cst_150 = arith.constant dense<0.000000e+00> : vector<16x32xf32>
    %450 = tpu.matmul %448, %449, %cst_150 {dimension_numbers = #tpu.dot_dimension_numbers<[1], [0], [0], [1], [0, 0, 1, 1], [], []>} : vector<16x8xbf16>, vector<8x32xbf16>, vector<16x32xf32> -> vector<16x32xf32>
    %451 = arith.addf %430, %450 : vector<16x32xf32>
    %452 = vector.extract_strided_slice %408 {offsets = [0, 0, 16], sizes = [2, 8, 8], strides = [1, 1, 1]} : vector<2x8x32xbf16> to vector<2x8x8xbf16>
    %453 = vector.extract_strided_slice %409 {offsets = [0, 0, 16], sizes = [2, 8, 8], strides = [1, 1, 1]} : vector<2x8x32xbf16> to vector<2x8x8xbf16>
    %cst_151 = arith.constant dense<0.000000e+00> : vector<2x8x8xf32>
    %454 = tpu.matmul %452, %453, %cst_151 {dimension_numbers = #tpu.dot_dimension_numbers<[2], [2], [1], [1], [0, 0, 0, 1, 1, 1], [0], [0]>} : vector<2x8x8xbf16>, vector<2x8x8xbf16>, vector<2x8x8xf32> -> vector<2x8x8xf32>
    %cst_152 = arith.constant dense<0xFF800000> : vector<2x8xf32>
    %455 = vector.multi_reduction <maximumf>, %454, %cst_152 [2] : vector<2x8x8xf32> to vector<2x8xf32>
    %456 = vector.shape_cast %455 : vector<2x8xf32> to vector<2x8x1xf32>
    %457 = vector.broadcast %456 : vector<2x8x1xf32> to vector<2x8x8xf32>
    %458 = arith.subf %454, %457 : vector<2x8x8xf32>
    %459 = math.exp %458 : vector<2x8x8xf32>
    %cst_153 = arith.constant dense<0.000000e+00> : vector<2x8xf32>
    %460 = vector.multi_reduction <add>, %459, %cst_153 [2] : vector<2x8x8xf32> to vector<2x8xf32>
    %461 = vector.shape_cast %460 : vector<2x8xf32> to vector<2x8x1xf32>
    %462 = tpu.reciprocal %461 {approx = true} : vector<2x8x1xf32> -> vector<2x8x1xf32>
    %463 = vector.broadcast %462 : vector<2x8x1xf32> to vector<2x8x8xf32>
    %464 = arith.mulf %459, %463 : vector<2x8x8xf32>
    %465 = arith.truncf %464 : vector<2x8x8xf32> to vector<2x8x8xbf16>
    %466 = vector.extract_strided_slice %410 {offsets = [0, 0, 16], sizes = [2, 8, 8], strides = [1, 1, 1]} : vector<2x8x32xbf16> to vector<2x8x8xbf16>
    %cst_154 = arith.constant dense<0.000000e+00> : vector<2x8x8xf32>
    %467 = tpu.matmul %465, %466, %cst_154 {dimension_numbers = #tpu.dot_dimension_numbers<[2], [1], [1], [2], [0, 0, 0, 1, 1, 2], [0], [0]>} : vector<2x8x8xbf16>, vector<2x8x8xbf16>, vector<2x8x8xf32> -> vector<2x8x8xf32>
    %468 = vector.shape_cast %467 : vector<2x8x8xf32> to vector<16x8xf32>
    %469 = arith.truncf %468 : vector<16x8xf32> to vector<16x8xbf16>
    %470 = vector.extract_strided_slice %377 {offsets = [16, 0], sizes = [8, 32], strides = [1, 1]} : vector<32x32xbf16> to vector<8x32xbf16>
    %cst_155 = arith.constant dense<0.000000e+00> : vector<16x32xf32>
    %471 = tpu.matmul %469, %470, %cst_155 {dimension_numbers = #tpu.dot_dimension_numbers<[1], [0], [0], [1], [0, 0, 1, 1], [], []>} : vector<16x8xbf16>, vector<8x32xbf16>, vector<16x32xf32> -> vector<16x32xf32>
    %472 = arith.addf %451, %471 : vector<16x32xf32>
    %473 = vector.extract_strided_slice %408 {offsets = [0, 0, 24], sizes = [2, 8, 8], strides = [1, 1, 1]} : vector<2x8x32xbf16> to vector<2x8x8xbf16>
    %474 = vector.extract_strided_slice %409 {offsets = [0, 0, 24], sizes = [2, 8, 8], strides = [1, 1, 1]} : vector<2x8x32xbf16> to vector<2x8x8xbf16>
    %cst_156 = arith.constant dense<0.000000e+00> : vector<2x8x8xf32>
    %475 = tpu.matmul %473, %474, %cst_156 {dimension_numbers = #tpu.dot_dimension_numbers<[2], [2], [1], [1], [0, 0, 0, 1, 1, 1], [0], [0]>} : vector<2x8x8xbf16>, vector<2x8x8xbf16>, vector<2x8x8xf32> -> vector<2x8x8xf32>
    %cst_157 = arith.constant dense<0xFF800000> : vector<2x8xf32>
    %476 = vector.multi_reduction <maximumf>, %475, %cst_157 [2] : vector<2x8x8xf32> to vector<2x8xf32>
    %477 = vector.shape_cast %476 : vector<2x8xf32> to vector<2x8x1xf32>
    %478 = vector.broadcast %477 : vector<2x8x1xf32> to vector<2x8x8xf32>
    %479 = arith.subf %475, %478 : vector<2x8x8xf32>
    %480 = math.exp %479 : vector<2x8x8xf32>
    %cst_158 = arith.constant dense<0.000000e+00> : vector<2x8xf32>
    %481 = vector.multi_reduction <add>, %480, %cst_158 [2] : vector<2x8x8xf32> to vector<2x8xf32>
    %482 = vector.shape_cast %481 : vector<2x8xf32> to vector<2x8x1xf32>
    %483 = tpu.reciprocal %482 {approx = true} : vector<2x8x1xf32> -> vector<2x8x1xf32>
    %484 = vector.broadcast %483 : vector<2x8x1xf32> to vector<2x8x8xf32>
    %485 = arith.mulf %480, %484 : vector<2x8x8xf32>
    %486 = arith.truncf %485 : vector<2x8x8xf32> to vector<2x8x8xbf16>
    %487 = vector.extract_strided_slice %410 {offsets = [0, 0, 24], sizes = [2, 8, 8], strides = [1, 1, 1]} : vector<2x8x32xbf16> to vector<2x8x8xbf16>
    %cst_159 = arith.constant dense<0.000000e+00> : vector<2x8x8xf32>
    %488 = tpu.matmul %486, %487, %cst_159 {dimension_numbers = #tpu.dot_dimension_numbers<[2], [1], [1], [2], [0, 0, 0, 1, 1, 2], [0], [0]>} : vector<2x8x8xbf16>, vector<2x8x8xbf16>, vector<2x8x8xf32> -> vector<2x8x8xf32>
    %489 = vector.shape_cast %488 : vector<2x8x8xf32> to vector<16x8xf32>
    %490 = arith.truncf %489 : vector<16x8xf32> to vector<16x8xbf16>
    %491 = vector.extract_strided_slice %377 {offsets = [24, 0], sizes = [8, 32], strides = [1, 1]} : vector<32x32xbf16> to vector<8x32xbf16>
    %cst_160 = arith.constant dense<0.000000e+00> : vector<16x32xf32>
    %492 = tpu.matmul %490, %491, %cst_160 {dimension_numbers = #tpu.dot_dimension_numbers<[1], [0], [0], [1], [0, 0, 1, 1], [], []>} : vector<16x8xbf16>, vector<8x32xbf16>, vector<16x32xf32> -> vector<16x32xf32>
    %493 = arith.addf %472, %492 : vector<16x32xf32>
    %494 = vector.broadcast %384 : vector<1x32xf32> to vector<16x32xf32>
    %495 = arith.addf %493, %494 : vector<16x32xf32>
    %496 = arith.addf %25, %495 : vector<16x32xf32>
    %cst_161 = arith.constant dense<0.000000e+00> : vector<16xf32>
    %497 = vector.multi_reduction <add>, %496, %cst_161 [1] : vector<16x32xf32> to vector<16xf32>
    %498 = vector.shape_cast %497 : vector<16xf32> to vector<16x1xf32>
    %cst_162 = arith.constant 3.200000e+01 : f32
    %499 = vector.broadcast %cst_162 : f32 to vector<16x1xf32>
    %500 = arith.divf %498, %499 : vector<16x1xf32>
    %501 = vector.broadcast %500 : vector<16x1xf32> to vector<16x32xf32>
    %502 = arith.subf %496, %501 : vector<16x32xf32>
    %503 = arith.mulf %502, %502 : vector<16x32xf32>
    %cst_163 = arith.constant dense<0.000000e+00> : vector<16xf32>
    %504 = vector.multi_reduction <add>, %503, %cst_163 [1] : vector<16x32xf32> to vector<16xf32>
    %505 = vector.shape_cast %504 : vector<16xf32> to vector<16x1xf32>
    %cst_164 = arith.constant 3.200000e+01 : f32
    %506 = vector.broadcast %cst_164 : f32 to vector<16x1xf32>
    %507 = arith.divf %505, %506 : vector<16x1xf32>
    %cst_165 = arith.constant 9.99999974E-6 : f32
    %508 = vector.broadcast %cst_165 : f32 to vector<16x1xf32>
    %509 = arith.addf %507, %508 : vector<16x1xf32>
    %510 = math.rsqrt %509 : vector<16x1xf32>
    %511 = vector.broadcast %510 : vector<16x1xf32> to vector<16x32xf32>
    %512 = arith.mulf %502, %511 : vector<16x32xf32>
    %513 = vector.broadcast %385 : vector<1x32xf32> to vector<16x32xf32>
    %514 = arith.mulf %512, %513 : vector<16x32xf32>
    %515 = vector.broadcast %386 : vector<1x32xf32> to vector<16x32xf32>
    %516 = arith.addf %514, %515 : vector<16x32xf32>
    %517 = arith.truncf %516 : vector<16x32xf32> to vector<16x32xbf16>
    %cst_166 = arith.constant dense<0.000000e+00> : vector<16x32xf32>
    %518 = tpu.matmul %517, %378, %cst_166 {dimension_numbers = #tpu.dot_dimension_numbers<[1], [0], [0], [1], [0, 0, 1, 1], [], []>} : vector<16x32xbf16>, vector<32x32xbf16>, vector<16x32xf32> -> vector<16x32xf32>
    %519 = vector.broadcast %387 : vector<1x32xf32> to vector<16x32xf32>
    %520 = arith.addf %518, %519 : vector<16x32xf32>
    %521 = arith.truncf %375 : vector<16x32xf32> to vector<16x32xbf16>
    %cst_167 = arith.constant dense<0.000000e+00> : vector<16x64xf32>
    %522 = tpu.matmul %521, %379, %cst_167 {dimension_numbers = #tpu.dot_dimension_numbers<[1], [0], [0], [1], [0, 0, 1, 1], [], []>} : vector<16x32xbf16>, vector<32x64xbf16>, vector<16x64xf32> -> vector<16x64xf32>
    %523 = vector.broadcast %388 : vector<1x64xf32> to vector<16x64xf32>
    %524 = arith.addf %522, %523 : vector<16x64xf32>
    %525 = vector.shape_cast %520 : vector<16x32xf32> to vector<2x8x32xf32>
    %526 = vector.extract_strided_slice %524 {offsets = [0, 0], sizes = [16, 32], strides = [1, 1]} : vector<16x64xf32> to vector<16x32xf32>
    %527 = vector.shape_cast %526 : vector<16x32xf32> to vector<2x8x32xf32>
    %528 = vector.extract_strided_slice %524 {offsets = [0, 32], sizes = [16, 32], strides = [1, 1]} : vector<16x64xf32> to vector<16x32xf32>
    %529 = vector.shape_cast %528 : vector<16x32xf32> to vector<2x8x32xf32>
    %cst_168 = arith.constant 0.353553385 : f32
    %530 = vector.broadcast %cst_168 : f32 to vector<2x8x32xf32>
    %531 = arith.mulf %525, %530 : vector<2x8x32xf32>
    %532 = arith.truncf %531 : vector<2x8x32xf32> to vector<2x8x32xbf16>
    %533 = arith.truncf %527 : vector<2x8x32xf32> to vector<2x8x32xbf16>
    %534 = arith.truncf %529 : vector<2x8x32xf32> to vector<2x8x32xbf16>
    %535 = vector.extract_strided_slice %532 {offsets = [0, 0, 0], sizes = [2, 8, 8], strides = [1, 1, 1]} : vector<2x8x32xbf16> to vector<2x8x8xbf16>
    %536 = vector.extract_strided_slice %533 {offsets = [0, 0, 0], sizes = [2, 8, 8], strides = [1, 1, 1]} : vector<2x8x32xbf16> to vector<2x8x8xbf16>
    %cst_169 = arith.constant dense<0.000000e+00> : vector<2x8x8xf32>
    %537 = tpu.matmul %535, %536, %cst_169 {dimension_numbers = #tpu.dot_dimension_numbers<[2], [2], [1], [1], [0, 0, 0, 1, 1, 1], [0], [0]>} : vector<2x8x8xbf16>, vector<2x8x8xbf16>, vector<2x8x8xf32> -> vector<2x8x8xf32>
    %cst_170 = arith.constant dense<0xFF800000> : vector<2x8xf32>
    %538 = vector.multi_reduction <maximumf>, %537, %cst_170 [2] : vector<2x8x8xf32> to vector<2x8xf32>
    %539 = vector.shape_cast %538 : vector<2x8xf32> to vector<2x8x1xf32>
    %540 = vector.broadcast %539 : vector<2x8x1xf32> to vector<2x8x8xf32>
    %541 = arith.subf %537, %540 : vector<2x8x8xf32>
    %542 = math.exp %541 : vector<2x8x8xf32>
    %cst_171 = arith.constant dense<0.000000e+00> : vector<2x8xf32>
    %543 = vector.multi_reduction <add>, %542, %cst_171 [2] : vector<2x8x8xf32> to vector<2x8xf32>
    %544 = vector.shape_cast %543 : vector<2x8xf32> to vector<2x8x1xf32>
    %545 = tpu.reciprocal %544 {approx = true} : vector<2x8x1xf32> -> vector<2x8x1xf32>
    %546 = vector.broadcast %545 : vector<2x8x1xf32> to vector<2x8x8xf32>
    %547 = arith.mulf %542, %546 : vector<2x8x8xf32>
    %548 = arith.truncf %547 : vector<2x8x8xf32> to vector<2x8x8xbf16>
    %549 = vector.extract_strided_slice %534 {offsets = [0, 0, 0], sizes = [2, 8, 8], strides = [1, 1, 1]} : vector<2x8x32xbf16> to vector<2x8x8xbf16>
    %cst_172 = arith.constant dense<0.000000e+00> : vector<2x8x8xf32>
    %550 = tpu.matmul %548, %549, %cst_172 {dimension_numbers = #tpu.dot_dimension_numbers<[2], [1], [1], [2], [0, 0, 0, 1, 1, 2], [0], [0]>} : vector<2x8x8xbf16>, vector<2x8x8xbf16>, vector<2x8x8xf32> -> vector<2x8x8xf32>
    %551 = vector.shape_cast %550 : vector<2x8x8xf32> to vector<16x8xf32>
    %552 = arith.truncf %551 : vector<16x8xf32> to vector<16x8xbf16>
    %553 = vector.extract_strided_slice %380 {offsets = [0, 0], sizes = [8, 32], strides = [1, 1]} : vector<32x32xbf16> to vector<8x32xbf16>
    %cst_173 = arith.constant dense<0.000000e+00> : vector<16x32xf32>
    %554 = tpu.matmul %552, %553, %cst_173 {dimension_numbers = #tpu.dot_dimension_numbers<[1], [0], [0], [1], [0, 0, 1, 1], [], []>} : vector<16x8xbf16>, vector<8x32xbf16>, vector<16x32xf32> -> vector<16x32xf32>
    %555 = vector.extract_strided_slice %532 {offsets = [0, 0, 8], sizes = [2, 8, 8], strides = [1, 1, 1]} : vector<2x8x32xbf16> to vector<2x8x8xbf16>
    %556 = vector.extract_strided_slice %533 {offsets = [0, 0, 8], sizes = [2, 8, 8], strides = [1, 1, 1]} : vector<2x8x32xbf16> to vector<2x8x8xbf16>
    %cst_174 = arith.constant dense<0.000000e+00> : vector<2x8x8xf32>
    %557 = tpu.matmul %555, %556, %cst_174 {dimension_numbers = #tpu.dot_dimension_numbers<[2], [2], [1], [1], [0, 0, 0, 1, 1, 1], [0], [0]>} : vector<2x8x8xbf16>, vector<2x8x8xbf16>, vector<2x8x8xf32> -> vector<2x8x8xf32>
    %cst_175 = arith.constant dense<0xFF800000> : vector<2x8xf32>
    %558 = vector.multi_reduction <maximumf>, %557, %cst_175 [2] : vector<2x8x8xf32> to vector<2x8xf32>
    %559 = vector.shape_cast %558 : vector<2x8xf32> to vector<2x8x1xf32>
    %560 = vector.broadcast %559 : vector<2x8x1xf32> to vector<2x8x8xf32>
    %561 = arith.subf %557, %560 : vector<2x8x8xf32>
    %562 = math.exp %561 : vector<2x8x8xf32>
    %cst_176 = arith.constant dense<0.000000e+00> : vector<2x8xf32>
    %563 = vector.multi_reduction <add>, %562, %cst_176 [2] : vector<2x8x8xf32> to vector<2x8xf32>
    %564 = vector.shape_cast %563 : vector<2x8xf32> to vector<2x8x1xf32>
    %565 = tpu.reciprocal %564 {approx = true} : vector<2x8x1xf32> -> vector<2x8x1xf32>
    %566 = vector.broadcast %565 : vector<2x8x1xf32> to vector<2x8x8xf32>
    %567 = arith.mulf %562, %566 : vector<2x8x8xf32>
    %568 = arith.truncf %567 : vector<2x8x8xf32> to vector<2x8x8xbf16>
    %569 = vector.extract_strided_slice %534 {offsets = [0, 0, 8], sizes = [2, 8, 8], strides = [1, 1, 1]} : vector<2x8x32xbf16> to vector<2x8x8xbf16>
    %cst_177 = arith.constant dense<0.000000e+00> : vector<2x8x8xf32>
    %570 = tpu.matmul %568, %569, %cst_177 {dimension_numbers = #tpu.dot_dimension_numbers<[2], [1], [1], [2], [0, 0, 0, 1, 1, 2], [0], [0]>} : vector<2x8x8xbf16>, vector<2x8x8xbf16>, vector<2x8x8xf32> -> vector<2x8x8xf32>
    %571 = vector.shape_cast %570 : vector<2x8x8xf32> to vector<16x8xf32>
    %572 = arith.truncf %571 : vector<16x8xf32> to vector<16x8xbf16>
    %573 = vector.extract_strided_slice %380 {offsets = [8, 0], sizes = [8, 32], strides = [1, 1]} : vector<32x32xbf16> to vector<8x32xbf16>
    %cst_178 = arith.constant dense<0.000000e+00> : vector<16x32xf32>
    %574 = tpu.matmul %572, %573, %cst_178 {dimension_numbers = #tpu.dot_dimension_numbers<[1], [0], [0], [1], [0, 0, 1, 1], [], []>} : vector<16x8xbf16>, vector<8x32xbf16>, vector<16x32xf32> -> vector<16x32xf32>
    %575 = arith.addf %554, %574 : vector<16x32xf32>
    %576 = vector.extract_strided_slice %532 {offsets = [0, 0, 16], sizes = [2, 8, 8], strides = [1, 1, 1]} : vector<2x8x32xbf16> to vector<2x8x8xbf16>
    %577 = vector.extract_strided_slice %533 {offsets = [0, 0, 16], sizes = [2, 8, 8], strides = [1, 1, 1]} : vector<2x8x32xbf16> to vector<2x8x8xbf16>
    %cst_179 = arith.constant dense<0.000000e+00> : vector<2x8x8xf32>
    %578 = tpu.matmul %576, %577, %cst_179 {dimension_numbers = #tpu.dot_dimension_numbers<[2], [2], [1], [1], [0, 0, 0, 1, 1, 1], [0], [0]>} : vector<2x8x8xbf16>, vector<2x8x8xbf16>, vector<2x8x8xf32> -> vector<2x8x8xf32>
    %cst_180 = arith.constant dense<0xFF800000> : vector<2x8xf32>
    %579 = vector.multi_reduction <maximumf>, %578, %cst_180 [2] : vector<2x8x8xf32> to vector<2x8xf32>
    %580 = vector.shape_cast %579 : vector<2x8xf32> to vector<2x8x1xf32>
    %581 = vector.broadcast %580 : vector<2x8x1xf32> to vector<2x8x8xf32>
    %582 = arith.subf %578, %581 : vector<2x8x8xf32>
    %583 = math.exp %582 : vector<2x8x8xf32>
    %cst_181 = arith.constant dense<0.000000e+00> : vector<2x8xf32>
    %584 = vector.multi_reduction <add>, %583, %cst_181 [2] : vector<2x8x8xf32> to vector<2x8xf32>
    %585 = vector.shape_cast %584 : vector<2x8xf32> to vector<2x8x1xf32>
    %586 = tpu.reciprocal %585 {approx = true} : vector<2x8x1xf32> -> vector<2x8x1xf32>
    %587 = vector.broadcast %586 : vector<2x8x1xf32> to vector<2x8x8xf32>
    %588 = arith.mulf %583, %587 : vector<2x8x8xf32>
    %589 = arith.truncf %588 : vector<2x8x8xf32> to vector<2x8x8xbf16>
    %590 = vector.extract_strided_slice %534 {offsets = [0, 0, 16], sizes = [2, 8, 8], strides = [1, 1, 1]} : vector<2x8x32xbf16> to vector<2x8x8xbf16>
    %cst_182 = arith.constant dense<0.000000e+00> : vector<2x8x8xf32>
    %591 = tpu.matmul %589, %590, %cst_182 {dimension_numbers = #tpu.dot_dimension_numbers<[2], [1], [1], [2], [0, 0, 0, 1, 1, 2], [0], [0]>} : vector<2x8x8xbf16>, vector<2x8x8xbf16>, vector<2x8x8xf32> -> vector<2x8x8xf32>
    %592 = vector.shape_cast %591 : vector<2x8x8xf32> to vector<16x8xf32>
    %593 = arith.truncf %592 : vector<16x8xf32> to vector<16x8xbf16>
    %594 = vector.extract_strided_slice %380 {offsets = [16, 0], sizes = [8, 32], strides = [1, 1]} : vector<32x32xbf16> to vector<8x32xbf16>
    %cst_183 = arith.constant dense<0.000000e+00> : vector<16x32xf32>
    %595 = tpu.matmul %593, %594, %cst_183 {dimension_numbers = #tpu.dot_dimension_numbers<[1], [0], [0], [1], [0, 0, 1, 1], [], []>} : vector<16x8xbf16>, vector<8x32xbf16>, vector<16x32xf32> -> vector<16x32xf32>
    %596 = arith.addf %575, %595 : vector<16x32xf32>
    %597 = vector.extract_strided_slice %532 {offsets = [0, 0, 24], sizes = [2, 8, 8], strides = [1, 1, 1]} : vector<2x8x32xbf16> to vector<2x8x8xbf16>
    %598 = vector.extract_strided_slice %533 {offsets = [0, 0, 24], sizes = [2, 8, 8], strides = [1, 1, 1]} : vector<2x8x32xbf16> to vector<2x8x8xbf16>
    %cst_184 = arith.constant dense<0.000000e+00> : vector<2x8x8xf32>
    %599 = tpu.matmul %597, %598, %cst_184 {dimension_numbers = #tpu.dot_dimension_numbers<[2], [2], [1], [1], [0, 0, 0, 1, 1, 1], [0], [0]>} : vector<2x8x8xbf16>, vector<2x8x8xbf16>, vector<2x8x8xf32> -> vector<2x8x8xf32>
    %cst_185 = arith.constant dense<0xFF800000> : vector<2x8xf32>
    %600 = vector.multi_reduction <maximumf>, %599, %cst_185 [2] : vector<2x8x8xf32> to vector<2x8xf32>
    %601 = vector.shape_cast %600 : vector<2x8xf32> to vector<2x8x1xf32>
    %602 = vector.broadcast %601 : vector<2x8x1xf32> to vector<2x8x8xf32>
    %603 = arith.subf %599, %602 : vector<2x8x8xf32>
    %604 = math.exp %603 : vector<2x8x8xf32>
    %cst_186 = arith.constant dense<0.000000e+00> : vector<2x8xf32>
    %605 = vector.multi_reduction <add>, %604, %cst_186 [2] : vector<2x8x8xf32> to vector<2x8xf32>
    %606 = vector.shape_cast %605 : vector<2x8xf32> to vector<2x8x1xf32>
    %607 = tpu.reciprocal %606 {approx = true} : vector<2x8x1xf32> -> vector<2x8x1xf32>
    %608 = vector.broadcast %607 : vector<2x8x1xf32> to vector<2x8x8xf32>
    %609 = arith.mulf %604, %608 : vector<2x8x8xf32>
    %610 = arith.truncf %609 : vector<2x8x8xf32> to vector<2x8x8xbf16>
    %611 = vector.extract_strided_slice %534 {offsets = [0, 0, 24], sizes = [2, 8, 8], strides = [1, 1, 1]} : vector<2x8x32xbf16> to vector<2x8x8xbf16>
    %cst_187 = arith.constant dense<0.000000e+00> : vector<2x8x8xf32>
    %612 = tpu.matmul %610, %611, %cst_187 {dimension_numbers = #tpu.dot_dimension_numbers<[2], [1], [1], [2], [0, 0, 0, 1, 1, 2], [0], [0]>} : vector<2x8x8xbf16>, vector<2x8x8xbf16>, vector<2x8x8xf32> -> vector<2x8x8xf32>
    %613 = vector.shape_cast %612 : vector<2x8x8xf32> to vector<16x8xf32>
    %614 = arith.truncf %613 : vector<16x8xf32> to vector<16x8xbf16>
    %615 = vector.extract_strided_slice %380 {offsets = [24, 0], sizes = [8, 32], strides = [1, 1]} : vector<32x32xbf16> to vector<8x32xbf16>
    %cst_188 = arith.constant dense<0.000000e+00> : vector<16x32xf32>
    %616 = tpu.matmul %614, %615, %cst_188 {dimension_numbers = #tpu.dot_dimension_numbers<[1], [0], [0], [1], [0, 0, 1, 1], [], []>} : vector<16x8xbf16>, vector<8x32xbf16>, vector<16x32xf32> -> vector<16x32xf32>
    %617 = arith.addf %596, %616 : vector<16x32xf32>
    %618 = vector.broadcast %389 : vector<1x32xf32> to vector<16x32xf32>
    %619 = arith.addf %617, %618 : vector<16x32xf32>
    %620 = arith.addf %516, %619 : vector<16x32xf32>
    %cst_189 = arith.constant dense<0.000000e+00> : vector<16xf32>
    %621 = vector.multi_reduction <add>, %620, %cst_189 [1] : vector<16x32xf32> to vector<16xf32>
    %622 = vector.shape_cast %621 : vector<16xf32> to vector<16x1xf32>
    %cst_190 = arith.constant 3.200000e+01 : f32
    %623 = vector.broadcast %cst_190 : f32 to vector<16x1xf32>
    %624 = arith.divf %622, %623 : vector<16x1xf32>
    %625 = vector.broadcast %624 : vector<16x1xf32> to vector<16x32xf32>
    %626 = arith.subf %620, %625 : vector<16x32xf32>
    %627 = arith.mulf %626, %626 : vector<16x32xf32>
    %cst_191 = arith.constant dense<0.000000e+00> : vector<16xf32>
    %628 = vector.multi_reduction <add>, %627, %cst_191 [1] : vector<16x32xf32> to vector<16xf32>
    %629 = vector.shape_cast %628 : vector<16xf32> to vector<16x1xf32>
    %cst_192 = arith.constant 3.200000e+01 : f32
    %630 = vector.broadcast %cst_192 : f32 to vector<16x1xf32>
    %631 = arith.divf %629, %630 : vector<16x1xf32>
    %cst_193 = arith.constant 9.99999974E-6 : f32
    %632 = vector.broadcast %cst_193 : f32 to vector<16x1xf32>
    %633 = arith.addf %631, %632 : vector<16x1xf32>
    %634 = math.rsqrt %633 : vector<16x1xf32>
    %635 = vector.broadcast %634 : vector<16x1xf32> to vector<16x32xf32>
    %636 = arith.mulf %626, %635 : vector<16x32xf32>
    %637 = vector.broadcast %390 : vector<1x32xf32> to vector<16x32xf32>
    %638 = arith.mulf %636, %637 : vector<16x32xf32>
    %639 = vector.broadcast %391 : vector<1x32xf32> to vector<16x32xf32>
    %640 = arith.addf %638, %639 : vector<16x32xf32>
    %641 = arith.truncf %640 : vector<16x32xf32> to vector<16x32xbf16>
    %cst_194 = arith.constant dense<0.000000e+00> : vector<16x64xf32>
    %642 = tpu.matmul %641, %381, %cst_194 {dimension_numbers = #tpu.dot_dimension_numbers<[1], [0], [0], [1], [0, 0, 1, 1], [], []>} : vector<16x32xbf16>, vector<32x64xbf16>, vector<16x64xf32> -> vector<16x64xf32>
    %643 = vector.broadcast %392 : vector<1x64xf32> to vector<16x64xf32>
    %644 = arith.addf %642, %643 : vector<16x64xf32>
    %cst_195 = arith.constant 0.000000e+00 : f32
    %645 = vector.broadcast %cst_195 : f32 to vector<16x64xf32>
    %646 = arith.maximumf %644, %645 : vector<16x64xf32>
    %647 = arith.truncf %646 : vector<16x64xf32> to vector<16x64xbf16>
    %cst_196 = arith.constant dense<0.000000e+00> : vector<16x32xf32>
    %648 = tpu.matmul %647, %382, %cst_196 {dimension_numbers = #tpu.dot_dimension_numbers<[1], [0], [0], [1], [0, 0, 1, 1], [], []>} : vector<16x64xbf16>, vector<64x32xbf16>, vector<16x32xf32> -> vector<16x32xf32>
    %649 = vector.broadcast %393 : vector<1x32xf32> to vector<16x32xf32>
    %650 = arith.addf %648, %649 : vector<16x32xf32>
    %651 = arith.addf %640, %650 : vector<16x32xf32>
    %cst_197 = arith.constant dense<0.000000e+00> : vector<16xf32>
    %652 = vector.multi_reduction <add>, %651, %cst_197 [1] : vector<16x32xf32> to vector<16xf32>
    %653 = vector.shape_cast %652 : vector<16xf32> to vector<16x1xf32>
    %cst_198 = arith.constant 3.200000e+01 : f32
    %654 = vector.broadcast %cst_198 : f32 to vector<16x1xf32>
    %655 = arith.divf %653, %654 : vector<16x1xf32>
    %656 = vector.broadcast %655 : vector<16x1xf32> to vector<16x32xf32>
    %657 = arith.subf %651, %656 : vector<16x32xf32>
    %658 = arith.mulf %657, %657 : vector<16x32xf32>
    %cst_199 = arith.constant dense<0.000000e+00> : vector<16xf32>
    %659 = vector.multi_reduction <add>, %658, %cst_199 [1] : vector<16x32xf32> to vector<16xf32>
    %660 = vector.shape_cast %659 : vector<16xf32> to vector<16x1xf32>
    %cst_200 = arith.constant 3.200000e+01 : f32
    %661 = vector.broadcast %cst_200 : f32 to vector<16x1xf32>
    %662 = arith.divf %660, %661 : vector<16x1xf32>
    %cst_201 = arith.constant 9.99999974E-6 : f32
    %663 = vector.broadcast %cst_201 : f32 to vector<16x1xf32>
    %664 = arith.addf %662, %663 : vector<16x1xf32>
    %665 = math.rsqrt %664 : vector<16x1xf32>
    %666 = vector.broadcast %665 : vector<16x1xf32> to vector<16x32xf32>
    %667 = arith.mulf %657, %666 : vector<16x32xf32>
    %668 = vector.broadcast %394 : vector<1x32xf32> to vector<16x32xf32>
    %669 = arith.mulf %667, %668 : vector<16x32xf32>
    %670 = vector.broadcast %395 : vector<1x32xf32> to vector<16x32xf32>
    %671 = arith.addf %669, %670 : vector<16x32xf32>
    %c640 = arith.constant 640 : index
    %c0_202 = arith.constant 0 : index
    %672 = vector.load %arg2[%c640, %c0_202] : memref<928x128xbf16, #tpu.memory_space<vmem>>, vector<32x96xbf16>
    %c672 = arith.constant 672 : index
    %c0_203 = arith.constant 0 : index
    %673 = vector.load %arg2[%c672, %c0_203] : memref<928x128xbf16, #tpu.memory_space<vmem>>, vector<32x32xbf16>
    %c704 = arith.constant 704 : index
    %c0_204 = arith.constant 0 : index
    %674 = vector.load %arg2[%c704, %c0_204] : memref<928x128xbf16, #tpu.memory_space<vmem>>, vector<32x32xbf16>
    %c736 = arith.constant 736 : index
    %c0_205 = arith.constant 0 : index
    %675 = vector.load %arg2[%c736, %c0_205] : memref<928x128xbf16, #tpu.memory_space<vmem>>, vector<32x64xbf16>
    %c768 = arith.constant 768 : index
    %c0_206 = arith.constant 0 : index
    %676 = vector.load %arg2[%c768, %c0_206] : memref<928x128xbf16, #tpu.memory_space<vmem>>, vector<32x32xbf16>
    %c800 = arith.constant 800 : index
    %c0_207 = arith.constant 0 : index
    %677 = vector.load %arg2[%c800, %c0_207] : memref<928x128xbf16, #tpu.memory_space<vmem>>, vector<32x64xbf16>
    %c832 = arith.constant 832 : index
    %c0_208 = arith.constant 0 : index
    %678 = vector.load %arg2[%c832, %c0_208] : memref<928x128xbf16, #tpu.memory_space<vmem>>, vector<64x32xbf16>
    %c264 = arith.constant 264 : index
    %c0_209 = arith.constant 0 : index
    %679 = vector.load %arg3[%c264, %c0_209] : memref<392x128xf32, #tpu.memory_space<vmem>>, vector<1x96xf32>
    %c272 = arith.constant 272 : index
    %c0_210 = arith.constant 0 : index
    %680 = vector.load %arg3[%c272, %c0_210] : memref<392x128xf32, #tpu.memory_space<vmem>>, vector<1x32xf32>
    %c280 = arith.constant 280 : index
    %c0_211 = arith.constant 0 : index
    %681 = vector.load %arg3[%c280, %c0_211] : memref<392x128xf32, #tpu.memory_space<vmem>>, vector<1x32xf32>
    %c288_212 = arith.constant 288 : index
    %c0_213 = arith.constant 0 : index
    %682 = vector.load %arg3[%c288_212, %c0_213] : memref<392x128xf32, #tpu.memory_space<vmem>>, vector<1x32xf32>
    %c296 = arith.constant 296 : index
    %c0_214 = arith.constant 0 : index
    %683 = vector.load %arg3[%c296, %c0_214] : memref<392x128xf32, #tpu.memory_space<vmem>>, vector<1x32xf32>
    %c304 = arith.constant 304 : index
    %c0_215 = arith.constant 0 : index
    %684 = vector.load %arg3[%c304, %c0_215] : memref<392x128xf32, #tpu.memory_space<vmem>>, vector<1x64xf32>
    %c312 = arith.constant 312 : index
    %c0_216 = arith.constant 0 : index
    %685 = vector.load %arg3[%c312, %c0_216] : memref<392x128xf32, #tpu.memory_space<vmem>>, vector<1x32xf32>
    %c320_217 = arith.constant 320 : index
    %c0_218 = arith.constant 0 : index
    %686 = vector.load %arg3[%c320_217, %c0_218] : memref<392x128xf32, #tpu.memory_space<vmem>>, vector<1x32xf32>
    %c328 = arith.constant 328 : index
    %c0_219 = arith.constant 0 : index
    %687 = vector.load %arg3[%c328, %c0_219] : memref<392x128xf32, #tpu.memory_space<vmem>>, vector<1x32xf32>
    %c336 = arith.constant 336 : index
    %c0_220 = arith.constant 0 : index
    %688 = vector.load %arg3[%c336, %c0_220] : memref<392x128xf32, #tpu.memory_space<vmem>>, vector<1x64xf32>
    %c344 = arith.constant 344 : index
    %c0_221 = arith.constant 0 : index
    %689 = vector.load %arg3[%c344, %c0_221] : memref<392x128xf32, #tpu.memory_space<vmem>>, vector<1x32xf32>
    %c352 = arith.constant 352 : index
    %c0_222 = arith.constant 0 : index
    %690 = vector.load %arg3[%c352, %c0_222] : memref<392x128xf32, #tpu.memory_space<vmem>>, vector<1x32xf32>
    %c360 = arith.constant 360 : index
    %c0_223 = arith.constant 0 : index
    %691 = vector.load %arg3[%c360, %c0_223] : memref<392x128xf32, #tpu.memory_space<vmem>>, vector<1x32xf32>
    %692 = arith.truncf %671 : vector<16x32xf32> to vector<16x32xbf16>
    %cst_224 = arith.constant dense<0.000000e+00> : vector<16x96xf32>
    %693 = tpu.matmul %692, %672, %cst_224 {dimension_numbers = #tpu.dot_dimension_numbers<[1], [0], [0], [1], [0, 0, 1, 1], [], []>} : vector<16x32xbf16>, vector<32x96xbf16>, vector<16x96xf32> -> vector<16x96xf32>
    %694 = vector.broadcast %679 : vector<1x96xf32> to vector<16x96xf32>
    %695 = arith.addf %693, %694 : vector<16x96xf32>
    %696 = vector.extract_strided_slice %695 {offsets = [0, 0], sizes = [16, 32], strides = [1, 1]} : vector<16x96xf32> to vector<16x32xf32>
    %697 = vector.shape_cast %696 : vector<16x32xf32> to vector<2x8x32xf32>
    %698 = vector.extract_strided_slice %695 {offsets = [0, 32], sizes = [16, 32], strides = [1, 1]} : vector<16x96xf32> to vector<16x32xf32>
    %699 = vector.shape_cast %698 : vector<16x32xf32> to vector<2x8x32xf32>
    %700 = vector.extract_strided_slice %695 {offsets = [0, 64], sizes = [16, 32], strides = [1, 1]} : vector<16x96xf32> to vector<16x32xf32>
    %701 = vector.shape_cast %700 : vector<16x32xf32> to vector<2x8x32xf32>
    %cst_225 = arith.constant 0.353553385 : f32
    %702 = vector.broadcast %cst_225 : f32 to vector<2x8x32xf32>
    %703 = arith.mulf %697, %702 : vector<2x8x32xf32>
    %704 = arith.truncf %703 : vector<2x8x32xf32> to vector<2x8x32xbf16>
    %705 = arith.truncf %699 : vector<2x8x32xf32> to vector<2x8x32xbf16>
    %706 = arith.truncf %701 : vector<2x8x32xf32> to vector<2x8x32xbf16>
    %707 = vector.extract_strided_slice %704 {offsets = [0, 0, 0], sizes = [2, 8, 8], strides = [1, 1, 1]} : vector<2x8x32xbf16> to vector<2x8x8xbf16>
    %708 = vector.extract_strided_slice %705 {offsets = [0, 0, 0], sizes = [2, 8, 8], strides = [1, 1, 1]} : vector<2x8x32xbf16> to vector<2x8x8xbf16>
    %cst_226 = arith.constant dense<0.000000e+00> : vector<2x8x8xf32>
    %709 = tpu.matmul %707, %708, %cst_226 {dimension_numbers = #tpu.dot_dimension_numbers<[2], [2], [1], [1], [0, 0, 0, 1, 1, 1], [0], [0]>} : vector<2x8x8xbf16>, vector<2x8x8xbf16>, vector<2x8x8xf32> -> vector<2x8x8xf32>
    %cst_227 = arith.constant dense<0xFF800000> : vector<2x8xf32>
    %710 = vector.multi_reduction <maximumf>, %709, %cst_227 [2] : vector<2x8x8xf32> to vector<2x8xf32>
    %711 = vector.shape_cast %710 : vector<2x8xf32> to vector<2x8x1xf32>
    %712 = vector.broadcast %711 : vector<2x8x1xf32> to vector<2x8x8xf32>
    %713 = arith.subf %709, %712 : vector<2x8x8xf32>
    %714 = math.exp %713 : vector<2x8x8xf32>
    %cst_228 = arith.constant dense<0.000000e+00> : vector<2x8xf32>
    %715 = vector.multi_reduction <add>, %714, %cst_228 [2] : vector<2x8x8xf32> to vector<2x8xf32>
    %716 = vector.shape_cast %715 : vector<2x8xf32> to vector<2x8x1xf32>
    %717 = tpu.reciprocal %716 {approx = true} : vector<2x8x1xf32> -> vector<2x8x1xf32>
    %718 = vector.broadcast %717 : vector<2x8x1xf32> to vector<2x8x8xf32>
    %719 = arith.mulf %714, %718 : vector<2x8x8xf32>
    %720 = arith.truncf %719 : vector<2x8x8xf32> to vector<2x8x8xbf16>
    %721 = vector.extract_strided_slice %706 {offsets = [0, 0, 0], sizes = [2, 8, 8], strides = [1, 1, 1]} : vector<2x8x32xbf16> to vector<2x8x8xbf16>
    %cst_229 = arith.constant dense<0.000000e+00> : vector<2x8x8xf32>
    %722 = tpu.matmul %720, %721, %cst_229 {dimension_numbers = #tpu.dot_dimension_numbers<[2], [1], [1], [2], [0, 0, 0, 1, 1, 2], [0], [0]>} : vector<2x8x8xbf16>, vector<2x8x8xbf16>, vector<2x8x8xf32> -> vector<2x8x8xf32>
    %723 = vector.shape_cast %722 : vector<2x8x8xf32> to vector<16x8xf32>
    %724 = arith.truncf %723 : vector<16x8xf32> to vector<16x8xbf16>
    %725 = vector.extract_strided_slice %673 {offsets = [0, 0], sizes = [8, 32], strides = [1, 1]} : vector<32x32xbf16> to vector<8x32xbf16>
    %cst_230 = arith.constant dense<0.000000e+00> : vector<16x32xf32>
    %726 = tpu.matmul %724, %725, %cst_230 {dimension_numbers = #tpu.dot_dimension_numbers<[1], [0], [0], [1], [0, 0, 1, 1], [], []>} : vector<16x8xbf16>, vector<8x32xbf16>, vector<16x32xf32> -> vector<16x32xf32>
    %727 = vector.extract_strided_slice %704 {offsets = [0, 0, 8], sizes = [2, 8, 8], strides = [1, 1, 1]} : vector<2x8x32xbf16> to vector<2x8x8xbf16>
    %728 = vector.extract_strided_slice %705 {offsets = [0, 0, 8], sizes = [2, 8, 8], strides = [1, 1, 1]} : vector<2x8x32xbf16> to vector<2x8x8xbf16>
    %cst_231 = arith.constant dense<0.000000e+00> : vector<2x8x8xf32>
    %729 = tpu.matmul %727, %728, %cst_231 {dimension_numbers = #tpu.dot_dimension_numbers<[2], [2], [1], [1], [0, 0, 0, 1, 1, 1], [0], [0]>} : vector<2x8x8xbf16>, vector<2x8x8xbf16>, vector<2x8x8xf32> -> vector<2x8x8xf32>
    %cst_232 = arith.constant dense<0xFF800000> : vector<2x8xf32>
    %730 = vector.multi_reduction <maximumf>, %729, %cst_232 [2] : vector<2x8x8xf32> to vector<2x8xf32>
    %731 = vector.shape_cast %730 : vector<2x8xf32> to vector<2x8x1xf32>
    %732 = vector.broadcast %731 : vector<2x8x1xf32> to vector<2x8x8xf32>
    %733 = arith.subf %729, %732 : vector<2x8x8xf32>
    %734 = math.exp %733 : vector<2x8x8xf32>
    %cst_233 = arith.constant dense<0.000000e+00> : vector<2x8xf32>
    %735 = vector.multi_reduction <add>, %734, %cst_233 [2] : vector<2x8x8xf32> to vector<2x8xf32>
    %736 = vector.shape_cast %735 : vector<2x8xf32> to vector<2x8x1xf32>
    %737 = tpu.reciprocal %736 {approx = true} : vector<2x8x1xf32> -> vector<2x8x1xf32>
    %738 = vector.broadcast %737 : vector<2x8x1xf32> to vector<2x8x8xf32>
    %739 = arith.mulf %734, %738 : vector<2x8x8xf32>
    %740 = arith.truncf %739 : vector<2x8x8xf32> to vector<2x8x8xbf16>
    %741 = vector.extract_strided_slice %706 {offsets = [0, 0, 8], sizes = [2, 8, 8], strides = [1, 1, 1]} : vector<2x8x32xbf16> to vector<2x8x8xbf16>
    %cst_234 = arith.constant dense<0.000000e+00> : vector<2x8x8xf32>
    %742 = tpu.matmul %740, %741, %cst_234 {dimension_numbers = #tpu.dot_dimension_numbers<[2], [1], [1], [2], [0, 0, 0, 1, 1, 2], [0], [0]>} : vector<2x8x8xbf16>, vector<2x8x8xbf16>, vector<2x8x8xf32> -> vector<2x8x8xf32>
    %743 = vector.shape_cast %742 : vector<2x8x8xf32> to vector<16x8xf32>
    %744 = arith.truncf %743 : vector<16x8xf32> to vector<16x8xbf16>
    %745 = vector.extract_strided_slice %673 {offsets = [8, 0], sizes = [8, 32], strides = [1, 1]} : vector<32x32xbf16> to vector<8x32xbf16>
    %cst_235 = arith.constant dense<0.000000e+00> : vector<16x32xf32>
    %746 = tpu.matmul %744, %745, %cst_235 {dimension_numbers = #tpu.dot_dimension_numbers<[1], [0], [0], [1], [0, 0, 1, 1], [], []>} : vector<16x8xbf16>, vector<8x32xbf16>, vector<16x32xf32> -> vector<16x32xf32>
    %747 = arith.addf %726, %746 : vector<16x32xf32>
    %748 = vector.extract_strided_slice %704 {offsets = [0, 0, 16], sizes = [2, 8, 8], strides = [1, 1, 1]} : vector<2x8x32xbf16> to vector<2x8x8xbf16>
    %749 = vector.extract_strided_slice %705 {offsets = [0, 0, 16], sizes = [2, 8, 8], strides = [1, 1, 1]} : vector<2x8x32xbf16> to vector<2x8x8xbf16>
    %cst_236 = arith.constant dense<0.000000e+00> : vector<2x8x8xf32>
    %750 = tpu.matmul %748, %749, %cst_236 {dimension_numbers = #tpu.dot_dimension_numbers<[2], [2], [1], [1], [0, 0, 0, 1, 1, 1], [0], [0]>} : vector<2x8x8xbf16>, vector<2x8x8xbf16>, vector<2x8x8xf32> -> vector<2x8x8xf32>
    %cst_237 = arith.constant dense<0xFF800000> : vector<2x8xf32>
    %751 = vector.multi_reduction <maximumf>, %750, %cst_237 [2] : vector<2x8x8xf32> to vector<2x8xf32>
    %752 = vector.shape_cast %751 : vector<2x8xf32> to vector<2x8x1xf32>
    %753 = vector.broadcast %752 : vector<2x8x1xf32> to vector<2x8x8xf32>
    %754 = arith.subf %750, %753 : vector<2x8x8xf32>
    %755 = math.exp %754 : vector<2x8x8xf32>
    %cst_238 = arith.constant dense<0.000000e+00> : vector<2x8xf32>
    %756 = vector.multi_reduction <add>, %755, %cst_238 [2] : vector<2x8x8xf32> to vector<2x8xf32>
    %757 = vector.shape_cast %756 : vector<2x8xf32> to vector<2x8x1xf32>
    %758 = tpu.reciprocal %757 {approx = true} : vector<2x8x1xf32> -> vector<2x8x1xf32>
    %759 = vector.broadcast %758 : vector<2x8x1xf32> to vector<2x8x8xf32>
    %760 = arith.mulf %755, %759 : vector<2x8x8xf32>
    %761 = arith.truncf %760 : vector<2x8x8xf32> to vector<2x8x8xbf16>
    %762 = vector.extract_strided_slice %706 {offsets = [0, 0, 16], sizes = [2, 8, 8], strides = [1, 1, 1]} : vector<2x8x32xbf16> to vector<2x8x8xbf16>
    %cst_239 = arith.constant dense<0.000000e+00> : vector<2x8x8xf32>
    %763 = tpu.matmul %761, %762, %cst_239 {dimension_numbers = #tpu.dot_dimension_numbers<[2], [1], [1], [2], [0, 0, 0, 1, 1, 2], [0], [0]>} : vector<2x8x8xbf16>, vector<2x8x8xbf16>, vector<2x8x8xf32> -> vector<2x8x8xf32>
    %764 = vector.shape_cast %763 : vector<2x8x8xf32> to vector<16x8xf32>
    %765 = arith.truncf %764 : vector<16x8xf32> to vector<16x8xbf16>
    %766 = vector.extract_strided_slice %673 {offsets = [16, 0], sizes = [8, 32], strides = [1, 1]} : vector<32x32xbf16> to vector<8x32xbf16>
    %cst_240 = arith.constant dense<0.000000e+00> : vector<16x32xf32>
    %767 = tpu.matmul %765, %766, %cst_240 {dimension_numbers = #tpu.dot_dimension_numbers<[1], [0], [0], [1], [0, 0, 1, 1], [], []>} : vector<16x8xbf16>, vector<8x32xbf16>, vector<16x32xf32> -> vector<16x32xf32>
    %768 = arith.addf %747, %767 : vector<16x32xf32>
    %769 = vector.extract_strided_slice %704 {offsets = [0, 0, 24], sizes = [2, 8, 8], strides = [1, 1, 1]} : vector<2x8x32xbf16> to vector<2x8x8xbf16>
    %770 = vector.extract_strided_slice %705 {offsets = [0, 0, 24], sizes = [2, 8, 8], strides = [1, 1, 1]} : vector<2x8x32xbf16> to vector<2x8x8xbf16>
    %cst_241 = arith.constant dense<0.000000e+00> : vector<2x8x8xf32>
    %771 = tpu.matmul %769, %770, %cst_241 {dimension_numbers = #tpu.dot_dimension_numbers<[2], [2], [1], [1], [0, 0, 0, 1, 1, 1], [0], [0]>} : vector<2x8x8xbf16>, vector<2x8x8xbf16>, vector<2x8x8xf32> -> vector<2x8x8xf32>
    %cst_242 = arith.constant dense<0xFF800000> : vector<2x8xf32>
    %772 = vector.multi_reduction <maximumf>, %771, %cst_242 [2] : vector<2x8x8xf32> to vector<2x8xf32>
    %773 = vector.shape_cast %772 : vector<2x8xf32> to vector<2x8x1xf32>
    %774 = vector.broadcast %773 : vector<2x8x1xf32> to vector<2x8x8xf32>
    %775 = arith.subf %771, %774 : vector<2x8x8xf32>
    %776 = math.exp %775 : vector<2x8x8xf32>
    %cst_243 = arith.constant dense<0.000000e+00> : vector<2x8xf32>
    %777 = vector.multi_reduction <add>, %776, %cst_243 [2] : vector<2x8x8xf32> to vector<2x8xf32>
    %778 = vector.shape_cast %777 : vector<2x8xf32> to vector<2x8x1xf32>
    %779 = tpu.reciprocal %778 {approx = true} : vector<2x8x1xf32> -> vector<2x8x1xf32>
    %780 = vector.broadcast %779 : vector<2x8x1xf32> to vector<2x8x8xf32>
    %781 = arith.mulf %776, %780 : vector<2x8x8xf32>
    %782 = arith.truncf %781 : vector<2x8x8xf32> to vector<2x8x8xbf16>
    %783 = vector.extract_strided_slice %706 {offsets = [0, 0, 24], sizes = [2, 8, 8], strides = [1, 1, 1]} : vector<2x8x32xbf16> to vector<2x8x8xbf16>
    %cst_244 = arith.constant dense<0.000000e+00> : vector<2x8x8xf32>
    %784 = tpu.matmul %782, %783, %cst_244 {dimension_numbers = #tpu.dot_dimension_numbers<[2], [1], [1], [2], [0, 0, 0, 1, 1, 2], [0], [0]>} : vector<2x8x8xbf16>, vector<2x8x8xbf16>, vector<2x8x8xf32> -> vector<2x8x8xf32>
    %785 = vector.shape_cast %784 : vector<2x8x8xf32> to vector<16x8xf32>
    %786 = arith.truncf %785 : vector<16x8xf32> to vector<16x8xbf16>
    %787 = vector.extract_strided_slice %673 {offsets = [24, 0], sizes = [8, 32], strides = [1, 1]} : vector<32x32xbf16> to vector<8x32xbf16>
    %cst_245 = arith.constant dense<0.000000e+00> : vector<16x32xf32>
    %788 = tpu.matmul %786, %787, %cst_245 {dimension_numbers = #tpu.dot_dimension_numbers<[1], [0], [0], [1], [0, 0, 1, 1], [], []>} : vector<16x8xbf16>, vector<8x32xbf16>, vector<16x32xf32> -> vector<16x32xf32>
    %789 = arith.addf %768, %788 : vector<16x32xf32>
    %790 = vector.broadcast %680 : vector<1x32xf32> to vector<16x32xf32>
    %791 = arith.addf %789, %790 : vector<16x32xf32>
    %792 = arith.addf %671, %791 : vector<16x32xf32>
    %cst_246 = arith.constant dense<0.000000e+00> : vector<16xf32>
    %793 = vector.multi_reduction <add>, %792, %cst_246 [1] : vector<16x32xf32> to vector<16xf32>
    %794 = vector.shape_cast %793 : vector<16xf32> to vector<16x1xf32>
    %cst_247 = arith.constant 3.200000e+01 : f32
    %795 = vector.broadcast %cst_247 : f32 to vector<16x1xf32>
    %796 = arith.divf %794, %795 : vector<16x1xf32>
    %797 = vector.broadcast %796 : vector<16x1xf32> to vector<16x32xf32>
    %798 = arith.subf %792, %797 : vector<16x32xf32>
    %799 = arith.mulf %798, %798 : vector<16x32xf32>
    %cst_248 = arith.constant dense<0.000000e+00> : vector<16xf32>
    %800 = vector.multi_reduction <add>, %799, %cst_248 [1] : vector<16x32xf32> to vector<16xf32>
    %801 = vector.shape_cast %800 : vector<16xf32> to vector<16x1xf32>
    %cst_249 = arith.constant 3.200000e+01 : f32
    %802 = vector.broadcast %cst_249 : f32 to vector<16x1xf32>
    %803 = arith.divf %801, %802 : vector<16x1xf32>
    %cst_250 = arith.constant 9.99999974E-6 : f32
    %804 = vector.broadcast %cst_250 : f32 to vector<16x1xf32>
    %805 = arith.addf %803, %804 : vector<16x1xf32>
    %806 = math.rsqrt %805 : vector<16x1xf32>
    %807 = vector.broadcast %806 : vector<16x1xf32> to vector<16x32xf32>
    %808 = arith.mulf %798, %807 : vector<16x32xf32>
    %809 = vector.broadcast %681 : vector<1x32xf32> to vector<16x32xf32>
    %810 = arith.mulf %808, %809 : vector<16x32xf32>
    %811 = vector.broadcast %682 : vector<1x32xf32> to vector<16x32xf32>
    %812 = arith.addf %810, %811 : vector<16x32xf32>
    %813 = arith.truncf %812 : vector<16x32xf32> to vector<16x32xbf16>
    %cst_251 = arith.constant dense<0.000000e+00> : vector<16x32xf32>
    %814 = tpu.matmul %813, %674, %cst_251 {dimension_numbers = #tpu.dot_dimension_numbers<[1], [0], [0], [1], [0, 0, 1, 1], [], []>} : vector<16x32xbf16>, vector<32x32xbf16>, vector<16x32xf32> -> vector<16x32xf32>
    %815 = vector.broadcast %683 : vector<1x32xf32> to vector<16x32xf32>
    %816 = arith.addf %814, %815 : vector<16x32xf32>
    %817 = arith.truncf %375 : vector<16x32xf32> to vector<16x32xbf16>
    %cst_252 = arith.constant dense<0.000000e+00> : vector<16x64xf32>
    %818 = tpu.matmul %817, %675, %cst_252 {dimension_numbers = #tpu.dot_dimension_numbers<[1], [0], [0], [1], [0, 0, 1, 1], [], []>} : vector<16x32xbf16>, vector<32x64xbf16>, vector<16x64xf32> -> vector<16x64xf32>
    %819 = vector.broadcast %684 : vector<1x64xf32> to vector<16x64xf32>
    %820 = arith.addf %818, %819 : vector<16x64xf32>
    %821 = vector.shape_cast %816 : vector<16x32xf32> to vector<2x8x32xf32>
    %822 = vector.extract_strided_slice %820 {offsets = [0, 0], sizes = [16, 32], strides = [1, 1]} : vector<16x64xf32> to vector<16x32xf32>
    %823 = vector.shape_cast %822 : vector<16x32xf32> to vector<2x8x32xf32>
    %824 = vector.extract_strided_slice %820 {offsets = [0, 32], sizes = [16, 32], strides = [1, 1]} : vector<16x64xf32> to vector<16x32xf32>
    %825 = vector.shape_cast %824 : vector<16x32xf32> to vector<2x8x32xf32>
    %cst_253 = arith.constant 0.353553385 : f32
    %826 = vector.broadcast %cst_253 : f32 to vector<2x8x32xf32>
    %827 = arith.mulf %821, %826 : vector<2x8x32xf32>
    %828 = arith.truncf %827 : vector<2x8x32xf32> to vector<2x8x32xbf16>
    %829 = arith.truncf %823 : vector<2x8x32xf32> to vector<2x8x32xbf16>
    %830 = arith.truncf %825 : vector<2x8x32xf32> to vector<2x8x32xbf16>
    %831 = vector.extract_strided_slice %828 {offsets = [0, 0, 0], sizes = [2, 8, 8], strides = [1, 1, 1]} : vector<2x8x32xbf16> to vector<2x8x8xbf16>
    %832 = vector.extract_strided_slice %829 {offsets = [0, 0, 0], sizes = [2, 8, 8], strides = [1, 1, 1]} : vector<2x8x32xbf16> to vector<2x8x8xbf16>
    %cst_254 = arith.constant dense<0.000000e+00> : vector<2x8x8xf32>
    %833 = tpu.matmul %831, %832, %cst_254 {dimension_numbers = #tpu.dot_dimension_numbers<[2], [2], [1], [1], [0, 0, 0, 1, 1, 1], [0], [0]>} : vector<2x8x8xbf16>, vector<2x8x8xbf16>, vector<2x8x8xf32> -> vector<2x8x8xf32>
    %cst_255 = arith.constant dense<0xFF800000> : vector<2x8xf32>
    %834 = vector.multi_reduction <maximumf>, %833, %cst_255 [2] : vector<2x8x8xf32> to vector<2x8xf32>
    %835 = vector.shape_cast %834 : vector<2x8xf32> to vector<2x8x1xf32>
    %836 = vector.broadcast %835 : vector<2x8x1xf32> to vector<2x8x8xf32>
    %837 = arith.subf %833, %836 : vector<2x8x8xf32>
    %838 = math.exp %837 : vector<2x8x8xf32>
    %cst_256 = arith.constant dense<0.000000e+00> : vector<2x8xf32>
    %839 = vector.multi_reduction <add>, %838, %cst_256 [2] : vector<2x8x8xf32> to vector<2x8xf32>
    %840 = vector.shape_cast %839 : vector<2x8xf32> to vector<2x8x1xf32>
    %841 = tpu.reciprocal %840 {approx = true} : vector<2x8x1xf32> -> vector<2x8x1xf32>
    %842 = vector.broadcast %841 : vector<2x8x1xf32> to vector<2x8x8xf32>
    %843 = arith.mulf %838, %842 : vector<2x8x8xf32>
    %844 = arith.truncf %843 : vector<2x8x8xf32> to vector<2x8x8xbf16>
    %845 = vector.extract_strided_slice %830 {offsets = [0, 0, 0], sizes = [2, 8, 8], strides = [1, 1, 1]} : vector<2x8x32xbf16> to vector<2x8x8xbf16>
    %cst_257 = arith.constant dense<0.000000e+00> : vector<2x8x8xf32>
    %846 = tpu.matmul %844, %845, %cst_257 {dimension_numbers = #tpu.dot_dimension_numbers<[2], [1], [1], [2], [0, 0, 0, 1, 1, 2], [0], [0]>} : vector<2x8x8xbf16>, vector<2x8x8xbf16>, vector<2x8x8xf32> -> vector<2x8x8xf32>
    %847 = vector.shape_cast %846 : vector<2x8x8xf32> to vector<16x8xf32>
    %848 = arith.truncf %847 : vector<16x8xf32> to vector<16x8xbf16>
    %849 = vector.extract_strided_slice %676 {offsets = [0, 0], sizes = [8, 32], strides = [1, 1]} : vector<32x32xbf16> to vector<8x32xbf16>
    %cst_258 = arith.constant dense<0.000000e+00> : vector<16x32xf32>
    %850 = tpu.matmul %848, %849, %cst_258 {dimension_numbers = #tpu.dot_dimension_numbers<[1], [0], [0], [1], [0, 0, 1, 1], [], []>} : vector<16x8xbf16>, vector<8x32xbf16>, vector<16x32xf32> -> vector<16x32xf32>
    %851 = vector.extract_strided_slice %828 {offsets = [0, 0, 8], sizes = [2, 8, 8], strides = [1, 1, 1]} : vector<2x8x32xbf16> to vector<2x8x8xbf16>
    %852 = vector.extract_strided_slice %829 {offsets = [0, 0, 8], sizes = [2, 8, 8], strides = [1, 1, 1]} : vector<2x8x32xbf16> to vector<2x8x8xbf16>
    %cst_259 = arith.constant dense<0.000000e+00> : vector<2x8x8xf32>
    %853 = tpu.matmul %851, %852, %cst_259 {dimension_numbers = #tpu.dot_dimension_numbers<[2], [2], [1], [1], [0, 0, 0, 1, 1, 1], [0], [0]>} : vector<2x8x8xbf16>, vector<2x8x8xbf16>, vector<2x8x8xf32> -> vector<2x8x8xf32>
    %cst_260 = arith.constant dense<0xFF800000> : vector<2x8xf32>
    %854 = vector.multi_reduction <maximumf>, %853, %cst_260 [2] : vector<2x8x8xf32> to vector<2x8xf32>
    %855 = vector.shape_cast %854 : vector<2x8xf32> to vector<2x8x1xf32>
    %856 = vector.broadcast %855 : vector<2x8x1xf32> to vector<2x8x8xf32>
    %857 = arith.subf %853, %856 : vector<2x8x8xf32>
    %858 = math.exp %857 : vector<2x8x8xf32>
    %cst_261 = arith.constant dense<0.000000e+00> : vector<2x8xf32>
    %859 = vector.multi_reduction <add>, %858, %cst_261 [2] : vector<2x8x8xf32> to vector<2x8xf32>
    %860 = vector.shape_cast %859 : vector<2x8xf32> to vector<2x8x1xf32>
    %861 = tpu.reciprocal %860 {approx = true} : vector<2x8x1xf32> -> vector<2x8x1xf32>
    %862 = vector.broadcast %861 : vector<2x8x1xf32> to vector<2x8x8xf32>
    %863 = arith.mulf %858, %862 : vector<2x8x8xf32>
    %864 = arith.truncf %863 : vector<2x8x8xf32> to vector<2x8x8xbf16>
    %865 = vector.extract_strided_slice %830 {offsets = [0, 0, 8], sizes = [2, 8, 8], strides = [1, 1, 1]} : vector<2x8x32xbf16> to vector<2x8x8xbf16>
    %cst_262 = arith.constant dense<0.000000e+00> : vector<2x8x8xf32>
    %866 = tpu.matmul %864, %865, %cst_262 {dimension_numbers = #tpu.dot_dimension_numbers<[2], [1], [1], [2], [0, 0, 0, 1, 1, 2], [0], [0]>} : vector<2x8x8xbf16>, vector<2x8x8xbf16>, vector<2x8x8xf32> -> vector<2x8x8xf32>
    %867 = vector.shape_cast %866 : vector<2x8x8xf32> to vector<16x8xf32>
    %868 = arith.truncf %867 : vector<16x8xf32> to vector<16x8xbf16>
    %869 = vector.extract_strided_slice %676 {offsets = [8, 0], sizes = [8, 32], strides = [1, 1]} : vector<32x32xbf16> to vector<8x32xbf16>
    %cst_263 = arith.constant dense<0.000000e+00> : vector<16x32xf32>
    %870 = tpu.matmul %868, %869, %cst_263 {dimension_numbers = #tpu.dot_dimension_numbers<[1], [0], [0], [1], [0, 0, 1, 1], [], []>} : vector<16x8xbf16>, vector<8x32xbf16>, vector<16x32xf32> -> vector<16x32xf32>
    %871 = arith.addf %850, %870 : vector<16x32xf32>
    %872 = vector.extract_strided_slice %828 {offsets = [0, 0, 16], sizes = [2, 8, 8], strides = [1, 1, 1]} : vector<2x8x32xbf16> to vector<2x8x8xbf16>
    %873 = vector.extract_strided_slice %829 {offsets = [0, 0, 16], sizes = [2, 8, 8], strides = [1, 1, 1]} : vector<2x8x32xbf16> to vector<2x8x8xbf16>
    %cst_264 = arith.constant dense<0.000000e+00> : vector<2x8x8xf32>
    %874 = tpu.matmul %872, %873, %cst_264 {dimension_numbers = #tpu.dot_dimension_numbers<[2], [2], [1], [1], [0, 0, 0, 1, 1, 1], [0], [0]>} : vector<2x8x8xbf16>, vector<2x8x8xbf16>, vector<2x8x8xf32> -> vector<2x8x8xf32>
    %cst_265 = arith.constant dense<0xFF800000> : vector<2x8xf32>
    %875 = vector.multi_reduction <maximumf>, %874, %cst_265 [2] : vector<2x8x8xf32> to vector<2x8xf32>
    %876 = vector.shape_cast %875 : vector<2x8xf32> to vector<2x8x1xf32>
    %877 = vector.broadcast %876 : vector<2x8x1xf32> to vector<2x8x8xf32>
    %878 = arith.subf %874, %877 : vector<2x8x8xf32>
    %879 = math.exp %878 : vector<2x8x8xf32>
    %cst_266 = arith.constant dense<0.000000e+00> : vector<2x8xf32>
    %880 = vector.multi_reduction <add>, %879, %cst_266 [2] : vector<2x8x8xf32> to vector<2x8xf32>
    %881 = vector.shape_cast %880 : vector<2x8xf32> to vector<2x8x1xf32>
    %882 = tpu.reciprocal %881 {approx = true} : vector<2x8x1xf32> -> vector<2x8x1xf32>
    %883 = vector.broadcast %882 : vector<2x8x1xf32> to vector<2x8x8xf32>
    %884 = arith.mulf %879, %883 : vector<2x8x8xf32>
    %885 = arith.truncf %884 : vector<2x8x8xf32> to vector<2x8x8xbf16>
    %886 = vector.extract_strided_slice %830 {offsets = [0, 0, 16], sizes = [2, 8, 8], strides = [1, 1, 1]} : vector<2x8x32xbf16> to vector<2x8x8xbf16>
    %cst_267 = arith.constant dense<0.000000e+00> : vector<2x8x8xf32>
    %887 = tpu.matmul %885, %886, %cst_267 {dimension_numbers = #tpu.dot_dimension_numbers<[2], [1], [1], [2], [0, 0, 0, 1, 1, 2], [0], [0]>} : vector<2x8x8xbf16>, vector<2x8x8xbf16>, vector<2x8x8xf32> -> vector<2x8x8xf32>
    %888 = vector.shape_cast %887 : vector<2x8x8xf32> to vector<16x8xf32>
    %889 = arith.truncf %888 : vector<16x8xf32> to vector<16x8xbf16>
    %890 = vector.extract_strided_slice %676 {offsets = [16, 0], sizes = [8, 32], strides = [1, 1]} : vector<32x32xbf16> to vector<8x32xbf16>
    %cst_268 = arith.constant dense<0.000000e+00> : vector<16x32xf32>
    %891 = tpu.matmul %889, %890, %cst_268 {dimension_numbers = #tpu.dot_dimension_numbers<[1], [0], [0], [1], [0, 0, 1, 1], [], []>} : vector<16x8xbf16>, vector<8x32xbf16>, vector<16x32xf32> -> vector<16x32xf32>
    %892 = arith.addf %871, %891 : vector<16x32xf32>
    %893 = vector.extract_strided_slice %828 {offsets = [0, 0, 24], sizes = [2, 8, 8], strides = [1, 1, 1]} : vector<2x8x32xbf16> to vector<2x8x8xbf16>
    %894 = vector.extract_strided_slice %829 {offsets = [0, 0, 24], sizes = [2, 8, 8], strides = [1, 1, 1]} : vector<2x8x32xbf16> to vector<2x8x8xbf16>
    %cst_269 = arith.constant dense<0.000000e+00> : vector<2x8x8xf32>
    %895 = tpu.matmul %893, %894, %cst_269 {dimension_numbers = #tpu.dot_dimension_numbers<[2], [2], [1], [1], [0, 0, 0, 1, 1, 1], [0], [0]>} : vector<2x8x8xbf16>, vector<2x8x8xbf16>, vector<2x8x8xf32> -> vector<2x8x8xf32>
    %cst_270 = arith.constant dense<0xFF800000> : vector<2x8xf32>
    %896 = vector.multi_reduction <maximumf>, %895, %cst_270 [2] : vector<2x8x8xf32> to vector<2x8xf32>
    %897 = vector.shape_cast %896 : vector<2x8xf32> to vector<2x8x1xf32>
    %898 = vector.broadcast %897 : vector<2x8x1xf32> to vector<2x8x8xf32>
    %899 = arith.subf %895, %898 : vector<2x8x8xf32>
    %900 = math.exp %899 : vector<2x8x8xf32>
    %cst_271 = arith.constant dense<0.000000e+00> : vector<2x8xf32>
    %901 = vector.multi_reduction <add>, %900, %cst_271 [2] : vector<2x8x8xf32> to vector<2x8xf32>
    %902 = vector.shape_cast %901 : vector<2x8xf32> to vector<2x8x1xf32>
    %903 = tpu.reciprocal %902 {approx = true} : vector<2x8x1xf32> -> vector<2x8x1xf32>
    %904 = vector.broadcast %903 : vector<2x8x1xf32> to vector<2x8x8xf32>
    %905 = arith.mulf %900, %904 : vector<2x8x8xf32>
    %906 = arith.truncf %905 : vector<2x8x8xf32> to vector<2x8x8xbf16>
    %907 = vector.extract_strided_slice %830 {offsets = [0, 0, 24], sizes = [2, 8, 8], strides = [1, 1, 1]} : vector<2x8x32xbf16> to vector<2x8x8xbf16>
    %cst_272 = arith.constant dense<0.000000e+00> : vector<2x8x8xf32>
    %908 = tpu.matmul %906, %907, %cst_272 {dimension_numbers = #tpu.dot_dimension_numbers<[2], [1], [1], [2], [0, 0, 0, 1, 1, 2], [0], [0]>} : vector<2x8x8xbf16>, vector<2x8x8xbf16>, vector<2x8x8xf32> -> vector<2x8x8xf32>
    %909 = vector.shape_cast %908 : vector<2x8x8xf32> to vector<16x8xf32>
    %910 = arith.truncf %909 : vector<16x8xf32> to vector<16x8xbf16>
    %911 = vector.extract_strided_slice %676 {offsets = [24, 0], sizes = [8, 32], strides = [1, 1]} : vector<32x32xbf16> to vector<8x32xbf16>
    %cst_273 = arith.constant dense<0.000000e+00> : vector<16x32xf32>
    %912 = tpu.matmul %910, %911, %cst_273 {dimension_numbers = #tpu.dot_dimension_numbers<[1], [0], [0], [1], [0, 0, 1, 1], [], []>} : vector<16x8xbf16>, vector<8x32xbf16>, vector<16x32xf32> -> vector<16x32xf32>
    %913 = arith.addf %892, %912 : vector<16x32xf32>
    %914 = vector.broadcast %685 : vector<1x32xf32> to vector<16x32xf32>
    %915 = arith.addf %913, %914 : vector<16x32xf32>
    %916 = arith.addf %812, %915 : vector<16x32xf32>
    %cst_274 = arith.constant dense<0.000000e+00> : vector<16xf32>
    %917 = vector.multi_reduction <add>, %916, %cst_274 [1] : vector<16x32xf32> to vector<16xf32>
    %918 = vector.shape_cast %917 : vector<16xf32> to vector<16x1xf32>
    %cst_275 = arith.constant 3.200000e+01 : f32
    %919 = vector.broadcast %cst_275 : f32 to vector<16x1xf32>
    %920 = arith.divf %918, %919 : vector<16x1xf32>
    %921 = vector.broadcast %920 : vector<16x1xf32> to vector<16x32xf32>
    %922 = arith.subf %916, %921 : vector<16x32xf32>
    %923 = arith.mulf %922, %922 : vector<16x32xf32>
    %cst_276 = arith.constant dense<0.000000e+00> : vector<16xf32>
    %924 = vector.multi_reduction <add>, %923, %cst_276 [1] : vector<16x32xf32> to vector<16xf32>
    %925 = vector.shape_cast %924 : vector<16xf32> to vector<16x1xf32>
    %cst_277 = arith.constant 3.200000e+01 : f32
    %926 = vector.broadcast %cst_277 : f32 to vector<16x1xf32>
    %927 = arith.divf %925, %926 : vector<16x1xf32>
    %cst_278 = arith.constant 9.99999974E-6 : f32
    %928 = vector.broadcast %cst_278 : f32 to vector<16x1xf32>
    %929 = arith.addf %927, %928 : vector<16x1xf32>
    %930 = math.rsqrt %929 : vector<16x1xf32>
    %931 = vector.broadcast %930 : vector<16x1xf32> to vector<16x32xf32>
    %932 = arith.mulf %922, %931 : vector<16x32xf32>
    %933 = vector.broadcast %686 : vector<1x32xf32> to vector<16x32xf32>
    %934 = arith.mulf %932, %933 : vector<16x32xf32>
    %935 = vector.broadcast %687 : vector<1x32xf32> to vector<16x32xf32>
    %936 = arith.addf %934, %935 : vector<16x32xf32>
    %937 = arith.truncf %936 : vector<16x32xf32> to vector<16x32xbf16>
    %cst_279 = arith.constant dense<0.000000e+00> : vector<16x64xf32>
    %938 = tpu.matmul %937, %677, %cst_279 {dimension_numbers = #tpu.dot_dimension_numbers<[1], [0], [0], [1], [0, 0, 1, 1], [], []>} : vector<16x32xbf16>, vector<32x64xbf16>, vector<16x64xf32> -> vector<16x64xf32>
    %939 = vector.broadcast %688 : vector<1x64xf32> to vector<16x64xf32>
    %940 = arith.addf %938, %939 : vector<16x64xf32>
    %cst_280 = arith.constant 0.000000e+00 : f32
    %941 = vector.broadcast %cst_280 : f32 to vector<16x64xf32>
    %942 = arith.maximumf %940, %941 : vector<16x64xf32>
    %943 = arith.truncf %942 : vector<16x64xf32> to vector<16x64xbf16>
    %cst_281 = arith.constant dense<0.000000e+00> : vector<16x32xf32>
    %944 = tpu.matmul %943, %678, %cst_281 {dimension_numbers = #tpu.dot_dimension_numbers<[1], [0], [0], [1], [0, 0, 1, 1], [], []>} : vector<16x64xbf16>, vector<64x32xbf16>, vector<16x32xf32> -> vector<16x32xf32>
    %945 = vector.broadcast %689 : vector<1x32xf32> to vector<16x32xf32>
    %946 = arith.addf %944, %945 : vector<16x32xf32>
    %947 = arith.addf %936, %946 : vector<16x32xf32>
    %cst_282 = arith.constant dense<0.000000e+00> : vector<16xf32>
    %948 = vector.multi_reduction <add>, %947, %cst_282 [1] : vector<16x32xf32> to vector<16xf32>
    %949 = vector.shape_cast %948 : vector<16xf32> to vector<16x1xf32>
    %cst_283 = arith.constant 3.200000e+01 : f32
    %950 = vector.broadcast %cst_283 : f32 to vector<16x1xf32>
    %951 = arith.divf %949, %950 : vector<16x1xf32>
    %952 = vector.broadcast %951 : vector<16x1xf32> to vector<16x32xf32>
    %953 = arith.subf %947, %952 : vector<16x32xf32>
    %954 = arith.mulf %953, %953 : vector<16x32xf32>
    %cst_284 = arith.constant dense<0.000000e+00> : vector<16xf32>
    %955 = vector.multi_reduction <add>, %954, %cst_284 [1] : vector<16x32xf32> to vector<16xf32>
    %956 = vector.shape_cast %955 : vector<16xf32> to vector<16x1xf32>
    %cst_285 = arith.constant 3.200000e+01 : f32
    %957 = vector.broadcast %cst_285 : f32 to vector<16x1xf32>
    %958 = arith.divf %956, %957 : vector<16x1xf32>
    %cst_286 = arith.constant 9.99999974E-6 : f32
    %959 = vector.broadcast %cst_286 : f32 to vector<16x1xf32>
    %960 = arith.addf %958, %959 : vector<16x1xf32>
    %961 = math.rsqrt %960 : vector<16x1xf32>
    %962 = vector.broadcast %961 : vector<16x1xf32> to vector<16x32xf32>
    %963 = arith.mulf %953, %962 : vector<16x32xf32>
    %964 = vector.broadcast %690 : vector<1x32xf32> to vector<16x32xf32>
    %965 = arith.mulf %963, %964 : vector<16x32xf32>
    %966 = vector.broadcast %691 : vector<1x32xf32> to vector<16x32xf32>
    %967 = arith.addf %965, %966 : vector<16x32xf32>
    %c368 = arith.constant 368 : index
    %c0_287 = arith.constant 0 : index
    %968 = vector.load %arg3[%c368, %c0_287] : memref<392x128xf32, #tpu.memory_space<vmem>>, vector<1x32xf32>
    %c376 = arith.constant 376 : index
    %c0_288 = arith.constant 0 : index
    %969 = vector.load %arg3[%c376, %c0_288] : memref<392x128xf32, #tpu.memory_space<vmem>>, vector<1x32xf32>
    %cst_289 = arith.constant dense<0.000000e+00> : vector<16xf32>
    %970 = vector.multi_reduction <add>, %967, %cst_289 [1] : vector<16x32xf32> to vector<16xf32>
    %971 = vector.shape_cast %970 : vector<16xf32> to vector<16x1xf32>
    %cst_290 = arith.constant 3.200000e+01 : f32
    %972 = vector.broadcast %cst_290 : f32 to vector<16x1xf32>
    %973 = arith.divf %971, %972 : vector<16x1xf32>
    %974 = vector.broadcast %973 : vector<16x1xf32> to vector<16x32xf32>
    %975 = arith.subf %967, %974 : vector<16x32xf32>
    %976 = arith.mulf %975, %975 : vector<16x32xf32>
    %cst_291 = arith.constant dense<0.000000e+00> : vector<16xf32>
    %977 = vector.multi_reduction <add>, %976, %cst_291 [1] : vector<16x32xf32> to vector<16xf32>
    %978 = vector.shape_cast %977 : vector<16xf32> to vector<16x1xf32>
    %cst_292 = arith.constant 3.200000e+01 : f32
    %979 = vector.broadcast %cst_292 : f32 to vector<16x1xf32>
    %980 = arith.divf %978, %979 : vector<16x1xf32>
    %cst_293 = arith.constant 9.99999974E-6 : f32
    %981 = vector.broadcast %cst_293 : f32 to vector<16x1xf32>
    %982 = arith.addf %980, %981 : vector<16x1xf32>
    %983 = math.rsqrt %982 : vector<16x1xf32>
    %984 = vector.broadcast %983 : vector<16x1xf32> to vector<16x32xf32>
    %985 = arith.mulf %975, %984 : vector<16x32xf32>
    %986 = vector.broadcast %968 : vector<1x32xf32> to vector<16x32xf32>
    %987 = arith.mulf %985, %986 : vector<16x32xf32>
    %988 = vector.broadcast %969 : vector<1x32xf32> to vector<16x32xf32>
    %989 = arith.addf %987, %988 : vector<16x32xf32>
    %c896 = arith.constant 896 : index
    %c0_294 = arith.constant 0 : index
    %990 = vector.load %arg2[%c896, %c0_294] : memref<928x128xbf16, #tpu.memory_space<vmem>>, vector<32x128xbf16>
    %c384_295 = arith.constant 384 : index
    %c0_296 = arith.constant 0 : index
    %991 = vector.load %arg3[%c384_295, %c0_296] : memref<392x128xf32, #tpu.memory_space<vmem>>, vector<1x128xf32>
    %992 = arith.truncf %989 : vector<16x32xf32> to vector<16x32xbf16>
    %cst_297 = arith.constant dense<0.000000e+00> : vector<16x128xf32>
    %993 = tpu.matmul %992, %990, %cst_297 {dimension_numbers = #tpu.dot_dimension_numbers<[1], [0], [0], [1], [0, 0, 1, 1], [], []>} : vector<16x32xbf16>, vector<32x128xbf16>, vector<16x128xf32> -> vector<16x128xf32>
    %994 = vector.broadcast %991 : vector<1x128xf32> to vector<16x128xf32>
    %995 = arith.addf %993, %994 : vector<16x128xf32>
    %c0_298 = arith.constant 0 : index
    %c0_299 = arith.constant 0 : index
    %996 = vector.load %arg4[%c0_298, %c0_299] : memref<16x128xf32, #tpu.memory_space<vmem>>, vector<16x128xf32>
    tpu.vector_store %arg4[%c0_298, %c0_299], %995 {strides = array<i32>} : memref<16x128xf32, #tpu.memory_space<vmem>>, vector<16x128xf32>,
    return
  }
}

</mosaic_0001>

<bundles_post_ra>
// kernel: transformer_forward.1
= control target key start
LH: loop header
LB: loop body
LE: loop exit
PB: predicated region body
PF: predicated region fallthrough
CT: control target
= control target key end

     0   :  { %9 = vsyncpa [#allocation3], 0  ;;  %s11696_s0 = inlined_call_operand.vmem [shape: s32[16,1], index: 0, kind: input, shape index: {}]   ;;  %s11697_s1 = inlined_call_operand.vmem [shape: s32[16,1], index: 1, kind: input, shape index: {}]   ;;  %s11698_s2 = inlined_call_operand.hbm [shape: bf16[928,128], index: 2, kind: input, shape index: {}]   ;;  %s11699_s3 = inlined_call_operand.hbm [shape: f32[392,128], index: 3, kind: input, shape index: {}]   ;;  %s11700_s4 = inlined_call_operand.vmem [shape: f32[16,128], index: 4, kind: output, shape index: {}]  }
   0x1   :  { %10 = vsyncpa [#allocation5], 0  ;;  %s10237_s15 = smov [#allocation2]  }
   0x2   :  { %s20_s16 = sshll.u32 %s10237_s15, 4  ;;  %s21_s16 = int_to_ptr.vmem [resolvable:$true] %s20_s16 }
   0x3   :  { %s10201_s17 = scalar_lea.vmem %s21_s16, 7424  ;;  %p10206_p1 = scmp.lt.s32.totalorder %s21_s16, %s21_s16 }
   0x4   :  { %p10202_p0 = scmp.ne.s32.totalorder %s21_s16, %s10201_s17  ;;  %p10207_p2 = scmp.lt.s32.totalorder %s10201_s17, %s10201_s17 }
   0x6   :  { %p10208_p3 = por %p10207_p2, %p10206_p1 }
   0x8   :  { %p10209_p4 = pnand %p10208_p3, %p10202_p0 }
   0xa   :  { %10212 = shalt.err (!%p10209_p4)
}
   0xb   :  { %s10238_s18 = smov 64   ;;  %s10239_s19 = smov 4  }
   0xc   :  { %26 = dma.hbm_to_vmem [thread:$0]  %s11698_s2, 7424, %s21_s16, [#allocation3], %s10238_s18, %s10238_s18, %s10239_s19  }
   0xd   :  { %s10240_s22 = smov [#allocation4]  }
   0xe   :  { %s32_s23 = sshll.u32 %s10240_s22, 4  ;;  %s33_s23 = int_to_ptr.vmem [resolvable:$true] %s32_s23 }
   0xf   :  { %s10221_s24 = scalar_lea.vmem %s33_s23, 6272  ;;  %p10226_p6 = scmp.lt.s32.totalorder %s33_s23, %s33_s23 }
  0x10   :  { %p10222_p5 = scmp.ne.s32.totalorder %s33_s23, %s10221_s24  ;;  %p10227_p7 = scmp.lt.s32.totalorder %s10221_s24, %s10221_s24 }
  0x12   :  { %p10228_p8 = por %p10227_p7, %p10226_p6 }
  0x14   :  { %p10229_p9 = pnand %p10228_p8, %p10222_p5 }
  0x16   :  { %10232 = shalt.err (!%p10229_p9)
}
  0x17   :  { %s10241_s25 = smov 128   ;;  %s10242_s26 = smov 8  }
  0x18   :  { %38 = dma.hbm_to_vmem [thread:$0]  %s11699_s3, 6272, %s33_s23, [#allocation5], %s10241_s25, %s10241_s25, %s10242_s26  }
  0x19   :  { %10233 = dma.done.wait [#allocation3], 7424  }
  0x1a   :  { %10234 = vsyncadd [#allocation3], 4294959872 }
  0x1b   :  { %10235 = dma.done.wait [#allocation5], 6272  }
  0x1c   :  { %10236 = vsyncadd [#allocation5], 4294961024  ;;  %v10243_v0 = vmov 0   ;;  %v10244_v1 = vmov 0.0   ;;  %v55_v2 = vld [vmem:[%s11696_s0] sm:$0xff]  ;;  %v9906_v3 = vld [vmem:[#allocation2 + $0x18] sm:$0xff]   ;;  %v57_v8 = vlaneseq }
  0x1d   :  { %9904 = vset.pattern.permute.xlu0 %v10243_v0  ;;  %8989 = vmatprep.subr.bf16.mxu0 %v10244_v1  ;;  %v56_v4 = vld [vmem:[%s11696_s0 + $0x8] sm:$0xff]  ;;  %v9907_v5 = vld [vmem:[#allocation2 + $0x10] sm:$0xff]   ;;  %vm10245_vm0 = vmmov 0   ;;  %v9909_v7 = vld [vmem:[#allocation2] sm:$0xff]   ;;  %vm94_vm3 = vcmask 523264   ;;  %vm241_vm4 = vcmask 261120  }
  0x1e   :  { %9905 = vset.pattern.permute.xlu1 %v10243_v0  ;;  %9001 = vmatprep.subr.bf16.mxu1 %v10244_v1  ;;  %v9908_v6 = vld [vmem:[#allocation2 + $0x8] sm:$0xff]   ;;  %v58_v9 = vand.u32 127, %v57_v8  ;;  %v9911_v16 = vld [vmem:[#allocation2 + $0x20] sm:$0xff]   ;;  %v54_v20 = vld [vmem:[#allocation4] sm:$0xff]  ;;  %vm295_vm7 = vcmask 64512   ;;  %s10247_s8 = smov 88  }
  0x1f   :  { %60 = vperm.xlu0 %9904, %v55_v2   ;;  %8990 = vmatpush3.bf16.msra.mxu0 %v9906_v3  ;;  %v9910_v15 = vld [vmem:[#allocation2 + $0x28] sm:$0xff]   ;;  %v139_v17 = vld [vmem:[%s11697_s1] sm:$0xff]  ;;  %s10248_s9 = smov 120   ;;  %vm420_vm8 = vcmask 1043456   ;;  %s10249_s10 = smov 56  }
  0x20   :  { %9002 = vmatpush3.bf16.msra.mxu1 %v9906_v3  ;;  %8991 = vmatprep.subr.bf16.mxu0 %v10244_v1  ;;  %v140_v18 = vld [vmem:[%s11697_s1 + $0x8] sm:$0xff]  ;;  %v8454_v32 = vld [vmem:[#allocation4 + $0x10] ss:$0 sm:$0xff]  ;;  %s10246_s1 = smov 96   ;;  %s10250_s11 = smov 80  }
  0x21   :  { %8997 = vmatprep.mubr.msk.bf16.mxu0 %vm10245_vm0, %v10244_v1  ;;  %9003 = vmatprep.subr.bf16.mxu1 %v10244_v1  ;;  %s10251_s12 = smov 112   ;;  %s10252_s13 = smov 48  }
  0x22   :  { %9009 = vmatprep.mubr.msk.bf16.mxu1 %vm10245_vm0, %v10244_v1  ;;  %142 = vperm.xlu1 %9905, %v139_v17   ;;  %s10253_s14 = smov 72   ;;  %s10254_s15 = smov 104  }
  0x23   :  { %63 = vperm.xlu0 %9904, %v56_v4   ;;  %8992 = vmatpush3.bf16.msra.mxu0 %v9907_v5  ;;  %s10255_s16 = smov 40  }
  0x24   :  { %9004 = vmatpush3.bf16.msra.mxu1 %v9907_v5  ;;  %8993 = vmatprep.subr.bf16.mxu0 %v10244_v1 }
  0x25   :  { %9005 = vmatprep.subr.bf16.mxu1 %v10244_v1 }
  0x26   :  { %145 = vperm.xlu1 %9905, %v140_v18  }
  0x27   :  { %8994 = vmatpush3.bf16.msra.mxu0 %v9908_v6 }
  0x28   :  { %9006 = vmatpush3.bf16.msra.mxu1 %v9908_v6  ;;  %8995 = vmatprep.subr.bf16.mxu0 %v10244_v1 }
  0x29   :  { %9007 = vmatprep.subr.bf16.mxu1 %v10244_v1 }
  0x2b   :  { %8996 = vmatpush3.bf16.msra.mxu0 %v9909_v7 }
  0x2c   :  { %9008 = vmatpush3.bf16.msra.mxu1 %v9909_v7  ;;  %9013 = vmatprep.subr.bf16.mxu0 %v10244_v1 }
  0x2d   :  { %9021 = vmatprep.subr.bf16.mxu1 %v10244_v1 }
  0x9a   :  { %v61_v10 = vpop.permute.xlu0 %60 }
  0x9b   :  { %vm65_vm1 = vcmp.eq.s32.totalorder %v58_v9, %v61_v10 }
  0x9c   :  { %v67_v12 = vsel %vm65_vm1, 1.0, %v10244_v1 }
  0x9d   :  { %v143_v27 = vpop.permute.xlu1 %142 }
  0x9e   :  { %v64_v11 = vpop.permute.xlu0 %63  ;;  %vm147_vm5 = vcmp.eq.s32.totalorder %v58_v9, %v143_v27 }
  0x9f   :  { %vm66_vm2 = vcmp.eq.s32.totalorder %v58_v9, %v64_v11  ;;  %v149_v28 = vsel %vm147_vm5, 1.0, %v10244_v1 }
  0xa0   :  { %v68_v13 = vsel %vm66_vm2, 1.0, %v10244_v1 }
  0xa1   :  { %v69_v14 = vpack.c.bf16 %v68_v13, %v67_v12  ;;  %v146_v29 = vpop.permute.xlu1 %145 }
  0xa2   :  { %vm148_vm6 = vcmp.eq.s32.totalorder %v58_v9, %v146_v29 }
  0xa3   :  { %8998 = vmatmul.mubr.msk.bf16.vlgmr.msra.gmra.mxu0 %vm94_vm3, %v69_v14  ;;  %v150_v30 = vsel %vm148_vm6, 1.0, %v10244_v1 }
  0xa4   :  { %9017 = vmatprep.mubr.msk.bf16.mxu0 %vm10245_vm0, %v10244_v1  ;;  %9014 = vmatpush3.bf16.msra.mxu0 %v9910_v15  ;;  %v151_v31 = vpack.c.bf16 %v150_v30, %v149_v28 }
  0xa5   :  { %9015 = vmatprep.subr.bf16.mxu0 %v10244_v1 }
  0xa6   :  { %9010 = vmatmul.mubr.msk.bf16.vlgmr.msra.gmra.mxu1 %vm94_vm3, %v151_v31 }
  0xa7   :  { %9023 = vmatprep.mubr.msk.bf16.mxu1 %vm10245_vm0, %v10244_v1 }
  0xa8   :  { %9016 = vmatpush3.bf16.msra.mxu0 %v9911_v16 }
  0xa9   :  { %9027 = vmatprep.subr.bf16.mxu0 %v10244_v1 }
 0x163   :  { %v132_v19 = vpop.f32.mrf.mxu0 }
 0x164   :  { %v10322_v23 = vadd.f32 %v132_v19, %v54_v20 }
 0x165   :  { %v8999_v21 = vpop.f32.mrf.mxu0 }
 0x166   :  { %v10344_v41 = vpop.f32.mrf.mxu1 }
 0x167   :  { %v135_v22 = vpop.f32.mrf.mxu0 }
 0x168   :  { %v10324_v24 = vadd.f32 %v135_v22, %v54_v20  ;;  %v9011_v42 = vpop.f32.mrf.mxu1 }
 0x169   :  { %v9000_v25 = vpop.f32.mrf.mxu0 }
 0x16a   :  { %v224_v26 = vpack.c.bf16 %v10324_v24, %v10322_v23  ;;  %v10346_v43 = vpop.f32.mrf.mxu1 }
 0x16c   :  { %9018 = vmatmul.mubr.msk.bf16.vlgmr.msra.gmra.mxu0 %vm241_vm4, %v224_v26  ;;  %v9012_v44 = vpop.f32.mrf.mxu1 }
 0x16d   :  { %9029 = vmatprep.mubr.msk.bf16.mxu0 %vm10245_vm0, %v10244_v1 }
 0x22c   :  { %v279_v33 = vpop.f32.mrf.mxu0 }
 0x22d   :  { %v280_v34 = vadd.f32 %v8454_v32, %v279_v33 }
 0x22e   :  { %v9019_v35 = vpop.f32.mrf.mxu0 }
 0x22f   :  { %v10336_v36 = vpack.c.bf16 %v280_v34, %v280_v34  ;;  %v286_v47 = vmul.f32 0.35355338, %v280_v34 }
 0x230   :  { %v282_v37 = vpop.f32.mrf.mxu0 }
 0x231   :  { %v283_v38 = vadd.f32 %v8454_v32, %v282_v37  ;;  %293 = vrot.lane.b32.xlu0 %v10336_v36, %s10246_s1  ;;  %v10351_v50 = vpack.c.bf16 %v286_v47, %v286_v47 }
 0x232   :  { %v9020_v39 = vpop.f32.mrf.mxu0 }
 0x233   :  { %v10340_v40 = vpack.c.bf16 %v283_v38, %v283_v38  ;;  %v287_v51 = vmul.f32 0.35355338, %v283_v38 }
 0x235   :  { %343 = vrot.lane.b32.xlu1 %v10340_v40, %s10246_s1  ;;  %v10358_v52 = vpack.c.bf16 %v287_v51, %v287_v51 }
 0x2a3   :  { %v294_v45 = vpop.permute.xlu0 %293 }
 0x2a4   :  { %v300_v46 = vsel %vm295_vm7, %v294_v45, 0 }
 0x2a5   :  { %9022 = vmatpush3.bf16.xpose.msra.mxu1 %v300_v46 }
 0x2a6   :  { %9033 = vmatprep.subr.bf16.mxu1 %v10244_v1 }
 0x2a7   :  { %v344_v48 = vpop.permute.xlu1 %343 }
 0x2a8   :  { %v349_v49 = vsel %vm295_vm7, %v344_v48, 0 }
 0x2a9   :  { %9028 = vmatpush3.bf16.xpose.msra.mxu0 %v349_v49 }
 0x2aa   :  { %9039 = vmatprep.subr.bf16.mxu0 %v10244_v1 }
 0x2ac   :  { %9024 = vmatmul.mubr.msk.bf16.vlgmr.msra.gmra.mxu1 %vm295_vm7, %v10351_v50 }
 0x2ad   :  { %9035 = vmatprep.mubr.msk.bf16.mxu1 %vm10245_vm0, %v10244_v1 }
 0x2b0   :  { %9030 = vmatmul.mubr.msk.bf16.vlgmr.msra.gmra.mxu0 %vm295_vm7, %v10358_v52 }
 0x2b1   :  { %9041 = vmatprep.mubr.msk.bf16.mxu0 %vm10245_vm0, %v10244_v1 }
 0x36c   :  { %v336_v53 = vpop.f32.mrf.mxu1 }
 0x36d   :  { %v391_v54 = vsel %vm295_vm7, %v336_v53, -inf }
 0x36e   :  { %392 = vmax.xlane.f32.xlu0 %v391_v54  ;;  %v9025_v55 = vpop.f32.mrf.mxu1 }
 0x370   :  { %v339_v56 = vpop.f32.mrf.mxu1  ;;  %v385_v57 = vpop.f32.mrf.mxu0 }
 0x371   :  { %v394_v58 = vsel %vm295_vm7, %v385_v57, -inf }
 0x372   :  { %v9026_v59 = vpop.f32.mrf.mxu1  ;;  %395 = vmax.xlane.f32.xlu1 %v394_v58  ;;  %v9031_v60 = vpop.f32.mrf.mxu0 }
 0x374   :  { %v388_v61 = vpop.f32.mrf.mxu0 }
 0x376   :  { %v9032_v62 = vpop.f32.mrf.mxu0 }
 0x383   :  { %415 = vrot.lane.b32.xlu1 %v10336_v36, %s10238_s18 }
 0x387   :  { %516 = vrot.lane.b32.xlu1 %v10336_v36, %s10247_s8 }
 0x38b   :  { %567 = vrot.lane.b32.xlu1 %v10340_v40, %s10247_s8 }
 0x38f   :  { %565 = vrot.lane.b32.xlu1 %v10358_v52, %s10248_s9 }
 0x3f7   :  { %v393_v63 = vpop.xlane.xlu0 %392 }
 0x3f8   :  { %v397_v0 = vsub.f32 %v336_v53, %v393_v63 }
 0x3fa   :  { %v399_v2 = vmul.f32 1.442695, %v397_v0 }
 0x3fb   :  { %v396_v3 = vpop.xlane.xlu1 %395 }
 0x3fc   :  { %9952 = vpow2.f32 %v399_v2  ;;  %v398_v4 = vsub.f32 %v385_v57, %v396_v3 }
 0x3fe   :  { %v401_v5 = vmul.f32 1.442695, %v398_v4 }
 0x3ff   :  { %v416_v6 = vpop.permute.xlu1 %415 }
 0x400   :  { %9954 = vpow2.f32 %v401_v5  ;;  %v422_v7 = vsel %vm420_vm8, %v416_v6, 0 }
 0x401   :  { %9034 = vmatpush3.bf16.msra.mxu1 %v422_v7 }
 0x402   :  { %9045 = vmatprep.subr.bf16.mxu1 %v10244_v1 }
 0x403   :  { %v517_v17 = vpop.permute.xlu1 %516 }
 0x404   :  { %v522_v21 = vsel %vm295_vm7, %v517_v17, 0 }
 0x407   :  { %v568_v25 = vpop.permute.xlu1 %567 }
 0x408   :  { %v573_v27 = vsel %vm295_vm7, %v568_v25, 0 }
 0x409   :  { %v9953_v8 = vpop.eup %9952 }
 0x40a   :  { %v403_v9 = vsel %vm295_vm7, %v9953_v8, 0.0 }
 0x40b   :  { %404 = vadd.xlane.f32.xlu0 %v403_v9  ;;  %v566_v29 = vpop.permute.xlu1 %565 }
 0x40d   :  { %v9955_v10 = vpop.eup %9954 }
 0x40e   :  { %v406_v11 = vsel %vm295_vm7, %v9955_v10, 0.0 }
 0x40f   :  { %407 = vadd.xlane.f32.xlu0 %v406_v11 }
 0x425   :  { %464 = vrot.lane.b32.xlu0 %v10340_v40, %s10238_s18 }
 0x429   :  { %514 = vrot.lane.b32.xlu0 %v10351_v50, %s10248_s9 }
 0x494   :  { %v405_v12 = vpop.xlane.xlu0 %404 }
 0x495   :  { %9956 = vrcp.f32 %v405_v12  ;;  %v200_v12 = vld [vmem:[#allocation2 + $0x30] sm:$0xf] }
 0x498   :  { %v408_v13 = vpop.xlane.xlu0 %407 }
 0x499   :  { %9958 = vrcp.f32 %v408_v13 }
 0x49c   :  { %v465_v14 = vpop.permute.xlu0 %464 }
 0x49d   :  { %v470_v15 = vsel %vm420_vm8, %v465_v14, 0 }
 0x49e   :  { %9040 = vmatpush3.bf16.msra.mxu0 %v470_v15  ;;  %v787_v15 = vsel %vm420_vm8, %v200_v12, 0 }
 0x49f   :  { %9051 = vmatprep.subr.bf16.mxu0 %v10244_v1 }
 0x4a0   :  { %v515_v28 = vpop.permute.xlu0 %514 }
 0x4a2   :  { %v9957_v16 = vpop.eup %9956 }
 0x4a3   :  { %v411_v18 = vmul.f32 %v9957_v16, %v9953_v8 }
 0x4a5   :  { %v413_v19 = vpack.c.bf16 %v411_v18, %v411_v18 }
 0x4a6   :  { %v9959_v20 = vpop.eup %9958 }
 0x4a7   :  { %9036 = vmatmul.mubr.msk.bf16.vlgmr.msra.gmra.mxu1 %vm295_vm7, %v413_v19  ;;  %v412_v22 = vmul.f32 %v9959_v20, %v9955_v10  ;;  %v201_v20 = vld [vmem:[#allocation2 + $0x34] sm:$0xf] }
 0x4a8   :  { %9046 = vmatpush3.bf16.xpose.msra.mxu1 %v522_v21  ;;  %9047 = vmatprep.mubr.msk.bf16.mxu1 %vm10245_vm0, %v10244_v1  ;;  %v740_v21 = vsel %vm420_vm8, %v201_v20, 0 }
 0x4a9   :  { %v414_v26 = vpack.c.bf16 %v412_v22, %v412_v22  ;;  %9057 = vmatprep.subr.bf16.mxu1 %v10244_v1 }
 0x4ab   :  { %9042 = vmatmul.mubr.msk.bf16.vlgmr.msra.gmra.mxu0 %vm295_vm7, %v414_v26 }
 0x4ac   :  { %9052 = vmatpush3.bf16.xpose.msra.mxu0 %v573_v27  ;;  %9053 = vmatprep.mubr.msk.bf16.mxu0 %vm10245_vm0, %v10244_v1 }
 0x4ad   :  { %9063 = vmatprep.subr.bf16.mxu0 %v10244_v1 }
 0x4af   :  { %9048 = vmatmul.mubr.msk.bf16.vlgmr.msra.gmra.mxu1 %vm295_vm7, %v515_v28 }
 0x4b0   :  { %9059 = vmatprep.mubr.msk.bf16.mxu1 %vm10245_vm0, %v10244_v1 }
 0x4b3   :  { %9054 = vmatmul.mubr.msk.bf16.vlgmr.msra.gmra.mxu0 %vm295_vm7, %v566_v29 }
 0x4b4   :  { %9065 = vmatprep.mubr.msk.bf16.mxu0 %vm10245_vm0, %v10244_v1 }
 0x567   :  { %v10400_v30 = vpop.f32.mrf.mxu1 }
 0x569   :  { %v9037_v31 = vpop.f32.mrf.mxu1 }
 0x56b   :  { %v461_v32 = vpop.f32.mrf.mxu1  ;;  %v10402_v33 = vpop.f32.mrf.mxu0 }
 0x56c   :  { %v512_v34 = vpack.c.bf16 %v10402_v33, %v10400_v30 }
 0x56d   :  { %v9038_v35 = vpop.f32.mrf.mxu1  ;;  %v9043_v37 = vpop.f32.mrf.mxu0 }
 0x56f   :  { %v509_v38 = vpop.f32.mrf.mxu0  ;;  %v558_v39 = vpop.f32.mrf.mxu1 }
 0x570   :  { %v615_v42 = vsel %vm295_vm7, %v558_v39, -inf }
 0x571   :  { %616 = vmax.xlane.f32.xlu0 %v615_v42  ;;  %v9044_v44 = vpop.f32.mrf.mxu0  ;;  %v9049_v45 = vpop.f32.mrf.mxu1 }
 0x573   :  { %v561_v46 = vpop.f32.mrf.mxu1  ;;  %v609_v47 = vpop.f32.mrf.mxu0 }
 0x574   :  { %v618_v48 = vsel %vm295_vm7, %v609_v47, -inf }
 0x575   :  { %v9050_v49 = vpop.f32.mrf.mxu1  ;;  %619 = vmax.xlane.f32.xlu1 %v618_v48  ;;  %v9055_v51 = vpop.f32.mrf.mxu0 }
 0x577   :  { %v612_v53 = vpop.f32.mrf.mxu0 }
 0x579   :  { %v9056_v54 = vpop.f32.mrf.mxu0 }
 0x586   :  { %639 = vrot.lane.b32.xlu1 %v10336_v36, %s10249_s10 }
 0x58a   :  { %832 = vrot.lane.b32.xlu1 %v10336_v36, %s10250_s11 }
 0x58e   :  { %882 = vrot.lane.b32.xlu1 %v10340_v40, %s10250_s11 }
 0x592   :  { %880 = vrot.lane.b32.xlu1 %v10358_v52, %s10251_s12 }
 0x5fa   :  { %v617_v55 = vpop.xlane.xlu0 %616 }
 0x5fb   :  { %v621_v56 = vsub.f32 %v558_v39, %v617_v55 }
 0x5fd   :  { %v623_v57 = vmul.f32 1.442695, %v621_v56 }
 0x5fe   :  { %v620_v58 = vpop.xlane.xlu1 %619 }
 0x5ff   :  { %9960 = vpow2.f32 %v623_v57  ;;  %v622_v59 = vsub.f32 %v609_v47, %v620_v58 }
 0x601   :  { %v625_v60 = vmul.f32 1.442695, %v622_v59 }
 0x602   :  { %v640_v61 = vpop.permute.xlu1 %639 }
 0x603   :  { %9962 = vpow2.f32 %v625_v60  ;;  %v645_v62 = vsel %vm420_vm8, %v640_v61, 0 }
 0x604   :  { %9058 = vmatpush3.bf16.msra.mxu1 %v645_v62 }
 0x605   :  { %9069 = vmatprep.subr.bf16.mxu1 %v10244_v1 }
 0x606   :  { %v833_v16 = vpop.permute.xlu1 %832 }
 0x607   :  { %v838_v31 = vsel %vm295_vm7, %v833_v16, 0 }
 0x60a   :  { %v883_v17 = vpop.permute.xlu1 %882 }
 0x60b   :  { %v888_v18 = vsel %vm295_vm7, %v883_v17, 0 }
 0x60c   :  { %v9961_v63 = vpop.eup %9960 }
 0x60d   :  { %v627_v0 = vsel %vm295_vm7, %v9961_v63, 0.0 }
 0x60e   :  { %628 = vadd.xlane.f32.xlu0 %v627_v0  ;;  %v881_v19 = vpop.permute.xlu1 %880 }
 0x610   :  { %v9963_v2 = vpop.eup %9962 }
 0x611   :  { %v630_v3 = vsel %vm295_vm7, %v9963_v2, 0.0 }
 0x612   :  { %631 = vadd.xlane.f32.xlu0 %v630_v3 }
 0x628   :  { %687 = vrot.lane.b32.xlu0 %v10340_v40, %s10249_s10 }
 0x62c   :  { %830 = vrot.lane.b32.xlu0 %v10351_v50, %s10251_s12 }
 0x697   :  { %v629_v4 = vpop.xlane.xlu0 %628 }
 0x698   :  { %9964 = vrcp.f32 %v629_v4 }
 0x69b   :  { %v632_v5 = vpop.xlane.xlu0 %631 }
 0x69c   :  { %9966 = vrcp.f32 %v632_v5 }
 0x69f   :  { %v688_v6 = vpop.permute.xlu0 %687 }
 0x6a0   :  { %v693_v7 = vsel %vm420_vm8, %v688_v6, 0 }
 0x6a1   :  { %9064 = vmatpush3.bf16.msra.mxu0 %v693_v7 }
 0x6a2   :  { %9075 = vmatprep.subr.bf16.mxu0 %v10244_v1 }
 0x6a3   :  { %v831_v35 = vpop.permute.xlu0 %830 }
 0x6a5   :  { %v9965_v8 = vpop.eup %9964 }
 0x6a6   :  { %v635_v9 = vmul.f32 %v9965_v8, %v9961_v63 }
 0x6a8   :  { %v637_v10 = vpack.c.bf16 %v635_v9, %v635_v9 }
 0x6a9   :  { %v9967_v11 = vpop.eup %9966 }
 0x6aa   :  { %9060 = vmatmul.mubr.msk.bf16.vlgmr.msra.gmra.mxu1 %vm295_vm7, %v637_v10  ;;  %v636_v13 = vmul.f32 %v9967_v11, %v9963_v2 }
 0x6ab   :  { %9071 = vmatprep.mubr.msk.bf16.mxu1 %vm10245_vm0, %v10244_v1  ;;  %9070 = vmatpush3.bf16.msra.mxu1 %v740_v21 }
 0x6ac   :  { %v638_v14 = vpack.c.bf16 %v636_v13, %v636_v13  ;;  %9081 = vmatprep.subr.bf16.mxu1 %v10244_v1 }
 0x6ae   :  { %9066 = vmatmul.mubr.msk.bf16.vlgmr.msra.gmra.mxu0 %vm295_vm7, %v638_v14 }
 0x6af   :  { %9076 = vmatpush3.bf16.msra.mxu0 %v787_v15  ;;  %9077 = vmatprep.mubr.msk.bf16.mxu0 %vm10245_vm0, %v10244_v1 }
 0x6b0   :  { %9087 = vmatprep.subr.bf16.mxu0 %v10244_v1 }
 0x6b6   :  { %9078 = vmatmul.mubr.msk.bf16.vlgmr.msra.gmra.mxu0 %vm295_vm7, %v512_v34 }
 0x6b7   :  { %9088 = vmatpush3.bf16.xpose.msra.mxu0 %v888_v18  ;;  %9089 = vmatprep.mubr.msk.bf16.mxu0 %vm10245_vm0, %v10244_v1 }
 0x6b8   :  { %9099 = vmatprep.subr.bf16.mxu0 %v10244_v1 }
 0x6be   :  { %9090 = vmatmul.mubr.msk.bf16.vlgmr.msra.gmra.mxu0 %vm295_vm7, %v881_v19  ;;  %v202_v19 = vld [vmem:[#allocation2 + $0x38] sm:$0xf] }
 0x6bf   :  { %9101 = vmatprep.mubr.msk.bf16.mxu0 %vm10245_vm0, %v10244_v1  ;;  %v1055_v20 = vsel %vm420_vm8, %v202_v19, 0 }
 0x76a   :  { %v681_v22 = vpop.f32.mrf.mxu1 }
 0x76c   :  { %v9061_v25 = vpop.f32.mrf.mxu1 }
 0x76e   :  { %v684_v26 = vpop.f32.mrf.mxu1  ;;  %v729_v27 = vpop.f32.mrf.mxu0 }
 0x76f   :  { %v735_v28 = vpack.c.bf16 %v729_v27, %v681_v22 }
 0x770   :  { %v9062_v29 = vpop.f32.mrf.mxu1  ;;  %v9067_v30 = vpop.f32.mrf.mxu0 }
 0x771   :  { %9072 = vmatmul.mubr.msk.bf16.vlgmr.msra.gmra.mxu1 %vm295_vm7, %v735_v28 }
 0x772   :  { %9082 = vmatpush3.bf16.xpose.msra.mxu1 %v838_v31  ;;  %v732_v32 = vpop.f32.mrf.mxu0  ;;  %9083 = vmatprep.mubr.msk.bf16.mxu1 %vm10245_vm0, %v10244_v1 }
 0x773   :  { %9093 = vmatprep.subr.bf16.mxu1 %v10244_v1 }
 0x774   :  { %v9068_v33 = vpop.f32.mrf.mxu0 }
 0x776   :  { %v10452_v34 = vpop.f32.mrf.mxu0 }
 0x778   :  { %v9079_v37 = vpop.f32.mrf.mxu0 }
 0x779   :  { %9084 = vmatmul.mubr.msk.bf16.vlgmr.msra.gmra.mxu1 %vm295_vm7, %v831_v35 }
 0x77a   :  { %v10455_v38 = vpop.f32.mrf.mxu0  ;;  %9095 = vmatprep.mubr.msk.bf16.mxu1 %vm10245_vm0, %v10244_v1 }
 0x77c   :  { %v9080_v39 = vpop.f32.mrf.mxu0 }
 0x77e   :  { %v924_v42 = vpop.f32.mrf.mxu0 }
 0x77f   :  { %v933_v44 = vsel %vm295_vm7, %v924_v42, -inf }
 0x780   :  { %934 = vmax.xlane.f32.xlu1 %v933_v44  ;;  %v9091_v45 = vpop.f32.mrf.mxu0 }
 0x782   :  { %v927_v46 = vpop.f32.mrf.mxu0 }
 0x784   :  { %v9092_v47 = vpop.f32.mrf.mxu0 }
 0x791   :  { %954 = vrot.lane.b32.xlu1 %v10336_v36, %s10252_s13 }
 0x795   :  { %1102 = vrot.lane.b32.xlu1 %v10336_v36, %s10253_s14 }
 0x799   :  { %1152 = vrot.lane.b32.xlu1 %v10340_v40, %s10253_s14 }
 0x79d   :  { %1150 = vrot.lane.b32.xlu1 %v10358_v52, %s10254_s15 }
 0x809   :  { %v935_v48 = vpop.xlane.xlu1 %934 }
 0x80a   :  { %v937_v53 = vsub.f32 %v924_v42, %v935_v48 }
 0x80c   :  { %v940_v54 = vmul.f32 1.442695, %v937_v53 }
 0x80d   :  { %v955_v49 = vpop.permute.xlu1 %954 }
 0x80e   :  { %v960_v51 = vsel %vm420_vm8, %v955_v49, 0  ;;  %9968 = vpow2.f32 %v940_v54 }
 0x80f   :  { %9094 = vmatpush3.bf16.msra.mxu1 %v960_v51 }
 0x810   :  { %9105 = vmatprep.subr.bf16.mxu1 %v10244_v1 }
 0x811   :  { %v1103_v13 = vpop.permute.xlu1 %1102 }
 0x812   :  { %v1108_v15 = vsel %vm295_vm7, %v1103_v13, 0 }
 0x815   :  { %v1153_v28 = vpop.permute.xlu1 %1152 }
 0x816   :  { %v1158_v37 = vsel %vm295_vm7, %v1153_v28, 0 }
 0x819   :  { %v1151_v45 = vpop.permute.xlu1 %1150 }
 0x81b   :  { %v9969_v52 = vpop.eup %9968 }
 0x81c   :  { %v945_v63 = vsel %vm295_vm7, %v9969_v52, 0.0 }
 0x831   :  { %v10470_v55 = vpop.f32.mrf.mxu1 }
 0x832   :  { %v824_v53 = vadd.f32 %v10452_v34, %v10470_v55 }
 0x833   :  { %v9073_v56 = vpop.f32.mrf.mxu1 }
 0x835   :  { %v10472_v57 = vpop.f32.mrf.mxu1 }
 0x837   :  { %v9074_v58 = vpop.f32.mrf.mxu1 }
 0x839   :  { %v874_v59 = vpop.f32.mrf.mxu1 }
 0x83a   :  { %v930_v60 = vsel %vm295_vm7, %v874_v59, -inf }
 0x83b   :  { %931 = vmax.xlane.f32.xlu0 %v930_v60  ;;  %v9085_v61 = vpop.f32.mrf.mxu1 }
 0x83d   :  { %v877_v62 = vpop.f32.mrf.mxu1 }
 0x83f   :  { %v9086_v0 = vpop.f32.mrf.mxu1  ;;  %946 = vadd.xlane.f32.xlu0 %v945_v63 }
 0x8c4   :  { %v932_v2 = vpop.xlane.xlu0 %931 }
 0x8c5   :  { %v936_v3 = vsub.f32 %v874_v59, %v932_v2  ;;  %v827_v59 = vadd.f32 %v10455_v38, %v10472_v57 }
 0x8c7   :  { %v938_v4 = vmul.f32 1.442695, %v936_v3 }
 0x8c8   :  { %v947_v7 = vpop.xlane.xlu0 %946 }
 0x8c9   :  { %9970 = vpow2.f32 %v938_v4 }
 0x8ca   :  { %9972 = vrcp.f32 %v947_v7 }
 0x8d6   :  { %v9971_v5 = vpop.eup %9970 }
 0x8d7   :  { %v942_v6 = vsel %vm295_vm7, %v9971_v5, 0.0  ;;  %v9973_v8 = vpop.eup %9972 }
 0x8d8   :  { %943 = vadd.xlane.f32.xlu0 %v942_v6  ;;  %v951_v10 = vmul.f32 %v9973_v8, %v9969_v52 }
 0x8da   :  { %v953_v14 = vpack.c.bf16 %v951_v10, %v951_v10  ;;  %v203_v10 = vld [vmem:[#allocation2 + $0x3c] sm:$0xf] }
 0x8ee   :  { %1002 = vrot.lane.b32.xlu0 %v10340_v40, %s10252_s13 }
 0x8f2   :  { %1100 = vrot.lane.b32.xlu0 %v10351_v50, %s10254_s15 }
 0x961   :  { %v944_v9 = vpop.xlane.xlu0 %943 }
 0x962   :  { %9974 = vrcp.f32 %v944_v9 }
 0x965   :  { %v1003_v11 = vpop.permute.xlu0 %1002 }
 0x966   :  { %v1008_v12 = vsel %vm420_vm8, %v1003_v11, 0  ;;  %v1325_v11 = vsel %vm420_vm8, %v203_v10, 0  ;;  %v9916_v10 = vld [vmem:[#allocation2 + $0x58] sm:$0xff]  }
 0x967   :  { %9100 = vmatpush3.bf16.msra.mxu0 %v1008_v12 }
 0x968   :  { %9111 = vmatprep.subr.bf16.mxu0 %v10244_v1 }
 0x969   :  { %v1101_v17 = vpop.permute.xlu0 %1100 }
 0x96a   :  { %9102 = vmatmul.mubr.msk.bf16.vlgmr.msra.gmra.mxu0 %vm295_vm7, %v953_v14 }
 0x96b   :  { %9112 = vmatpush3.bf16.xpose.msra.mxu0 %v1108_v15  ;;  %9113 = vmatprep.mubr.msk.bf16.mxu0 %vm10245_vm0, %v10244_v1 }
 0x96c   :  { %9123 = vmatprep.subr.bf16.mxu0 %v10244_v1 }
 0x96f   :  { %v9975_v50 = vpop.eup %9974 }
 0x970   :  { %v950_v16 = vmul.f32 %v9975_v50, %v9971_v5 }
 0x972   :  { %9114 = vmatmul.mubr.msk.bf16.vlgmr.msra.gmra.mxu0 %vm295_vm7, %v1101_v17  ;;  %v952_v18 = vpack.c.bf16 %v950_v16, %v950_v16 }
 0x973   :  { %9125 = vmatprep.mubr.msk.bf16.mxu0 %vm10245_vm0, %v10244_v1 }
 0x974   :  { %9096 = vmatmul.mubr.msk.bf16.vlgmr.msra.gmra.mxu1 %vm295_vm7, %v952_v18 }
 0x975   :  { %9107 = vmatprep.mubr.msk.bf16.mxu1 %vm10245_vm0, %v10244_v1  ;;  %9106 = vmatpush3.bf16.msra.mxu1 %v1055_v20 }
 0x976   :  { %9117 = vmatprep.subr.bf16.mxu1 %v10244_v1 }
 0xa2a   :  { %v1044_v21 = vpop.f32.mrf.mxu0 }
 0xa2c   :  { %v9103_v22 = vpop.f32.mrf.mxu0 }
 0xa2e   :  { %v1047_v25 = vpop.f32.mrf.mxu0 }
 0xa30   :  { %v9104_v26 = vpop.f32.mrf.mxu0 }
 0xa32   :  { %v1144_v27 = vpop.f32.mrf.mxu0 }
 0xa33   :  { %v1200_v29 = vsel %vm295_vm7, %v1144_v27, -inf }
 0xa34   :  { %v996_v30 = vpop.f32.mrf.mxu1  ;;  %1201 = vmax.xlane.f32.xlu0 %v1200_v29  ;;  %v9115_v31 = vpop.f32.mrf.mxu0 }
 0xa35   :  { %v1050_v32 = vpack.c.bf16 %v1044_v21, %v996_v30 }
 0xa36   :  { %v9097_v33 = vpop.f32.mrf.mxu1  ;;  %v1147_v35 = vpop.f32.mrf.mxu0 }
 0xa37   :  { %9108 = vmatmul.mubr.msk.bf16.vlgmr.msra.gmra.mxu1 %vm295_vm7, %v1050_v32 }
 0xa38   :  { %9118 = vmatpush3.bf16.xpose.msra.mxu1 %v1158_v37  ;;  %v999_v39 = vpop.f32.mrf.mxu1  ;;  %v9116_v42 = vpop.f32.mrf.mxu0  ;;  %9119 = vmatprep.mubr.msk.bf16.mxu1 %vm10245_vm0, %v10244_v1 }
 0xa39   :  { %9129 = vmatprep.subr.bf16.mxu1 %v10244_v1 }
 0xa3a   :  { %v9098_v44 = vpop.f32.mrf.mxu1 }
 0xa3f   :  { %9120 = vmatmul.mubr.msk.bf16.vlgmr.msra.gmra.mxu1 %vm295_vm7, %v1151_v45 }
 0xa40   :  { %9131 = vmatprep.mubr.msk.bf16.mxu1 %vm10245_vm0, %v10244_v1 }
 0xabd   :  { %v1202_v46 = vpop.xlane.xlu0 %1201 }
 0xabe   :  { %v1206_v47 = vsub.f32 %v1144_v27, %v1202_v46  ;;  %v8478_v27 = vld [vmem:[#allocation4 + $0x18] ss:$0 sm:$0xff] }
 0xac0   :  { %v1208_v48 = vmul.f32 1.442695, %v1206_v47 }
 0xac2   :  { %9976 = vpow2.f32 %v1208_v48 }
 0xacf   :  { %v9977_v49 = vpop.eup %9976 }
 0xad0   :  { %v1212_v51 = vsel %vm295_vm7, %v9977_v49, 0.0 }
 0xad1   :  { %1213 = vadd.xlane.f32.xlu0 %v1212_v51 }
 0xaf7   :  { %v1091_v54 = vpop.f32.mrf.mxu1 }
 0xaf8   :  { %v1098_v56 = vadd.f32 %v1091_v54, %v824_v53 }
 0xaf9   :  { %v9109_v58 = vpop.f32.mrf.mxu1 }
 0xafb   :  { %v1094_v60 = vpop.f32.mrf.mxu1 }
 0xafc   :  { %v1099_v52 = vadd.f32 %v1094_v60, %v827_v59  ;;  %v9912_v59 = vld [vmem:[#allocation2 + $0x48] sm:$0xff]  }
 0xafd   :  { %v9110_v61 = vpop.f32.mrf.mxu1  ;;  %v9914_v60 = vld [vmem:[#allocation2 + $0x68] sm:$0xff]  }
 0xaff   :  { %v1194_v62 = vpop.f32.mrf.mxu1 }
 0xb00   :  { %v1203_v63 = vsel %vm295_vm7, %v1194_v62, -inf }
 0xb01   :  { %1204 = vmax.xlane.f32.xlu1 %v1203_v63  ;;  %v9121_v0 = vpop.f32.mrf.mxu1 }
 0xb03   :  { %v1197_v2 = vpop.f32.mrf.mxu1 }
 0xb05   :  { %v9122_v3 = vpop.f32.mrf.mxu1 }
 0xb12   :  { %1224 = vrot.lane.b32.xlu1 %v10336_v36, %s10255_s16 }
 0xb5a   :  { %v1214_v34 = vpop.xlane.xlu0 %1213 }
 0xb5b   :  { %9978 = vrcp.f32 %v1214_v34 }
 0xb68   :  { %v9979_v55 = vpop.eup %9978 }
 0xb69   :  { %v1220_v57 = vmul.f32 %v9979_v55, %v9977_v49  ;;  %v8479_v55 = vld [vmem:[#allocation4 + $0x20] ss:$0 sm:$0xff] }
 0xb6b   :  { %v1222_v8 = vpack.c.bf16 %v1220_v57, %v1220_v57  ;;  %v8480_v57 = vld [vmem:[#allocation4 + $0x28] ss:$0 sm:$0xff] }
 0xb8a   :  { %v1205_v4 = vpop.xlane.xlu1 %1204 }
 0xb8b   :  { %v1207_v5 = vsub.f32 %v1194_v62, %v1205_v4 }
 0xb8d   :  { %v1210_v38 = vmul.f32 1.442695, %v1207_v5 }
 0xb8e   :  { %v1225_v6 = vpop.permute.xlu1 %1224 }
 0xb8f   :  { %9980 = vpow2.f32 %v1210_v38  ;;  %v1230_v7 = vsel %vm420_vm8, %v1225_v6, 0 }
 0xb90   :  { %9124 = vmatpush3.bf16.msra.mxu0 %v1230_v7 }
 0xb91   :  { %9135 = vmatprep.subr.bf16.mxu0 %v10244_v1 }
 0xb93   :  { %9126 = vmatmul.mubr.msk.bf16.vlgmr.msra.gmra.mxu0 %vm295_vm7, %v1222_v8 }
 0xb94   :  { %9137 = vmatprep.mubr.msk.bf16.mxu0 %vm10245_vm0, %v10244_v1  ;;  %9136 = vmatpush3.bf16.msra.mxu0 %v1325_v11  ;;  %v9917_v11 = vld [vmem:[#allocation2 + $0x50] sm:$0xff]  }
 0xb95   :  { %9149 = vmatprep.subr.bf16.mxu0 %v10244_v1 }
 0xb9c   :  { %v9981_v36 = vpop.eup %9980 }
 0xb9d   :  { %v1215_v9 = vsel %vm295_vm7, %v9981_v36, 0.0 }
 0xb9e   :  { %1216 = vadd.xlane.f32.xlu0 %v1215_v9  ;;  %v9915_v9 = vld [vmem:[#allocation2 + $0x60] sm:$0xff]  }
 0xbb4   :  { %1272 = vrot.lane.b32.xlu0 %v10340_v40, %s10255_s16 }
 0xc27   :  { %v1217_v12 = vpop.xlane.xlu0 %1216 }
 0xc28   :  { %9982 = vrcp.f32 %v1217_v12  ;;  %v8481_v12 = vld [vmem:[#allocation4 + $0x30] ss:$0 sm:$0xff] }
 0xc2b   :  { %v1273_v13 = vpop.permute.xlu0 %1272 }
 0xc2c   :  { %v1278_v14 = vsel %vm420_vm8, %v1273_v13, 0 }
 0xc2d   :  { %9130 = vmatpush3.bf16.msra.mxu1 %v1278_v14 }
 0xc2e   :  { %9141 = vmatprep.subr.bf16.mxu1 %v10244_v1 }
 0xc35   :  { %v9983_v15 = vpop.eup %9982 }
 0xc36   :  { %v1221_v50 = vmul.f32 %v9983_v15, %v9981_v36 }
 0xc38   :  { %v1223_v16 = vpack.c.bf16 %v1221_v50, %v1221_v50 }
 0xc3a   :  { %9132 = vmatmul.mubr.msk.bf16.vlgmr.msra.gmra.mxu1 %vm295_vm7, %v1223_v16 }
 0xc3b   :  { %9145 = vmatprep.mubr.msk.bf16.mxu1 %vm10245_vm0, %v10244_v1  ;;  %9142 = vmatpush3.bf16.msra.mxu1 %v9912_v59 }
 0xc3c   :  { %9143 = vmatprep.subr.bf16.mxu1 %v10244_v1 }
 0xc53   :  { %v1266_v40 = vpop.f32.mrf.mxu0 }
 0xc55   :  { %v9127_v17 = vpop.f32.mrf.mxu0 }
 0xc57   :  { %v1269_v18 = vpop.f32.mrf.mxu0 }
 0xc59   :  { %v9128_v19 = vpop.f32.mrf.mxu0 }
 0xcfa   :  { %v1314_v20 = vpop.f32.mrf.mxu1 }
 0xcfb   :  { %v1320_v21 = vpack.c.bf16 %v1314_v20, %v1266_v40  ;;  %v8485_v20 = vld [vmem:[#allocation4 + $0x38] ss:$0 sm:$0xff] }
 0xcfc   :  { %v9133_v22 = vpop.f32.mrf.mxu1 }
 0xcfd   :  { %9138 = vmatmul.mubr.msk.bf16.vlgmr.msra.gmra.mxu0 %vm295_vm7, %v1320_v21 }
 0xcfe   :  { %v1317_v25 = vpop.f32.mrf.mxu1  ;;  %9157 = vmatprep.mubr.msk.bf16.mxu0 %vm10245_vm0, %v10244_v1  ;;  %9150 = vmatpush3.bf16.msra.mxu0 %v9914_v60 }
 0xcff   :  { %9151 = vmatprep.subr.bf16.mxu0 %v10244_v1 }
 0xd00   :  { %v9134_v26 = vpop.f32.mrf.mxu1 }
 0xd02   :  { %9152 = vmatpush3.bf16.msra.mxu0 %v9915_v9 }
 0xd03   :  { %9153 = vmatprep.subr.bf16.mxu0 %v10244_v1 }
 0xd06   :  { %9154 = vmatpush3.bf16.msra.mxu0 %v9916_v10 }
 0xd07   :  { %9155 = vmatprep.subr.bf16.mxu0 %v10244_v1 }
 0xd0a   :  { %9156 = vmatpush3.bf16.msra.mxu0 %v9917_v11 }
 0xd0b   :  { %9175 = vmatprep.subr.bf16.mxu0 %v10244_v1 }
 0xdbd   :  { %v1361_v28 = vpop.f32.mrf.mxu0 }
 0xdbe   :  { %v1368_v29 = vadd.f32 %v1361_v28, %v1098_v56 }
 0xdbf   :  { %v9139_v30 = vpop.f32.mrf.mxu0 }
 0xdc0   :  { %v1374_v31 = vadd.f32 %v8478_v27, %v1368_v29 }
 0xdc1   :  { %v1364_v32 = vpop.f32.mrf.mxu0 }
 0xdc2   :  { %v1369_v33 = vadd.f32 %v1364_v32, %v1099_v52  ;;  %v1376_v35 = vadd.f32 %v1374_v31, %v10322_v23 }
 0xdc3   :  { %v9140_v37 = vpop.f32.mrf.mxu0 }
 0xdc4   :  { %v1375_v39 = vadd.f32 %v8478_v27, %v1369_v33  ;;  %v1378_v42 = vsel %vm241_vm4, %v1376_v35, 0.0 }
 0xdc5   :  { %1379 = vadd.xlane.f32.xlu1 %v1378_v42 }
 0xdc6   :  { %v1377_v44 = vadd.f32 %v1375_v39, %v10324_v24  ;;  %v9913_v24 = vld [vmem:[#allocation2 + $0x40] sm:$0xff]  }
 0xdc7   :  { %9144 = vmatpush3.bf16.msra.mxu1 %v9913_v24 }
 0xdc8   :  { %v1381_v45 = vsel %vm241_vm4, %v1377_v44, 0.0  ;;  %9161 = vmatprep.subr.bf16.mxu1 %v10244_v1 }
 0xdc9   :  { %1382 = vadd.xlane.f32.xlu0 %v1381_v45 }
 0xe4e   :  { %v1380_v46 = vpop.xlane.xlu1 %1379 }
 0xe4f   :  { %v1385_v47 = vmul.f32 0.03125, %v1380_v46 }
 0xe51   :  { %v1387_v48 = vsub.f32 %v1376_v35, %v1385_v47 }
 0xe52   :  { %v1383_v49 = vpop.xlane.xlu0 %1382 }
 0xe53   :  { %v1386_v51 = vmul.f32 0.03125, %v1383_v49  ;;  %v1389_v53 = vmul.f32 %v1387_v48, %v1387_v48  ;;  %v9918_v49 = vld [vmem:[#allocation2 + $0x78] sm:$0xff]  }
 0xe55   :  { %v1388_v54 = vsub.f32 %v1377_v44, %v1386_v51  ;;  %v1391_v56 = vsel %vm241_vm4, %v1389_v53, 0.0  ;;  %v9919_v51 = vld [vmem:[#allocation2 + $0x70] sm:$0xff]  }
 0xe56   :  { %1392 = vadd.xlane.f32.xlu1 %v1391_v56 }
 0xe57   :  { %v1390_v23 = vmul.f32 %v1388_v54, %v1388_v54 }
 0xe59   :  { %v1394_v58 = vsel %vm241_vm4, %v1390_v23, 0.0 }
 0xe5a   :  { %1395 = vadd.xlane.f32.xlu0 %v1394_v58 }
 0xedf   :  { %v1393_v52 = vpop.xlane.xlu1 %1392 }
 0xee0   :  { %v1397_v61 = vmul.f32 0.03125, %v1393_v52  ;;  %v8491_v52 = vld [vmem:[#allocation4 + $0x40] ss:$0 sm:$0xff] }
 0xee2   :  { %v1399_v62 = vadd.f32 1e-05, %v1397_v61 }
 0xee3   :  { %v1396_v63 = vpop.xlane.xlu0 %1395 }
 0xee4   :  { %9984 = vrsqrt.f32 %v1399_v62  ;;  %v1398_v0 = vmul.f32 0.03125, %v1396_v63 }
 0xee6   :  { %v1400_v2 = vadd.f32 1e-05, %v1398_v0  ;;  %v8492_v0 = vld [vmem:[#allocation4 + $0x48] ss:$0 sm:$0xff] }
 0xee8   :  { %9986 = vrsqrt.f32 %v1400_v2 }
 0xef1   :  { %v9985_v3 = vpop.eup %9984 }
 0xef2   :  { %v1403_v34 = vmul.f32 %v9985_v3, %v1387_v48 }
 0xef4   :  { %v1409_v38 = vmul.f32 %v8479_v55, %v1403_v34 }
 0xef5   :  { %v9987_v4 = vpop.eup %9986 }
 0xef6   :  { %v1404_v5 = vmul.f32 %v9987_v4, %v1388_v54  ;;  %v1415_v7 = vadd.f32 %v8480_v57, %v1409_v38  ;;  %v8493_v4 = vld [vmem:[#allocation4 + $0x50] ss:$0 sm:$0xff] }
 0xef8   :  { %v1410_v6 = vmul.f32 %v8479_v55, %v1404_v5 }
 0xefa   :  { %v1416_v8 = vadd.f32 %v8480_v57, %v1410_v6 }
 0xefc   :  { %v1417_v36 = vpack.c.bf16 %v1416_v8, %v1415_v7 }
 0xefe   :  { %9146 = vmatmul.mubr.msk.bf16.vlgmr.msra.gmra.mxu1 %vm241_vm4, %v1417_v36 }
 0xeff   :  { %9165 = vmatprep.mubr.msk.bf16.mxu1 %vm10245_vm0, %v10244_v1  ;;  %9162 = vmatpush3.bf16.msra.mxu1 %v9918_v49 }
 0xf00   :  { %9163 = vmatprep.subr.bf16.mxu1 %v10244_v1 }
 0xf03   :  { %9164 = vmatpush3.bf16.msra.mxu1 %v9919_v51 }
 0xf04   :  { %9169 = vmatprep.subr.bf16.mxu1 %v10244_v1 }
 0xfbe   :  { %v1471_v13 = vpop.f32.mrf.mxu1 }
 0xfbf   :  { %v1472_v15 = vadd.f32 %v8481_v12, %v1471_v13 }
 0xfc0   :  { %v9147_v14 = vpop.f32.mrf.mxu1 }
 0xfc1   :  { %v1478_v17 = vmax.f32 %v1472_v15, 0.0 }
 0xfc2   :  { %v1474_v50 = vpop.f32.mrf.mxu1 }
 0xfc3   :  { %v1475_v16 = vadd.f32 %v8481_v12, %v1474_v50 }
 0xfc4   :  { %v9148_v40 = vpop.f32.mrf.mxu1 }
 0xfc5   :  { %v1479_v18 = vmax.f32 %v1475_v16, 0.0 }
 0xfc7   :  { %v1480_v19 = vpack.c.bf16 %v1479_v18, %v1478_v17 }
 0xfc9   :  { %9158 = vmatmul.mubr.msk.bf16.vlgmr.msra.gmra.mxu0 %vm94_vm3, %v1480_v19 }
 0xfca   :  { %9177 = vmatprep.mubr.msk.bf16.mxu0 %vm10245_vm0, %v10244_v1 }
0x1089   :  { %v1546_v21 = vpop.f32.mrf.mxu0 }
0x108a   :  { %v1547_v22 = vadd.f32 %v8485_v20, %v1546_v21 }
0x108b   :  { %v9159_v25 = vpop.f32.mrf.mxu0 }
0x108c   :  { %v1553_v26 = vadd.f32 %v1547_v22, %v1415_v7 }
0x108d   :  { %v1549_v27 = vpop.f32.mrf.mxu0 }
0x108e   :  { %v1550_v28 = vadd.f32 %v8485_v20, %v1549_v27  ;;  %v1555_v29 = vsel %vm241_vm4, %v1553_v26, 0.0 }
0x108f   :  { %1556 = vadd.xlane.f32.xlu1 %v1555_v29  ;;  %v9160_v30 = vpop.f32.mrf.mxu0 }
0x1090   :  { %v1554_v31 = vadd.f32 %v1550_v28, %v1416_v8 }
0x1092   :  { %v1558_v32 = vsel %vm241_vm4, %v1554_v31, 0.0 }
0x1093   :  { %1559 = vadd.xlane.f32.xlu0 %v1558_v32 }
0x1118   :  { %v1557_v33 = vpop.xlane.xlu1 %1556 }
0x1119   :  { %v1561_v35 = vmul.f32 0.03125, %v1557_v33 }
0x111b   :  { %v1563_v37 = vsub.f32 %v1553_v26, %v1561_v35 }
0x111c   :  { %v1560_v39 = vpop.xlane.xlu0 %1559 }
0x111d   :  { %v1562_v42 = vmul.f32 0.03125, %v1560_v39  ;;  %v1565_v44 = vmul.f32 %v1563_v37, %v1563_v37 }
0x111f   :  { %v1564_v45 = vsub.f32 %v1554_v31, %v1562_v42  ;;  %v1567_v46 = vsel %vm241_vm4, %v1565_v44, 0.0 }
0x1120   :  { %1568 = vadd.xlane.f32.xlu1 %v1567_v46 }
0x1121   :  { %v1566_v47 = vmul.f32 %v1564_v45, %v1564_v45 }
0x1123   :  { %v1570_v48 = vsel %vm241_vm4, %v1566_v47, 0.0 }
0x1124   :  { %1571 = vadd.xlane.f32.xlu0 %v1570_v48 }
0x11a9   :  { %v1569_v53 = vpop.xlane.xlu1 %1568 }
0x11aa   :  { %v1573_v54 = vmul.f32 0.03125, %v1569_v53 }
0x11ac   :  { %v1575_v56 = vadd.f32 1e-05, %v1573_v54 }
0x11ad   :  { %v1572_v23 = vpop.xlane.xlu0 %1571 }
0x11ae   :  { %9988 = vrsqrt.f32 %v1575_v56  ;;  %v1574_v58 = vmul.f32 0.03125, %v1572_v23 }
0x11b0   :  { %v1576_v59 = vadd.f32 1e-05, %v1574_v58 }
0x11b2   :  { %9990 = vrsqrt.f32 %v1576_v59 }
0x11bb   :  { %v9989_v24 = vpop.eup %9988 }
0x11bc   :  { %v1579_v60 = vmul.f32 %v9989_v24, %v1563_v37 }
0x11be   :  { %v1585_v63 = vmul.f32 %v8491_v52, %v1579_v60 }
0x11bf   :  { %v9991_v61 = vpop.eup %9990 }
0x11c0   :  { %v1580_v62 = vmul.f32 %v9991_v61, %v1564_v45  ;;  %v10555_v3 = vadd.f32 %v8492_v0, %v1585_v63 }
0x11c2   :  { %v1586_v2 = vmul.f32 %v8491_v52, %v1580_v62 }
0x11c4   :  { %v10557_v34 = vadd.f32 %v8492_v0, %v1586_v2 }
0x11c6   :  { %v1621_v55 = vpack.c.bf16 %v10557_v34, %v10555_v3 }
0x11c8   :  { %9166 = vmatmul.mubr.msk.bf16.vlgmr.msra.gmra.mxu1 %vm241_vm4, %v1621_v55 }
0x11c9   :  { %9171 = vmatprep.mubr.msk.bf16.mxu1 %vm10245_vm0, %v10244_v1 }
0x1288   :  { %v1675_v5 = vpop.f32.mrf.mxu1 }
0x1289   :  { %v1676_v38 = vadd.f32 %v8493_v4, %v1675_v5 }
0x128a   :  { %v9167_v57 = vpop.f32.mrf.mxu1 }
0x128b   :  { %v10564_v6 = vpack.c.bf16 %v1676_v38, %v1676_v38  ;;  %v1682_v12 = vmul.f32 0.35355338, %v1676_v38 }
0x128c   :  { %v1678_v7 = vpop.f32.mrf.mxu1 }
0x128d   :  { %v1679_v8 = vadd.f32 %v8493_v4, %v1678_v7  ;;  %1689 = vrot.lane.b32.xlu1 %v10564_v6, %s10246_s1  ;;  %v10575_v15 = vpack.c.bf16 %v1682_v12, %v1682_v12 }
0x128e   :  { %v9168_v36 = vpop.f32.mrf.mxu1 }
0x128f   :  { %v10568_v9 = vpack.c.bf16 %v1679_v8, %v1679_v8  ;;  %v1683_v50 = vmul.f32 0.35355338, %v1679_v8 }
0x1291   :  { %1738 = vrot.lane.b32.xlu0 %v10568_v9, %s10246_s1  ;;  %v10582_v16 = vpack.c.bf16 %v1683_v50, %v1683_v50 }
0x12ff   :  { %v1690_v10 = vpop.permute.xlu1 %1689 }
0x1300   :  { %v1695_v11 = vsel %vm295_vm7, %v1690_v10, 0 }
0x1301   :  { %9170 = vmatpush3.bf16.xpose.msra.mxu1 %v1695_v11 }
0x1302   :  { %9181 = vmatprep.subr.bf16.mxu1 %v10244_v1 }
0x1303   :  { %v1739_v13 = vpop.permute.xlu0 %1738 }
0x1304   :  { %v1744_v14 = vsel %vm295_vm7, %v1739_v13, 0 }
0x1305   :  { %9176 = vmatpush3.bf16.xpose.msra.mxu0 %v1744_v14 }
0x1306   :  { %9187 = vmatprep.subr.bf16.mxu0 %v10244_v1 }
0x1308   :  { %9172 = vmatmul.mubr.msk.bf16.vlgmr.msra.gmra.mxu1 %vm295_vm7, %v10575_v15 }
0x1309   :  { %9183 = vmatprep.mubr.msk.bf16.mxu1 %vm10245_vm0, %v10244_v1 }
0x130c   :  { %9178 = vmatmul.mubr.msk.bf16.vlgmr.msra.gmra.mxu0 %vm295_vm7, %v10582_v16 }
0x130d   :  { %9189 = vmatprep.mubr.msk.bf16.mxu0 %vm10245_vm0, %v10244_v1 }
0x13c8   :  { %v1731_v40 = vpop.f32.mrf.mxu1 }
0x13c9   :  { %v1786_v17 = vsel %vm295_vm7, %v1731_v40, -inf }
0x13ca   :  { %1787 = vmax.xlane.f32.xlu1 %v1786_v17  ;;  %v9173_v18 = vpop.f32.mrf.mxu1 }
0x13cc   :  { %v1734_v19 = vpop.f32.mrf.mxu1  ;;  %v1780_v20 = vpop.f32.mrf.mxu0 }
0x13cd   :  { %v1789_v21 = vsel %vm295_vm7, %v1780_v20, -inf }
0x13ce   :  { %v9174_v22 = vpop.f32.mrf.mxu1  ;;  %1790 = vmax.xlane.f32.xlu0 %v1789_v21  ;;  %v9179_v25 = vpop.f32.mrf.mxu0 }
0x13d0   :  { %v1783_v26 = vpop.f32.mrf.mxu0 }
0x13d2   :  { %v9180_v27 = vpop.f32.mrf.mxu0 }
0x13db   :  { %1810 = vrot.lane.b32.xlu1 %v10564_v6, %s10238_s18 }
0x1453   :  { %v1788_v28 = vpop.xlane.xlu1 %1787 }
0x1454   :  { %v1792_v29 = vsub.f32 %v1731_v40, %v1788_v28 }
0x1456   :  { %v1794_v30 = vmul.f32 1.442695, %v1792_v29 }
0x1457   :  { %v1811_v31 = vpop.permute.xlu1 %1810  ;;  %v1791_v32 = vpop.xlane.xlu0 %1790 }
0x1458   :  { %9992 = vpow2.f32 %v1794_v30  ;;  %v1816_v33 = vsel %vm420_vm8, %v1811_v31, 0  ;;  %v1793_v35 = vsub.f32 %v1780_v20, %v1791_v32 }
0x1459   :  { %9182 = vmatpush3.bf16.msra.mxu1 %v1816_v33 }
0x145a   :  { %v1796_v37 = vmul.f32 1.442695, %v1793_v35  ;;  %9193 = vmatprep.subr.bf16.mxu1 %v10244_v1 }
0x145c   :  { %9994 = vpow2.f32 %v1796_v37 }
0x1465   :  { %v9993_v39 = vpop.eup %9992 }
0x1466   :  { %v1798_v42 = vsel %vm295_vm7, %v9993_v39, 0.0 }
0x1467   :  { %1799 = vadd.xlane.f32.xlu1 %v1798_v42 }
0x1469   :  { %v9995_v44 = vpop.eup %9994 }
0x146a   :  { %v1801_v45 = vsel %vm295_vm7, %v9995_v44, 0.0 }
0x146b   :  { %1802 = vadd.xlane.f32.xlu0 %v1801_v45 }
0x1478   :  { %1910 = vrot.lane.b32.xlu1 %v10564_v6, %s10247_s8 }
0x147c   :  { %1961 = vrot.lane.b32.xlu1 %v10568_v9, %s10247_s8 }
0x1480   :  { %1959 = vrot.lane.b32.xlu1 %v10582_v16, %s10248_s9 }
0x1481   :  { %1858 = vrot.lane.b32.xlu0 %v10568_v9, %s10238_s18 }
0x1485   :  { %1908 = vrot.lane.b32.xlu0 %v10575_v15, %s10248_s9 }
0x14f0   :  { %v1800_v46 = vpop.xlane.xlu1 %1799 }
0x14f1   :  { %9996 = vrcp.f32 %v1800_v46  ;;  %v1597_v46 = vld [vmem:[#allocation2 + $0x80] sm:$0xf] }
0x14f4   :  { %v1803_v47 = vpop.xlane.xlu0 %1802  ;;  %v1911_v53 = vpop.permute.xlu1 %1910 }
0x14f5   :  { %9998 = vrcp.f32 %v1803_v47  ;;  %v1916_v58 = vsel %vm295_vm7, %v1911_v53, 0 }
0x14f8   :  { %v1859_v48 = vpop.permute.xlu0 %1858  ;;  %v1962_v24 = vpop.permute.xlu1 %1961 }
0x14f9   :  { %v1864_v49 = vsel %vm420_vm8, %v1859_v48, 0  ;;  %v1967_v52 = vsel %vm295_vm7, %v1962_v24, 0 }
0x14fa   :  { %9188 = vmatpush3.bf16.msra.mxu0 %v1864_v49  ;;  %v2181_v49 = vsel %vm420_vm8, %v1597_v46, 0 }
0x14fb   :  { %9199 = vmatprep.subr.bf16.mxu0 %v10244_v1 }
0x14fc   :  { %v1909_v61 = vpop.permute.xlu0 %1908  ;;  %v1960_v62 = vpop.permute.xlu1 %1959 }
0x14fe   :  { %v9997_v51 = vpop.eup %9996 }
0x14ff   :  { %v1806_v54 = vmul.f32 %v9997_v51, %v9993_v39 }
0x1501   :  { %v1808_v56 = vpack.c.bf16 %v1806_v54, %v1806_v54 }
0x1502   :  { %v9999_v23 = vpop.eup %9998 }
0x1503   :  { %9184 = vmatmul.mubr.msk.bf16.vlgmr.msra.gmra.mxu1 %vm295_vm7, %v1808_v56  ;;  %v1807_v59 = vmul.f32 %v9999_v23, %v9995_v44  ;;  %v1598_v23 = vld [vmem:[#allocation2 + $0x84] sm:$0xf] }
0x1504   :  { %9194 = vmatpush3.bf16.xpose.msra.mxu1 %v1916_v58  ;;  %9195 = vmatprep.mubr.msk.bf16.mxu1 %vm10245_vm0, %v10244_v1  ;;  %v2134_v58 = vsel %vm420_vm8, %v1598_v23, 0 }
0x1505   :  { %v1809_v60 = vpack.c.bf16 %v1807_v59, %v1807_v59  ;;  %9205 = vmatprep.subr.bf16.mxu1 %v10244_v1 }
0x1507   :  { %9190 = vmatmul.mubr.msk.bf16.vlgmr.msra.gmra.mxu0 %vm295_vm7, %v1809_v60 }
0x1508   :  { %9200 = vmatpush3.bf16.xpose.msra.mxu0 %v1967_v52  ;;  %9201 = vmatprep.mubr.msk.bf16.mxu0 %vm10245_vm0, %v10244_v1 }
0x1509   :  { %9211 = vmatprep.subr.bf16.mxu0 %v10244_v1 }
0x150b   :  { %9196 = vmatmul.mubr.msk.bf16.vlgmr.msra.gmra.mxu1 %vm295_vm7, %v1909_v61 }
0x150c   :  { %9207 = vmatprep.mubr.msk.bf16.mxu1 %vm10245_vm0, %v10244_v1 }
0x150f   :  { %9202 = vmatmul.mubr.msk.bf16.vlgmr.msra.gmra.mxu0 %vm295_vm7, %v1960_v62 }
0x1510   :  { %9213 = vmatprep.mubr.msk.bf16.mxu0 %vm10245_vm0, %v10244_v1 }
0x15c3   :  { %v10624_v63 = vpop.f32.mrf.mxu1 }
0x15c5   :  { %v9185_v0 = vpop.f32.mrf.mxu1 }
0x15c7   :  { %v1855_v2 = vpop.f32.mrf.mxu1  ;;  %v10626_v55 = vpop.f32.mrf.mxu0 }
0x15c8   :  { %v1906_v4 = vpack.c.bf16 %v10626_v55, %v10624_v63 }
0x15c9   :  { %v9186_v5 = vpop.f32.mrf.mxu1  ;;  %v9191_v38 = vpop.f32.mrf.mxu0 }
0x15cb   :  { %v1903_v57 = vpop.f32.mrf.mxu0  ;;  %v1952_v7 = vpop.f32.mrf.mxu1 }
0x15cc   :  { %v2009_v8 = vsel %vm295_vm7, %v1952_v7, -inf }
0x15cd   :  { %2010 = vmax.xlane.f32.xlu0 %v2009_v8  ;;  %v9192_v36 = vpop.f32.mrf.mxu0  ;;  %v9197_v10 = vpop.f32.mrf.mxu1 }
0x15cf   :  { %v1955_v11 = vpop.f32.mrf.mxu1  ;;  %v2003_v12 = vpop.f32.mrf.mxu0 }
0x15d0   :  { %v2012_v13 = vsel %vm295_vm7, %v2003_v12, -inf }
0x15d1   :  { %v9198_v14 = vpop.f32.mrf.mxu1  ;;  %2013 = vmax.xlane.f32.xlu1 %v2012_v13  ;;  %v9203_v50 = vpop.f32.mrf.mxu0 }
0x15d3   :  { %v2006_v40 = vpop.f32.mrf.mxu0 }
0x15d5   :  { %v9204_v17 = vpop.f32.mrf.mxu0 }
0x15e2   :  { %2033 = vrot.lane.b32.xlu1 %v10564_v6, %s10249_s10 }
0x15e6   :  { %2226 = vrot.lane.b32.xlu1 %v10564_v6, %s10250_s11 }
0x15ea   :  { %2276 = vrot.lane.b32.xlu1 %v10568_v9, %s10250_s11 }
0x15ee   :  { %2274 = vrot.lane.b32.xlu1 %v10582_v16, %s10251_s12 }
0x1656   :  { %v2011_v18 = vpop.xlane.xlu0 %2010 }
0x1657   :  { %v2015_v19 = vsub.f32 %v1952_v7, %v2011_v18 }
0x1659   :  { %v2017_v20 = vmul.f32 1.442695, %v2015_v19 }
0x165a   :  { %v2014_v21 = vpop.xlane.xlu1 %2013 }
0x165b   :  { %10000 = vpow2.f32 %v2017_v20  ;;  %v2016_v22 = vsub.f32 %v2003_v12, %v2014_v21 }
0x165d   :  { %v2019_v25 = vmul.f32 1.442695, %v2016_v22 }
0x165e   :  { %v2034_v26 = vpop.permute.xlu1 %2033 }
0x165f   :  { %10002 = vpow2.f32 %v2019_v25  ;;  %v2039_v27 = vsel %vm420_vm8, %v2034_v26, 0 }
0x1660   :  { %9206 = vmatpush3.bf16.msra.mxu1 %v2039_v27 }
0x1661   :  { %9217 = vmatprep.subr.bf16.mxu1 %v10244_v1 }
0x1662   :  { %v2227_v51 = vpop.permute.xlu1 %2226 }
0x1663   :  { %v2232_v0 = vsel %vm295_vm7, %v2227_v51, 0 }
0x1666   :  { %v2277_v53 = vpop.permute.xlu1 %2276 }
0x1667   :  { %v2282_v54 = vsel %vm295_vm7, %v2277_v53, 0 }
0x1668   :  { %v10001_v28 = vpop.eup %10000 }
0x1669   :  { %v2021_v29 = vsel %vm295_vm7, %v10001_v28, 0.0 }
0x166a   :  { %2022 = vadd.xlane.f32.xlu0 %v2021_v29  ;;  %v2275_v56 = vpop.permute.xlu1 %2274 }
0x166c   :  { %v10003_v30 = vpop.eup %10002 }
0x166d   :  { %v2024_v31 = vsel %vm295_vm7, %v10003_v30, 0.0 }
0x166e   :  { %2025 = vadd.xlane.f32.xlu0 %v2024_v31 }
0x1684   :  { %2081 = vrot.lane.b32.xlu0 %v10568_v9, %s10249_s10 }
0x1688   :  { %2224 = vrot.lane.b32.xlu0 %v10575_v15, %s10251_s12 }
0x16f3   :  { %v2023_v32 = vpop.xlane.xlu0 %2022 }
0x16f4   :  { %10004 = vrcp.f32 %v2023_v32 }
0x16f7   :  { %v2026_v33 = vpop.xlane.xlu0 %2025 }
0x16f8   :  { %10006 = vrcp.f32 %v2026_v33 }
0x16fb   :  { %v2082_v35 = vpop.permute.xlu0 %2081 }
0x16fc   :  { %v2087_v37 = vsel %vm420_vm8, %v2082_v35, 0 }
0x16fd   :  { %9212 = vmatpush3.bf16.msra.mxu0 %v2087_v37 }
0x16fe   :  { %9223 = vmatprep.subr.bf16.mxu0 %v10244_v1 }
0x16ff   :  { %v2225_v5 = vpop.permute.xlu0 %2224 }
0x1701   :  { %v10005_v39 = vpop.eup %10004 }
0x1702   :  { %v2029_v42 = vmul.f32 %v10005_v39, %v10001_v28 }
0x1704   :  { %v2031_v44 = vpack.c.bf16 %v2029_v42, %v2029_v42 }
0x1705   :  { %v10007_v45 = vpop.eup %10006 }
0x1706   :  { %9208 = vmatmul.mubr.msk.bf16.vlgmr.msra.gmra.mxu1 %vm295_vm7, %v2031_v44  ;;  %v2030_v47 = vmul.f32 %v10007_v45, %v10003_v30 }
0x1707   :  { %9219 = vmatprep.mubr.msk.bf16.mxu1 %vm10245_vm0, %v10244_v1  ;;  %9218 = vmatpush3.bf16.msra.mxu1 %v2134_v58 }
0x1708   :  { %v2032_v48 = vpack.c.bf16 %v2030_v47, %v2030_v47  ;;  %9229 = vmatprep.subr.bf16.mxu1 %v10244_v1 }
0x170a   :  { %9214 = vmatmul.mubr.msk.bf16.vlgmr.msra.gmra.mxu0 %vm295_vm7, %v2032_v48 }
0x170b   :  { %9224 = vmatpush3.bf16.msra.mxu0 %v2181_v49  ;;  %9225 = vmatprep.mubr.msk.bf16.mxu0 %vm10245_vm0, %v10244_v1 }
0x170c   :  { %9235 = vmatprep.subr.bf16.mxu0 %v10244_v1 }
0x1712   :  { %9226 = vmatmul.mubr.msk.bf16.vlgmr.msra.gmra.mxu0 %vm295_vm7, %v1906_v4 }
0x1713   :  { %9236 = vmatpush3.bf16.xpose.msra.mxu0 %v2282_v54  ;;  %9237 = vmatprep.mubr.msk.bf16.mxu0 %vm10245_vm0, %v10244_v1 }
0x1714   :  { %9247 = vmatprep.subr.bf16.mxu0 %v10244_v1 }
0x171a   :  { %9238 = vmatmul.mubr.msk.bf16.vlgmr.msra.gmra.mxu0 %vm295_vm7, %v2275_v56  ;;  %v1599_v56 = vld [vmem:[#allocation2 + $0x88] sm:$0xf] }
0x171b   :  { %9249 = vmatprep.mubr.msk.bf16.mxu0 %vm10245_vm0, %v10244_v1  ;;  %v2449_v23 = vsel %vm420_vm8, %v1599_v56, 0 }
0x17c6   :  { %v2075_v59 = vpop.f32.mrf.mxu1 }
0x17c8   :  { %v9209_v24 = vpop.f32.mrf.mxu1 }
0x17ca   :  { %v2078_v60 = vpop.f32.mrf.mxu1  ;;  %v2123_v52 = vpop.f32.mrf.mxu0 }
0x17cb   :  { %v2129_v61 = vpack.c.bf16 %v2123_v52, %v2075_v59 }
0x17cc   :  { %v9210_v62 = vpop.f32.mrf.mxu1  ;;  %v9215_v63 = vpop.f32.mrf.mxu0 }
0x17cd   :  { %9220 = vmatmul.mubr.msk.bf16.vlgmr.msra.gmra.mxu1 %vm295_vm7, %v2129_v61 }
0x17ce   :  { %9230 = vmatpush3.bf16.xpose.msra.mxu1 %v2232_v0  ;;  %v2126_v2 = vpop.f32.mrf.mxu0  ;;  %9231 = vmatprep.mubr.msk.bf16.mxu1 %vm10245_vm0, %v10244_v1 }
0x17cf   :  { %9241 = vmatprep.subr.bf16.mxu1 %v10244_v1 }
0x17d0   :  { %v9216_v55 = vpop.f32.mrf.mxu0 }
0x17d2   :  { %v10676_v4 = vpop.f32.mrf.mxu0 }
0x17d4   :  { %v9227_v38 = vpop.f32.mrf.mxu0 }
0x17d5   :  { %9232 = vmatmul.mubr.msk.bf16.vlgmr.msra.gmra.mxu1 %vm295_vm7, %v2225_v5 }
0x17d6   :  { %v10679_v57 = vpop.f32.mrf.mxu0  ;;  %9243 = vmatprep.mubr.msk.bf16.mxu1 %vm10245_vm0, %v10244_v1 }
0x17d8   :  { %v9228_v7 = vpop.f32.mrf.mxu0 }
0x17da   :  { %v2318_v8 = vpop.f32.mrf.mxu0 }
0x17db   :  { %v2327_v36 = vsel %vm295_vm7, %v2318_v8, -inf }
0x17dc   :  { %2328 = vmax.xlane.f32.xlu1 %v2327_v36  ;;  %v9239_v10 = vpop.f32.mrf.mxu0 }
0x17de   :  { %v2321_v11 = vpop.f32.mrf.mxu0 }
0x17e0   :  { %v9240_v12 = vpop.f32.mrf.mxu0 }
0x17ed   :  { %2348 = vrot.lane.b32.xlu1 %v10564_v6, %s10252_s13 }
0x17f1   :  { %2496 = vrot.lane.b32.xlu1 %v10564_v6, %s10253_s14 }
0x17f5   :  { %2546 = vrot.lane.b32.xlu1 %v10568_v9, %s10253_s14 }
0x17f9   :  { %2544 = vrot.lane.b32.xlu1 %v10582_v16, %s10254_s15 }
0x1865   :  { %v2329_v13 = vpop.xlane.xlu1 %2328 }
0x1866   :  { %v2331_v40 = vsub.f32 %v2318_v8, %v2329_v13 }
0x1868   :  { %v2334_v17 = vmul.f32 1.442695, %v2331_v40 }
0x1869   :  { %v2349_v14 = vpop.permute.xlu1 %2348 }
0x186a   :  { %v2354_v50 = vsel %vm420_vm8, %v2349_v14, 0  ;;  %10008 = vpow2.f32 %v2334_v17 }
0x186b   :  { %9242 = vmatpush3.bf16.msra.mxu1 %v2354_v50 }
0x186c   :  { %9253 = vmatprep.subr.bf16.mxu1 %v10244_v1 }
0x186d   :  { %v2497_v47 = vpop.permute.xlu1 %2496 }
0x186e   :  { %v2502_v49 = vsel %vm295_vm7, %v2497_v47, 0 }
0x1871   :  { %v2547_v61 = vpop.permute.xlu1 %2546 }
0x1872   :  { %v2552_v38 = vsel %vm295_vm7, %v2547_v61, 0 }
0x1875   :  { %v2545_v10 = vpop.permute.xlu1 %2544 }
0x1877   :  { %v10009_v16 = vpop.eup %10008 }
0x1878   :  { %v2339_v28 = vsel %vm295_vm7, %v10009_v16, 0.0 }
0x188d   :  { %v10694_v18 = vpop.f32.mrf.mxu1 }
0x188e   :  { %v2218_v40 = vadd.f32 %v10676_v4, %v10694_v18 }
0x188f   :  { %v9221_v19 = vpop.f32.mrf.mxu1 }
0x1891   :  { %v10696_v20 = vpop.f32.mrf.mxu1 }
0x1893   :  { %v9222_v21 = vpop.f32.mrf.mxu1 }
0x1895   :  { %v2268_v22 = vpop.f32.mrf.mxu1 }
0x1896   :  { %v2324_v25 = vsel %vm295_vm7, %v2268_v22, -inf }
0x1897   :  { %2325 = vmax.xlane.f32.xlu0 %v2324_v25  ;;  %v9233_v26 = vpop.f32.mrf.mxu1 }
0x1899   :  { %v2271_v27 = vpop.f32.mrf.mxu1 }
0x189b   :  { %v9234_v29 = vpop.f32.mrf.mxu1  ;;  %2340 = vadd.xlane.f32.xlu0 %v2339_v28 }
0x1920   :  { %v2326_v30 = vpop.xlane.xlu0 %2325 }
0x1921   :  { %v2330_v31 = vsub.f32 %v2268_v22, %v2326_v30  ;;  %v2221_v22 = vadd.f32 %v10679_v57, %v10696_v20 }
0x1923   :  { %v2332_v32 = vmul.f32 1.442695, %v2330_v31 }
0x1924   :  { %v2341_v37 = vpop.xlane.xlu0 %2340 }
0x1925   :  { %10010 = vpow2.f32 %v2332_v32 }
0x1926   :  { %10012 = vrcp.f32 %v2341_v37 }
0x1932   :  { %v10011_v33 = vpop.eup %10010 }
0x1933   :  { %v2336_v35 = vsel %vm295_vm7, %v10011_v33, 0.0  ;;  %v10013_v39 = vpop.eup %10012 }
0x1934   :  { %2337 = vadd.xlane.f32.xlu0 %v2336_v35  ;;  %v2345_v44 = vmul.f32 %v10013_v39, %v10009_v16 }
0x1936   :  { %v2347_v48 = vpack.c.bf16 %v2345_v44, %v2345_v44  ;;  %v1600_v44 = vld [vmem:[#allocation2 + $0x8c] sm:$0xf] }
0x194a   :  { %2396 = vrot.lane.b32.xlu0 %v10568_v9, %s10252_s13 }
0x194e   :  { %2494 = vrot.lane.b32.xlu0 %v10575_v15, %s10254_s15 }
0x19bd   :  { %v2338_v42 = vpop.xlane.xlu0 %2337 }
0x19be   :  { %10014 = vrcp.f32 %v2338_v42 }
0x19c1   :  { %v2397_v45 = vpop.permute.xlu0 %2396 }
0x19c2   :  { %v2402_v46 = vsel %vm420_vm8, %v2397_v45, 0  ;;  %v2719_v45 = vsel %vm420_vm8, %v1600_v44, 0  ;;  %v9923_v44 = vld [vmem:[#allocation2 + $0xc0] sm:$0xff]  }
0x19c3   :  { %9248 = vmatpush3.bf16.msra.mxu0 %v2402_v46 }
0x19c4   :  { %9259 = vmatprep.subr.bf16.mxu0 %v10244_v1 }
0x19c5   :  { %v2495_v53 = vpop.permute.xlu0 %2494 }
0x19c6   :  { %9250 = vmatmul.mubr.msk.bf16.vlgmr.msra.gmra.mxu0 %vm295_vm7, %v2347_v48 }
0x19c7   :  { %9260 = vmatpush3.bf16.xpose.msra.mxu0 %v2502_v49  ;;  %9261 = vmatprep.mubr.msk.bf16.mxu0 %vm10245_vm0, %v10244_v1 }
0x19c8   :  { %9271 = vmatprep.subr.bf16.mxu0 %v10244_v1 }
0x19cb   :  { %v10015_v15 = vpop.eup %10014 }
0x19cc   :  { %v2344_v51 = vmul.f32 %v10015_v15, %v10011_v33 }
0x19ce   :  { %9262 = vmatmul.mubr.msk.bf16.vlgmr.msra.gmra.mxu0 %vm295_vm7, %v2495_v53  ;;  %v2346_v54 = vpack.c.bf16 %v2344_v51, %v2344_v51 }
0x19cf   :  { %9273 = vmatprep.mubr.msk.bf16.mxu0 %vm10245_vm0, %v10244_v1 }
0x19d0   :  { %9244 = vmatmul.mubr.msk.bf16.vlgmr.msra.gmra.mxu1 %vm295_vm7, %v2346_v54 }
0x19d1   :  { %9255 = vmatprep.mubr.msk.bf16.mxu1 %vm10245_vm0, %v10244_v1  ;;  %9254 = vmatpush3.bf16.msra.mxu1 %v2449_v23 }
0x19d2   :  { %9265 = vmatprep.subr.bf16.mxu1 %v10244_v1 }
0x1a86   :  { %v2438_v58 = vpop.f32.mrf.mxu0 }
0x1a88   :  { %v9251_v59 = vpop.f32.mrf.mxu0 }
0x1a8a   :  { %v2441_v24 = vpop.f32.mrf.mxu0 }
0x1a8c   :  { %v9252_v60 = vpop.f32.mrf.mxu0 }
0x1a8e   :  { %v2538_v52 = vpop.f32.mrf.mxu0 }
0x1a8f   :  { %v2594_v62 = vsel %vm295_vm7, %v2538_v52, -inf }
0x1a90   :  { %v2390_v63 = vpop.f32.mrf.mxu1  ;;  %2595 = vmax.xlane.f32.xlu0 %v2594_v62  ;;  %v9263_v0 = vpop.f32.mrf.mxu0 }
0x1a91   :  { %v2444_v2 = vpack.c.bf16 %v2438_v58, %v2390_v63 }
0x1a92   :  { %v9245_v55 = vpop.f32.mrf.mxu1  ;;  %v2541_v5 = vpop.f32.mrf.mxu0 }
0x1a93   :  { %9256 = vmatmul.mubr.msk.bf16.vlgmr.msra.gmra.mxu1 %vm295_vm7, %v2444_v2 }
0x1a94   :  { %9266 = vmatpush3.bf16.xpose.msra.mxu1 %v2552_v38  ;;  %v2393_v7 = vpop.f32.mrf.mxu1  ;;  %v9264_v8 = vpop.f32.mrf.mxu0  ;;  %9267 = vmatprep.mubr.msk.bf16.mxu1 %vm10245_vm0, %v10244_v1 }
0x1a95   :  { %9277 = vmatprep.subr.bf16.mxu1 %v10244_v1 }
0x1a96   :  { %v9246_v36 = vpop.f32.mrf.mxu1 }
0x1a9b   :  { %9268 = vmatmul.mubr.msk.bf16.vlgmr.msra.gmra.mxu1 %vm295_vm7, %v2545_v10 }
0x1a9c   :  { %9279 = vmatprep.mubr.msk.bf16.mxu1 %vm10245_vm0, %v10244_v1 }
0x1b19   :  { %v2596_v11 = vpop.xlane.xlu0 %2595 }
0x1b1a   :  { %v2600_v12 = vsub.f32 %v2538_v52, %v2596_v11  ;;  %v8517_v52 = vld [vmem:[#allocation4 + $0x58] ss:$0 sm:$0xff] }
0x1b1c   :  { %v2602_v13 = vmul.f32 1.442695, %v2600_v12 }
0x1b1e   :  { %10016 = vpow2.f32 %v2602_v13 }
0x1b2b   :  { %v10017_v14 = vpop.eup %10016 }
0x1b2c   :  { %v2606_v50 = vsel %vm295_vm7, %v10017_v14, 0.0 }
0x1b2d   :  { %2607 = vadd.xlane.f32.xlu0 %v2606_v50 }
0x1b53   :  { %v2485_v17 = vpop.f32.mrf.mxu1 }
0x1b54   :  { %v2492_v19 = vadd.f32 %v2485_v17, %v2218_v40 }
0x1b55   :  { %v9257_v21 = vpop.f32.mrf.mxu1 }
0x1b57   :  { %v2488_v25 = vpop.f32.mrf.mxu1 }
0x1b58   :  { %v2493_v16 = vadd.f32 %v2488_v25, %v2221_v22  ;;  %v9920_v22 = vld [vmem:[#allocation2 + $0x98] sm:$0xff]  }
0x1b59   :  { %v9258_v26 = vpop.f32.mrf.mxu1  ;;  %v9924_v25 = vld [vmem:[#allocation2 + $0xb8] sm:$0xff]  }
0x1b5b   :  { %v2588_v27 = vpop.f32.mrf.mxu1 }
0x1b5c   :  { %v2597_v28 = vsel %vm295_vm7, %v2588_v27, -inf }
0x1b5d   :  { %2598 = vmax.xlane.f32.xlu1 %v2597_v28  ;;  %v9269_v29 = vpop.f32.mrf.mxu1 }
0x1b5f   :  { %v2591_v30 = vpop.f32.mrf.mxu1 }
0x1b61   :  { %v9270_v31 = vpop.f32.mrf.mxu1 }
0x1b6e   :  { %2618 = vrot.lane.b32.xlu1 %v10564_v6, %s10255_s16 }
0x1bb6   :  { %v2608_v4 = vpop.xlane.xlu0 %2607 }
0x1bb7   :  { %10018 = vrcp.f32 %v2608_v4 }
0x1bc4   :  { %v10019_v18 = vpop.eup %10018 }
0x1bc5   :  { %v2614_v57 = vmul.f32 %v10019_v18, %v10017_v14  ;;  %v8518_v18 = vld [vmem:[#allocation4 + $0x60] ss:$0 sm:$0xff] }
0x1bc7   :  { %v2616_v39 = vpack.c.bf16 %v2614_v57, %v2614_v57  ;;  %v8519_v57 = vld [vmem:[#allocation4 + $0x68] ss:$0 sm:$0xff] }
0x1be6   :  { %v2599_v32 = vpop.xlane.xlu1 %2598 }
0x1be7   :  { %v2601_v33 = vsub.f32 %v2588_v27, %v2599_v32 }
0x1be9   :  { %v2604_v35 = vmul.f32 1.442695, %v2601_v33 }
0x1bea   :  { %v2619_v20 = vpop.permute.xlu1 %2618 }
0x1beb   :  { %10020 = vpow2.f32 %v2604_v35  ;;  %v2624_v37 = vsel %vm420_vm8, %v2619_v20, 0 }
0x1bec   :  { %9272 = vmatpush3.bf16.msra.mxu0 %v2624_v37 }
0x1bed   :  { %9283 = vmatprep.subr.bf16.mxu0 %v10244_v1 }
0x1bef   :  { %9274 = vmatmul.mubr.msk.bf16.vlgmr.msra.gmra.mxu0 %vm295_vm7, %v2616_v39 }
0x1bf0   :  { %9285 = vmatprep.mubr.msk.bf16.mxu0 %vm10245_vm0, %v10244_v1  ;;  %9284 = vmatpush3.bf16.msra.mxu0 %v2719_v45  ;;  %v10192_v45 = vld [vmem:[#allocation4] sm:$0xff] }
0x1bf1   :  { %9297 = vmatprep.subr.bf16.mxu0 %v10244_v1 }
0x1bf8   :  { %v10021_v6 = vpop.eup %10020 }
0x1bf9   :  { %v2609_v42 = vsel %vm295_vm7, %v10021_v6, 0.0 }
0x1bfa   :  { %2610 = vadd.xlane.f32.xlu0 %v2609_v42 }
0x1c10   :  { %2666 = vrot.lane.b32.xlu0 %v10568_v9, %s10255_s16 }
0x1c83   :  { %v2611_v46 = vpop.xlane.xlu0 %2610 }
0x1c84   :  { %10022 = vrcp.f32 %v2611_v46  ;;  %v10774_v46 = vadd.f32 %v10192_v45, %v10344_v41  ;;  %v9926_v41 = vld [vmem:[#allocation2 + $0xa8] sm:$0xff]  }
0x1c87   :  { %v2667_v47 = vpop.permute.xlu0 %2666 }
0x1c88   :  { %v2672_v48 = vsel %vm420_vm8, %v2667_v47, 0  ;;  %v10777_v47 = vadd.f32 %v10192_v45, %v10346_v43  ;;  %v9927_v43 = vld [vmem:[#allocation2 + $0xa0] sm:$0xff]  }
0x1c89   :  { %9278 = vmatpush3.bf16.msra.mxu1 %v2672_v48 }
0x1c8a   :  { %9289 = vmatprep.subr.bf16.mxu1 %v10244_v1  ;;  %v3071_v48 = vpack.c.bf16 %v10777_v47, %v10774_v46 }
0x1c91   :  { %v10023_v49 = vpop.eup %10022 }
0x1c92   :  { %v2615_v15 = vmul.f32 %v10023_v49, %v10021_v6  ;;  %v9922_v6 = vld [vmem:[#allocation2 + $0xc8] sm:$0xff]   ;;  %v9925_v49 = vld [vmem:[#allocation2 + $0xb0] sm:$0xff]  }
0x1c94   :  { %v2617_v51 = vpack.c.bf16 %v2615_v15, %v2615_v15  ;;  %v8520_v15 = vld [vmem:[#allocation4 + $0x70] ss:$0 sm:$0xff] }
0x1c96   :  { %9280 = vmatmul.mubr.msk.bf16.vlgmr.msra.gmra.mxu1 %vm295_vm7, %v2617_v51 }
0x1c97   :  { %9293 = vmatprep.mubr.msk.bf16.mxu1 %vm10245_vm0, %v10244_v1  ;;  %9290 = vmatpush3.bf16.msra.mxu1 %v9920_v22 }
0x1c98   :  { %9291 = vmatprep.subr.bf16.mxu1 %v10244_v1 }
0x1caf   :  { %v2660_v9 = vpop.f32.mrf.mxu0 }
0x1cb1   :  { %v9275_v53 = vpop.f32.mrf.mxu0 }
0x1cb3   :  { %v2663_v54 = vpop.f32.mrf.mxu0 }
0x1cb5   :  { %v9276_v56 = vpop.f32.mrf.mxu0 }
0x1d56   :  { %v2708_v23 = vpop.f32.mrf.mxu1 }
0x1d57   :  { %v2714_v58 = vpack.c.bf16 %v2708_v23, %v2660_v9 }
0x1d58   :  { %v9281_v59 = vpop.f32.mrf.mxu1 }
0x1d59   :  { %9286 = vmatmul.mubr.msk.bf16.vlgmr.msra.gmra.mxu0 %vm295_vm7, %v2714_v58  ;;  %v8534_v58 = vld [vmem:[#allocation4 + $0xa0] ss:$0 sm:$0xff] }
0x1d5a   :  { %v2711_v24 = vpop.f32.mrf.mxu1  ;;  %9305 = vmatprep.mubr.msk.bf16.mxu0 %vm10245_vm0, %v10244_v1  ;;  %9298 = vmatpush3.bf16.msra.mxu0 %v9924_v25 }
0x1d5b   :  { %9299 = vmatprep.subr.bf16.mxu0 %v10244_v1 }
0x1d5c   :  { %v9282_v60 = vpop.f32.mrf.mxu1 }
0x1d5e   :  { %9300 = vmatpush3.bf16.msra.mxu0 %v9925_v49 }
0x1d5f   :  { %9301 = vmatprep.subr.bf16.mxu0 %v10244_v1 }
0x1d62   :  { %9302 = vmatpush3.bf16.msra.mxu0 %v9926_v41 }
0x1d63   :  { %9303 = vmatprep.subr.bf16.mxu0 %v10244_v1 }
0x1d66   :  { %9304 = vmatpush3.bf16.msra.mxu0 %v9927_v43 }
0x1d67   :  { %9323 = vmatprep.subr.bf16.mxu0 %v10244_v1 }
0x1e19   :  { %v2755_v61 = vpop.f32.mrf.mxu0 }
0x1e1a   :  { %v2762_v62 = vadd.f32 %v2755_v61, %v2492_v19 }
0x1e1b   :  { %v9287_v63 = vpop.f32.mrf.mxu0 }
0x1e1c   :  { %v2768_v0 = vadd.f32 %v8517_v52, %v2762_v62 }
0x1e1d   :  { %v2758_v2 = vpop.f32.mrf.mxu0 }
0x1e1e   :  { %v2763_v55 = vadd.f32 %v2758_v2, %v2493_v16  ;;  %v2770_v5 = vadd.f32 %v2768_v0, %v10555_v3 }
0x1e1f   :  { %v9288_v38 = vpop.f32.mrf.mxu0 }
0x1e20   :  { %v2769_v7 = vadd.f32 %v8517_v52, %v2763_v55  ;;  %v2772_v8 = vsel %vm241_vm4, %v2770_v5, 0.0 }
0x1e21   :  { %2773 = vadd.xlane.f32.xlu1 %v2772_v8 }
0x1e22   :  { %v2771_v36 = vadd.f32 %v2769_v7, %v10557_v34  ;;  %v9921_v34 = vld [vmem:[#allocation2 + $0x90] sm:$0xff]  }
0x1e23   :  { %9292 = vmatpush3.bf16.msra.mxu1 %v9921_v34 }
0x1e24   :  { %v2775_v10 = vsel %vm241_vm4, %v2771_v36, 0.0  ;;  %9309 = vmatprep.subr.bf16.mxu1 %v10244_v1 }
0x1e25   :  { %2776 = vadd.xlane.f32.xlu0 %v2775_v10 }
0x1eaa   :  { %v2774_v11 = vpop.xlane.xlu1 %2773 }
0x1eab   :  { %v2778_v12 = vmul.f32 0.03125, %v2774_v11 }
0x1ead   :  { %v2780_v13 = vsub.f32 %v2770_v5, %v2778_v12 }
0x1eae   :  { %v2777_v14 = vpop.xlane.xlu0 %2776 }
0x1eaf   :  { %v2779_v50 = vmul.f32 0.03125, %v2777_v14  ;;  %v2782_v40 = vmul.f32 %v2780_v13, %v2780_v13 }
0x1eb1   :  { %v2781_v17 = vsub.f32 %v2771_v36, %v2779_v50  ;;  %v2784_v19 = vsel %vm241_vm4, %v2782_v40, 0.0  ;;  %v10818_v40 = vld [vmem:[#allocation4 + $0x78] ss:$0 sm:$0xff] }
0x1eb2   :  { %2785 = vadd.xlane.f32.xlu1 %v2784_v19 }
0x1eb3   :  { %v2783_v3 = vmul.f32 %v2781_v17, %v2781_v17 }
0x1eb5   :  { %v2787_v21 = vsel %vm241_vm4, %v2783_v3, 0.0 }
0x1eb6   :  { %2788 = vadd.xlane.f32.xlu0 %v2787_v21 }
0x1f3b   :  { %v2786_v16 = vpop.xlane.xlu1 %2785 }
0x1f3c   :  { %v2790_v26 = vmul.f32 0.03125, %v2786_v16 }
0x1f3e   :  { %v2792_v27 = vadd.f32 1e-05, %v2790_v26 }
0x1f3f   :  { %v2789_v28 = vpop.xlane.xlu0 %2788 }
0x1f40   :  { %10024 = vrsqrt.f32 %v2792_v27  ;;  %v2791_v29 = vmul.f32 0.03125, %v2789_v28 }
0x1f42   :  { %v2793_v30 = vadd.f32 1e-05, %v2791_v29 }
0x1f44   :  { %10026 = vrsqrt.f32 %v2793_v30 }
0x1f4d   :  { %v10025_v31 = vpop.eup %10024 }
0x1f4e   :  { %v2796_v4 = vmul.f32 %v10025_v31, %v2780_v13 }
0x1f50   :  { %v2802_v35 = vmul.f32 %v8518_v18, %v2796_v4 }
0x1f51   :  { %v10027_v32 = vpop.eup %10026 }
0x1f52   :  { %v2797_v33 = vmul.f32 %v10027_v32, %v2781_v17  ;;  %v10764_v37 = vadd.f32 %v8519_v57, %v2802_v35 }
0x1f54   :  { %v2803_v20 = vmul.f32 %v8518_v18, %v2797_v33 }
0x1f56   :  { %v10766_v39 = vadd.f32 %v8519_v57, %v2803_v20 }
0x1f58   :  { %v2810_v42 = vpack.c.bf16 %v10766_v39, %v10764_v37 }
0x1f5a   :  { %9294 = vmatmul.mubr.msk.bf16.vlgmr.msra.gmra.mxu1 %vm241_vm4, %v2810_v42 }
0x1f5b   :  { %9310 = vmatpush3.bf16.msra.mxu1 %v9922_v6  ;;  %9313 = vmatprep.mubr.msk.bf16.mxu1 %vm10245_vm0, %v10244_v1 }
0x1f5c   :  { %9311 = vmatprep.subr.bf16.mxu1 %v10244_v1 }
0x1f5f   :  { %9312 = vmatpush3.bf16.msra.mxu1 %v9923_v44 }
0x1f60   :  { %9317 = vmatprep.subr.bf16.mxu1 %v10244_v1 }
0x1f62   :  { %9314 = vmatmul.mubr.msk.bf16.vlgmr.msra.gmra.mxu1 %vm241_vm4, %v3071_v48 }
0x1f63   :  { %9319 = vmatprep.mubr.msk.bf16.mxu1 %vm10245_vm0, %v10244_v1 }
0x201a   :  { %v2864_v51 = vpop.f32.mrf.mxu1 }
0x201b   :  { %v2865_v53 = vadd.f32 %v8520_v15, %v2864_v51 }
0x201c   :  { %v9295_v9 = vpop.f32.mrf.mxu1 }
0x201d   :  { %v2871_v59 = vmax.f32 %v2865_v53, 0.0 }
0x201e   :  { %v2867_v54 = vpop.f32.mrf.mxu1 }
0x201f   :  { %v2868_v56 = vadd.f32 %v8520_v15, %v2867_v54 }
0x2020   :  { %v9296_v23 = vpop.f32.mrf.mxu1 }
0x2021   :  { %v2872_v24 = vmax.f32 %v2868_v56, 0.0 }
0x2022   :  { %v3125_v60 = vpop.f32.mrf.mxu1 }
0x2023   :  { %v2873_v52 = vpack.c.bf16 %v2872_v24, %v2871_v59  ;;  %v3126_v61 = vadd.f32 %v8534_v58, %v3125_v60 }
0x2024   :  { %v9315_v62 = vpop.f32.mrf.mxu1 }
0x2025   :  { %v10789_v63 = vpack.c.bf16 %v3126_v61, %v3126_v61  ;;  %9306 = vmatmul.mubr.msk.bf16.vlgmr.msra.gmra.mxu0 %vm94_vm3, %v2873_v52  ;;  %v3132_v8 = vmul.f32 0.35355338, %v3126_v61 }
0x2026   :  { %v3128_v0 = vpop.f32.mrf.mxu1  ;;  %9325 = vmatprep.mubr.msk.bf16.mxu0 %vm10245_vm0, %v10244_v1 }
0x2027   :  { %v3129_v2 = vadd.f32 %v8534_v58, %v3128_v0  ;;  %3139 = vrot.lane.b32.xlu1 %v10789_v63, %s10246_s1  ;;  %v10803_v11 = vpack.c.bf16 %v3132_v8, %v3132_v8 }
0x2028   :  { %v9316_v55 = vpop.f32.mrf.mxu1 }
0x2029   :  { %v10796_v5 = vpack.c.bf16 %v3129_v2, %v3129_v2  ;;  %v3133_v12 = vmul.f32 0.35355338, %v3129_v2 }
0x202b   :  { %3188 = vrot.lane.b32.xlu0 %v10796_v5, %s10246_s1  ;;  %v10810_v13 = vpack.c.bf16 %v3133_v12, %v3133_v12 }
0x2099   :  { %v3140_v38 = vpop.permute.xlu1 %3139 }
0x209a   :  { %v3145_v7 = vsel %vm295_vm7, %v3140_v38, 0 }
0x209b   :  { %9318 = vmatpush3.bf16.xpose.msra.mxu1 %v3145_v7 }
0x209c   :  { %9329 = vmatprep.subr.bf16.mxu1 %v10244_v1 }
0x209d   :  { %v3189_v36 = vpop.permute.xlu0 %3188 }
0x209e   :  { %v3194_v10 = vsel %vm295_vm7, %v3189_v36, 0 }
0x209f   :  { %9324 = vmatpush3.bf16.xpose.msra.mxu0 %v3194_v10 }
0x20a0   :  { %9335 = vmatprep.subr.bf16.mxu0 %v10244_v1 }
0x20a2   :  { %9320 = vmatmul.mubr.msk.bf16.vlgmr.msra.gmra.mxu1 %vm295_vm7, %v10803_v11 }
0x20a3   :  { %9331 = vmatprep.mubr.msk.bf16.mxu1 %vm10245_vm0, %v10244_v1 }
0x20a6   :  { %9326 = vmatmul.mubr.msk.bf16.vlgmr.msra.gmra.mxu0 %vm295_vm7, %v10810_v13 }
0x20a7   :  { %9337 = vmatprep.mubr.msk.bf16.mxu0 %vm10245_vm0, %v10244_v1 }
0x20e5   :  { %v10816_v14 = vpop.f32.mrf.mxu0 }
0x20e7   :  { %v9307_v50 = vpop.f32.mrf.mxu0 }
0x20e9   :  { %v2942_v17 = vpop.f32.mrf.mxu0 }
0x20ea   :  { %v10821_v19 = vadd.f32 %v10818_v40, %v2942_v17 }
0x20eb   :  { %v9308_v3 = vpop.f32.mrf.mxu0 }
0x2162   :  { %v3181_v21 = vpop.f32.mrf.mxu1 }
0x2163   :  { %v3236_v22 = vsel %vm295_vm7, %v3181_v21, -inf }
0x2164   :  { %3237 = vmax.xlane.f32.xlu1 %v3236_v22  ;;  %v9321_v34 = vpop.f32.mrf.mxu1 }
0x2166   :  { %v3184_v25 = vpop.f32.mrf.mxu1  ;;  %v3230_v16 = vpop.f32.mrf.mxu0 }
0x2167   :  { %v3239_v26 = vsel %vm295_vm7, %v3230_v16, -inf }
0x2168   :  { %v9322_v27 = vpop.f32.mrf.mxu1  ;;  %3240 = vmax.xlane.f32.xlu0 %v3239_v26  ;;  %v9327_v28 = vpop.f32.mrf.mxu0 }
0x216a   :  { %v3233_v29 = vpop.f32.mrf.mxu0 }
0x216c   :  { %v9328_v30 = vpop.f32.mrf.mxu0 }
0x2175   :  { %3260 = vrot.lane.b32.xlu1 %v10789_v63, %s10238_s18 }
0x21ed   :  { %v3238_v31 = vpop.xlane.xlu1 %3237 }
0x21ee   :  { %v3242_v4 = vsub.f32 %v3181_v21, %v3238_v31 }
0x21f0   :  { %v3244_v18 = vmul.f32 1.442695, %v3242_v4 }
0x21f1   :  { %v3261_v32 = vpop.permute.xlu1 %3260  ;;  %v3241_v33 = vpop.xlane.xlu0 %3240 }
0x21f2   :  { %10028 = vpow2.f32 %v3244_v18  ;;  %v3266_v35 = vsel %vm420_vm8, %v3261_v32, 0  ;;  %v3243_v57 = vsub.f32 %v3230_v16, %v3241_v33 }
0x21f3   :  { %9330 = vmatpush3.bf16.msra.mxu1 %v3266_v35 }
0x21f4   :  { %v3246_v20 = vmul.f32 1.442695, %v3243_v57  ;;  %9341 = vmatprep.subr.bf16.mxu1 %v10244_v1 }
0x21f6   :  { %10030 = vpow2.f32 %v3246_v20 }
0x21ff   :  { %v10029_v6 = vpop.eup %10028 }
0x2200   :  { %v3248_v42 = vsel %vm295_vm7, %v10029_v6, 0.0 }
0x2201   :  { %3249 = vadd.xlane.f32.xlu1 %v3248_v42 }
0x2203   :  { %v10031_v44 = vpop.eup %10030 }
0x2204   :  { %v3251_v45 = vsel %vm295_vm7, %v10031_v44, 0.0 }
0x2205   :  { %3252 = vadd.xlane.f32.xlu0 %v3251_v45 }
0x2212   :  { %3360 = vrot.lane.b32.xlu1 %v10789_v63, %s10247_s8 }
0x2216   :  { %3411 = vrot.lane.b32.xlu1 %v10796_v5, %s10247_s8 }
0x221a   :  { %3409 = vrot.lane.b32.xlu1 %v10810_v13, %s10248_s9 }
0x221b   :  { %3308 = vrot.lane.b32.xlu0 %v10796_v5, %s10238_s18 }
0x221f   :  { %3358 = vrot.lane.b32.xlu0 %v10803_v11, %s10248_s9 }
0x228a   :  { %v3250_v48 = vpop.xlane.xlu1 %3249 }
0x228b   :  { %10032 = vrcp.f32 %v3250_v48 }
0x228e   :  { %v3253_v49 = vpop.xlane.xlu0 %3252  ;;  %v3361_v51 = vpop.permute.xlu1 %3360 }
0x228f   :  { %10034 = vrcp.f32 %v3253_v49  ;;  %v3366_v56 = vsel %vm295_vm7, %v3361_v51, 0 }
0x2292   :  { %v3309_v41 = vpop.permute.xlu0 %3308  ;;  %v3412_v58 = vpop.permute.xlu1 %3411 }
0x2293   :  { %v3314_v43 = vsel %vm420_vm8, %v3309_v41, 0  ;;  %v3417_v24 = vsel %vm295_vm7, %v3412_v58, 0  ;;  %v3031_v58 = vld [vmem:[#allocation2 + $0xd4] sm:$0xf] }
0x2294   :  { %9336 = vmatpush3.bf16.msra.mxu0 %v3314_v43  ;;  %v3030_v43 = vld [vmem:[#allocation2 + $0xd0] sm:$0xf] }
0x2295   :  { %9347 = vmatprep.subr.bf16.mxu0 %v10244_v1 }
0x2296   :  { %v3359_v60 = vpop.permute.xlu0 %3358  ;;  %v3410_v52 = vpop.permute.xlu1 %3409 }
0x2298   :  { %v10033_v15 = vpop.eup %10032 }
0x2299   :  { %v3256_v9 = vmul.f32 %v10033_v15, %v10029_v6 }
0x229b   :  { %v3258_v53 = vpack.c.bf16 %v3256_v9, %v3256_v9  ;;  %v3631_v9 = vsel %vm420_vm8, %v3030_v43, 0 }
0x229c   :  { %v10035_v54 = vpop.eup %10034 }
0x229d   :  { %9332 = vmatmul.mubr.msk.bf16.vlgmr.msra.gmra.mxu1 %vm295_vm7, %v3258_v53  ;;  %v3257_v23 = vmul.f32 %v10035_v54, %v10031_v44 }
0x229e   :  { %9342 = vmatpush3.bf16.xpose.msra.mxu1 %v3366_v56  ;;  %9343 = vmatprep.mubr.msk.bf16.mxu1 %vm10245_vm0, %v10244_v1 }
0x229f   :  { %v3259_v59 = vpack.c.bf16 %v3257_v23, %v3257_v23  ;;  %9353 = vmatprep.subr.bf16.mxu1 %v10244_v1 }
0x22a1   :  { %9338 = vmatmul.mubr.msk.bf16.vlgmr.msra.gmra.mxu0 %vm295_vm7, %v3259_v59  ;;  %v3584_v59 = vsel %vm420_vm8, %v3031_v58, 0 }
0x22a2   :  { %9348 = vmatpush3.bf16.xpose.msra.mxu0 %v3417_v24  ;;  %9349 = vmatprep.mubr.msk.bf16.mxu0 %vm10245_vm0, %v10244_v1 }
0x22a3   :  { %9359 = vmatprep.subr.bf16.mxu0 %v10244_v1 }
0x22a5   :  { %9344 = vmatmul.mubr.msk.bf16.vlgmr.msra.gmra.mxu1 %vm295_vm7, %v3359_v60 }
0x22a6   :  { %9355 = vmatprep.mubr.msk.bf16.mxu1 %vm10245_vm0, %v10244_v1 }
0x22a9   :  { %9350 = vmatmul.mubr.msk.bf16.vlgmr.msra.gmra.mxu0 %vm295_vm7, %v3410_v52 }
0x22aa   :  { %9361 = vmatprep.mubr.msk.bf16.mxu0 %vm10245_vm0, %v10244_v1 }
0x235d   :  { %v10859_v61 = vpop.f32.mrf.mxu1 }
0x235f   :  { %v9333_v62 = vpop.f32.mrf.mxu1 }
0x2361   :  { %v3305_v0 = vpop.f32.mrf.mxu1  ;;  %v10861_v2 = vpop.f32.mrf.mxu0 }
0x2362   :  { %v3356_v55 = vpack.c.bf16 %v10861_v2, %v10859_v61 }
0x2363   :  { %v9334_v38 = vpop.f32.mrf.mxu1  ;;  %v9339_v7 = vpop.f32.mrf.mxu0 }
0x2365   :  { %v3353_v8 = vpop.f32.mrf.mxu0  ;;  %v3402_v36 = vpop.f32.mrf.mxu1 }
0x2366   :  { %v3459_v10 = vsel %vm295_vm7, %v3402_v36, -inf }
0x2367   :  { %3460 = vmax.xlane.f32.xlu0 %v3459_v10  ;;  %v9340_v12 = vpop.f32.mrf.mxu0  ;;  %v9345_v50 = vpop.f32.mrf.mxu1 }
0x2369   :  { %v3405_v17 = vpop.f32.mrf.mxu1  ;;  %v3453_v3 = vpop.f32.mrf.mxu0 }
0x236a   :  { %v3462_v21 = vsel %vm295_vm7, %v3453_v3, -inf }
0x236b   :  { %v9346_v22 = vpop.f32.mrf.mxu1  ;;  %3463 = vmax.xlane.f32.xlu1 %v3462_v21  ;;  %v9351_v34 = vpop.f32.mrf.mxu0 }
0x236d   :  { %v3456_v25 = vpop.f32.mrf.mxu0 }
0x236f   :  { %v9352_v16 = vpop.f32.mrf.mxu0 }
0x237c   :  { %3483 = vrot.lane.b32.xlu1 %v10789_v63, %s10249_s10 }
0x2380   :  { %3676 = vrot.lane.b32.xlu1 %v10789_v63, %s10250_s11 }
0x2384   :  { %3726 = vrot.lane.b32.xlu1 %v10796_v5, %s10250_s11 }
0x2388   :  { %3724 = vrot.lane.b32.xlu1 %v10810_v13, %s10251_s12 }
0x23f0   :  { %v3461_v26 = vpop.xlane.xlu0 %3460 }
0x23f1   :  { %v3465_v27 = vsub.f32 %v3402_v36, %v3461_v26 }
0x23f3   :  { %v3467_v28 = vmul.f32 1.442695, %v3465_v27 }
0x23f4   :  { %v3464_v29 = vpop.xlane.xlu1 %3463 }
0x23f5   :  { %10036 = vpow2.f32 %v3467_v28  ;;  %v3466_v30 = vsub.f32 %v3453_v3, %v3464_v29 }
0x23f7   :  { %v3469_v31 = vmul.f32 1.442695, %v3466_v30 }
0x23f8   :  { %v3484_v4 = vpop.permute.xlu1 %3483 }
0x23f9   :  { %10038 = vpow2.f32 %v3469_v31  ;;  %v3489_v18 = vsel %vm420_vm8, %v3484_v4, 0 }
0x23fa   :  { %9354 = vmatpush3.bf16.msra.mxu1 %v3489_v18 }
0x23fb   :  { %9365 = vmatprep.subr.bf16.mxu1 %v10244_v1 }
0x23fc   :  { %v3677_v53 = vpop.permute.xlu1 %3676 }
0x2400   :  { %v3727_v54 = vpop.permute.xlu1 %3726 }
0x2401   :  { %v3732_v56 = vsel %vm295_vm7, %v3727_v54, 0 }
0x2402   :  { %v10037_v32 = vpop.eup %10036 }
0x2403   :  { %v3471_v33 = vsel %vm295_vm7, %v10037_v32, 0.0 }
0x2404   :  { %3472 = vadd.xlane.f32.xlu0 %v3471_v33  ;;  %v3725_v23 = vpop.permute.xlu1 %3724 }
0x2406   :  { %v10039_v35 = vpop.eup %10038 }
0x2407   :  { %v3474_v57 = vsel %vm295_vm7, %v10039_v35, 0.0 }
0x2408   :  { %3475 = vadd.xlane.f32.xlu0 %v3474_v57 }
0x241e   :  { %3531 = vrot.lane.b32.xlu0 %v10796_v5, %s10249_s10 }
0x2422   :  { %3674 = vrot.lane.b32.xlu0 %v10803_v11, %s10251_s12 }
0x248d   :  { %v3473_v20 = vpop.xlane.xlu0 %3472 }
0x248e   :  { %10040 = vrcp.f32 %v3473_v20 }
0x2491   :  { %v3476_v6 = vpop.xlane.xlu0 %3475 }
0x2492   :  { %10042 = vrcp.f32 %v3476_v6 }
0x2495   :  { %v3532_v42 = vpop.permute.xlu0 %3531 }
0x2496   :  { %v3537_v44 = vsel %vm420_vm8, %v3532_v42, 0 }
0x2497   :  { %9360 = vmatpush3.bf16.msra.mxu0 %v3537_v44 }
0x2498   :  { %9371 = vmatprep.subr.bf16.mxu0 %v10244_v1 }
0x2499   :  { %v3675_v36 = vpop.permute.xlu0 %3674 }
0x249b   :  { %v10041_v45 = vpop.eup %10040 }
0x249c   :  { %v3479_v48 = vmul.f32 %v10041_v45, %v10037_v32 }
0x249e   :  { %v3481_v49 = vpack.c.bf16 %v3479_v48, %v3479_v48 }
0x249f   :  { %v10043_v41 = vpop.eup %10042 }
0x24a0   :  { %9356 = vmatmul.mubr.msk.bf16.vlgmr.msra.gmra.mxu1 %vm295_vm7, %v3481_v49  ;;  %v3480_v15 = vmul.f32 %v10043_v41, %v10039_v35 }
0x24a1   :  { %9367 = vmatprep.mubr.msk.bf16.mxu1 %vm10245_vm0, %v10244_v1  ;;  %9366 = vmatpush3.bf16.msra.mxu1 %v3584_v59 }
0x24a2   :  { %v3482_v51 = vpack.c.bf16 %v3480_v15, %v3480_v15  ;;  %9377 = vmatprep.subr.bf16.mxu1 %v10244_v1 }
0x24a4   :  { %9362 = vmatmul.mubr.msk.bf16.vlgmr.msra.gmra.mxu0 %vm295_vm7, %v3482_v51 }
0x24a5   :  { %9372 = vmatpush3.bf16.msra.mxu0 %v3631_v9  ;;  %9373 = vmatprep.mubr.msk.bf16.mxu0 %vm10245_vm0, %v10244_v1 }
0x24a6   :  { %9383 = vmatprep.subr.bf16.mxu0 %v10244_v1 }
0x24ac   :  { %9374 = vmatmul.mubr.msk.bf16.vlgmr.msra.gmra.mxu0 %vm295_vm7, %v3356_v55  ;;  %v3682_v55 = vsel %vm295_vm7, %v3677_v53, 0 }
0x24ad   :  { %9384 = vmatpush3.bf16.xpose.msra.mxu0 %v3732_v56  ;;  %9385 = vmatprep.mubr.msk.bf16.mxu0 %vm10245_vm0, %v10244_v1 }
0x24ae   :  { %9395 = vmatprep.subr.bf16.mxu0 %v10244_v1 }
0x24b4   :  { %9386 = vmatmul.mubr.msk.bf16.vlgmr.msra.gmra.mxu0 %vm295_vm7, %v3725_v23 }
0x24b5   :  { %9397 = vmatprep.mubr.msk.bf16.mxu0 %vm10245_vm0, %v10244_v1 }
0x2560   :  { %v3525_v24 = vpop.f32.mrf.mxu1 }
0x2562   :  { %v9357_v60 = vpop.f32.mrf.mxu1 }
0x2564   :  { %v3528_v52 = vpop.f32.mrf.mxu1  ;;  %v3573_v61 = vpop.f32.mrf.mxu0 }
0x2565   :  { %v3579_v62 = vpack.c.bf16 %v3573_v61, %v3525_v24  ;;  %v3032_v24 = vld [vmem:[#allocation2 + $0xd8] sm:$0xf] }
0x2566   :  { %v9358_v0 = vpop.f32.mrf.mxu1  ;;  %v9363_v2 = vpop.f32.mrf.mxu0  ;;  %v3899_v60 = vsel %vm420_vm8, %v3032_v24, 0 }
0x2567   :  { %9368 = vmatmul.mubr.msk.bf16.vlgmr.msra.gmra.mxu1 %vm295_vm7, %v3579_v62 }
0x2568   :  { %9378 = vmatpush3.bf16.xpose.msra.mxu1 %v3682_v55  ;;  %v3576_v38 = vpop.f32.mrf.mxu0  ;;  %9379 = vmatprep.mubr.msk.bf16.mxu1 %vm10245_vm0, %v10244_v1 }
0x2569   :  { %9389 = vmatprep.subr.bf16.mxu1 %v10244_v1 }
0x256a   :  { %v9364_v7 = vpop.f32.mrf.mxu0 }
0x256c   :  { %v10911_v8 = vpop.f32.mrf.mxu0 }
0x256e   :  { %v9375_v10 = vpop.f32.mrf.mxu0 }
0x256f   :  { %9380 = vmatmul.mubr.msk.bf16.vlgmr.msra.gmra.mxu1 %vm295_vm7, %v3675_v36 }
0x2570   :  { %v10914_v12 = vpop.f32.mrf.mxu0  ;;  %9391 = vmatprep.mubr.msk.bf16.mxu1 %vm10245_vm0, %v10244_v1 }
0x2572   :  { %v9376_v50 = vpop.f32.mrf.mxu0 }
0x2574   :  { %v3768_v17 = vpop.f32.mrf.mxu0 }
0x2575   :  { %v3777_v3 = vsel %vm295_vm7, %v3768_v17, -inf }
0x2576   :  { %3778 = vmax.xlane.f32.xlu1 %v3777_v3  ;;  %v9387_v21 = vpop.f32.mrf.mxu0 }
0x2578   :  { %v3771_v22 = vpop.f32.mrf.mxu0 }
0x257a   :  { %v9388_v34 = vpop.f32.mrf.mxu0 }
0x2587   :  { %3798 = vrot.lane.b32.xlu1 %v10789_v63, %s10252_s13 }
0x258b   :  { %3946 = vrot.lane.b32.xlu1 %v10789_v63, %s10253_s14 }
0x258f   :  { %3996 = vrot.lane.b32.xlu1 %v10796_v5, %s10253_s14 }
0x2593   :  { %3994 = vrot.lane.b32.xlu1 %v10810_v13, %s10254_s15 }
0x25ff   :  { %v3779_v25 = vpop.xlane.xlu1 %3778 }
0x2600   :  { %v3781_v27 = vsub.f32 %v3768_v17, %v3779_v25 }
0x2602   :  { %v3784_v28 = vmul.f32 1.442695, %v3781_v27 }
0x2603   :  { %v3799_v16 = vpop.permute.xlu1 %3798 }
0x2604   :  { %v3804_v26 = vsel %vm420_vm8, %v3799_v16, 0  ;;  %10044 = vpow2.f32 %v3784_v28 }
0x2605   :  { %9390 = vmatpush3.bf16.msra.mxu1 %v3804_v26 }
0x2606   :  { %9401 = vmatprep.subr.bf16.mxu1 %v10244_v1 }
0x2607   :  { %v3947_v53 = vpop.permute.xlu1 %3946 }
0x2608   :  { %v3952_v56 = vsel %vm295_vm7, %v3947_v53, 0 }
0x260b   :  { %v3997_v55 = vpop.permute.xlu1 %3996 }
0x260c   :  { %v4002_v3 = vsel %vm295_vm7, %v3997_v55, 0 }
0x260f   :  { %v3995_v25 = vpop.permute.xlu1 %3994 }
0x2611   :  { %v10045_v13 = vpop.eup %10044 }
0x2612   :  { %v3789_v57 = vsel %vm295_vm7, %v10045_v13, 0.0 }
0x2627   :  { %v10929_v29 = vpop.f32.mrf.mxu1 }
0x2629   :  { %v9369_v30 = vpop.f32.mrf.mxu1 }
0x262b   :  { %v10931_v31 = vpop.f32.mrf.mxu1 }
0x262d   :  { %v9370_v4 = vpop.f32.mrf.mxu1 }
0x262e   :  { %v3668_v4 = vadd.f32 %v10911_v8, %v10929_v29  ;;  %v2940_v8 = vadd.f32 %v10818_v40, %v10816_v14 }
0x262f   :  { %v3718_v18 = vpop.f32.mrf.mxu1 }
0x2630   :  { %v3774_v32 = vsel %vm295_vm7, %v3718_v18, -inf  ;;  %v2946_v29 = vadd.f32 %v2940_v8, %v10764_v37 }
0x2631   :  { %3775 = vmax.xlane.f32.xlu0 %v3774_v32  ;;  %v9381_v33 = vpop.f32.mrf.mxu1 }
0x2632   :  { %v3671_v33 = vadd.f32 %v10914_v12, %v10931_v31  ;;  %v2948_v12 = vsel %vm241_vm4, %v2946_v29, 0.0 }
0x2633   :  { %v3721_v35 = vpop.f32.mrf.mxu1 }
0x2635   :  { %v9382_v20 = vpop.f32.mrf.mxu1  ;;  %3790 = vadd.xlane.f32.xlu0 %v3789_v57 }
0x26ba   :  { %v3776_v6 = vpop.xlane.xlu0 %3775 }
0x26bb   :  { %v3780_v42 = vsub.f32 %v3718_v18, %v3776_v6 }
0x26bd   :  { %v3782_v44 = vmul.f32 1.442695, %v3780_v42 }
0x26be   :  { %v3791_v49 = vpop.xlane.xlu0 %3790 }
0x26bf   :  { %10046 = vpow2.f32 %v3782_v44 }
0x26c0   :  { %10048 = vrcp.f32 %v3791_v49 }
0x26cc   :  { %v10047_v45 = vpop.eup %10046 }
0x26cd   :  { %v3786_v48 = vsel %vm295_vm7, %v10047_v45, 0.0  ;;  %v10049_v41 = vpop.eup %10048 }
0x26ce   :  { %3787 = vadd.xlane.f32.xlu0 %v3786_v48  ;;  %v3795_v15 = vmul.f32 %v10049_v41, %v10045_v13 }
0x26d0   :  { %v3797_v54 = vpack.c.bf16 %v3795_v15, %v3795_v15 }
0x26e4   :  { %3846 = vrot.lane.b32.xlu0 %v10796_v5, %s10252_s13 }
0x26e8   :  { %3944 = vrot.lane.b32.xlu0 %v10803_v11, %s10254_s15 }
0x2757   :  { %v3788_v43 = vpop.xlane.xlu0 %3787 }
0x2758   :  { %10050 = vrcp.f32 %v3788_v43 }
0x275b   :  { %v3847_v51 = vpop.permute.xlu0 %3846 }
0x275c   :  { %v3852_v9 = vsel %vm420_vm8, %v3847_v51, 0 }
0x275d   :  { %9396 = vmatpush3.bf16.msra.mxu0 %v3852_v9 }
0x275e   :  { %9407 = vmatprep.subr.bf16.mxu0 %v10244_v1 }
0x275f   :  { %v3945_v58 = vpop.permute.xlu0 %3944 }
0x2760   :  { %9398 = vmatmul.mubr.msk.bf16.vlgmr.msra.gmra.mxu0 %vm295_vm7, %v3797_v54 }
0x2761   :  { %9408 = vmatpush3.bf16.xpose.msra.mxu0 %v3952_v56  ;;  %9409 = vmatprep.mubr.msk.bf16.mxu0 %vm10245_vm0, %v10244_v1 }
0x2762   :  { %9419 = vmatprep.subr.bf16.mxu0 %v10244_v1 }
0x2765   :  { %v10051_v11 = vpop.eup %10050 }
0x2766   :  { %v3794_v23 = vmul.f32 %v10051_v11, %v10047_v45 }
0x2768   :  { %v3796_v59 = vpack.c.bf16 %v3794_v23, %v3794_v23  ;;  %9410 = vmatmul.mubr.msk.bf16.vlgmr.msra.gmra.mxu0 %vm295_vm7, %v3945_v58  ;;  %v2947_v58 = vadd.f32 %v10821_v19, %v10766_v39 }
0x2769   :  { %9421 = vmatprep.mubr.msk.bf16.mxu0 %vm10245_vm0, %v10244_v1 }
0x276a   :  { %9392 = vmatmul.mubr.msk.bf16.vlgmr.msra.gmra.mxu1 %vm295_vm7, %v3796_v59  ;;  %v2951_v59 = vsel %vm241_vm4, %v2947_v58, 0.0 }
0x276b   :  { %9403 = vmatprep.mubr.msk.bf16.mxu1 %vm10245_vm0, %v10244_v1  ;;  %9402 = vmatpush3.bf16.msra.mxu1 %v3899_v60 }
0x276c   :  { %9413 = vmatprep.subr.bf16.mxu1 %v10244_v1 }
0x2820   :  { %v3888_v52 = vpop.f32.mrf.mxu0 }
0x2822   :  { %v9399_v61 = vpop.f32.mrf.mxu0 }
0x2824   :  { %v3891_v62 = vpop.f32.mrf.mxu0 }
0x2826   :  { %v9400_v0 = vpop.f32.mrf.mxu0 }
0x2828   :  { %v3988_v2 = vpop.f32.mrf.mxu0 }
0x2829   :  { %v4044_v38 = vsel %vm295_vm7, %v3988_v2, -inf }
0x282a   :  { %v3840_v7 = vpop.f32.mrf.mxu1  ;;  %4045 = vmax.xlane.f32.xlu0 %v4044_v38  ;;  %v9411_v36 = vpop.f32.mrf.mxu0 }
0x282b   :  { %v3894_v10 = vpack.c.bf16 %v3888_v52, %v3840_v7 }
0x282c   :  { %v9393_v50 = vpop.f32.mrf.mxu1  ;;  %v3991_v17 = vpop.f32.mrf.mxu0 }
0x282d   :  { %9404 = vmatmul.mubr.msk.bf16.vlgmr.msra.gmra.mxu1 %vm295_vm7, %v3894_v10 }
0x282e   :  { %9414 = vmatpush3.bf16.xpose.msra.mxu1 %v4002_v3  ;;  %v3843_v21 = vpop.f32.mrf.mxu1  ;;  %v9412_v22 = vpop.f32.mrf.mxu0  ;;  %9415 = vmatprep.mubr.msk.bf16.mxu1 %vm10245_vm0, %v10244_v1 }
0x282f   :  { %9425 = vmatprep.subr.bf16.mxu1 %v10244_v1  ;;  %v8530_v21 = vld [vmem:[#allocation4 + $0x80] ss:$0 sm:$0xff] }
0x2830   :  { %v9394_v34 = vpop.f32.mrf.mxu1 }
0x2835   :  { %9416 = vmatmul.mubr.msk.bf16.vlgmr.msra.gmra.mxu1 %vm295_vm7, %v3995_v25  ;;  %v8531_v25 = vld [vmem:[#allocation4 + $0x88] ss:$0 sm:$0xff] }
0x2836   :  { %9427 = vmatprep.mubr.msk.bf16.mxu1 %vm10245_vm0, %v10244_v1 }
0x28b3   :  { %v4046_v16 = vpop.xlane.xlu0 %4045 }
0x28b4   :  { %v4050_v26 = vsub.f32 %v3988_v2, %v4046_v16 }
0x28b6   :  { %v4052_v27 = vmul.f32 1.442695, %v4050_v26 }
0x28b8   :  { %10052 = vpow2.f32 %v4052_v27 }
0x28c5   :  { %v10053_v28 = vpop.eup %10052 }
0x28c6   :  { %v4056_v30 = vsel %vm295_vm7, %v10053_v28, 0.0 }
0x28c7   :  { %4057 = vadd.xlane.f32.xlu0 %v4056_v30 }
0x28ed   :  { %v3935_v18 = vpop.f32.mrf.mxu1 }
0x28ee   :  { %v10967_v32 = vadd.f32 %v3935_v18, %v3668_v4 }
0x28ef   :  { %v9405_v13 = vpop.f32.mrf.mxu1 }
0x28f1   :  { %v3938_v35 = vpop.f32.mrf.mxu1 }
0x28f2   :  { %v10971_v57 = vadd.f32 %v3938_v35, %v3671_v33 }
0x28f3   :  { %v9406_v20 = vpop.f32.mrf.mxu1 }
0x28f5   :  { %v4038_v6 = vpop.f32.mrf.mxu1 }
0x28f6   :  { %v4047_v42 = vsel %vm295_vm7, %v4038_v6, -inf }
0x28f7   :  { %4048 = vmax.xlane.f32.xlu1 %v4047_v42  ;;  %v9417_v44 = vpop.f32.mrf.mxu1 }
0x28f9   :  { %v4041_v45 = vpop.f32.mrf.mxu1 }
0x28fb   :  { %v9418_v48 = vpop.f32.mrf.mxu1 }
0x2908   :  { %4068 = vrot.lane.b32.xlu1 %v10789_v63, %s10255_s16 }
0x292c   :  { %2949 = vadd.xlane.f32.xlu1 %v2948_v12 }
0x2950   :  { %v4058_v31 = vpop.xlane.xlu0 %4057 }
0x2951   :  { %10054 = vrcp.f32 %v4058_v31 }
0x295e   :  { %v10055_v49 = vpop.eup %10054 }
0x295f   :  { %v4064_v15 = vmul.f32 %v10055_v49, %v10053_v28  ;;  %v3033_v28 = vld [vmem:[#allocation2 + $0xdc] sm:$0xf] }
0x2960   :  { %v4169_v30 = vsel %vm420_vm8, %v3033_v28, 0 }
0x2961   :  { %v4066_v63 = vpack.c.bf16 %v4064_v15, %v4064_v15 }
0x2980   :  { %v4049_v41 = vpop.xlane.xlu1 %4048 }
0x2981   :  { %v4051_v43 = vsub.f32 %v4038_v6, %v4049_v41  ;;  %v8558_v41 = vld [vmem:[#allocation4 + $0xa8] ss:$0 sm:$0xff] }
0x2983   :  { %v4054_v51 = vmul.f32 1.442695, %v4051_v43 }
0x2984   :  { %v4069_v9 = vpop.permute.xlu1 %4068 }
0x2985   :  { %10056 = vpow2.f32 %v4054_v51  ;;  %v4074_v53 = vsel %vm420_vm8, %v4069_v9, 0 }
0x2986   :  { %9420 = vmatpush3.bf16.msra.mxu0 %v4074_v53 }
0x2987   :  { %9431 = vmatprep.subr.bf16.mxu0 %v10244_v1 }
0x2989   :  { %9422 = vmatmul.mubr.msk.bf16.vlgmr.msra.gmra.mxu0 %vm295_vm7, %v4066_v63 }
0x298a   :  { %9433 = vmatprep.mubr.msk.bf16.mxu0 %vm10245_vm0, %v10244_v1  ;;  %9432 = vmatpush3.bf16.msra.mxu0 %v4169_v30 }
0x298b   :  { %9445 = vmatprep.subr.bf16.mxu0 %v10244_v1 }
0x2992   :  { %v10057_v37 = vpop.eup %10056 }
0x2993   :  { %v4059_v14 = vsel %vm295_vm7, %v10057_v37, 0.0 }
0x2994   :  { %4060 = vadd.xlane.f32.xlu0 %v4059_v14 }
0x29aa   :  { %4116 = vrot.lane.b32.xlu0 %v10796_v5, %s10255_s16 }
0x29b5   :  { %v2950_v40 = vpop.xlane.xlu1 %2949 }
0x29b6   :  { %v2954_v54 = vmul.f32 0.03125, %v2950_v40 }
0x29b8   :  { %v2956_v56 = vsub.f32 %v2946_v29, %v2954_v54 }
0x29ba   :  { %v2958_v11 = vmul.f32 %v2956_v56, %v2956_v56 }
0x29bc   :  { %v2960_v23 = vsel %vm241_vm4, %v2958_v11, 0.0 }
0x29bd   :  { %2961 = vadd.xlane.f32.xlu1 %v2960_v23 }
0x29c9   :  { %2952 = vadd.xlane.f32.xlu0 %v2951_v59 }
0x2a1d   :  { %v4061_v24 = vpop.xlane.xlu0 %4060 }
0x2a1e   :  { %10058 = vrcp.f32 %v4061_v24 }
0x2a21   :  { %v4117_v60 = vpop.permute.xlu0 %4116 }
0x2a22   :  { %v4122_v52 = vsel %vm420_vm8, %v4117_v60, 0 }
0x2a23   :  { %9426 = vmatpush3.bf16.msra.mxu1 %v4122_v52  ;;  %v9929_v52 = vld [vmem:[#allocation2 + $0xf0] sm:$0xff]  }
0x2a24   :  { %9437 = vmatprep.subr.bf16.mxu1 %v10244_v1 }
0x2a2b   :  { %v10059_v5 = vpop.eup %10058 }
0x2a2c   :  { %v4065_v61 = vmul.f32 %v10059_v5, %v10057_v37 }
0x2a2e   :  { %v4067_v62 = vpack.c.bf16 %v4065_v61, %v4065_v61 }
0x2a30   :  { %9428 = vmatmul.mubr.msk.bf16.vlgmr.msra.gmra.mxu1 %vm295_vm7, %v4067_v62 }
0x2a31   :  { %9441 = vmatprep.mubr.msk.bf16.mxu1 %vm10245_vm0, %v10244_v1 }
0x2a46   :  { %v2962_v39 = vpop.xlane.xlu1 %2961 }
0x2a47   :  { %v2966_v19 = vmul.f32 0.03125, %v2962_v39 }
0x2a49   :  { %v2968_v0 = vadd.f32 1e-05, %v2966_v19  ;;  %v4110_v2 = vpop.f32.mrf.mxu0 }
0x2a4b   :  { %10060 = vrsqrt.f32 %v2968_v0  ;;  %v9423_v55 = vpop.f32.mrf.mxu0 }
0x2a4d   :  { %v4113_v38 = vpop.f32.mrf.mxu0 }
0x2a4f   :  { %v9424_v7 = vpop.f32.mrf.mxu0 }
0x2a52   :  { %v2953_v36 = vpop.xlane.xlu0 %2952 }
0x2a53   :  { %v2955_v10 = vmul.f32 0.03125, %v2953_v36 }
0x2a55   :  { %v2957_v50 = vsub.f32 %v2947_v58, %v2955_v10 }
0x2a57   :  { %v2959_v17 = vmul.f32 %v2957_v50, %v2957_v50 }
0x2a58   :  { %v10061_v3 = vpop.eup %10060 }
0x2a59   :  { %v2963_v22 = vsel %vm241_vm4, %v2959_v17, 0.0  ;;  %v2972_v34 = vmul.f32 %v10061_v3, %v2956_v56 }
0x2a5a   :  { %2964 = vadd.xlane.f32.xlu0 %v2963_v22 }
0x2a5b   :  { %v2978_v16 = vmul.f32 %v8530_v21, %v2972_v34  ;;  %v8532_v34 = vld [vmem:[#allocation4 + $0x90] ss:$0 sm:$0xff] }
0x2a5d   :  { %v2984_v26 = vadd.f32 %v8531_v25, %v2978_v16 }
0x2a5f   :  { %v2988_v27 = vsel %vm241_vm4, %v2984_v26, 0.0 }
0x2a60   :  { %2989 = vadd.xlane.f32.xlu1 %v2988_v27  ;;  %v8533_v27 = vld [vmem:[#allocation4 + $0x98] ss:$0 sm:$0xff] }
0x2ae3   :  { %v2965_v4 = vpop.xlane.xlu0 %2964 }
0x2ae4   :  { %v2967_v18 = vmul.f32 0.03125, %v2965_v4 }
0x2ae6   :  { %v2969_v13 = vadd.f32 1e-05, %v2967_v18 }
0x2ae8   :  { %10062 = vrsqrt.f32 %v2969_v13  ;;  %v9930_v13 = vld [vmem:[#allocation2 + $0xe8] sm:$0xff]  }
0x2ae9   :  { %v2990_v12 = vpop.xlane.xlu1 %2989  ;;  %9438 = vmatpush3.bf16.msra.mxu1 %v9930_v13 }
0x2aea   :  { %v2994_v31 = vmul.f32 0.03125, %v2990_v12  ;;  %9439 = vmatprep.subr.bf16.mxu1 %v10244_v1 }
0x2aec   :  { %v2996_v9 = vsub.f32 %v2984_v26, %v2994_v31 }
0x2aee   :  { %v2998_v58 = vmul.f32 %v2996_v9, %v2996_v9 }
0x2af0   :  { %v4158_v33 = vpop.f32.mrf.mxu1 }
0x2af1   :  { %v4164_v35 = vpack.c.bf16 %v4158_v33, %v4110_v2  ;;  %v9931_v33 = vld [vmem:[#allocation2 + $0xe0] sm:$0xff]  }
0x2af2   :  { %v9429_v20 = vpop.f32.mrf.mxu1  ;;  %9440 = vmatpush3.bf16.msra.mxu1 %v9931_v33 }
0x2af3   :  { %9434 = vmatmul.mubr.msk.bf16.vlgmr.msra.gmra.mxu0 %vm295_vm7, %v4164_v35  ;;  %9453 = vmatprep.subr.bf16.mxu1 %v10244_v1 }
0x2af4   :  { %v4161_v6 = vpop.f32.mrf.mxu1  ;;  %9449 = vmatprep.mubr.msk.bf16.mxu0 %vm10245_vm0, %v10244_v1 }
0x2af5   :  { %v10063_v42 = vpop.eup %10062 }
0x2af6   :  { %v9430_v44 = vpop.f32.mrf.mxu1  ;;  %v2973_v45 = vmul.f32 %v10063_v42, %v2957_v50 }
0x2af8   :  { %v2979_v48 = vmul.f32 %v8530_v21, %v2973_v45 }
0x2afa   :  { %v2985_v8 = vadd.f32 %v8531_v25, %v2979_v48 }
0x2afc   :  { %v2991_v29 = vsel %vm241_vm4, %v2985_v8, 0.0 }
0x2afd   :  { %2992 = vadd.xlane.f32.xlu0 %v2991_v29  ;;  %v8559_v29 = vld [vmem:[#allocation4 + $0xb0] ss:$0 sm:$0xff] }
0x2b86   :  { %v2993_v49 = vpop.xlane.xlu0 %2992 }
0x2b87   :  { %v2995_v53 = vmul.f32 0.03125, %v2993_v49 }
0x2b89   :  { %v2997_v56 = vsub.f32 %v2985_v8, %v2995_v53  ;;  %v8565_v53 = vld [vmem:[#allocation4 + $0xc8] ss:$0 sm:$0xff] }
0x2b8b   :  { %v2999_v60 = vmul.f32 %v2997_v56, %v2997_v56 }
0x2bb3   :  { %v4205_v43 = vpop.f32.mrf.mxu0 }
0x2bb4   :  { %v4212_v15 = vadd.f32 %v4205_v43, %v10967_v32  ;;  %v3000_v32 = vsel %vm241_vm4, %v2998_v58, 0.0 }
0x2bb5   :  { %v9435_v51 = vpop.f32.mrf.mxu0 }
0x2bb6   :  { %v4218_v63 = vadd.f32 %v8558_v41, %v4212_v15 }
0x2bb7   :  { %v4208_v37 = vpop.f32.mrf.mxu0 }
0x2bb8   :  { %v4213_v14 = vadd.f32 %v4208_v37, %v10971_v57  ;;  %v4220_v40 = vadd.f32 %v4218_v63, %v10774_v46  ;;  %v3003_v57 = vsel %vm241_vm4, %v2999_v60, 0.0  ;;  %v9928_v46 = vld [vmem:[#allocation2 + $0xf8] sm:$0xff]  }
0x2bb9   :  { %v9436_v54 = vpop.f32.mrf.mxu0  ;;  %9446 = vmatpush3.bf16.msra.mxu0 %v9928_v46 }
0x2bba   :  { %v4219_v11 = vadd.f32 %v8558_v41, %v4213_v14  ;;  %v4222_v23 = vsel %vm241_vm4, %v4220_v40, 0.0  ;;  %9447 = vmatprep.subr.bf16.mxu0 %v10244_v1  ;;  %v8560_v41 = vld [vmem:[#allocation4 + $0xb8] ss:$0 sm:$0xff] }
0x2bbb   :  { %4223 = vadd.xlane.f32.xlu1 %v4222_v23 }
0x2bbc   :  { %v4221_v59 = vadd.f32 %v4219_v11, %v10777_v47 }
0x2bbd   :  { %9448 = vmatpush3.bf16.msra.mxu0 %v9929_v52 }
0x2bbe   :  { %v4225_v24 = vsel %vm241_vm4, %v4221_v59, 0.0  ;;  %9459 = vmatprep.subr.bf16.mxu0 %v10244_v1 }
0x2bbf   :  { %3001 = vadd.xlane.f32.xlu1 %v3000_v32  ;;  %4226 = vadd.xlane.f32.xlu0 %v4225_v24  ;;  %v8561_v32 = vld [vmem:[#allocation4 + $0xc0] ss:$0 sm:$0xff] }
0x2bc3   :  { %3004 = vadd.xlane.f32.xlu0 %v3003_v57 }
0x2c44   :  { %v4224_v5 = vpop.xlane.xlu1 %4223 }
0x2c45   :  { %v4228_v47 = vmul.f32 0.03125, %v4224_v5 }
0x2c47   :  { %v4230_v61 = vsub.f32 %v4220_v40, %v4228_v47 }
0x2c48   :  { %v3002_v62 = vpop.xlane.xlu1 %3001  ;;  %v4227_v39 = vpop.xlane.xlu0 %4226 }
0x2c49   :  { %v3006_v19 = vmul.f32 0.03125, %v3002_v62  ;;  %v4229_v0 = vmul.f32 0.03125, %v4227_v39  ;;  %v4232_v2 = vmul.f32 %v4230_v61, %v4230_v61 }
0x2c4b   :  { %v3008_v55 = vadd.f32 1e-05, %v3006_v19  ;;  %v4231_v38 = vsub.f32 %v4221_v59, %v4229_v0  ;;  %v4234_v7 = vsel %vm241_vm4, %v4232_v2, 0.0 }
0x2c4c   :  { %4235 = vadd.xlane.f32.xlu1 %v4234_v7  ;;  %v3005_v36 = vpop.xlane.xlu0 %3004 }
0x2c4d   :  { %10064 = vrsqrt.f32 %v3008_v55  ;;  %v3007_v10 = vmul.f32 0.03125, %v3005_v36  ;;  %v4233_v50 = vmul.f32 %v4231_v38, %v4231_v38 }
0x2c4f   :  { %v3009_v17 = vadd.f32 1e-05, %v3007_v10  ;;  %v4237_v3 = vsel %vm241_vm4, %v4233_v50, 0.0 }
0x2c50   :  { %4238 = vadd.xlane.f32.xlu0 %v4237_v3 }
0x2c51   :  { %10066 = vrsqrt.f32 %v3009_v17 }
0x2c5a   :  { %v10065_v21 = vpop.eup %10064 }
0x2c5b   :  { %v3012_v22 = vmul.f32 %v10065_v21, %v2996_v9 }
0x2c5d   :  { %v3018_v16 = vmul.f32 %v8532_v34, %v3012_v22 }
0x2c5e   :  { %v10067_v25 = vpop.eup %10066 }
0x2c5f   :  { %v3013_v26 = vmul.f32 %v10067_v25, %v2997_v56  ;;  %v3024_v30 = vadd.f32 %v8533_v27, %v3018_v16 }
0x2c61   :  { %v3019_v28 = vmul.f32 %v8532_v34, %v3013_v26 }
0x2c63   :  { %v3025_v4 = vadd.f32 %v8533_v27, %v3019_v28 }
0x2c65   :  { %v11017_v18 = vpack.c.bf16 %v3025_v4, %v3024_v30 }
0x2c67   :  { %9450 = vmatmul.mubr.msk.bf16.vlgmr.msra.gmra.mxu0 %vm241_vm4, %v11017_v18 }
0x2c68   :  { %9461 = vmatprep.mubr.msk.bf16.mxu0 %vm10245_vm0, %v10244_v1 }
0x2cd5   :  { %v4236_v35 = vpop.xlane.xlu1 %4235 }
0x2cd6   :  { %v4240_v20 = vmul.f32 0.03125, %v4236_v35 }
0x2cd8   :  { %v4242_v6 = vadd.f32 1e-05, %v4240_v20 }
0x2cd9   :  { %v4239_v42 = vpop.xlane.xlu0 %4238 }
0x2cda   :  { %10068 = vrsqrt.f32 %v4242_v6  ;;  %v4241_v44 = vmul.f32 0.03125, %v4239_v42 }
0x2cdc   :  { %v4243_v45 = vadd.f32 1e-05, %v4241_v44 }
0x2cde   :  { %10070 = vrsqrt.f32 %v4243_v45 }
0x2ce7   :  { %v10069_v48 = vpop.eup %10068 }
0x2ce8   :  { %v4246_v8 = vmul.f32 %v10069_v48, %v4230_v61 }
0x2cea   :  { %v4252_v31 = vmul.f32 %v8559_v29, %v4246_v8 }
0x2ceb   :  { %v10071_v12 = vpop.eup %10070 }
0x2cec   :  { %v4247_v49 = vmul.f32 %v10071_v12, %v4231_v38  ;;  %v11025_v15 = vadd.f32 %v8560_v41, %v4252_v31 }
0x2cee   :  { %v4253_v43 = vmul.f32 %v8559_v29, %v4247_v49 }
0x2cf0   :  { %v11027_v51 = vadd.f32 %v8560_v41, %v4253_v43 }
0x2cf2   :  { %v4260_v9 = vpack.c.bf16 %v11027_v51, %v11025_v15 }
0x2cf4   :  { %9442 = vmatmul.mubr.msk.bf16.vlgmr.msra.gmra.mxu1 %vm241_vm4, %v4260_v9 }
0x2cf5   :  { %9455 = vmatprep.mubr.msk.bf16.mxu1 %vm10245_vm0, %v10244_v1 }
0x2d27   :  { %v4375_v63 = vpop.f32.mrf.mxu0 }
0x2d28   :  { %v4376_v37 = vadd.f32 %v8565_v53, %v4375_v63 }
0x2d29   :  { %v9451_v14 = vpop.f32.mrf.mxu0 }
0x2d2a   :  { %v11034_v40 = vpack.c.bf16 %v4376_v37, %v4376_v37 }
0x2d2b   :  { %v4378_v54 = vpop.f32.mrf.mxu0 }
0x2d2c   :  { %v4379_v56 = vadd.f32 %v8565_v53, %v4378_v54  ;;  %v4392_v11 = vsel %vm295_vm7, %v11034_v40, 0 }
0x2d2d   :  { %v9452_v23 = vpop.f32.mrf.mxu0  ;;  %9454 = vmatpush3.bf16.xpose.msra.mxu1 %v4392_v11 }
0x2d2e   :  { %v11038_v58 = vpack.c.bf16 %v4379_v56, %v4379_v56  ;;  %9465 = vmatprep.subr.bf16.mxu1 %v10244_v1 }
0x2d30   :  { %v4438_v59 = vsel %vm295_vm7, %v11038_v58, 0 }
0x2d31   :  { %9460 = vmatpush3.bf16.xpose.msra.mxu0 %v4438_v59 }
0x2d32   :  { %9471 = vmatprep.subr.bf16.mxu0 %v10244_v1 }
0x2db4   :  { %v4314_v24 = vpop.f32.mrf.mxu1 }
0x2db5   :  { %v4315_v60 = vadd.f32 %v8561_v32, %v4314_v24 }
0x2db6   :  { %v9443_v57 = vpop.f32.mrf.mxu1 }
0x2db7   :  { %v4382_v46 = vmul.f32 0.35355338, %v4315_v60 }
0x2db8   :  { %v4317_v52 = vpop.f32.mrf.mxu1 }
0x2db9   :  { %v11044_v5 = vpack.c.bf16 %v4382_v46, %v4382_v46  ;;  %v4318_v47 = vadd.f32 %v8561_v32, %v4317_v52 }
0x2dba   :  { %v9444_v61 = vpop.f32.mrf.mxu1 }
0x2dbb   :  { %v4383_v62 = vmul.f32 0.35355338, %v4318_v47  ;;  %9456 = vmatmul.mubr.msk.bf16.vlgmr.msra.gmra.mxu1 %vm295_vm7, %v11044_v5 }
0x2dbc   :  { %9467 = vmatprep.mubr.msk.bf16.mxu1 %vm10245_vm0, %v10244_v1 }
0x2dbd   :  { %v11050_v39 = vpack.c.bf16 %v4383_v62, %v4383_v62 }
0x2dbf   :  { %9462 = vmatmul.mubr.msk.bf16.vlgmr.msra.gmra.mxu0 %vm295_vm7, %v11050_v39 }
0x2dc0   :  { %9473 = vmatprep.mubr.msk.bf16.mxu0 %vm10245_vm0, %v10244_v1 }
0x2e7b   :  { %v4428_v19 = vpop.f32.mrf.mxu1 }
0x2e7c   :  { %v4480_v0 = vsel %vm295_vm7, %v4428_v19, -inf }
0x2e7d   :  { %4481 = vmax.xlane.f32.xlu1 %v4480_v0  ;;  %v9457_v2 = vpop.f32.mrf.mxu1 }
0x2e7f   :  { %v4431_v55 = vpop.f32.mrf.mxu1  ;;  %v4474_v38 = vpop.f32.mrf.mxu0 }
0x2e80   :  { %v4483_v7 = vsel %vm295_vm7, %v4474_v38, -inf }
0x2e81   :  { %v9458_v36 = vpop.f32.mrf.mxu1  ;;  %4484 = vmax.xlane.f32.xlu0 %v4483_v7  ;;  %v9463_v10 = vpop.f32.mrf.mxu0 }
0x2e83   :  { %v4477_v50 = vpop.f32.mrf.mxu0 }
0x2e85   :  { %v9464_v17 = vpop.f32.mrf.mxu0 }
0x2e8e   :  { %4505 = vrot.lane.b32.xlu1 %v11034_v40, %s10246_s1 }
0x2f06   :  { %v4482_v3 = vpop.xlane.xlu1 %4481 }
0x2f07   :  { %v4486_v21 = vsub.f32 %v4428_v19, %v4482_v3 }
0x2f09   :  { %v4488_v22 = vmul.f32 1.442695, %v4486_v21 }
0x2f0a   :  { %v4506_v34 = vpop.permute.xlu1 %4505  ;;  %v4485_v25 = vpop.xlane.xlu0 %4484 }
0x2f0b   :  { %10072 = vpow2.f32 %v4488_v22  ;;  %v4511_v16 = vsel %vm420_vm8, %v4506_v34, 0  ;;  %v4487_v26 = vsub.f32 %v4474_v38, %v4485_v25 }
0x2f0c   :  { %9466 = vmatpush3.bf16.msra.mxu1 %v4511_v16 }
0x2f0d   :  { %v4490_v27 = vmul.f32 1.442695, %v4487_v26  ;;  %9477 = vmatprep.subr.bf16.mxu1 %v10244_v1 }
0x2f0f   :  { %10074 = vpow2.f32 %v4490_v27 }
0x2f18   :  { %v10073_v28 = vpop.eup %10072 }
0x2f19   :  { %v4492_v30 = vsel %vm295_vm7, %v10073_v28, 0.0 }
0x2f1a   :  { %4493 = vadd.xlane.f32.xlu1 %v4492_v30 }
0x2f1c   :  { %v10075_v4 = vpop.eup %10074 }
0x2f1d   :  { %v4495_v13 = vsel %vm295_vm7, %v10075_v4, 0.0 }
0x2f1e   :  { %4496 = vadd.xlane.f32.xlu0 %v4495_v13  ;;  %v3042_v13 = vld [vmem:[#allocation2 + $0x100] sm:$0xf] }
0x2f2b   :  { %4606 = vrot.lane.b32.xlu1 %v11034_v40, %s10248_s9 }
0x2f2f   :  { %4657 = vrot.lane.b32.xlu1 %v11038_v58, %s10248_s9 }
0x2f33   :  { %4655 = vrot.lane.b32.xlu1 %v11050_v39, %s10248_s9 }
0x2f34   :  { %4554 = vrot.lane.b32.xlu0 %v11038_v58, %s10246_s1 }
0x2f38   :  { %4604 = vrot.lane.b32.xlu0 %v11044_v5, %s10248_s9 }
0x2fa3   :  { %v4494_v33 = vpop.xlane.xlu1 %4493 }
0x2fa4   :  { %10076 = vrcp.f32 %v4494_v33 }
0x2fa7   :  { %v4497_v35 = vpop.xlane.xlu0 %4496  ;;  %v4607_v44 = vpop.permute.xlu1 %4606 }
0x2fa8   :  { %10078 = vrcp.f32 %v4497_v35  ;;  %v4612_v29 = vsel %vm295_vm7, %v4607_v44, 0 }
0x2fab   :  { %v4555_v20 = vpop.permute.xlu0 %4554  ;;  %v4658_v31 = vpop.permute.xlu1 %4657 }
0x2fac   :  { %v4560_v6 = vsel %vm420_vm8, %v4555_v20, 0  ;;  %v4663_v41 = vsel %vm295_vm7, %v4658_v31, 0  ;;  %v4877_v20 = vsel %vm420_vm8, %v3042_v13, 0 }
0x2fad   :  { %9472 = vmatpush3.bf16.msra.mxu0 %v4560_v6 }
0x2fae   :  { %9483 = vmatprep.subr.bf16.mxu0 %v10244_v1 }
0x2faf   :  { %v4605_v43 = vpop.permute.xlu0 %4604  ;;  %v4656_v9 = vpop.permute.xlu1 %4655 }
0x2fb1   :  { %v10077_v42 = vpop.eup %10076 }
0x2fb2   :  { %v4500_v45 = vmul.f32 %v10077_v42, %v10073_v28 }
0x2fb4   :  { %v4502_v48 = vpack.c.bf16 %v4500_v45, %v4500_v45 }
0x2fb5   :  { %v10079_v8 = vpop.eup %10078 }
0x2fb6   :  { %v4501_v12 = vmul.f32 %v10079_v8, %v10075_v4  ;;  %9468 = vmatmul.mubr.msk.bf16.vlgmr.msra.gmra.mxu1 %vm295_vm7, %v4502_v48  ;;  %v3043_v48 = vld [vmem:[#allocation2 + $0x104] sm:$0xf] }
0x2fb7   :  { %9478 = vmatpush3.bf16.xpose.msra.mxu1 %v4612_v29  ;;  %9479 = vmatprep.mubr.msk.bf16.mxu1 %vm10245_vm0, %v10244_v1  ;;  %v4830_v8 = vsel %vm420_vm8, %v3043_v48, 0 }
0x2fb8   :  { %v4503_v49 = vpack.c.bf16 %v4501_v12, %v4501_v12  ;;  %9489 = vmatprep.subr.bf16.mxu1 %v10244_v1 }
0x2fba   :  { %9474 = vmatmul.mubr.msk.bf16.vlgmr.msra.gmra.mxu0 %vm295_vm7, %v4503_v49 }
0x2fbb   :  { %9484 = vmatpush3.bf16.xpose.msra.mxu0 %v4663_v41  ;;  %9485 = vmatprep.mubr.msk.bf16.mxu0 %vm10245_vm0, %v10244_v1 }
0x2fbc   :  { %9495 = vmatprep.subr.bf16.mxu0 %v10244_v1 }
0x2fbe   :  { %9480 = vmatmul.mubr.msk.bf16.vlgmr.msra.gmra.mxu1 %vm295_vm7, %v4605_v43 }
0x2fbf   :  { %9491 = vmatprep.mubr.msk.bf16.mxu1 %vm10245_vm0, %v10244_v1 }
0x2fc2   :  { %9486 = vmatmul.mubr.msk.bf16.vlgmr.msra.gmra.mxu0 %vm295_vm7, %v4656_v9 }
0x2fc3   :  { %9497 = vmatprep.mubr.msk.bf16.mxu0 %vm10245_vm0, %v10244_v1 }
0x3076   :  { %v11092_v53 = vpop.f32.mrf.mxu1 }
0x3078   :  { %v9469_v63 = vpop.f32.mrf.mxu1 }
0x307a   :  { %v4550_v37 = vpop.f32.mrf.mxu1  ;;  %v11094_v14 = vpop.f32.mrf.mxu0 }
0x307b   :  { %v4602_v54 = vpack.c.bf16 %v11094_v14, %v11092_v53 }
0x307c   :  { %v9470_v56 = vpop.f32.mrf.mxu1  ;;  %v9475_v11 = vpop.f32.mrf.mxu0 }
0x307e   :  { %v4599_v23 = vpop.f32.mrf.mxu0  ;;  %v4648_v59 = vpop.f32.mrf.mxu1 }
0x307f   :  { %v4705_v32 = vsel %vm295_vm7, %v4648_v59, -inf }
0x3080   :  { %4706 = vmax.xlane.f32.xlu0 %v4705_v32  ;;  %v9476_v24 = vpop.f32.mrf.mxu0  ;;  %v9481_v60 = vpop.f32.mrf.mxu1 }
0x3082   :  { %v4651_v57 = vpop.f32.mrf.mxu1  ;;  %v4699_v46 = vpop.f32.mrf.mxu0 }
0x3083   :  { %v4708_v52 = vsel %vm295_vm7, %v4699_v46, -inf }
0x3084   :  { %v9482_v47 = vpop.f32.mrf.mxu1  ;;  %4709 = vmax.xlane.f32.xlu1 %v4708_v52  ;;  %v9487_v61 = vpop.f32.mrf.mxu0 }
0x3086   :  { %v4702_v62 = vpop.f32.mrf.mxu0 }
0x3088   :  { %v9488_v19 = vpop.f32.mrf.mxu0 }
0x3095   :  { %4729 = vrot.lane.b32.xlu1 %v11034_v40, %s10247_s8 }
0x3099   :  { %4922 = vrot.lane.b32.xlu1 %v11034_v40, %s10251_s12 }
0x309d   :  { %4972 = vrot.lane.b32.xlu1 %v11038_v58, %s10251_s12 }
0x30a1   :  { %4970 = vrot.lane.b32.xlu1 %v11050_v39, %s10251_s12 }
0x3109   :  { %v4707_v0 = vpop.xlane.xlu0 %4706 }
0x310a   :  { %v4711_v2 = vsub.f32 %v4648_v59, %v4707_v0 }
0x310c   :  { %v4713_v55 = vmul.f32 1.442695, %v4711_v2 }
0x310d   :  { %v4710_v38 = vpop.xlane.xlu1 %4709 }
0x310e   :  { %10080 = vpow2.f32 %v4713_v55  ;;  %v4712_v7 = vsub.f32 %v4699_v46, %v4710_v38 }
0x3110   :  { %v4715_v36 = vmul.f32 1.442695, %v4712_v7 }
0x3111   :  { %v4730_v10 = vpop.permute.xlu1 %4729 }
0x3112   :  { %10082 = vpow2.f32 %v4715_v36  ;;  %v4735_v50 = vsel %vm420_vm8, %v4730_v10, 0 }
0x3113   :  { %9490 = vmatpush3.bf16.msra.mxu1 %v4735_v50 }
0x3114   :  { %9501 = vmatprep.subr.bf16.mxu1 %v10244_v1 }
0x3115   :  { %v4923_v6 = vpop.permute.xlu1 %4922 }
0x3116   :  { %v4928_v53 = vsel %vm295_vm7, %v4923_v6, 0 }
0x3119   :  { %v4973_v42 = vpop.permute.xlu1 %4972 }
0x311a   :  { %v4978_v44 = vsel %vm295_vm7, %v4973_v42, 0 }
0x311b   :  { %v10081_v17 = vpop.eup %10080 }
0x311c   :  { %v4717_v3 = vsel %vm295_vm7, %v10081_v17, 0.0 }
0x311d   :  { %4718 = vadd.xlane.f32.xlu0 %v4717_v3  ;;  %v4971_v45 = vpop.permute.xlu1 %4970 }
0x311f   :  { %v10083_v21 = vpop.eup %10082 }
0x3120   :  { %v4720_v22 = vsel %vm295_vm7, %v10083_v21, 0.0 }
0x3121   :  { %4721 = vadd.xlane.f32.xlu0 %v4720_v22 }
0x3137   :  { %4777 = vrot.lane.b32.xlu0 %v11038_v58, %s10247_s8 }
0x313b   :  { %4920 = vrot.lane.b32.xlu0 %v11044_v5, %s10251_s12 }
0x31a6   :  { %v4719_v34 = vpop.xlane.xlu0 %4718 }
0x31a7   :  { %10084 = vrcp.f32 %v4719_v34 }
0x31aa   :  { %v4722_v25 = vpop.xlane.xlu0 %4721 }
0x31ab   :  { %10086 = vrcp.f32 %v4722_v25 }
0x31ae   :  { %v4778_v16 = vpop.permute.xlu0 %4777 }
0x31af   :  { %v4783_v26 = vsel %vm420_vm8, %v4778_v16, 0 }
0x31b0   :  { %9496 = vmatpush3.bf16.msra.mxu0 %v4783_v26 }
0x31b1   :  { %9507 = vmatprep.subr.bf16.mxu0 %v10244_v1 }
0x31b4   :  { %v10085_v27 = vpop.eup %10084 }
0x31b5   :  { %v4725_v28 = vmul.f32 %v10085_v27, %v10081_v17 }
0x31b7   :  { %v4727_v30 = vpack.c.bf16 %v4725_v28, %v4725_v28 }
0x31b8   :  { %v10087_v4 = vpop.eup %10086 }
0x31b9   :  { %v4726_v33 = vmul.f32 %v10087_v4, %v10083_v21  ;;  %9492 = vmatmul.mubr.msk.bf16.vlgmr.msra.gmra.mxu1 %vm295_vm7, %v4727_v30 }
0x31ba   :  { %9503 = vmatprep.mubr.msk.bf16.mxu1 %vm10245_vm0, %v10244_v1  ;;  %9502 = vmatpush3.bf16.msra.mxu1 %v4830_v8 }
0x31bb   :  { %v4728_v35 = vpack.c.bf16 %v4726_v33, %v4726_v33  ;;  %9513 = vmatprep.subr.bf16.mxu1 %v10244_v1 }
0x31bd   :  { %9498 = vmatmul.mubr.msk.bf16.vlgmr.msra.gmra.mxu0 %vm295_vm7, %v4728_v35 }
0x31be   :  { %9508 = vmatpush3.bf16.msra.mxu0 %v4877_v20  ;;  %9509 = vmatprep.mubr.msk.bf16.mxu0 %vm10245_vm0, %v10244_v1 }
0x31bf   :  { %9519 = vmatprep.subr.bf16.mxu0 %v10244_v1 }
0x31c5   :  { %9510 = vmatmul.mubr.msk.bf16.vlgmr.msra.gmra.mxu0 %vm295_vm7, %v4602_v54  ;;  %v4921_v54 = vpop.permute.xlu0 %4920 }
0x31c6   :  { %9520 = vmatpush3.bf16.xpose.msra.mxu0 %v4978_v44  ;;  %9521 = vmatprep.mubr.msk.bf16.mxu0 %vm10245_vm0, %v10244_v1  ;;  %v3044_v44 = vld [vmem:[#allocation2 + $0x108] sm:$0xf] }
0x31c7   :  { %9531 = vmatprep.subr.bf16.mxu0 %v10244_v1 }
0x31cd   :  { %9522 = vmatmul.mubr.msk.bf16.vlgmr.msra.gmra.mxu0 %vm295_vm7, %v4971_v45  ;;  %v5145_v45 = vsel %vm420_vm8, %v3044_v44, 0 }
0x31ce   :  { %9533 = vmatprep.mubr.msk.bf16.mxu0 %vm10245_vm0, %v10244_v1 }
0x3279   :  { %v4771_v29 = vpop.f32.mrf.mxu1 }
0x327b   :  { %v9493_v12 = vpop.f32.mrf.mxu1 }
0x327d   :  { %v4774_v31 = vpop.f32.mrf.mxu1  ;;  %v4819_v49 = vpop.f32.mrf.mxu0 }
0x327e   :  { %v4825_v41 = vpack.c.bf16 %v4819_v49, %v4771_v29 }
0x327f   :  { %v9494_v43 = vpop.f32.mrf.mxu1  ;;  %v9499_v9 = vpop.f32.mrf.mxu0 }
0x3280   :  { %9504 = vmatmul.mubr.msk.bf16.vlgmr.msra.gmra.mxu1 %vm295_vm7, %v4825_v41 }
0x3281   :  { %9514 = vmatpush3.bf16.xpose.msra.mxu1 %v4928_v53  ;;  %v4822_v63 = vpop.f32.mrf.mxu0  ;;  %9515 = vmatprep.mubr.msk.bf16.mxu1 %vm10245_vm0, %v10244_v1 }
0x3282   :  { %9525 = vmatprep.subr.bf16.mxu1 %v10244_v1 }
0x3283   :  { %v9500_v37 = vpop.f32.mrf.mxu0 }
0x3285   :  { %v11144_v14 = vpop.f32.mrf.mxu0 }
0x3287   :  { %v9511_v56 = vpop.f32.mrf.mxu0 }
0x3288   :  { %9516 = vmatmul.mubr.msk.bf16.vlgmr.msra.gmra.mxu1 %vm295_vm7, %v4921_v54 }
0x3289   :  { %v11147_v11 = vpop.f32.mrf.mxu0  ;;  %9527 = vmatprep.mubr.msk.bf16.mxu1 %vm10245_vm0, %v10244_v1 }
0x328b   :  { %v9512_v23 = vpop.f32.mrf.mxu0 }
0x328d   :  { %v5014_v59 = vpop.f32.mrf.mxu0 }
0x328e   :  { %v5023_v32 = vsel %vm295_vm7, %v5014_v59, -inf }
0x328f   :  { %5024 = vmax.xlane.f32.xlu1 %v5023_v32  ;;  %v9523_v24 = vpop.f32.mrf.mxu0 }
0x3291   :  { %v5017_v60 = vpop.f32.mrf.mxu0 }
0x3293   :  { %v9524_v57 = vpop.f32.mrf.mxu0 }
0x32a0   :  { %5044 = vrot.lane.b32.xlu1 %v11034_v40, %s10250_s11 }
0x32a4   :  { %5192 = vrot.lane.b32.xlu1 %v11034_v40, %s10254_s15 }
0x32a8   :  { %5242 = vrot.lane.b32.xlu1 %v11038_v58, %s10254_s15 }
0x32ac   :  { %5240 = vrot.lane.b32.xlu1 %v11050_v39, %s10254_s15 }
0x3318   :  { %v5025_v46 = vpop.xlane.xlu1 %5024 }
0x3319   :  { %v5027_v61 = vsub.f32 %v5014_v59, %v5025_v46 }
0x331b   :  { %v5030_v62 = vmul.f32 1.442695, %v5027_v61 }
0x331c   :  { %v5045_v52 = vpop.permute.xlu1 %5044 }
0x331d   :  { %v5050_v47 = vsel %vm420_vm8, %v5045_v52, 0  ;;  %10088 = vpow2.f32 %v5030_v62 }
0x331e   :  { %9526 = vmatpush3.bf16.msra.mxu1 %v5050_v47 }
0x331f   :  { %9537 = vmatprep.subr.bf16.mxu1 %v10244_v1 }
0x3320   :  { %v5193_v13 = vpop.permute.xlu1 %5192 }
0x3321   :  { %v5198_v35 = vsel %vm295_vm7, %v5193_v13, 0 }
0x3324   :  { %v5243_v49 = vpop.permute.xlu1 %5242 }
0x3325   :  { %v5248_v54 = vsel %vm295_vm7, %v5243_v49, 0 }
0x3328   :  { %v5241_v32 = vpop.permute.xlu1 %5240 }
0x332a   :  { %v10089_v39 = vpop.eup %10088 }
0x332b   :  { %v5035_v50 = vsel %vm295_vm7, %v10089_v39, 0.0 }
0x3340   :  { %v11162_v19 = vpop.f32.mrf.mxu1 }
0x3341   :  { %v4914_v47 = vadd.f32 %v11144_v14, %v11162_v19 }
0x3342   :  { %v9505_v0 = vpop.f32.mrf.mxu1 }
0x3344   :  { %v11164_v2 = vpop.f32.mrf.mxu1 }
0x3346   :  { %v9506_v55 = vpop.f32.mrf.mxu1 }
0x3347   :  { %v4917_v55 = vadd.f32 %v11147_v11, %v11164_v2 }
0x3348   :  { %v4964_v38 = vpop.f32.mrf.mxu1 }
0x3349   :  { %v5020_v7 = vsel %vm295_vm7, %v4964_v38, -inf }
0x334a   :  { %5021 = vmax.xlane.f32.xlu0 %v5020_v7  ;;  %v9517_v36 = vpop.f32.mrf.mxu1 }
0x334c   :  { %v4967_v10 = vpop.f32.mrf.mxu1 }
0x334e   :  { %v9518_v17 = vpop.f32.mrf.mxu1  ;;  %5036 = vadd.xlane.f32.xlu0 %v5035_v50 }
0x33d3   :  { %v5022_v3 = vpop.xlane.xlu0 %5021 }
0x33d4   :  { %v5026_v21 = vsub.f32 %v4964_v38, %v5022_v3 }
0x33d6   :  { %v5028_v22 = vmul.f32 1.442695, %v5026_v21 }
0x33d7   :  { %v5037_v16 = vpop.xlane.xlu0 %5036 }
0x33d8   :  { %10090 = vpow2.f32 %v5028_v22 }
0x33d9   :  { %10092 = vrcp.f32 %v5037_v16 }
0x33e5   :  { %v10091_v34 = vpop.eup %10090 }
0x33e6   :  { %v5032_v25 = vsel %vm295_vm7, %v10091_v34, 0.0  ;;  %v10093_v26 = vpop.eup %10092 }
0x33e7   :  { %5033 = vadd.xlane.f32.xlu0 %v5032_v25  ;;  %v5041_v28 = vmul.f32 %v10093_v26, %v10089_v39 }
0x33e9   :  { %v5043_v33 = vpack.c.bf16 %v5041_v28, %v5041_v28 }
0x33fd   :  { %5092 = vrot.lane.b32.xlu0 %v11038_v58, %s10250_s11 }
0x3401   :  { %5190 = vrot.lane.b32.xlu0 %v11044_v5, %s10254_s15 }
0x3470   :  { %v5034_v27 = vpop.xlane.xlu0 %5033 }
0x3471   :  { %10094 = vrcp.f32 %v5034_v27  ;;  %v3045_v27 = vld [vmem:[#allocation2 + $0x10c] sm:$0xf] }
0x3472   :  { %v5415_v28 = vsel %vm420_vm8, %v3045_v27, 0  ;;  %v9937_v27 = vld [vmem:[#allocation2 + $0x120] sm:$0xff]  }
0x3474   :  { %v5093_v30 = vpop.permute.xlu0 %5092 }
0x3475   :  { %v5098_v4 = vsel %vm420_vm8, %v5093_v30, 0 }
0x3476   :  { %9532 = vmatpush3.bf16.msra.mxu0 %v5098_v4 }
0x3477   :  { %9543 = vmatprep.subr.bf16.mxu0 %v10244_v1 }
0x3478   :  { %v5191_v6 = vpop.permute.xlu0 %5190 }
0x3479   :  { %9534 = vmatmul.mubr.msk.bf16.vlgmr.msra.gmra.mxu0 %vm295_vm7, %v5043_v33 }
0x347a   :  { %9544 = vmatpush3.bf16.xpose.msra.mxu0 %v5198_v35  ;;  %9545 = vmatprep.mubr.msk.bf16.mxu0 %vm10245_vm0, %v10244_v1 }
0x347b   :  { %9555 = vmatprep.subr.bf16.mxu0 %v10244_v1 }
0x347e   :  { %v10095_v5 = vpop.eup %10094 }
0x347f   :  { %v5040_v20 = vmul.f32 %v10095_v5, %v10091_v34 }
0x3481   :  { %v5042_v42 = vpack.c.bf16 %v5040_v20, %v5040_v20  ;;  %9546 = vmatmul.mubr.msk.bf16.vlgmr.msra.gmra.mxu0 %vm295_vm7, %v5191_v6 }
0x3482   :  { %9557 = vmatprep.mubr.msk.bf16.mxu0 %vm10245_vm0, %v10244_v1 }
0x3483   :  { %9528 = vmatmul.mubr.msk.bf16.vlgmr.msra.gmra.mxu1 %vm295_vm7, %v5042_v42 }
0x3484   :  { %9539 = vmatprep.mubr.msk.bf16.mxu1 %vm10245_vm0, %v10244_v1  ;;  %9538 = vmatpush3.bf16.msra.mxu1 %v5145_v45 }
0x3485   :  { %9549 = vmatprep.subr.bf16.mxu1 %v10244_v1 }
0x3539   :  { %v5134_v48 = vpop.f32.mrf.mxu0 }
0x353b   :  { %v9535_v8 = vpop.f32.mrf.mxu0 }
0x353d   :  { %v5137_v29 = vpop.f32.mrf.mxu0 }
0x353f   :  { %v9536_v12 = vpop.f32.mrf.mxu0 }
0x3540   :  { %v8589_v12 = vld [vmem:[#allocation4 + $0xd0] ss:$0 sm:$0xff] }
0x3541   :  { %v5234_v31 = vpop.f32.mrf.mxu0 }
0x3542   :  { %v5290_v41 = vsel %vm295_vm7, %v5234_v31, -inf }
0x3543   :  { %v5086_v43 = vpop.f32.mrf.mxu1  ;;  %5291 = vmax.xlane.f32.xlu0 %v5290_v41  ;;  %v9547_v9 = vpop.f32.mrf.mxu0 }
0x3544   :  { %v5140_v53 = vpack.c.bf16 %v5134_v48, %v5086_v43 }
0x3545   :  { %v9529_v63 = vpop.f32.mrf.mxu1  ;;  %v5237_v37 = vpop.f32.mrf.mxu0 }
0x3546   :  { %9540 = vmatmul.mubr.msk.bf16.vlgmr.msra.gmra.mxu1 %vm295_vm7, %v5140_v53 }
0x3547   :  { %9550 = vmatpush3.bf16.xpose.msra.mxu1 %v5248_v54  ;;  %v5089_v56 = vpop.f32.mrf.mxu1  ;;  %v9548_v23 = vpop.f32.mrf.mxu0  ;;  %9551 = vmatprep.mubr.msk.bf16.mxu1 %vm10245_vm0, %v10244_v1 }
0x3548   :  { %9561 = vmatprep.subr.bf16.mxu1 %v10244_v1 }
0x3549   :  { %v9530_v59 = vpop.f32.mrf.mxu1 }
0x354e   :  { %9552 = vmatmul.mubr.msk.bf16.vlgmr.msra.gmra.mxu1 %vm295_vm7, %v5241_v32 }
0x354f   :  { %9563 = vmatprep.mubr.msk.bf16.mxu1 %vm10245_vm0, %v10244_v1 }
0x35cc   :  { %v5292_v24 = vpop.xlane.xlu0 %5291 }
0x35cd   :  { %v5296_v60 = vsub.f32 %v5234_v31, %v5292_v24 }
0x35cf   :  { %v5298_v57 = vmul.f32 1.442695, %v5296_v60 }
0x35d1   :  { %10096 = vpow2.f32 %v5298_v57 }
0x35de   :  { %v10097_v46 = vpop.eup %10096 }
0x35df   :  { %v5302_v52 = vsel %vm295_vm7, %v10097_v46, 0.0 }
0x35e0   :  { %5303 = vadd.xlane.f32.xlu0 %v5302_v52 }
0x3606   :  { %v5181_v61 = vpop.f32.mrf.mxu1 }
0x3607   :  { %v5188_v62 = vadd.f32 %v5181_v61, %v4914_v47 }
0x3608   :  { %v9541_v0 = vpop.f32.mrf.mxu1 }
0x3609   :  { %v9932_v0 = vld [vmem:[#allocation2 + $0x118] sm:$0xff]  }
0x360a   :  { %v5184_v38 = vpop.f32.mrf.mxu1 }
0x360b   :  { %v5189_v7 = vadd.f32 %v5184_v38, %v4917_v55  ;;  %v9934_v55 = vld [vmem:[#allocation2 + $0x138] sm:$0xff]  }
0x360c   :  { %v9542_v39 = vpop.f32.mrf.mxu1 }
0x360e   :  { %v5284_v36 = vpop.f32.mrf.mxu1 }
0x360f   :  { %v5293_v10 = vsel %vm295_vm7, %v5284_v36, -inf }
0x3610   :  { %5294 = vmax.xlane.f32.xlu1 %v5293_v10  ;;  %v9553_v50 = vpop.f32.mrf.mxu1 }
0x3612   :  { %v5287_v17 = vpop.f32.mrf.mxu1 }
0x3614   :  { %v9554_v3 = vpop.f32.mrf.mxu1 }
0x3621   :  { %5314 = vrot.lane.b32.xlu1 %v11034_v40, %s10253_s14 }
0x3669   :  { %v5304_v14 = vpop.xlane.xlu0 %5303 }
0x366a   :  { %10098 = vrcp.f32 %v5304_v14  ;;  %v8590_v14 = vld [vmem:[#allocation4 + $0xd8] ss:$0 sm:$0xff] }
0x3677   :  { %v10099_v19 = vpop.eup %10098 }
0x3678   :  { %v5310_v34 = vmul.f32 %v10099_v19, %v10097_v46 }
0x367a   :  { %v5312_v16 = vpack.c.bf16 %v5310_v34, %v5310_v34  ;;  %v8591_v34 = vld [vmem:[#allocation4 + $0xe0] ss:$0 sm:$0xff] }
0x3699   :  { %v5295_v21 = vpop.xlane.xlu1 %5294 }
0x369a   :  { %v5297_v22 = vsub.f32 %v5284_v36, %v5295_v21 }
0x369c   :  { %v5300_v11 = vmul.f32 1.442695, %v5297_v22 }
0x369d   :  { %v5315_v2 = vpop.permute.xlu1 %5314 }
0x369e   :  { %10100 = vpow2.f32 %v5300_v11  ;;  %v5320_v25 = vsel %vm420_vm8, %v5315_v2, 0 }
0x369f   :  { %9556 = vmatpush3.bf16.msra.mxu0 %v5320_v25 }
0x36a0   :  { %9567 = vmatprep.subr.bf16.mxu0 %v10244_v1 }
0x36a2   :  { %9558 = vmatmul.mubr.msk.bf16.vlgmr.msra.gmra.mxu0 %vm295_vm7, %v5312_v16 }
0x36a3   :  { %9569 = vmatprep.mubr.msk.bf16.mxu0 %vm10245_vm0, %v10244_v1  ;;  %9568 = vmatpush3.bf16.msra.mxu0 %v5415_v28  ;;  %v8592_v28 = vld [vmem:[#allocation4 + $0xe8] ss:$0 sm:$0xff] }
0x36a4   :  { %9581 = vmatprep.subr.bf16.mxu0 %v10244_v1 }
0x36ab   :  { %v10101_v40 = vpop.eup %10100 }
0x36ac   :  { %v5305_v26 = vsel %vm295_vm7, %v10101_v40, 0.0 }
0x36ad   :  { %5306 = vadd.xlane.f32.xlu0 %v5305_v26  ;;  %v9936_v26 = vld [vmem:[#allocation2 + $0x128] sm:$0xff]  }
0x36c3   :  { %5362 = vrot.lane.b32.xlu0 %v11038_v58, %s10253_s14 }
0x3736   :  { %v5307_v30 = vpop.xlane.xlu0 %5306 }
0x3737   :  { %10102 = vrcp.f32 %v5307_v30 }
0x373a   :  { %v5363_v4 = vpop.permute.xlu0 %5362 }
0x373b   :  { %v5368_v13 = vsel %vm420_vm8, %v5363_v4, 0 }
0x373c   :  { %9562 = vmatpush3.bf16.msra.mxu1 %v5368_v13 }
0x373d   :  { %9573 = vmatprep.subr.bf16.mxu1 %v10244_v1 }
0x3744   :  { %v10103_v33 = vpop.eup %10102 }
0x3745   :  { %v5311_v35 = vmul.f32 %v10103_v33, %v10101_v40  ;;  %v9935_v40 = vld [vmem:[#allocation2 + $0x130] sm:$0xff]  }
0x3747   :  { %v5313_v5 = vpack.c.bf16 %v5311_v35, %v5311_v35 }
0x3749   :  { %9564 = vmatmul.mubr.msk.bf16.vlgmr.msra.gmra.mxu1 %vm295_vm7, %v5313_v5 }
0x374a   :  { %9577 = vmatprep.mubr.msk.bf16.mxu1 %vm10245_vm0, %v10244_v1  ;;  %9574 = vmatpush3.bf16.msra.mxu1 %v9932_v0 }
0x374b   :  { %9575 = vmatprep.subr.bf16.mxu1 %v10244_v1 }
0x3762   :  { %v5356_v58 = vpop.f32.mrf.mxu0 }
0x3764   :  { %v9559_v20 = vpop.f32.mrf.mxu0 }
0x3766   :  { %v5359_v6 = vpop.f32.mrf.mxu0 }
0x3768   :  { %v9560_v42 = vpop.f32.mrf.mxu0 }
0x3769   :  { %v8596_v42 = vld [vmem:[#allocation4 + $0xf0] ss:$0 sm:$0xff] }
0x3809   :  { %v5404_v44 = vpop.f32.mrf.mxu1 }
0x380a   :  { %v5410_v45 = vpack.c.bf16 %v5404_v44, %v5356_v58 }
0x380b   :  { %v9565_v48 = vpop.f32.mrf.mxu1 }
0x380c   :  { %9570 = vmatmul.mubr.msk.bf16.vlgmr.msra.gmra.mxu0 %vm295_vm7, %v5410_v45 }
0x380d   :  { %v5407_v8 = vpop.f32.mrf.mxu1  ;;  %9589 = vmatprep.mubr.msk.bf16.mxu0 %vm10245_vm0, %v10244_v1  ;;  %9582 = vmatpush3.bf16.msra.mxu0 %v9934_v55  ;;  %v8602_v55 = vld [vmem:[#allocation4 + $0xf8] ss:$0 sm:$0xff] }
0x380e   :  { %9583 = vmatprep.subr.bf16.mxu0 %v10244_v1 }
0x380f   :  { %v9566_v29 = vpop.f32.mrf.mxu1 }
0x3811   :  { %9584 = vmatpush3.bf16.msra.mxu0 %v9935_v40 }
0x3812   :  { %9585 = vmatprep.subr.bf16.mxu0 %v10244_v1 }
0x3815   :  { %9586 = vmatpush3.bf16.msra.mxu0 %v9936_v26 }
0x3816   :  { %9587 = vmatprep.subr.bf16.mxu0 %v10244_v1 }
0x3819   :  { %9588 = vmatpush3.bf16.msra.mxu0 %v9937_v27 }
0x381a   :  { %9607 = vmatprep.subr.bf16.mxu0 %v10244_v1 }
0x38cc   :  { %v5451_v31 = vpop.f32.mrf.mxu0 }
0x38cd   :  { %v5458_v49 = vadd.f32 %v5451_v31, %v5188_v62 }
0x38ce   :  { %v9571_v41 = vpop.f32.mrf.mxu0 }
0x38cf   :  { %v5464_v43 = vadd.f32 %v8589_v12, %v5458_v49 }
0x38d0   :  { %v5454_v9 = vpop.f32.mrf.mxu0 }
0x38d1   :  { %v5459_v53 = vadd.f32 %v5454_v9, %v5189_v7  ;;  %v5466_v63 = vadd.f32 %v5464_v43, %v11025_v15 }
0x38d2   :  { %v9572_v37 = vpop.f32.mrf.mxu0 }
0x38d3   :  { %v5465_v54 = vadd.f32 %v8589_v12, %v5459_v53  ;;  %v5468_v56 = vsel %vm241_vm4, %v5466_v63, 0.0 }
0x38d4   :  { %5469 = vadd.xlane.f32.xlu1 %v5468_v56 }
0x38d5   :  { %v5467_v23 = vadd.f32 %v5465_v54, %v11027_v51  ;;  %v9933_v51 = vld [vmem:[#allocation2 + $0x110] sm:$0xff]  }
0x38d6   :  { %9576 = vmatpush3.bf16.msra.mxu1 %v9933_v51 }
0x38d7   :  { %v5471_v59 = vsel %vm241_vm4, %v5467_v23, 0.0  ;;  %9593 = vmatprep.subr.bf16.mxu1 %v10244_v1 }
0x38d8   :  { %5472 = vadd.xlane.f32.xlu0 %v5471_v59 }
0x395d   :  { %v5470_v32 = vpop.xlane.xlu1 %5469 }
0x395e   :  { %v5474_v24 = vmul.f32 0.03125, %v5470_v32 }
0x3960   :  { %v5476_v60 = vsub.f32 %v5466_v63, %v5474_v24 }
0x3961   :  { %v5473_v57 = vpop.xlane.xlu0 %5472 }
0x3962   :  { %v5475_v46 = vmul.f32 0.03125, %v5473_v57  ;;  %v5478_v52 = vmul.f32 %v5476_v60, %v5476_v60  ;;  %v9939_v57 = vld [vmem:[#allocation2 + $0x140] sm:$0xff]  }
0x3964   :  { %v5477_v47 = vsub.f32 %v5467_v23, %v5475_v46  ;;  %v5480_v61 = vsel %vm241_vm4, %v5478_v52, 0.0 }
0x3965   :  { %5481 = vadd.xlane.f32.xlu1 %v5480_v61 }
0x3966   :  { %v5479_v15 = vmul.f32 %v5477_v47, %v5477_v47 }
0x3968   :  { %v5483_v62 = vsel %vm241_vm4, %v5479_v15, 0.0 }
0x3969   :  { %5484 = vadd.xlane.f32.xlu0 %v5483_v62 }
0x39ee   :  { %v5482_v38 = vpop.xlane.xlu1 %5481 }
0x39ef   :  { %v5486_v7 = vmul.f32 0.03125, %v5482_v38 }
0x39f1   :  { %v5488_v39 = vadd.f32 1e-05, %v5486_v7 }
0x39f2   :  { %v5485_v36 = vpop.xlane.xlu0 %5484 }
0x39f3   :  { %10104 = vrsqrt.f32 %v5488_v39  ;;  %v5487_v10 = vmul.f32 0.03125, %v5485_v36  ;;  %v8603_v36 = vld [vmem:[#allocation4 + $0x100] ss:$0 sm:$0xff] }
0x39f5   :  { %v5489_v50 = vadd.f32 1e-05, %v5487_v10 }
0x39f7   :  { %10106 = vrsqrt.f32 %v5489_v50 }
0x3a00   :  { %v10105_v17 = vpop.eup %10104 }
0x3a01   :  { %v5492_v3 = vmul.f32 %v10105_v17, %v5476_v60  ;;  %v9938_v60 = vld [vmem:[#allocation2 + $0x148] sm:$0xff]  }
0x3a03   :  { %v5498_v21 = vmul.f32 %v8590_v14, %v5492_v3 }
0x3a04   :  { %v10107_v19 = vpop.eup %10106 }
0x3a05   :  { %v5493_v22 = vmul.f32 %v10107_v19, %v5477_v47  ;;  %v5504_v2 = vadd.f32 %v8591_v34, %v5498_v21 }
0x3a07   :  { %v5499_v11 = vmul.f32 %v8590_v14, %v5493_v22  ;;  %v8604_v14 = vld [vmem:[#allocation4 + $0x108] ss:$0 sm:$0xff] }
0x3a09   :  { %v5505_v25 = vadd.f32 %v8591_v34, %v5499_v11 }
0x3a0b   :  { %v5506_v16 = vpack.c.bf16 %v5505_v25, %v5504_v2 }
0x3a0d   :  { %9578 = vmatmul.mubr.msk.bf16.vlgmr.msra.gmra.mxu1 %vm241_vm4, %v5506_v16 }
0x3a0e   :  { %9597 = vmatprep.mubr.msk.bf16.mxu1 %vm10245_vm0, %v10244_v1  ;;  %9594 = vmatpush3.bf16.msra.mxu1 %v9938_v60 }
0x3a0f   :  { %9595 = vmatprep.subr.bf16.mxu1 %v10244_v1 }
0x3a12   :  { %9596 = vmatpush3.bf16.msra.mxu1 %v9939_v57 }
0x3a13   :  { %9601 = vmatprep.subr.bf16.mxu1 %v10244_v1 }
0x3acd   :  { %v5560_v30 = vpop.f32.mrf.mxu1 }
0x3ace   :  { %v5561_v13 = vadd.f32 %v8592_v28, %v5560_v30 }
0x3acf   :  { %v9579_v4 = vpop.f32.mrf.mxu1 }
0x3ad0   :  { %v5567_v58 = vmax.f32 %v5561_v13, 0.0 }
0x3ad1   :  { %v5563_v33 = vpop.f32.mrf.mxu1 }
0x3ad2   :  { %v5564_v35 = vadd.f32 %v8592_v28, %v5563_v33 }
0x3ad3   :  { %v9580_v5 = vpop.f32.mrf.mxu1 }
0x3ad4   :  { %v5568_v20 = vmax.f32 %v5564_v35, 0.0 }
0x3ad6   :  { %v5569_v6 = vpack.c.bf16 %v5568_v20, %v5567_v58 }
0x3ad8   :  { %9590 = vmatmul.mubr.msk.bf16.vlgmr.msra.gmra.mxu0 %vm94_vm3, %v5569_v6 }
0x3ad9   :  { %9609 = vmatprep.mubr.msk.bf16.mxu0 %vm10245_vm0, %v10244_v1 }
0x3b98   :  { %v5635_v44 = vpop.f32.mrf.mxu0 }
0x3b99   :  { %v5636_v45 = vadd.f32 %v8596_v42, %v5635_v44 }
0x3b9a   :  { %v9591_v48 = vpop.f32.mrf.mxu0 }
0x3b9b   :  { %v5642_v8 = vadd.f32 %v5636_v45, %v5504_v2 }
0x3b9c   :  { %v5638_v29 = vpop.f32.mrf.mxu0 }
0x3b9d   :  { %v5639_v12 = vadd.f32 %v8596_v42, %v5638_v29  ;;  %v5644_v31 = vsel %vm241_vm4, %v5642_v8, 0.0 }
0x3b9e   :  { %5645 = vadd.xlane.f32.xlu1 %v5644_v31  ;;  %v9592_v49 = vpop.f32.mrf.mxu0 }
0x3b9f   :  { %v5643_v41 = vadd.f32 %v5639_v12, %v5505_v25 }
0x3ba1   :  { %v5647_v43 = vsel %vm241_vm4, %v5643_v41, 0.0 }
0x3ba2   :  { %5648 = vadd.xlane.f32.xlu0 %v5647_v43 }
0x3c27   :  { %v5646_v9 = vpop.xlane.xlu1 %5645 }
0x3c28   :  { %v5650_v53 = vmul.f32 0.03125, %v5646_v9 }
0x3c2a   :  { %v5652_v63 = vsub.f32 %v5642_v8, %v5650_v53 }
0x3c2b   :  { %v5649_v37 = vpop.xlane.xlu0 %5648 }
0x3c2c   :  { %v5651_v54 = vmul.f32 0.03125, %v5649_v37  ;;  %v5654_v56 = vmul.f32 %v5652_v63, %v5652_v63 }
0x3c2e   :  { %v5653_v23 = vsub.f32 %v5643_v41, %v5651_v54  ;;  %v5656_v59 = vsel %vm241_vm4, %v5654_v56, 0.0 }
0x3c2f   :  { %5657 = vadd.xlane.f32.xlu1 %v5656_v59 }
0x3c30   :  { %v5655_v32 = vmul.f32 %v5653_v23, %v5653_v23 }
0x3c32   :  { %v5659_v24 = vsel %vm241_vm4, %v5655_v32, 0.0 }
0x3c33   :  { %5660 = vadd.xlane.f32.xlu0 %v5659_v24 }
0x3cb8   :  { %v5658_v46 = vpop.xlane.xlu1 %5657 }
0x3cb9   :  { %v5662_v52 = vmul.f32 0.03125, %v5658_v46 }
0x3cbb   :  { %v5664_v47 = vadd.f32 1e-05, %v5662_v52 }
0x3cbc   :  { %v5661_v61 = vpop.xlane.xlu0 %5660 }
0x3cbd   :  { %10108 = vrsqrt.f32 %v5664_v47  ;;  %v5663_v15 = vmul.f32 0.03125, %v5661_v61 }
0x3cbf   :  { %v5665_v62 = vadd.f32 1e-05, %v5663_v15 }
0x3cc1   :  { %10110 = vrsqrt.f32 %v5665_v62 }
0x3cca   :  { %v10109_v0 = vpop.eup %10108 }
0x3ccb   :  { %v5668_v51 = vmul.f32 %v10109_v0, %v5652_v63 }
0x3ccd   :  { %v5674_v7 = vmul.f32 %v8602_v55, %v5668_v51 }
0x3cce   :  { %v10111_v38 = vpop.eup %10110 }
0x3ccf   :  { %v5669_v39 = vmul.f32 %v10111_v38, %v5653_v23  ;;  %v11247_v50 = vadd.f32 %v8603_v36, %v5674_v7 }
0x3cd1   :  { %v5675_v10 = vmul.f32 %v8602_v55, %v5669_v39 }
0x3cd3   :  { %v11249_v17 = vadd.f32 %v8603_v36, %v5675_v10 }
0x3cd5   :  { %v5727_v3 = vpack.c.bf16 %v11249_v17, %v11247_v50 }
0x3cd7   :  { %9598 = vmatmul.mubr.msk.bf16.vlgmr.msra.gmra.mxu1 %vm241_vm4, %v5727_v3 }
0x3cd8   :  { %9603 = vmatprep.mubr.msk.bf16.mxu1 %vm10245_vm0, %v10244_v1 }
0x3d97   :  { %v5781_v19 = vpop.f32.mrf.mxu1 }
0x3d98   :  { %v5782_v21 = vadd.f32 %v8604_v14, %v5781_v19 }
0x3d99   :  { %v9599_v22 = vpop.f32.mrf.mxu1 }
0x3d9a   :  { %v11256_v34 = vpack.c.bf16 %v5782_v21, %v5782_v21  ;;  %v5788_v27 = vmul.f32 0.35355338, %v5782_v21 }
0x3d9b   :  { %v5784_v11 = vpop.f32.mrf.mxu1 }
0x3d9c   :  { %v5785_v2 = vadd.f32 %v8604_v14, %v5784_v11  ;;  %5795 = vrot.lane.b32.xlu1 %v11256_v34, %s10246_s1  ;;  %v11267_v4 = vpack.c.bf16 %v5788_v27, %v5788_v27 }
0x3d9d   :  { %v9600_v25 = vpop.f32.mrf.mxu1 }
0x3d9e   :  { %v11260_v16 = vpack.c.bf16 %v5785_v2, %v5785_v2  ;;  %v5789_v13 = vmul.f32 0.35355338, %v5785_v2 }
0x3da0   :  { %5844 = vrot.lane.b32.xlu0 %v11260_v16, %s10246_s1  ;;  %v11274_v33 = vpack.c.bf16 %v5789_v13, %v5789_v13 }
0x3e0e   :  { %v5796_v40 = vpop.permute.xlu1 %5795 }
0x3e0f   :  { %v5801_v26 = vsel %vm295_vm7, %v5796_v40, 0 }
0x3e10   :  { %9602 = vmatpush3.bf16.xpose.msra.mxu1 %v5801_v26 }
0x3e11   :  { %9613 = vmatprep.subr.bf16.mxu1 %v10244_v1 }
0x3e12   :  { %v5845_v28 = vpop.permute.xlu0 %5844 }
0x3e13   :  { %v5850_v30 = vsel %vm295_vm7, %v5845_v28, 0 }
0x3e14   :  { %9608 = vmatpush3.bf16.xpose.msra.mxu0 %v5850_v30 }
0x3e15   :  { %9619 = vmatprep.subr.bf16.mxu0 %v10244_v1 }
0x3e17   :  { %9604 = vmatmul.mubr.msk.bf16.vlgmr.msra.gmra.mxu1 %vm295_vm7, %v11267_v4 }
0x3e18   :  { %9615 = vmatprep.mubr.msk.bf16.mxu1 %vm10245_vm0, %v10244_v1 }
0x3e1b   :  { %9610 = vmatmul.mubr.msk.bf16.vlgmr.msra.gmra.mxu0 %vm295_vm7, %v11274_v33 }
0x3e1c   :  { %9621 = vmatprep.mubr.msk.bf16.mxu0 %vm10245_vm0, %v10244_v1 }
0x3ed7   :  { %v5837_v35 = vpop.f32.mrf.mxu1 }
0x3ed8   :  { %v5892_v5 = vsel %vm295_vm7, %v5837_v35, -inf }
0x3ed9   :  { %5893 = vmax.xlane.f32.xlu1 %v5892_v5  ;;  %v9605_v58 = vpop.f32.mrf.mxu1 }
0x3edb   :  { %v5840_v20 = vpop.f32.mrf.mxu1  ;;  %v5886_v6 = vpop.f32.mrf.mxu0 }
0x3edc   :  { %v5895_v42 = vsel %vm295_vm7, %v5886_v6, -inf }
0x3edd   :  { %v9606_v44 = vpop.f32.mrf.mxu1  ;;  %5896 = vmax.xlane.f32.xlu0 %v5895_v42  ;;  %v9611_v45 = vpop.f32.mrf.mxu0 }
0x3edf   :  { %v5889_v48 = vpop.f32.mrf.mxu0 }
0x3ee1   :  { %v9612_v8 = vpop.f32.mrf.mxu0 }
0x3eea   :  { %5916 = vrot.lane.b32.xlu1 %v11256_v34, %s10238_s18 }
0x3f62   :  { %v5894_v29 = vpop.xlane.xlu1 %5893 }
0x3f63   :  { %v5898_v12 = vsub.f32 %v5837_v35, %v5894_v29 }
0x3f65   :  { %v5900_v31 = vmul.f32 1.442695, %v5898_v12 }
0x3f66   :  { %v5917_v49 = vpop.permute.xlu1 %5916  ;;  %v5897_v41 = vpop.xlane.xlu0 %5896 }
0x3f67   :  { %10112 = vpow2.f32 %v5900_v31  ;;  %v5922_v43 = vsel %vm420_vm8, %v5917_v49, 0  ;;  %v5899_v9 = vsub.f32 %v5886_v6, %v5897_v41 }
0x3f68   :  { %9614 = vmatpush3.bf16.msra.mxu1 %v5922_v43 }
0x3f69   :  { %v5902_v53 = vmul.f32 1.442695, %v5899_v9  ;;  %9625 = vmatprep.subr.bf16.mxu1 %v10244_v1 }
0x3f6b   :  { %10114 = vpow2.f32 %v5902_v53 }
0x3f74   :  { %v10113_v63 = vpop.eup %10112 }
0x3f75   :  { %v5904_v37 = vsel %vm295_vm7, %v10113_v63, 0.0 }
0x3f76   :  { %5905 = vadd.xlane.f32.xlu1 %v5904_v37 }
0x3f78   :  { %v10115_v54 = vpop.eup %10114 }
0x3f79   :  { %v5907_v56 = vsel %vm295_vm7, %v10115_v54, 0.0 }
0x3f7a   :  { %5908 = vadd.xlane.f32.xlu0 %v5907_v56  ;;  %v5686_v56 = vld [vmem:[#allocation2 + $0x150] sm:$0xf] }
0x3f87   :  { %6016 = vrot.lane.b32.xlu1 %v11256_v34, %s10247_s8 }
0x3f8b   :  { %6067 = vrot.lane.b32.xlu1 %v11260_v16, %s10247_s8 }
0x3f8f   :  { %6065 = vrot.lane.b32.xlu1 %v11274_v33, %s10248_s9 }
0x3f90   :  { %5964 = vrot.lane.b32.xlu0 %v11260_v16, %s10238_s18 }
0x3f94   :  { %6014 = vrot.lane.b32.xlu0 %v11267_v4, %s10248_s9 }
0x3fff   :  { %v5906_v23 = vpop.xlane.xlu1 %5905 }
0x4000   :  { %10116 = vrcp.f32 %v5906_v23 }
0x4003   :  { %v5909_v59 = vpop.xlane.xlu0 %5908  ;;  %v6017_v57 = vpop.permute.xlu1 %6016 }
0x4004   :  { %10118 = vrcp.f32 %v5909_v59  ;;  %v6022_v61 = vsel %vm295_vm7, %v6017_v57, 0 }
0x4007   :  { %v5965_v32 = vpop.permute.xlu0 %5964  ;;  %v6068_v62 = vpop.permute.xlu1 %6067 }
0x4008   :  { %v5970_v24 = vsel %vm420_vm8, %v5965_v32, 0  ;;  %v6073_v51 = vsel %vm295_vm7, %v6068_v62, 0  ;;  %v6287_v32 = vsel %vm420_vm8, %v5686_v56, 0 }
0x4009   :  { %9620 = vmatpush3.bf16.msra.mxu0 %v5970_v24 }
0x400a   :  { %9631 = vmatprep.subr.bf16.mxu0 %v10244_v1 }
0x400b   :  { %v6015_v55 = vpop.permute.xlu0 %6014  ;;  %v6066_v38 = vpop.permute.xlu1 %6065 }
0x400d   :  { %v10117_v60 = vpop.eup %10116 }
0x400e   :  { %v5912_v46 = vmul.f32 %v10117_v60, %v10113_v63 }
0x4010   :  { %v5914_v52 = vpack.c.bf16 %v5912_v46, %v5912_v46 }
0x4011   :  { %v10119_v47 = vpop.eup %10118 }
0x4012   :  { %v5913_v15 = vmul.f32 %v10119_v47, %v10115_v54  ;;  %9616 = vmatmul.mubr.msk.bf16.vlgmr.msra.gmra.mxu1 %vm295_vm7, %v5914_v52  ;;  %v5687_v52 = vld [vmem:[#allocation2 + $0x154] sm:$0xf] }
0x4013   :  { %9626 = vmatpush3.bf16.xpose.msra.mxu1 %v6022_v61  ;;  %9627 = vmatprep.mubr.msk.bf16.mxu1 %vm10245_vm0, %v10244_v1  ;;  %v6240_v47 = vsel %vm420_vm8, %v5687_v52, 0 }
0x4014   :  { %v5915_v0 = vpack.c.bf16 %v5913_v15, %v5913_v15  ;;  %9637 = vmatprep.subr.bf16.mxu1 %v10244_v1 }
0x4016   :  { %9622 = vmatmul.mubr.msk.bf16.vlgmr.msra.gmra.mxu0 %vm295_vm7, %v5915_v0 }
0x4017   :  { %9632 = vmatpush3.bf16.xpose.msra.mxu0 %v6073_v51  ;;  %9633 = vmatprep.mubr.msk.bf16.mxu0 %vm10245_vm0, %v10244_v1 }
0x4018   :  { %9643 = vmatprep.subr.bf16.mxu0 %v10244_v1 }
0x401a   :  { %9628 = vmatmul.mubr.msk.bf16.vlgmr.msra.gmra.mxu1 %vm295_vm7, %v6015_v55 }
0x401b   :  { %9639 = vmatprep.mubr.msk.bf16.mxu1 %vm10245_vm0, %v10244_v1 }
0x401e   :  { %9634 = vmatmul.mubr.msk.bf16.vlgmr.msra.gmra.mxu0 %vm295_vm7, %v6066_v38 }
0x401f   :  { %9645 = vmatprep.mubr.msk.bf16.mxu0 %vm10245_vm0, %v10244_v1 }
0x40d2   :  { %v11316_v7 = vpop.f32.mrf.mxu1 }
0x40d4   :  { %v9617_v39 = vpop.f32.mrf.mxu1 }
0x40d6   :  { %v5961_v36 = vpop.f32.mrf.mxu1  ;;  %v11318_v10 = vpop.f32.mrf.mxu0 }
0x40d7   :  { %v6012_v3 = vpack.c.bf16 %v11318_v10, %v11316_v7 }
0x40d8   :  { %v9618_v14 = vpop.f32.mrf.mxu1  ;;  %v9623_v19 = vpop.f32.mrf.mxu0 }
0x40da   :  { %v6009_v21 = vpop.f32.mrf.mxu0  ;;  %v6058_v22 = vpop.f32.mrf.mxu1 }
0x40db   :  { %v6115_v11 = vsel %vm295_vm7, %v6058_v22, -inf }
0x40dc   :  { %6116 = vmax.xlane.f32.xlu0 %v6115_v11  ;;  %v9624_v2 = vpop.f32.mrf.mxu0  ;;  %v9629_v25 = vpop.f32.mrf.mxu1 }
0x40de   :  { %v6061_v40 = vpop.f32.mrf.mxu1  ;;  %v6109_v26 = vpop.f32.mrf.mxu0 }
0x40df   :  { %v6118_v27 = vsel %vm295_vm7, %v6109_v26, -inf }
0x40e0   :  { %v9630_v28 = vpop.f32.mrf.mxu1  ;;  %6119 = vmax.xlane.f32.xlu1 %v6118_v27  ;;  %v9635_v30 = vpop.f32.mrf.mxu0 }
0x40e2   :  { %v6112_v13 = vpop.f32.mrf.mxu0 }
0x40e4   :  { %v9636_v35 = vpop.f32.mrf.mxu0 }
0x40f1   :  { %6139 = vrot.lane.b32.xlu1 %v11256_v34, %s10249_s10 }
0x40f5   :  { %6332 = vrot.lane.b32.xlu1 %v11256_v34, %s10250_s11 }
0x40f9   :  { %6382 = vrot.lane.b32.xlu1 %v11260_v16, %s10250_s11 }
0x40fd   :  { %6380 = vrot.lane.b32.xlu1 %v11274_v33, %s10251_s12 }
0x4165   :  { %v6117_v5 = vpop.xlane.xlu0 %6116 }
0x4166   :  { %v6121_v58 = vsub.f32 %v6058_v22, %v6117_v5 }
0x4168   :  { %v6123_v20 = vmul.f32 1.442695, %v6121_v58 }
0x4169   :  { %v6120_v6 = vpop.xlane.xlu1 %6119 }
0x416a   :  { %10120 = vpow2.f32 %v6123_v20  ;;  %v6122_v42 = vsub.f32 %v6109_v26, %v6120_v6 }
0x416c   :  { %v6125_v44 = vmul.f32 1.442695, %v6122_v42 }
0x416d   :  { %v6140_v45 = vpop.permute.xlu1 %6139 }
0x416e   :  { %10122 = vpow2.f32 %v6125_v44  ;;  %v6145_v48 = vsel %vm420_vm8, %v6140_v45, 0 }
0x416f   :  { %9638 = vmatpush3.bf16.msra.mxu1 %v6145_v48 }
0x4170   :  { %9649 = vmatprep.subr.bf16.mxu1 %v10244_v1 }
0x4171   :  { %v6333_v24 = vpop.permute.xlu1 %6332 }
0x4172   :  { %v6338_v7 = vsel %vm295_vm7, %v6333_v24, 0 }
0x4175   :  { %v6383_v60 = vpop.permute.xlu1 %6382 }
0x4176   :  { %v6388_v57 = vsel %vm295_vm7, %v6383_v60, 0 }
0x4177   :  { %v10121_v8 = vpop.eup %10120 }
0x4178   :  { %v6127_v29 = vsel %vm295_vm7, %v10121_v8, 0.0 }
0x4179   :  { %6128 = vadd.xlane.f32.xlu0 %v6127_v29  ;;  %v6381_v46 = vpop.permute.xlu1 %6380 }
0x417b   :  { %v10123_v12 = vpop.eup %10122 }
0x417c   :  { %v6130_v31 = vsel %vm295_vm7, %v10123_v12, 0.0 }
0x417d   :  { %6131 = vadd.xlane.f32.xlu0 %v6130_v31 }
0x4193   :  { %6187 = vrot.lane.b32.xlu0 %v11260_v16, %s10249_s10 }
0x4197   :  { %6330 = vrot.lane.b32.xlu0 %v11267_v4, %s10251_s12 }
0x4202   :  { %v6129_v49 = vpop.xlane.xlu0 %6128 }
0x4203   :  { %10124 = vrcp.f32 %v6129_v49 }
0x4206   :  { %v6132_v41 = vpop.xlane.xlu0 %6131 }
0x4207   :  { %10126 = vrcp.f32 %v6132_v41 }
0x420a   :  { %v6188_v43 = vpop.permute.xlu0 %6187 }
0x420b   :  { %v6193_v9 = vsel %vm420_vm8, %v6188_v43, 0 }
0x420c   :  { %9644 = vmatpush3.bf16.msra.mxu0 %v6193_v9 }
0x420d   :  { %9655 = vmatprep.subr.bf16.mxu0 %v10244_v1 }
0x4210   :  { %v10125_v53 = vpop.eup %10124 }
0x4211   :  { %v6135_v63 = vmul.f32 %v10125_v53, %v10121_v8 }
0x4213   :  { %v6137_v37 = vpack.c.bf16 %v6135_v63, %v6135_v63 }
0x4214   :  { %v10127_v54 = vpop.eup %10126 }
0x4215   :  { %v6136_v23 = vmul.f32 %v10127_v54, %v10123_v12  ;;  %9640 = vmatmul.mubr.msk.bf16.vlgmr.msra.gmra.mxu1 %vm295_vm7, %v6137_v37 }
0x4216   :  { %9651 = vmatprep.mubr.msk.bf16.mxu1 %vm10245_vm0, %v10244_v1  ;;  %9650 = vmatpush3.bf16.msra.mxu1 %v6240_v47 }
0x4217   :  { %v6138_v59 = vpack.c.bf16 %v6136_v23, %v6136_v23  ;;  %9661 = vmatprep.subr.bf16.mxu1 %v10244_v1 }
0x4219   :  { %9646 = vmatmul.mubr.msk.bf16.vlgmr.msra.gmra.mxu0 %vm295_vm7, %v6138_v59 }
0x421a   :  { %9656 = vmatpush3.bf16.msra.mxu0 %v6287_v32  ;;  %9657 = vmatprep.mubr.msk.bf16.mxu0 %vm10245_vm0, %v10244_v1 }
0x421b   :  { %9667 = vmatprep.subr.bf16.mxu0 %v10244_v1 }
0x4221   :  { %9658 = vmatmul.mubr.msk.bf16.vlgmr.msra.gmra.mxu0 %vm295_vm7, %v6012_v3  ;;  %v6331_v3 = vpop.permute.xlu0 %6330 }
0x4222   :  { %9668 = vmatpush3.bf16.xpose.msra.mxu0 %v6388_v57  ;;  %9669 = vmatprep.mubr.msk.bf16.mxu0 %vm10245_vm0, %v10244_v1  ;;  %v5688_v57 = vld [vmem:[#allocation2 + $0x158] sm:$0xf] }
0x4223   :  { %9679 = vmatprep.subr.bf16.mxu0 %v10244_v1 }
0x4229   :  { %9670 = vmatmul.mubr.msk.bf16.vlgmr.msra.gmra.mxu0 %vm295_vm7, %v6381_v46  ;;  %v6555_v46 = vsel %vm420_vm8, %v5688_v57, 0 }
0x422a   :  { %9681 = vmatprep.mubr.msk.bf16.mxu0 %vm10245_vm0, %v10244_v1 }
0x42d5   :  { %v6181_v61 = vpop.f32.mrf.mxu1 }
0x42d7   :  { %v9641_v15 = vpop.f32.mrf.mxu1 }
0x42d9   :  { %v6184_v62 = vpop.f32.mrf.mxu1  ;;  %v6229_v0 = vpop.f32.mrf.mxu0 }
0x42da   :  { %v6235_v51 = vpack.c.bf16 %v6229_v0, %v6181_v61 }
0x42db   :  { %v9642_v55 = vpop.f32.mrf.mxu1  ;;  %v9647_v38 = vpop.f32.mrf.mxu0 }
0x42dc   :  { %9652 = vmatmul.mubr.msk.bf16.vlgmr.msra.gmra.mxu1 %vm295_vm7, %v6235_v51 }
0x42dd   :  { %9662 = vmatpush3.bf16.xpose.msra.mxu1 %v6338_v7  ;;  %v6232_v39 = vpop.f32.mrf.mxu0  ;;  %9663 = vmatprep.mubr.msk.bf16.mxu1 %vm10245_vm0, %v10244_v1 }
0x42de   :  { %9673 = vmatprep.subr.bf16.mxu1 %v10244_v1 }
0x42df   :  { %v9648_v36 = vpop.f32.mrf.mxu0 }
0x42e1   :  { %v11368_v10 = vpop.f32.mrf.mxu0 }
0x42e3   :  { %v9659_v14 = vpop.f32.mrf.mxu0 }
0x42e4   :  { %9664 = vmatmul.mubr.msk.bf16.vlgmr.msra.gmra.mxu1 %vm295_vm7, %v6331_v3 }
0x42e5   :  { %v11371_v19 = vpop.f32.mrf.mxu0  ;;  %9675 = vmatprep.mubr.msk.bf16.mxu1 %vm10245_vm0, %v10244_v1 }
0x42e7   :  { %v9660_v21 = vpop.f32.mrf.mxu0 }
0x42e9   :  { %v6424_v22 = vpop.f32.mrf.mxu0 }
0x42ea   :  { %v6433_v11 = vsel %vm295_vm7, %v6424_v22, -inf }
0x42eb   :  { %6434 = vmax.xlane.f32.xlu1 %v6433_v11  ;;  %v9671_v2 = vpop.f32.mrf.mxu0 }
0x42ed   :  { %v6427_v25 = vpop.f32.mrf.mxu0 }
0x42ef   :  { %v9672_v40 = vpop.f32.mrf.mxu0 }
0x42fc   :  { %6454 = vrot.lane.b32.xlu1 %v11256_v34, %s10252_s13 }
0x4300   :  { %6602 = vrot.lane.b32.xlu1 %v11256_v34, %s10253_s14 }
0x4304   :  { %6652 = vrot.lane.b32.xlu1 %v11260_v16, %s10253_s14 }
0x4308   :  { %6650 = vrot.lane.b32.xlu1 %v11274_v33, %s10254_s15 }
0x4374   :  { %v6435_v26 = vpop.xlane.xlu1 %6434 }
0x4375   :  { %v6437_v30 = vsub.f32 %v6424_v22, %v6435_v26 }
0x4377   :  { %v6440_v13 = vmul.f32 1.442695, %v6437_v30 }
0x4378   :  { %v6455_v27 = vpop.permute.xlu1 %6454 }
0x4379   :  { %v6460_v28 = vsel %vm420_vm8, %v6455_v27, 0  ;;  %10128 = vpow2.f32 %v6440_v13 }
0x437a   :  { %9674 = vmatpush3.bf16.msra.mxu1 %v6460_v28 }
0x437b   :  { %9685 = vmatprep.subr.bf16.mxu1 %v10244_v1 }
0x437c   :  { %v6603_v56 = vpop.permute.xlu1 %6602 }
0x437d   :  { %v6608_v59 = vsel %vm295_vm7, %v6603_v56, 0 }
0x4380   :  { %v6653_v0 = vpop.permute.xlu1 %6652 }
0x4381   :  { %v6658_v3 = vsel %vm295_vm7, %v6653_v0, 0  ;;  %v8628_v0 = vld [vmem:[#allocation4 + $0x110] ss:$0 sm:$0xff] }
0x4384   :  { %v6651_v11 = vpop.permute.xlu1 %6650 }
0x4386   :  { %v10129_v33 = vpop.eup %10128 }
0x4387   :  { %v6445_v48 = vsel %vm295_vm7, %v10129_v33, 0.0 }
0x439c   :  { %v11386_v35 = vpop.f32.mrf.mxu1 }
0x439d   :  { %v6324_v28 = vadd.f32 %v11368_v10, %v11386_v35 }
0x439e   :  { %v9653_v5 = vpop.f32.mrf.mxu1 }
0x43a0   :  { %v11388_v58 = vpop.f32.mrf.mxu1 }
0x43a2   :  { %v9654_v20 = vpop.f32.mrf.mxu1 }
0x43a3   :  { %v6327_v20 = vadd.f32 %v11371_v19, %v11388_v58 }
0x43a4   :  { %v6374_v6 = vpop.f32.mrf.mxu1 }
0x43a5   :  { %v6430_v42 = vsel %vm295_vm7, %v6374_v6, -inf }
0x43a6   :  { %6431 = vmax.xlane.f32.xlu0 %v6430_v42  ;;  %v9665_v44 = vpop.f32.mrf.mxu1 }
0x43a8   :  { %v6377_v45 = vpop.f32.mrf.mxu1 }
0x43aa   :  { %v9666_v8 = vpop.f32.mrf.mxu1  ;;  %6446 = vadd.xlane.f32.xlu0 %v6445_v48 }
0x442f   :  { %v6432_v29 = vpop.xlane.xlu0 %6431 }
0x4430   :  { %v6436_v12 = vsub.f32 %v6374_v6, %v6432_v29 }
0x4432   :  { %v6438_v31 = vmul.f32 1.442695, %v6436_v12 }
0x4433   :  { %v6447_v43 = vpop.xlane.xlu0 %6446 }
0x4434   :  { %10130 = vpow2.f32 %v6438_v31 }
0x4435   :  { %10132 = vrcp.f32 %v6447_v43 }
0x4441   :  { %v10131_v49 = vpop.eup %10130 }
0x4442   :  { %v6442_v41 = vsel %vm295_vm7, %v10131_v49, 0.0  ;;  %v10133_v9 = vpop.eup %10132 }
0x4443   :  { %6443 = vadd.xlane.f32.xlu0 %v6442_v41  ;;  %v6451_v63 = vmul.f32 %v10133_v9, %v10129_v33 }
0x4445   :  { %v6453_v23 = vpack.c.bf16 %v6451_v63, %v6451_v63 }
0x4459   :  { %6502 = vrot.lane.b32.xlu0 %v11260_v16, %s10252_s13 }
0x445d   :  { %6600 = vrot.lane.b32.xlu0 %v11267_v4, %s10254_s15 }
0x44cc   :  { %v6444_v53 = vpop.xlane.xlu0 %6443 }
0x44cd   :  { %10134 = vrcp.f32 %v6444_v53  ;;  %v5689_v53 = vld [vmem:[#allocation2 + $0x15c] sm:$0xf] }
0x44ce   :  { %v6825_v63 = vsel %vm420_vm8, %v5689_v53, 0 }
0x44d0   :  { %v6503_v37 = vpop.permute.xlu0 %6502 }
0x44d1   :  { %v6508_v54 = vsel %vm420_vm8, %v6503_v37, 0 }
0x44d2   :  { %9680 = vmatpush3.bf16.msra.mxu0 %v6508_v54 }
0x44d3   :  { %9691 = vmatprep.subr.bf16.mxu0 %v10244_v1 }
0x44d4   :  { %v6601_v24 = vpop.permute.xlu0 %6600 }
0x44d5   :  { %9682 = vmatmul.mubr.msk.bf16.vlgmr.msra.gmra.mxu0 %vm295_vm7, %v6453_v23 }
0x44d6   :  { %9692 = vmatpush3.bf16.xpose.msra.mxu0 %v6608_v59  ;;  %9693 = vmatprep.mubr.msk.bf16.mxu0 %vm10245_vm0, %v10244_v1 }
0x44d7   :  { %9703 = vmatprep.subr.bf16.mxu0 %v10244_v1 }
0x44da   :  { %v10135_v4 = vpop.eup %10134 }
0x44db   :  { %v6450_v32 = vmul.f32 %v10135_v4, %v10131_v49 }
0x44dd   :  { %v6452_v60 = vpack.c.bf16 %v6450_v32, %v6450_v32  ;;  %9694 = vmatmul.mubr.msk.bf16.vlgmr.msra.gmra.mxu0 %vm295_vm7, %v6601_v24 }
0x44de   :  { %9705 = vmatprep.mubr.msk.bf16.mxu0 %vm10245_vm0, %v10244_v1 }
0x44df   :  { %9676 = vmatmul.mubr.msk.bf16.vlgmr.msra.gmra.mxu1 %vm295_vm7, %v6452_v60 }
0x44e0   :  { %9687 = vmatprep.mubr.msk.bf16.mxu1 %vm10245_vm0, %v10244_v1  ;;  %9686 = vmatpush3.bf16.msra.mxu1 %v6555_v46  ;;  %v9940_v46 = vld [vmem:[#allocation2 + $0x178] sm:$0xff]  }
0x44e1   :  { %9697 = vmatprep.subr.bf16.mxu1 %v10244_v1 }
0x4595   :  { %v6544_v52 = vpop.f32.mrf.mxu0 }
0x4597   :  { %v9683_v47 = vpop.f32.mrf.mxu0 }
0x4599   :  { %v6547_v61 = vpop.f32.mrf.mxu0 }
0x459b   :  { %v9684_v15 = vpop.f32.mrf.mxu0 }
0x459c   :  { %v9941_v15 = vld [vmem:[#allocation2 + $0x170] sm:$0xff]  }
0x459d   :  { %v6644_v62 = vpop.f32.mrf.mxu0 }
0x459e   :  { %v6700_v51 = vsel %vm295_vm7, %v6644_v62, -inf }
0x459f   :  { %v6496_v55 = vpop.f32.mrf.mxu1  ;;  %6701 = vmax.xlane.f32.xlu0 %v6700_v51  ;;  %v9695_v38 = vpop.f32.mrf.mxu0 }
0x45a0   :  { %v6550_v7 = vpack.c.bf16 %v6544_v52, %v6496_v55 }
0x45a1   :  { %v9677_v39 = vpop.f32.mrf.mxu1  ;;  %v6647_v36 = vpop.f32.mrf.mxu0 }
0x45a2   :  { %9688 = vmatmul.mubr.msk.bf16.vlgmr.msra.gmra.mxu1 %vm295_vm7, %v6550_v7 }
0x45a3   :  { %9698 = vmatpush3.bf16.xpose.msra.mxu1 %v6658_v3  ;;  %v6499_v14 = vpop.f32.mrf.mxu1  ;;  %v9696_v21 = vpop.f32.mrf.mxu0  ;;  %9699 = vmatprep.mubr.msk.bf16.mxu1 %vm10245_vm0, %v10244_v1 }
0x45a4   :  { %9709 = vmatprep.subr.bf16.mxu1 %v10244_v1  ;;  %v8635_v21 = vld [vmem:[#allocation4 + $0x130] ss:$0 sm:$0xff] }
0x45a5   :  { %v9678_v22 = vpop.f32.mrf.mxu1 }
0x45aa   :  { %9700 = vmatmul.mubr.msk.bf16.vlgmr.msra.gmra.mxu1 %vm295_vm7, %v6651_v11 }
0x45ab   :  { %9711 = vmatprep.mubr.msk.bf16.mxu1 %vm10245_vm0, %v10244_v1 }
0x4628   :  { %v6702_v2 = vpop.xlane.xlu0 %6701 }
0x4629   :  { %v6706_v25 = vsub.f32 %v6644_v62, %v6702_v2 }
0x462b   :  { %v6708_v40 = vmul.f32 1.442695, %v6706_v25 }
0x462d   :  { %10136 = vpow2.f32 %v6708_v40 }
0x463a   :  { %v10137_v26 = vpop.eup %10136 }
0x463b   :  { %v6712_v27 = vsel %vm295_vm7, %v10137_v26, 0.0 }
0x463c   :  { %6713 = vadd.xlane.f32.xlu0 %v6712_v27 }
0x4662   :  { %v6591_v30 = vpop.f32.mrf.mxu1 }
0x4663   :  { %v11424_v13 = vadd.f32 %v6591_v30, %v6324_v28 }
0x4664   :  { %v9689_v5 = vpop.f32.mrf.mxu1 }
0x4666   :  { %v6594_v6 = vpop.f32.mrf.mxu1 }
0x4667   :  { %v11428_v42 = vadd.f32 %v6594_v6, %v6327_v20 }
0x4668   :  { %v9690_v33 = vpop.f32.mrf.mxu1 }
0x466a   :  { %v6694_v44 = vpop.f32.mrf.mxu1 }
0x466b   :  { %v6703_v45 = vsel %vm295_vm7, %v6694_v44, -inf }
0x466c   :  { %6704 = vmax.xlane.f32.xlu1 %v6703_v45  ;;  %v9701_v48 = vpop.f32.mrf.mxu1 }
0x466e   :  { %v6697_v8 = vpop.f32.mrf.mxu1 }
0x4670   :  { %v9702_v29 = vpop.f32.mrf.mxu1 }
0x4671   :  { %v9942_v29 = vld [vmem:[#allocation2 + $0x168] sm:$0xff]  }
0x467d   :  { %6724 = vrot.lane.b32.xlu1 %v11256_v34, %s10255_s16 }
0x46c5   :  { %v6714_v10 = vpop.xlane.xlu0 %6713 }
0x46c6   :  { %10138 = vrcp.f32 %v6714_v10  ;;  %v9943_v10 = vld [vmem:[#allocation2 + $0x160] sm:$0xff]  }
0x46d3   :  { %v10139_v35 = vpop.eup %10138 }
0x46d4   :  { %v6720_v19 = vmul.f32 %v10139_v35, %v10137_v26 }
0x46d6   :  { %v6722_v43 = vpack.c.bf16 %v6720_v19, %v6720_v19 }
0x46f5   :  { %v6705_v12 = vpop.xlane.xlu1 %6704 }
0x46f6   :  { %v6707_v31 = vsub.f32 %v6694_v44, %v6705_v12 }
0x46f8   :  { %v6710_v58 = vmul.f32 1.442695, %v6707_v31 }
0x46f9   :  { %v6725_v49 = vpop.permute.xlu1 %6724 }
0x46fa   :  { %10140 = vpow2.f32 %v6710_v58  ;;  %v6730_v41 = vsel %vm420_vm8, %v6725_v49, 0 }
0x46fb   :  { %9704 = vmatpush3.bf16.msra.mxu0 %v6730_v41 }
0x46fc   :  { %9715 = vmatprep.subr.bf16.mxu0 %v10244_v1 }
0x46fe   :  { %9706 = vmatmul.mubr.msk.bf16.vlgmr.msra.gmra.mxu0 %vm295_vm7, %v6722_v43 }
0x46ff   :  { %9717 = vmatprep.mubr.msk.bf16.mxu0 %vm10245_vm0, %v10244_v1  ;;  %9716 = vmatpush3.bf16.msra.mxu0 %v6825_v63 }
0x4700   :  { %9729 = vmatprep.subr.bf16.mxu0 %v10244_v1 }
0x4707   :  { %v10141_v34 = vpop.eup %10140 }
0x4708   :  { %v6715_v9 = vsel %vm295_vm7, %v10141_v34, 0.0 }
0x4709   :  { %6716 = vadd.xlane.f32.xlu0 %v6715_v9 }
0x471f   :  { %6772 = vrot.lane.b32.xlu0 %v11260_v16, %s10255_s16 }
0x4792   :  { %v6717_v37 = vpop.xlane.xlu0 %6716 }
0x4793   :  { %10142 = vrcp.f32 %v6717_v37  ;;  %v8630_v37 = vld [vmem:[#allocation4 + $0x120] ss:$0 sm:$0xff] }
0x4796   :  { %v6773_v54 = vpop.permute.xlu0 %6772 }
0x4797   :  { %v6778_v56 = vsel %vm420_vm8, %v6773_v54, 0 }
0x4798   :  { %9710 = vmatpush3.bf16.msra.mxu1 %v6778_v56 }
0x4799   :  { %9721 = vmatprep.subr.bf16.mxu1 %v10244_v1 }
0x47a0   :  { %v10143_v23 = vpop.eup %10142 }
0x47a1   :  { %v6721_v59 = vmul.f32 %v10143_v23, %v10141_v34  ;;  %v8629_v34 = vld [vmem:[#allocation4 + $0x118] ss:$0 sm:$0xff] }
0x47a3   :  { %v6723_v4 = vpack.c.bf16 %v6721_v59, %v6721_v59 }
0x47a5   :  { %9712 = vmatmul.mubr.msk.bf16.vlgmr.msra.gmra.mxu1 %vm295_vm7, %v6723_v4 }
0x47a6   :  { %9725 = vmatprep.mubr.msk.bf16.mxu1 %vm10245_vm0, %v10244_v1  ;;  %9722 = vmatpush3.bf16.msra.mxu1 %v9942_v29 }
0x47a7   :  { %9723 = vmatprep.subr.bf16.mxu1 %v10244_v1 }
0x47aa   :  { %9724 = vmatpush3.bf16.msra.mxu1 %v9943_v10 }
0x47ab   :  { %9737 = vmatprep.subr.bf16.mxu1 %v10244_v1 }
0x47be   :  { %v6766_v16 = vpop.f32.mrf.mxu0 }
0x47c0   :  { %v9707_v32 = vpop.f32.mrf.mxu0 }
0x47c1   :  { %v8631_v32 = vld [vmem:[#allocation4 + $0x128] ss:$0 sm:$0xff] }
0x47c2   :  { %v6769_v24 = vpop.f32.mrf.mxu0 }
0x47c4   :  { %v9708_v60 = vpop.f32.mrf.mxu0 }
0x4865   :  { %v6814_v57 = vpop.f32.mrf.mxu1 }
0x4866   :  { %v6820_v52 = vpack.c.bf16 %v6814_v57, %v6766_v16 }
0x4867   :  { %v9713_v47 = vpop.f32.mrf.mxu1 }
0x4868   :  { %9718 = vmatmul.mubr.msk.bf16.vlgmr.msra.gmra.mxu0 %vm295_vm7, %v6820_v52 }
0x4869   :  { %v6817_v61 = vpop.f32.mrf.mxu1  ;;  %9730 = vmatpush3.bf16.msra.mxu0 %v9940_v46  ;;  %9733 = vmatprep.mubr.msk.bf16.mxu0 %vm10245_vm0, %v10244_v1 }
0x486a   :  { %9731 = vmatprep.subr.bf16.mxu0 %v10244_v1 }
0x486b   :  { %v9714_v62 = vpop.f32.mrf.mxu1 }
0x486d   :  { %9732 = vmatpush3.bf16.msra.mxu0 %v9941_v15 }
0x486e   :  { %9743 = vmatprep.subr.bf16.mxu0 %v10244_v1 }
0x4870   :  { %9734 = vmatmul.mubr.msk.bf16.vlgmr.msra.gmra.mxu0 %vm241_vm4, %v11017_v18 }
0x4871   :  { %9745 = vmatprep.mubr.msk.bf16.mxu0 %vm10245_vm0, %v10244_v1 }
0x4928   :  { %v6861_v51 = vpop.f32.mrf.mxu0 }
0x4929   :  { %v6868_v55 = vadd.f32 %v6861_v51, %v11424_v13 }
0x492a   :  { %v9719_v38 = vpop.f32.mrf.mxu0 }
0x492b   :  { %v6874_v7 = vadd.f32 %v8628_v0, %v6868_v55 }
0x492c   :  { %v6864_v39 = vpop.f32.mrf.mxu0 }
0x492d   :  { %v6869_v36 = vadd.f32 %v6864_v39, %v11428_v42  ;;  %v6876_v3 = vadd.f32 %v6874_v7, %v11247_v50 }
0x492e   :  { %v9720_v14 = vpop.f32.mrf.mxu0 }
0x492f   :  { %v6875_v22 = vadd.f32 %v8628_v0, %v6869_v36  ;;  %v6878_v11 = vsel %vm241_vm4, %v6876_v3, 0.0 }
0x4930   :  { %6879 = vadd.xlane.f32.xlu1 %v6878_v11  ;;  %v7027_v18 = vpop.f32.mrf.mxu0 }
0x4931   :  { %v7028_v2 = vadd.f32 %v8635_v21, %v7027_v18  ;;  %v6877_v25 = vadd.f32 %v6875_v22, %v11249_v17 }
0x4932   :  { %v9735_v40 = vpop.f32.mrf.mxu0 }
0x4933   :  { %v6881_v26 = vsel %vm241_vm4, %v6877_v25, 0.0  ;;  %v11472_v56 = vpack.c.bf16 %v7028_v2, %v7028_v2 }
0x4934   :  { %6882 = vadd.xlane.f32.xlu0 %v6881_v26  ;;  %v7030_v27 = vpop.f32.mrf.mxu0 }
0x4935   :  { %v7031_v28 = vadd.f32 %v8635_v21, %v7030_v27  ;;  %v7044_v16 = vsel %vm295_vm7, %v11472_v56, 0 }
0x4936   :  { %v9736_v30 = vpop.f32.mrf.mxu0 }
0x4937   :  { %v11463_v13 = vpack.c.bf16 %v7031_v28, %v7031_v28 }
0x4939   :  { %v7090_v50 = vsel %vm295_vm7, %v11463_v13, 0 }
0x493a   :  { %9744 = vmatpush3.bf16.xpose.msra.mxu0 %v7090_v50 }
0x493b   :  { %9755 = vmatprep.subr.bf16.mxu0 %v10244_v1 }
0x49b9   :  { %v6880_v5 = vpop.xlane.xlu1 %6879 }
0x49ba   :  { %v6884_v20 = vmul.f32 0.03125, %v6880_v5 }
0x49bc   :  { %v6886_v6 = vsub.f32 %v6876_v3, %v6884_v20 }
0x49bd   :  { %v6883_v42 = vpop.xlane.xlu0 %6882 }
0x49be   :  { %v6885_v17 = vmul.f32 0.03125, %v6883_v42  ;;  %v6888_v33 = vmul.f32 %v6886_v6, %v6886_v6 }
0x49c0   :  { %v6887_v44 = vsub.f32 %v6877_v25, %v6885_v17  ;;  %v6890_v45 = vsel %vm241_vm4, %v6888_v33, 0.0 }
0x49c1   :  { %6891 = vadd.xlane.f32.xlu1 %v6890_v45 }
0x49c2   :  { %v6889_v48 = vmul.f32 %v6887_v44, %v6887_v44 }
0x49c4   :  { %v6893_v8 = vsel %vm241_vm4, %v6889_v48, 0.0 }
0x49c5   :  { %6894 = vadd.xlane.f32.xlu0 %v6893_v8 }
0x4a4a   :  { %v6892_v35 = vpop.xlane.xlu1 %6891 }
0x4a4b   :  { %v6896_v12 = vmul.f32 0.03125, %v6892_v35 }
0x4a4d   :  { %v6898_v31 = vadd.f32 1e-05, %v6896_v12 }
0x4a4e   :  { %v6895_v19 = vpop.xlane.xlu0 %6894 }
0x4a4f   :  { %10144 = vrsqrt.f32 %v6898_v31  ;;  %v6897_v58 = vmul.f32 0.03125, %v6895_v19 }
0x4a51   :  { %v6899_v49 = vadd.f32 1e-05, %v6897_v58 }
0x4a53   :  { %10146 = vrsqrt.f32 %v6899_v49 }
0x4a5c   :  { %v10145_v41 = vpop.eup %10144 }
0x4a5d   :  { %v6902_v43 = vmul.f32 %v10145_v41, %v6886_v6 }
0x4a5f   :  { %v6908_v53 = vmul.f32 %v8629_v34, %v6902_v43 }
0x4a60   :  { %v10147_v9 = vpop.eup %10146 }
0x4a61   :  { %v6903_v63 = vmul.f32 %v10147_v9, %v6887_v44  ;;  %v11474_v23 = vadd.f32 %v8630_v37, %v6908_v53 }
0x4a63   :  { %v6909_v54 = vmul.f32 %v8629_v34, %v6903_v63 }
0x4a65   :  { %v11476_v59 = vadd.f32 %v8630_v37, %v6909_v54 }
0x4a67   :  { %v6916_v4 = vpack.c.bf16 %v11476_v59, %v11474_v23 }
0x4a69   :  { %9726 = vmatmul.mubr.msk.bf16.vlgmr.msra.gmra.mxu1 %vm241_vm4, %v6916_v4 }
0x4a6a   :  { %9738 = vmatpush3.bf16.xpose.msra.mxu1 %v7044_v16  ;;  %9739 = vmatprep.mubr.msk.bf16.mxu1 %vm10245_vm0, %v10244_v1 }
0x4a6b   :  { %9749 = vmatprep.subr.bf16.mxu1 %v10244_v1 }
0x4b29   :  { %v6970_v24 = vpop.f32.mrf.mxu1 }
0x4b2a   :  { %v6971_v60 = vadd.f32 %v8631_v32, %v6970_v24 }
0x4b2b   :  { %v9727_v57 = vpop.f32.mrf.mxu1 }
0x4b2c   :  { %v7034_v46 = vmul.f32 0.35355338, %v6971_v60 }
0x4b2d   :  { %v6973_v52 = vpop.f32.mrf.mxu1 }
0x4b2e   :  { %v11486_v47 = vpack.c.bf16 %v7034_v46, %v7034_v46  ;;  %v6974_v61 = vadd.f32 %v8631_v32, %v6973_v52 }
0x4b2f   :  { %v9728_v15 = vpop.f32.mrf.mxu1 }
0x4b30   :  { %v7035_v62 = vmul.f32 0.35355338, %v6974_v61  ;;  %9740 = vmatmul.mubr.msk.bf16.vlgmr.msra.gmra.mxu1 %vm295_vm7, %v11486_v47 }
0x4b31   :  { %9751 = vmatprep.mubr.msk.bf16.mxu1 %vm10245_vm0, %v10244_v1 }
0x4b32   :  { %v11492_v0 = vpack.c.bf16 %v7035_v62, %v7035_v62 }
0x4b34   :  { %9746 = vmatmul.mubr.msk.bf16.vlgmr.msra.gmra.mxu0 %vm295_vm7, %v11492_v0 }
0x4b35   :  { %9757 = vmatprep.mubr.msk.bf16.mxu0 %vm10245_vm0, %v10244_v1 }
0x4bf0   :  { %v7080_v51 = vpop.f32.mrf.mxu1 }
0x4bf1   :  { %v7132_v55 = vsel %vm295_vm7, %v7080_v51, -inf }
0x4bf2   :  { %7133 = vmax.xlane.f32.xlu1 %v7132_v55  ;;  %v9741_v38 = vpop.f32.mrf.mxu1 }
0x4bf4   :  { %v7083_v7 = vpop.f32.mrf.mxu1  ;;  %v7126_v39 = vpop.f32.mrf.mxu0 }
0x4bf5   :  { %v7135_v36 = vsel %vm295_vm7, %v7126_v39, -inf }
0x4bf6   :  { %v9742_v3 = vpop.f32.mrf.mxu1  ;;  %7136 = vmax.xlane.f32.xlu0 %v7135_v36  ;;  %v9747_v14 = vpop.f32.mrf.mxu0 }
0x4bf8   :  { %v7129_v21 = vpop.f32.mrf.mxu0 }
0x4bfa   :  { %v9748_v22 = vpop.f32.mrf.mxu0 }
0x4c03   :  { %7157 = vrot.lane.b32.xlu1 %v11472_v56, %s10246_s1 }
0x4c7b   :  { %v7134_v11 = vpop.xlane.xlu1 %7133 }
0x4c7c   :  { %v7138_v18 = vsub.f32 %v7080_v51, %v7134_v11 }
0x4c7e   :  { %v7140_v2 = vmul.f32 1.442695, %v7138_v18 }
0x4c7f   :  { %v7158_v25 = vpop.permute.xlu1 %7157  ;;  %v7137_v40 = vpop.xlane.xlu0 %7136 }
0x4c80   :  { %10148 = vpow2.f32 %v7140_v2  ;;  %v7163_v26 = vsel %vm420_vm8, %v7158_v25, 0  ;;  %v7139_v27 = vsub.f32 %v7126_v39, %v7137_v40 }
0x4c81   :  { %9750 = vmatpush3.bf16.msra.mxu1 %v7163_v26 }
0x4c82   :  { %v7142_v28 = vmul.f32 1.442695, %v7139_v27  ;;  %9761 = vmatprep.subr.bf16.mxu1 %v10244_v1 }
0x4c84   :  { %10150 = vpow2.f32 %v7142_v28 }
0x4c8d   :  { %v10149_v30 = vpop.eup %10148 }
0x4c8e   :  { %v7144_v50 = vsel %vm295_vm7, %v10149_v30, 0.0 }
0x4c8f   :  { %7145 = vadd.xlane.f32.xlu1 %v7144_v50 }
0x4c91   :  { %v10151_v5 = vpop.eup %10150 }
0x4c92   :  { %v7147_v20 = vsel %vm295_vm7, %v10151_v5, 0.0 }
0x4c93   :  { %7148 = vadd.xlane.f32.xlu0 %v7147_v20 }
0x4ca0   :  { %7258 = vrot.lane.b32.xlu1 %v11472_v56, %s10248_s9 }
0x4ca4   :  { %7309 = vrot.lane.b32.xlu1 %v11463_v13, %s10248_s9 }
0x4ca8   :  { %7307 = vrot.lane.b32.xlu1 %v11492_v0, %s10248_s9 }
0x4ca9   :  { %7206 = vrot.lane.b32.xlu0 %v11463_v13, %s10246_s1 }
0x4cad   :  { %7256 = vrot.lane.b32.xlu0 %v11486_v47, %s10248_s9 }
0x4d18   :  { %v7146_v6 = vpop.xlane.xlu1 %7145 }
0x4d19   :  { %10152 = vrcp.f32 %v7146_v6 }
0x4d1c   :  { %v7149_v42 = vpop.xlane.xlu0 %7148  ;;  %v7259_v45 = vpop.permute.xlu1 %7258 }
0x4d1d   :  { %10154 = vrcp.f32 %v7149_v42  ;;  %v7264_v10 = vsel %vm295_vm7, %v7259_v45, 0 }
0x4d20   :  { %v7207_v17 = vpop.permute.xlu0 %7206  ;;  %v7310_v12 = vpop.permute.xlu1 %7309 }
0x4d21   :  { %v7212_v33 = vsel %vm420_vm8, %v7207_v17, 0  ;;  %v7315_v19 = vsel %vm295_vm7, %v7310_v12, 0 }
0x4d22   :  { %9756 = vmatpush3.bf16.msra.mxu0 %v7212_v33 }
0x4d23   :  { %9767 = vmatprep.subr.bf16.mxu0 %v10244_v1 }
0x4d24   :  { %v7257_v58 = vpop.permute.xlu0 %7256  ;;  %v7308_v49 = vpop.permute.xlu1 %7307 }
0x4d26   :  { %v10153_v44 = vpop.eup %10152 }
0x4d27   :  { %v7152_v48 = vmul.f32 %v10153_v44, %v10149_v30 }
0x4d29   :  { %v7154_v8 = vpack.c.bf16 %v7152_v48, %v7152_v48  ;;  %v5699_v48 = vld [vmem:[#allocation2 + $0x184] sm:$0xf] }
0x4d2a   :  { %v10155_v29 = vpop.eup %10154 }
0x4d2b   :  { %v7153_v35 = vmul.f32 %v10155_v29, %v10151_v5  ;;  %9752 = vmatmul.mubr.msk.bf16.vlgmr.msra.gmra.mxu1 %vm295_vm7, %v7154_v8  ;;  %v5698_v5 = vld [vmem:[#allocation2 + $0x180] sm:$0xf]  ;;  %v7482_v8 = vsel %vm420_vm8, %v5699_v48, 0 }
0x4d2c   :  { %9762 = vmatpush3.bf16.xpose.msra.mxu1 %v7264_v10  ;;  %9763 = vmatprep.mubr.msk.bf16.mxu1 %vm10245_vm0, %v10244_v1  ;;  %v7529_v42 = vsel %vm420_vm8, %v5698_v5, 0 }
0x4d2d   :  { %v7155_v31 = vpack.c.bf16 %v7153_v35, %v7153_v35  ;;  %9773 = vmatprep.subr.bf16.mxu1 %v10244_v1 }
0x4d2f   :  { %9758 = vmatmul.mubr.msk.bf16.vlgmr.msra.gmra.mxu0 %vm295_vm7, %v7155_v31 }
0x4d30   :  { %9768 = vmatpush3.bf16.xpose.msra.mxu0 %v7315_v19  ;;  %9769 = vmatprep.mubr.msk.bf16.mxu0 %vm10245_vm0, %v10244_v1 }
0x4d31   :  { %9779 = vmatprep.subr.bf16.mxu0 %v10244_v1 }
0x4d33   :  { %9764 = vmatmul.mubr.msk.bf16.vlgmr.msra.gmra.mxu1 %vm295_vm7, %v7257_v58 }
0x4d34   :  { %9775 = vmatprep.mubr.msk.bf16.mxu1 %vm10245_vm0, %v10244_v1 }
0x4d37   :  { %9770 = vmatmul.mubr.msk.bf16.vlgmr.msra.gmra.mxu0 %vm295_vm7, %v7308_v49 }
0x4d38   :  { %9781 = vmatprep.mubr.msk.bf16.mxu0 %vm10245_vm0, %v10244_v1 }
0x4deb   :  { %v11534_v41 = vpop.f32.mrf.mxu1 }
0x4ded   :  { %v9753_v43 = vpop.f32.mrf.mxu1 }
0x4def   :  { %v7202_v34 = vpop.f32.mrf.mxu1  ;;  %v11536_v9 = vpop.f32.mrf.mxu0 }
0x4df0   :  { %v7254_v53 = vpack.c.bf16 %v11536_v9, %v11534_v41 }
0x4df1   :  { %v9754_v63 = vpop.f32.mrf.mxu1  ;;  %v9759_v37 = vpop.f32.mrf.mxu0 }
0x4df3   :  { %v7251_v54 = vpop.f32.mrf.mxu0  ;;  %v7300_v4 = vpop.f32.mrf.mxu1 }
0x4df4   :  { %v7357_v16 = vsel %vm295_vm7, %v7300_v4, -inf }
0x4df5   :  { %7358 = vmax.xlane.f32.xlu0 %v7357_v16  ;;  %v9760_v32 = vpop.f32.mrf.mxu0  ;;  %v9765_v24 = vpop.f32.mrf.mxu1 }
0x4df7   :  { %v7303_v60 = vpop.f32.mrf.mxu1  ;;  %v7351_v57 = vpop.f32.mrf.mxu0 }
0x4df8   :  { %v7360_v46 = vsel %vm295_vm7, %v7351_v57, -inf }
0x4df9   :  { %v9766_v52 = vpop.f32.mrf.mxu1  ;;  %7361 = vmax.xlane.f32.xlu1 %v7360_v46  ;;  %v9771_v61 = vpop.f32.mrf.mxu0 }
0x4dfb   :  { %v7354_v15 = vpop.f32.mrf.mxu0 }
0x4dfd   :  { %v9772_v62 = vpop.f32.mrf.mxu0 }
0x4e0a   :  { %7381 = vrot.lane.b32.xlu1 %v11472_v56, %s10247_s8 }
0x4e0e   :  { %7574 = vrot.lane.b32.xlu1 %v11472_v56, %s10251_s12 }
0x4e12   :  { %7624 = vrot.lane.b32.xlu1 %v11463_v13, %s10251_s12 }
0x4e16   :  { %7622 = vrot.lane.b32.xlu1 %v11492_v0, %s10251_s12 }
0x4e7e   :  { %v7359_v51 = vpop.xlane.xlu0 %7358 }
0x4e7f   :  { %v7363_v55 = vsub.f32 %v7300_v4, %v7359_v51 }
0x4e81   :  { %v7365_v38 = vmul.f32 1.442695, %v7363_v55 }
0x4e82   :  { %v7362_v7 = vpop.xlane.xlu1 %7361 }
0x4e83   :  { %10156 = vpow2.f32 %v7365_v38  ;;  %v7364_v39 = vsub.f32 %v7351_v57, %v7362_v7 }
0x4e85   :  { %v7367_v36 = vmul.f32 1.442695, %v7364_v39 }
0x4e86   :  { %v7382_v3 = vpop.permute.xlu1 %7381 }
0x4e87   :  { %10158 = vpow2.f32 %v7367_v36  ;;  %v7387_v14 = vsel %vm420_vm8, %v7382_v3, 0 }
0x4e88   :  { %9774 = vmatpush3.bf16.msra.mxu1 %v7387_v14 }
0x4e89   :  { %9785 = vmatprep.subr.bf16.mxu1 %v10244_v1 }
0x4e8a   :  { %v7575_v17 = vpop.permute.xlu1 %7574 }
0x4e8b   :  { %v7580_v49 = vsel %vm295_vm7, %v7575_v17, 0 }
0x4e8e   :  { %v7625_v33 = vpop.permute.xlu1 %7624 }
0x4e8f   :  { %v7630_v44 = vsel %vm295_vm7, %v7625_v33, 0  ;;  %v5700_v33 = vld [vmem:[#allocation2 + $0x188] sm:$0xf] }
0x4e90   :  { %v10157_v21 = vpop.eup %10156 }
0x4e91   :  { %v7369_v22 = vsel %vm295_vm7, %v10157_v21, 0.0 }
0x4e92   :  { %7370 = vadd.xlane.f32.xlu0 %v7369_v22  ;;  %v7623_v45 = vpop.permute.xlu1 %7622 }
0x4e94   :  { %v10159_v11 = vpop.eup %10158 }
0x4e95   :  { %v7372_v18 = vsel %vm295_vm7, %v10159_v11, 0.0 }
0x4e96   :  { %7373 = vadd.xlane.f32.xlu0 %v7372_v18 }
0x4eac   :  { %7429 = vrot.lane.b32.xlu0 %v11463_v13, %s10247_s8 }
0x4eb0   :  { %7572 = vrot.lane.b32.xlu0 %v11486_v47, %s10251_s12 }
0x4f1b   :  { %v7371_v2 = vpop.xlane.xlu0 %7370 }
0x4f1c   :  { %10160 = vrcp.f32 %v7371_v2 }
0x4f1f   :  { %v7374_v25 = vpop.xlane.xlu0 %7373 }
0x4f20   :  { %10162 = vrcp.f32 %v7374_v25 }
0x4f23   :  { %v7430_v40 = vpop.permute.xlu0 %7429 }
0x4f24   :  { %v7435_v26 = vsel %vm420_vm8, %v7430_v40, 0 }
0x4f25   :  { %9780 = vmatpush3.bf16.msra.mxu0 %v7435_v26 }
0x4f26   :  { %9791 = vmatprep.subr.bf16.mxu0 %v10244_v1 }
0x4f27   :  { %v7573_v9 = vpop.permute.xlu0 %7572 }
0x4f29   :  { %v10161_v27 = vpop.eup %10160 }
0x4f2a   :  { %v7377_v28 = vmul.f32 %v10161_v27, %v10157_v21 }
0x4f2c   :  { %v7379_v30 = vpack.c.bf16 %v7377_v28, %v7377_v28 }
0x4f2d   :  { %v10163_v50 = vpop.eup %10162 }
0x4f2e   :  { %v7378_v20 = vmul.f32 %v10163_v50, %v10159_v11  ;;  %9776 = vmatmul.mubr.msk.bf16.vlgmr.msra.gmra.mxu1 %vm295_vm7, %v7379_v30 }
0x4f2f   :  { %9787 = vmatprep.mubr.msk.bf16.mxu1 %vm10245_vm0, %v10244_v1  ;;  %9786 = vmatpush3.bf16.msra.mxu1 %v7482_v8 }
0x4f30   :  { %v7380_v6 = vpack.c.bf16 %v7378_v20, %v7378_v20  ;;  %9797 = vmatprep.subr.bf16.mxu1 %v10244_v1 }
0x4f32   :  { %9782 = vmatmul.mubr.msk.bf16.vlgmr.msra.gmra.mxu0 %vm295_vm7, %v7380_v6 }
0x4f33   :  { %9792 = vmatpush3.bf16.msra.mxu0 %v7529_v42  ;;  %9793 = vmatprep.mubr.msk.bf16.mxu0 %vm10245_vm0, %v10244_v1 }
0x4f34   :  { %9803 = vmatprep.subr.bf16.mxu0 %v10244_v1 }
0x4f3a   :  { %9794 = vmatmul.mubr.msk.bf16.vlgmr.msra.gmra.mxu0 %vm295_vm7, %v7254_v53 }
0x4f3b   :  { %9804 = vmatpush3.bf16.xpose.msra.mxu0 %v7630_v44  ;;  %9805 = vmatprep.mubr.msk.bf16.mxu0 %vm10245_vm0, %v10244_v1  ;;  %v7797_v44 = vsel %vm420_vm8, %v5700_v33, 0 }
0x4f3c   :  { %9815 = vmatprep.subr.bf16.mxu0 %v10244_v1 }
0x4f42   :  { %9806 = vmatmul.mubr.msk.bf16.vlgmr.msra.gmra.mxu0 %vm295_vm7, %v7623_v45 }
0x4f43   :  { %9817 = vmatprep.mubr.msk.bf16.mxu0 %vm10245_vm0, %v10244_v1 }
0x4fee   :  { %v7423_v29 = vpop.f32.mrf.mxu1 }
0x4ff0   :  { %v9777_v10 = vpop.f32.mrf.mxu1 }
0x4ff2   :  { %v7426_v35 = vpop.f32.mrf.mxu1  ;;  %v7471_v12 = vpop.f32.mrf.mxu0 }
0x4ff3   :  { %v7477_v31 = vpack.c.bf16 %v7471_v12, %v7423_v29 }
0x4ff4   :  { %v9778_v19 = vpop.f32.mrf.mxu1  ;;  %v9783_v58 = vpop.f32.mrf.mxu0 }
0x4ff5   :  { %9788 = vmatmul.mubr.msk.bf16.vlgmr.msra.gmra.mxu1 %vm295_vm7, %v7477_v31 }
0x4ff6   :  { %9798 = vmatpush3.bf16.xpose.msra.mxu1 %v7580_v49  ;;  %v7474_v41 = vpop.f32.mrf.mxu0  ;;  %9799 = vmatprep.mubr.msk.bf16.mxu1 %vm10245_vm0, %v10244_v1 }
0x4ff7   :  { %9809 = vmatprep.subr.bf16.mxu1 %v10244_v1 }
0x4ff8   :  { %v9784_v43 = vpop.f32.mrf.mxu0 }
0x4ffa   :  { %v11586_v34 = vpop.f32.mrf.mxu0 }
0x4ffc   :  { %v9795_v53 = vpop.f32.mrf.mxu0 }
0x4ffd   :  { %9800 = vmatmul.mubr.msk.bf16.vlgmr.msra.gmra.mxu1 %vm295_vm7, %v7573_v9 }
0x4ffe   :  { %v11589_v63 = vpop.f32.mrf.mxu0  ;;  %9811 = vmatprep.mubr.msk.bf16.mxu1 %vm10245_vm0, %v10244_v1 }
0x5000   :  { %v9796_v37 = vpop.f32.mrf.mxu0 }
0x5002   :  { %v7666_v54 = vpop.f32.mrf.mxu0 }
0x5003   :  { %v7675_v4 = vsel %vm295_vm7, %v7666_v54, -inf }
0x5004   :  { %7676 = vmax.xlane.f32.xlu1 %v7675_v4  ;;  %v9807_v16 = vpop.f32.mrf.mxu0 }
0x5006   :  { %v7669_v32 = vpop.f32.mrf.mxu0 }
0x5008   :  { %v9808_v24 = vpop.f32.mrf.mxu0 }
0x5015   :  { %7696 = vrot.lane.b32.xlu1 %v11472_v56, %s10250_s11 }
0x5019   :  { %7844 = vrot.lane.b32.xlu1 %v11472_v56, %s10254_s15 }
0x501d   :  { %7894 = vrot.lane.b32.xlu1 %v11463_v13, %s10254_s15 }
0x5021   :  { %7892 = vrot.lane.b32.xlu1 %v11492_v0, %s10254_s15 }
0x508d   :  { %v7677_v60 = vpop.xlane.xlu1 %7676 }
0x508e   :  { %v7679_v52 = vsub.f32 %v7666_v54, %v7677_v60 }
0x5090   :  { %v7682_v61 = vmul.f32 1.442695, %v7679_v52 }
0x5091   :  { %v7697_v57 = vpop.permute.xlu1 %7696 }
0x5092   :  { %v7702_v46 = vsel %vm420_vm8, %v7697_v57, 0  ;;  %10164 = vpow2.f32 %v7682_v61 }
0x5093   :  { %9810 = vmatpush3.bf16.msra.mxu1 %v7702_v46 }
0x5094   :  { %9821 = vmatprep.subr.bf16.mxu1 %v10244_v1 }
0x5095   :  { %v7845_v50 = vpop.permute.xlu1 %7844 }
0x5096   :  { %v7850_v20 = vsel %vm295_vm7, %v7845_v50, 0 }
0x5099   :  { %v7895_v35 = vpop.permute.xlu1 %7894 }
0x509a   :  { %v7900_v43 = vsel %vm295_vm7, %v7895_v35, 0 }
0x509d   :  { %v7893_v54 = vpop.permute.xlu1 %7892 }
0x509f   :  { %v10165_v0 = vpop.eup %10164 }
0x50a0   :  { %v7687_v3 = vsel %vm295_vm7, %v10165_v0, 0.0 }
0x50b5   :  { %v11604_v15 = vpop.f32.mrf.mxu1 }
0x50b6   :  { %v7566_v57 = vadd.f32 %v11586_v34, %v11604_v15 }
0x50b7   :  { %v9789_v62 = vpop.f32.mrf.mxu1 }
0x50b9   :  { %v11606_v51 = vpop.f32.mrf.mxu1 }
0x50ba   :  { %v7569_v62 = vadd.f32 %v11589_v63, %v11606_v51 }
0x50bb   :  { %v9790_v55 = vpop.f32.mrf.mxu1 }
0x50bd   :  { %v7616_v38 = vpop.f32.mrf.mxu1 }
0x50be   :  { %v7672_v7 = vsel %vm295_vm7, %v7616_v38, -inf }
0x50bf   :  { %7673 = vmax.xlane.f32.xlu0 %v7672_v7  ;;  %v9801_v39 = vpop.f32.mrf.mxu1 }
0x50c1   :  { %v7619_v36 = vpop.f32.mrf.mxu1 }
0x50c3   :  { %v9802_v14 = vpop.f32.mrf.mxu1  ;;  %7688 = vadd.xlane.f32.xlu0 %v7687_v3 }
0x5148   :  { %v7674_v21 = vpop.xlane.xlu0 %7673 }
0x5149   :  { %v7678_v22 = vsub.f32 %v7616_v38, %v7674_v21 }
0x514b   :  { %v7680_v11 = vmul.f32 1.442695, %v7678_v22 }
0x514c   :  { %v7689_v25 = vpop.xlane.xlu0 %7688 }
0x514d   :  { %10166 = vpow2.f32 %v7680_v11 }
0x514e   :  { %10168 = vrcp.f32 %v7689_v25 }
0x515a   :  { %v10167_v18 = vpop.eup %10166 }
0x515b   :  { %v7684_v2 = vsel %vm295_vm7, %v10167_v18, 0.0  ;;  %v10169_v40 = vpop.eup %10168 }
0x515c   :  { %7685 = vadd.xlane.f32.xlu0 %v7684_v2  ;;  %v7693_v27 = vmul.f32 %v10169_v40, %v10165_v0  ;;  %v5701_v40 = vld [vmem:[#allocation2 + $0x18c] sm:$0xf] }
0x515e   :  { %v7695_v5 = vpack.c.bf16 %v7693_v27, %v7693_v27 }
0x5172   :  { %7744 = vrot.lane.b32.xlu0 %v11463_v13, %s10250_s11 }
0x5176   :  { %7842 = vrot.lane.b32.xlu0 %v11486_v47, %s10254_s15 }
0x51e5   :  { %v7686_v26 = vpop.xlane.xlu0 %7685 }
0x51e6   :  { %10170 = vrcp.f32 %v7686_v26  ;;  %v8067_v26 = vsel %vm420_vm8, %v5701_v40, 0  ;;  %v8662_v40 = vld [vmem:[#allocation4 + $0x150] ss:$0 sm:$0xff] }
0x51e9   :  { %v7745_v28 = vpop.permute.xlu0 %7744 }
0x51ea   :  { %v7750_v30 = vsel %vm420_vm8, %v7745_v28, 0 }
0x51eb   :  { %9816 = vmatpush3.bf16.msra.mxu0 %v7750_v30 }
0x51ec   :  { %9827 = vmatprep.subr.bf16.mxu0 %v10244_v1 }
0x51ed   :  { %v7843_v42 = vpop.permute.xlu0 %7842 }
0x51ee   :  { %9818 = vmatmul.mubr.msk.bf16.vlgmr.msra.gmra.mxu0 %vm295_vm7, %v7695_v5 }
0x51ef   :  { %9828 = vmatpush3.bf16.xpose.msra.mxu0 %v7850_v20  ;;  %9829 = vmatprep.mubr.msk.bf16.mxu0 %vm10245_vm0, %v10244_v1 }
0x51f0   :  { %9839 = vmatprep.subr.bf16.mxu0 %v10244_v1 }
0x51f3   :  { %v10171_v47 = vpop.eup %10170 }
0x51f4   :  { %v7692_v6 = vmul.f32 %v10171_v47, %v10167_v18 }
0x51f6   :  { %v7694_v17 = vpack.c.bf16 %v7692_v6, %v7692_v6  ;;  %9830 = vmatmul.mubr.msk.bf16.vlgmr.msra.gmra.mxu0 %vm295_vm7, %v7843_v42 }
0x51f7   :  { %9841 = vmatprep.mubr.msk.bf16.mxu0 %vm10245_vm0, %v10244_v1 }
0x51f8   :  { %9812 = vmatmul.mubr.msk.bf16.vlgmr.msra.gmra.mxu1 %vm295_vm7, %v7694_v17 }
0x51f9   :  { %9823 = vmatprep.mubr.msk.bf16.mxu1 %vm10245_vm0, %v10244_v1  ;;  %9822 = vmatpush3.bf16.msra.mxu1 %v7797_v44 }
0x51fa   :  { %9833 = vmatprep.subr.bf16.mxu1 %v10244_v1 }
0x52ae   :  { %v7786_v45 = vpop.f32.mrf.mxu0 }
0x52b0   :  { %v9819_v48 = vpop.f32.mrf.mxu0 }
0x52b2   :  { %v7789_v8 = vpop.f32.mrf.mxu0 }
0x52b3   :  { %v8659_v8 = vld [vmem:[#allocation4 + $0x138] ss:$0 sm:$0xff] }
0x52b4   :  { %v9820_v29 = vpop.f32.mrf.mxu0 }
0x52b6   :  { %v7886_v10 = vpop.f32.mrf.mxu0 }
0x52b7   :  { %v7942_v12 = vsel %vm295_vm7, %v7886_v10, -inf }
0x52b8   :  { %v7738_v31 = vpop.f32.mrf.mxu1  ;;  %7943 = vmax.xlane.f32.xlu0 %v7942_v12  ;;  %v9831_v19 = vpop.f32.mrf.mxu0 }
0x52b9   :  { %v7792_v58 = vpack.c.bf16 %v7786_v45, %v7738_v31 }
0x52ba   :  { %v9813_v49 = vpop.f32.mrf.mxu1  ;;  %v7889_v41 = vpop.f32.mrf.mxu0 }
0x52bb   :  { %9824 = vmatmul.mubr.msk.bf16.vlgmr.msra.gmra.mxu1 %vm295_vm7, %v7792_v58 }
0x52bc   :  { %9834 = vmatpush3.bf16.xpose.msra.mxu1 %v7900_v43  ;;  %v7741_v9 = vpop.f32.mrf.mxu1  ;;  %v9832_v53 = vpop.f32.mrf.mxu0  ;;  %9835 = vmatprep.mubr.msk.bf16.mxu1 %vm10245_vm0, %v10244_v1 }
0x52bd   :  { %9845 = vmatprep.subr.bf16.mxu1 %v10244_v1 }
0x52be   :  { %v9814_v37 = vpop.f32.mrf.mxu1 }
0x52c3   :  { %9836 = vmatmul.mubr.msk.bf16.vlgmr.msra.gmra.mxu1 %vm295_vm7, %v7893_v54 }
0x52c4   :  { %9847 = vmatprep.mubr.msk.bf16.mxu1 %vm10245_vm0, %v10244_v1 }
0x5341   :  { %v7944_v4 = vpop.xlane.xlu0 %7943 }
0x5342   :  { %v7948_v16 = vsub.f32 %v7886_v10, %v7944_v4 }
0x5344   :  { %v7950_v32 = vmul.f32 1.442695, %v7948_v16 }
0x5346   :  { %10172 = vpow2.f32 %v7950_v32 }
0x5353   :  { %v10173_v24 = vpop.eup %10172 }
0x5354   :  { %v7954_v60 = vsel %vm295_vm7, %v10173_v24, 0.0 }
0x5355   :  { %7955 = vadd.xlane.f32.xlu0 %v7954_v60 }
0x537b   :  { %v7833_v46 = vpop.f32.mrf.mxu1 }
0x537c   :  { %v7840_v52 = vadd.f32 %v7833_v46, %v7566_v57 }
0x537d   :  { %v9825_v61 = vpop.f32.mrf.mxu1 }
0x537e   :  { %v9946_v61 = vld [vmem:[#allocation2 + $0x1b8] sm:$0xff]  }
0x537f   :  { %v7836_v55 = vpop.f32.mrf.mxu1 }
0x5380   :  { %v7841_v38 = vadd.f32 %v7836_v55, %v7569_v62 }
0x5381   :  { %v9826_v7 = vpop.f32.mrf.mxu1 }
0x5383   :  { %v7936_v0 = vpop.f32.mrf.mxu1 }
0x5384   :  { %v7945_v39 = vsel %vm295_vm7, %v7936_v0, -inf }
0x5385   :  { %7946 = vmax.xlane.f32.xlu1 %v7945_v39  ;;  %v9837_v36 = vpop.f32.mrf.mxu1 }
0x5387   :  { %v7939_v3 = vpop.f32.mrf.mxu1 }
0x5389   :  { %v9838_v14 = vpop.f32.mrf.mxu1 }
0x538a   :  { %v8660_v14 = vld [vmem:[#allocation4 + $0x140] ss:$0 sm:$0xff] }
0x5396   :  { %7966 = vrot.lane.b32.xlu1 %v11472_v56, %s10253_s14 }
0x53de   :  { %v7956_v34 = vpop.xlane.xlu0 %7955 }
0x53df   :  { %10174 = vrcp.f32 %v7956_v34 }
0x53ec   :  { %v10175_v15 = vpop.eup %10174 }
0x53ed   :  { %v7962_v11 = vmul.f32 %v10175_v15, %v10173_v24 }
0x53ef   :  { %v7964_v2 = vpack.c.bf16 %v7962_v11, %v7962_v11 }
0x540e   :  { %v7947_v21 = vpop.xlane.xlu1 %7946 }
0x540f   :  { %v7949_v22 = vsub.f32 %v7936_v0, %v7947_v21 }
0x5411   :  { %v7952_v63 = vmul.f32 1.442695, %v7949_v22  ;;  %v8661_v22 = vld [vmem:[#allocation4 + $0x148] ss:$0 sm:$0xff] }
0x5412   :  { %v7967_v51 = vpop.permute.xlu1 %7966 }
0x5413   :  { %10176 = vpow2.f32 %v7952_v63  ;;  %v7972_v18 = vsel %vm420_vm8, %v7967_v51, 0 }
0x5414   :  { %9840 = vmatpush3.bf16.msra.mxu0 %v7972_v18 }
0x5415   :  { %9851 = vmatprep.subr.bf16.mxu0 %v10244_v1 }
0x5417   :  { %9842 = vmatmul.mubr.msk.bf16.vlgmr.msra.gmra.mxu0 %vm295_vm7, %v7964_v2  ;;  %v9947_v2 = vld [vmem:[#allocation2 + $0x1b0] sm:$0xff]  }
0x5418   :  { %9853 = vmatprep.mubr.msk.bf16.mxu0 %vm10245_vm0, %v10244_v1  ;;  %9852 = vmatpush3.bf16.msra.mxu0 %v8067_v26 }
0x5419   :  { %9865 = vmatprep.subr.bf16.mxu0 %v10244_v1 }
0x5420   :  { %v10177_v56 = vpop.eup %10176 }
0x5421   :  { %v7957_v25 = vsel %vm295_vm7, %v10177_v56, 0.0 }
0x5422   :  { %7958 = vadd.xlane.f32.xlu0 %v7957_v25  ;;  %v9949_v25 = vld [vmem:[#allocation2 + $0x1a0] sm:$0xff]  }
0x5438   :  { %8014 = vrot.lane.b32.xlu0 %v11463_v13, %s10253_s14 }
0x54ab   :  { %v7959_v27 = vpop.xlane.xlu0 %7958 }
0x54ac   :  { %10178 = vrcp.f32 %v7959_v27 }
0x54af   :  { %v8015_v28 = vpop.permute.xlu0 %8014 }
0x54b0   :  { %v8020_v30 = vsel %vm420_vm8, %v8015_v28, 0 }
0x54b1   :  { %9846 = vmatpush3.bf16.msra.mxu1 %v8020_v30 }
0x54b2   :  { %9857 = vmatprep.subr.bf16.mxu1 %v10244_v1 }
0x54b9   :  { %v10179_v50 = vpop.eup %10178 }
0x54ba   :  { %v7963_v5 = vmul.f32 %v10179_v50, %v10177_v56  ;;  %v9948_v56 = vld [vmem:[#allocation2 + $0x1a8] sm:$0xff]  }
0x54bc   :  { %v7965_v20 = vpack.c.bf16 %v7963_v5, %v7963_v5 }
0x54be   :  { %9848 = vmatmul.mubr.msk.bf16.vlgmr.msra.gmra.mxu1 %vm295_vm7, %v7965_v20 }
0x54bf   :  { %9861 = vmatprep.mubr.msk.bf16.mxu1 %vm10245_vm0, %v10244_v1 }
0x54d7   :  { %v8008_v13 = vpop.f32.mrf.mxu0 }
0x54d9   :  { %v9843_v47 = vpop.f32.mrf.mxu0 }
0x54db   :  { %v8011_v6 = vpop.f32.mrf.mxu0 }
0x54dc   :  { %v8666_v6 = vld [vmem:[#allocation4 + $0x158] ss:$0 sm:$0xff] }
0x54dd   :  { %v9844_v42 = vpop.f32.mrf.mxu0 }
0x557e   :  { %v8056_v17 = vpop.f32.mrf.mxu1 }
0x557f   :  { %v8062_v33 = vpack.c.bf16 %v8056_v17, %v8008_v13 }
0x5580   :  { %v9849_v44 = vpop.f32.mrf.mxu1 }
0x5581   :  { %9854 = vmatmul.mubr.msk.bf16.vlgmr.msra.gmra.mxu0 %vm295_vm7, %v8062_v33 }
0x5582   :  { %v8059_v45 = vpop.f32.mrf.mxu1  ;;  %9873 = vmatprep.mubr.msk.bf16.mxu0 %vm10245_vm0, %v10244_v1  ;;  %9866 = vmatpush3.bf16.msra.mxu0 %v9946_v61 }
0x5583   :  { %9867 = vmatprep.subr.bf16.mxu0 %v10244_v1 }
0x5584   :  { %v9850_v48 = vpop.f32.mrf.mxu1 }
0x5586   :  { %9868 = vmatpush3.bf16.msra.mxu0 %v9947_v2  ;;  %v9951_v2 = vld [vmem:[#allocation2 + $0x1c0] sm:$0xff]  }
0x5587   :  { %9869 = vmatprep.subr.bf16.mxu0 %v10244_v1 }
0x558a   :  { %9870 = vmatpush3.bf16.msra.mxu0 %v9948_v56 }
0x558b   :  { %9871 = vmatprep.subr.bf16.mxu0 %v10244_v1 }
0x558e   :  { %9872 = vmatpush3.bf16.msra.mxu0 %v9949_v25 }
0x5641   :  { %v8103_v29 = vpop.f32.mrf.mxu0 }
0x5642   :  { %v8110_v10 = vadd.f32 %v8103_v29, %v7840_v52  ;;  %v9944_v52 = vld [vmem:[#allocation2 + $0x198] sm:$0xff]  }
0x5643   :  { %v9855_v35 = vpop.f32.mrf.mxu0  ;;  %9858 = vmatpush3.bf16.msra.mxu1 %v9944_v52  ;;  %v8673_v52 = vld [vmem:[#allocation4 + $0x168] ss:$0 sm:$0xff] }
0x5644   :  { %v8116_v12 = vadd.f32 %v8659_v8, %v8110_v10  ;;  %9859 = vmatprep.subr.bf16.mxu1 %v10244_v1 }
0x5645   :  { %v8106_v31 = vpop.f32.mrf.mxu0 }
0x5646   :  { %v8111_v19 = vadd.f32 %v8106_v31, %v7841_v38  ;;  %v8118_v58 = vadd.f32 %v8116_v12, %v11474_v23 }
0x5647   :  { %v9856_v49 = vpop.f32.mrf.mxu0 }
0x5648   :  { %v8117_v41 = vadd.f32 %v8659_v8, %v8111_v19  ;;  %v8120_v43 = vsel %vm241_vm4, %v8118_v58, 0.0 }
0x5649   :  { %8121 = vadd.xlane.f32.xlu1 %v8120_v43 }
0x564a   :  { %v8119_v9 = vadd.f32 %v8117_v41, %v11476_v59  ;;  %v9945_v59 = vld [vmem:[#allocation2 + $0x190] sm:$0xff]  }
0x564b   :  { %9860 = vmatpush3.bf16.msra.mxu1 %v9945_v59 }
0x564c   :  { %v8123_v53 = vsel %vm241_vm4, %v8119_v9, 0.0  ;;  %9877 = vmatprep.subr.bf16.mxu1 %v10244_v1 }
0x564d   :  { %8124 = vadd.xlane.f32.xlu0 %v8123_v53 }
0x56d2   :  { %v8122_v37 = vpop.xlane.xlu1 %8121 }
0x56d3   :  { %v8126_v54 = vmul.f32 0.03125, %v8122_v37 }
0x56d5   :  { %v8128_v4 = vsub.f32 %v8118_v58, %v8126_v54 }
0x56d6   :  { %v8125_v16 = vpop.xlane.xlu0 %8124 }
0x56d7   :  { %v8127_v32 = vmul.f32 0.03125, %v8125_v16  ;;  %v8130_v24 = vmul.f32 %v8128_v4, %v8128_v4 }
0x56d9   :  { %v8129_v60 = vsub.f32 %v8119_v9, %v8127_v32  ;;  %v8132_v57 = vsel %vm241_vm4, %v8130_v24, 0.0 }
0x56da   :  { %8133 = vadd.xlane.f32.xlu1 %v8132_v57 }
0x56db   :  { %v8131_v23 = vmul.f32 %v8129_v60, %v8129_v60 }
0x56dd   :  { %v8135_v46 = vsel %vm241_vm4, %v8131_v23, 0.0  ;;  %v8672_v23 = vld [vmem:[#allocation4 + $0x160] ss:$0 sm:$0xff] }
0x56de   :  { %8136 = vadd.xlane.f32.xlu0 %v8135_v46 }
0x5763   :  { %v8134_v62 = vpop.xlane.xlu1 %8133 }
0x5764   :  { %v8138_v55 = vmul.f32 0.03125, %v8134_v62 }
0x5766   :  { %v8140_v38 = vadd.f32 1e-05, %v8138_v55 }
0x5767   :  { %v8137_v7 = vpop.xlane.xlu0 %8136 }
0x5768   :  { %10180 = vrsqrt.f32 %v8140_v38  ;;  %v8139_v0 = vmul.f32 0.03125, %v8137_v7 }
0x576a   :  { %v8141_v39 = vadd.f32 1e-05, %v8139_v0 }
0x576c   :  { %10182 = vrsqrt.f32 %v8141_v39 }
0x5775   :  { %v10181_v36 = vpop.eup %10180 }
0x5776   :  { %v8144_v3 = vmul.f32 %v10181_v36, %v8128_v4 }
0x5778   :  { %v8150_v15 = vmul.f32 %v8660_v14, %v8144_v3 }
0x5779   :  { %v10183_v34 = vpop.eup %10182 }
0x577a   :  { %v8145_v21 = vmul.f32 %v10183_v34, %v8129_v60  ;;  %v8156_v63 = vadd.f32 %v8661_v22, %v8150_v15 }
0x577c   :  { %v8151_v11 = vmul.f32 %v8660_v14, %v8145_v21 }
0x577e   :  { %v8157_v51 = vadd.f32 %v8661_v22, %v8151_v11 }
0x5780   :  { %v8158_v18 = vpack.c.bf16 %v8157_v51, %v8156_v63 }
0x5782   :  { %9862 = vmatmul.mubr.msk.bf16.vlgmr.msra.gmra.mxu1 %vm241_vm4, %v8158_v18  ;;  %v9950_v18 = vld [vmem:[#allocation2 + $0x1c8] sm:$0xff]  }
0x5783   :  { %9881 = vmatprep.mubr.msk.bf16.mxu1 %vm10245_vm0, %v10244_v1  ;;  %9878 = vmatpush3.bf16.msra.mxu1 %v9950_v18 }
0x5784   :  { %9879 = vmatprep.subr.bf16.mxu1 %v10244_v1 }
0x5787   :  { %9880 = vmatpush3.bf16.msra.mxu1 %v9951_v2 }
0x5842   :  { %v8212_v26 = vpop.f32.mrf.mxu1 }
0x5843   :  { %v8213_v28 = vadd.f32 %v8662_v40, %v8212_v26 }
0x5844   :  { %v9863_v27 = vpop.f32.mrf.mxu1 }
0x5845   :  { %v8219_v20 = vmax.f32 %v8213_v28, 0.0 }
0x5846   :  { %v8215_v30 = vpop.f32.mrf.mxu1 }
0x5847   :  { %v8216_v50 = vadd.f32 %v8662_v40, %v8215_v30 }
0x5848   :  { %v9864_v5 = vpop.f32.mrf.mxu1 }
0x5849   :  { %v8220_v13 = vmax.f32 %v8216_v50, 0.0  ;;  %v8674_v5 = vld [vmem:[#allocation4 + $0x170] ss:$0 sm:$0xff] }
0x584b   :  { %v8221_v47 = vpack.c.bf16 %v8220_v13, %v8219_v20 }
0x584d   :  { %9874 = vmatmul.mubr.msk.bf16.vlgmr.msra.gmra.mxu0 %vm94_vm3, %v8221_v47 }
0x590d   :  { %v8287_v42 = vpop.f32.mrf.mxu0 }
0x590e   :  { %v8288_v17 = vadd.f32 %v8666_v6, %v8287_v42 }
0x590f   :  { %v9875_v33 = vpop.f32.mrf.mxu0 }
0x5910   :  { %v8294_v44 = vadd.f32 %v8288_v17, %v8156_v63 }
0x5911   :  { %v8290_v45 = vpop.f32.mrf.mxu0 }
0x5912   :  { %v8291_v48 = vadd.f32 %v8666_v6, %v8290_v45  ;;  %v8296_v8 = vsel %vm241_vm4, %v8294_v44, 0.0  ;;  %v8675_v6 = vld [vmem:[#allocation4 + $0x178] ss:$0 sm:$0xff] }
0x5913   :  { %8297 = vadd.xlane.f32.xlu1 %v8296_v8  ;;  %v9876_v29 = vpop.f32.mrf.mxu0 }
0x5914   :  { %v8295_v10 = vadd.f32 %v8291_v48, %v8157_v51 }
0x5916   :  { %v8299_v35 = vsel %vm241_vm4, %v8295_v10, 0.0 }
0x5917   :  { %8300 = vadd.xlane.f32.xlu0 %v8299_v35 }
0x599c   :  { %v8298_v12 = vpop.xlane.xlu1 %8297 }
0x599d   :  { %v8302_v31 = vmul.f32 0.03125, %v8298_v12 }
0x599f   :  { %v8304_v19 = vsub.f32 %v8294_v44, %v8302_v31  ;;  %v8676_v44 = vld [vmem:[#allocation4 + $0x180] ss:$0 sm:$0xff] }
0x59a0   :  { %v8301_v58 = vpop.xlane.xlu0 %8300 }
0x59a1   :  { %v8303_v49 = vmul.f32 0.03125, %v8301_v58  ;;  %v8306_v41 = vmul.f32 %v8304_v19, %v8304_v19 }
0x59a3   :  { %v8305_v43 = vsub.f32 %v8295_v10, %v8303_v49  ;;  %v8308_v9 = vsel %vm241_vm4, %v8306_v41, 0.0 }
0x59a4   :  { %8309 = vadd.xlane.f32.xlu1 %v8308_v9 }
0x59a5   :  { %v8307_v53 = vmul.f32 %v8305_v43, %v8305_v43 }
0x59a7   :  { %v8311_v37 = vsel %vm241_vm4, %v8307_v53, 0.0 }
0x59a8   :  { %8312 = vadd.xlane.f32.xlu0 %v8311_v37 }
0x5a2d   :  { %v8310_v54 = vpop.xlane.xlu1 %8309 }
0x5a2e   :  { %v8314_v4 = vmul.f32 0.03125, %v8310_v54 }
0x5a30   :  { %v8316_v16 = vadd.f32 1e-05, %v8314_v4 }
0x5a31   :  { %v8313_v32 = vpop.xlane.xlu0 %8312 }
0x5a32   :  { %10184 = vrsqrt.f32 %v8316_v16  ;;  %v8315_v24 = vmul.f32 0.03125, %v8313_v32 }
0x5a34   :  { %v8317_v60 = vadd.f32 1e-05, %v8315_v24 }
0x5a36   :  { %10186 = vrsqrt.f32 %v8317_v60 }
0x5a3f   :  { %v10185_v57 = vpop.eup %10184 }
0x5a40   :  { %v8320_v46 = vmul.f32 %v10185_v57, %v8304_v19 }
0x5a42   :  { %v8326_v59 = vmul.f32 %v8672_v23, %v8320_v46 }
0x5a43   :  { %v10187_v61 = vpop.eup %10186 }
0x5a44   :  { %v8332_v62 = vadd.f32 %v8673_v52, %v8326_v59  ;;  %v8321_v55 = vmul.f32 %v10187_v61, %v8305_v43 }
0x5a46   :  { %v8336_v38 = vsel %vm241_vm4, %v8332_v62, 0.0  ;;  %v8327_v7 = vmul.f32 %v8672_v23, %v8321_v55 }
0x5a47   :  { %8337 = vadd.xlane.f32.xlu1 %v8336_v38 }
0x5a48   :  { %v8333_v0 = vadd.f32 %v8673_v52, %v8327_v7 }
0x5a4a   :  { %v8339_v39 = vsel %vm241_vm4, %v8333_v0, 0.0 }
0x5a4b   :  { %8340 = vadd.xlane.f32.xlu0 %v8339_v39 }
0x5ad0   :  { %v8338_v36 = vpop.xlane.xlu1 %8337 }
0x5ad1   :  { %v8342_v3 = vmul.f32 0.03125, %v8338_v36 }
0x5ad3   :  { %v8344_v14 = vsub.f32 %v8332_v62, %v8342_v3 }
0x5ad4   :  { %v8341_v34 = vpop.xlane.xlu0 %8340 }
0x5ad5   :  { %v8343_v15 = vmul.f32 0.03125, %v8341_v34  ;;  %v8346_v21 = vmul.f32 %v8344_v14, %v8344_v14 }
0x5ad7   :  { %v8345_v22 = vsub.f32 %v8333_v0, %v8343_v15  ;;  %v8348_v11 = vsel %vm241_vm4, %v8346_v21, 0.0 }
0x5ad8   :  { %8349 = vadd.xlane.f32.xlu1 %v8348_v11 }
0x5ad9   :  { %v8347_v63 = vmul.f32 %v8345_v22, %v8345_v22 }
0x5adb   :  { %v8351_v51 = vsel %vm241_vm4, %v8347_v63, 0.0 }
0x5adc   :  { %8352 = vadd.xlane.f32.xlu0 %v8351_v51 }
0x5b61   :  { %v8350_v56 = vpop.xlane.xlu1 %8349 }
0x5b62   :  { %v8354_v25 = vmul.f32 0.03125, %v8350_v56 }
0x5b64   :  { %v8356_v40 = vadd.f32 1e-05, %v8354_v25 }
0x5b65   :  { %v8353_v26 = vpop.xlane.xlu0 %8352 }
0x5b66   :  { %10188 = vrsqrt.f32 %v8356_v40  ;;  %v8355_v27 = vmul.f32 0.03125, %v8353_v26 }
0x5b68   :  { %v8357_v28 = vadd.f32 1e-05, %v8355_v27 }
0x5b6a   :  { %10190 = vrsqrt.f32 %v8357_v28 }
0x5b73   :  { %v10189_v30 = vpop.eup %10188 }
0x5b74   :  { %v8360_v50 = vmul.f32 %v10189_v30, %v8344_v14 }
0x5b76   :  { %v8366_v13 = vmul.f32 %v8674_v5, %v8360_v50 }
0x5b77   :  { %v10191_v20 = vpop.eup %10190 }
0x5b78   :  { %v8361_v47 = vmul.f32 %v10191_v20, %v8345_v22  ;;  %v8372_v17 = vadd.f32 %v8675_v6, %v8366_v13 }
0x5b7a   :  { %v8367_v42 = vmul.f32 %v8674_v5, %v8361_v47 }
0x5b7c   :  { %v8373_v1 = vadd.f32 %v8675_v6, %v8367_v42 }
0x5b7e   :  { %v8379_v33 = vpack.c.bf16 %v8373_v1, %v8372_v17 }
0x5b80   :  { %9882 = vmatmul.mubr.msk.bf16.vlgmr.msra.gmra.mxu1 %vm241_vm4, %v8379_v33 }
0x5c40   :  { %v8433_v45 = vpop.f32.mrf.mxu1 }
0x5c41   :  { %v8434_v48 = vadd.f32 %v8676_v44, %v8433_v45 }
0x5c42   :  { %v9883_v8 = vpop.f32.mrf.mxu1 }
0x5c43   :  { %8440 = vst [vmem:[%s11700_s4] sm:$0xff] %v8434_v48 }
0x5c44   :  { %v8436_v29 = vpop.f32.mrf.mxu1 }
0x5c45   :  { %v8437_v10 = vadd.f32 %v8676_v44, %v8436_v29 }
0x5c46   :  { %v9884_v35 = vpop.f32.mrf.mxu1 }
0x5c47   :  { %8441 = vst [vmem:[%s11700_s4 + $0x8] sm:$0xff] %v8437_v10 }
0x5c48   :  { %8446 = vsyncpa [#allocation3], 1 }
0x5c49   :  { %8447 = vsyncpa [#allocation5], 1 }

</bundles_post_ra>
